<compile_context>
chip_gen: v5e
topology: v5e:2x2
jax: 0.10.0
libtpu: 0.0.40
codegen_flags: <defaults>
</compile_context>

<pallas_src>
import functools

import jax
import jax.numpy as jnp
from jax import lax
from jax.experimental import pallas as pl
from jax.experimental.pallas import tpu as pltpu

# ----------------------------- model hyperparams -----------------------------
EMBED_DIM = 96          # MViTv2-S first-stage embed dim
NUM_HEADS = 2
HEAD_DIM = EMBED_DIM // NUM_HEADS        # 48
MLP_DIM = 4 * EMBED_DIM                  # 384 (already a 128 multiple)
DEPTH = 2
NUM_CLASSES = 400       # Kinetics-400 head
PATCH_T, PATCH_H, PATCH_W = 2, 4, 4
LN_EPS = 1e-6           # MViT uses partial(nn.LayerNorm, eps=1e-6)

# ------------------------------ padded lane dims ------------------------------
D_PAD = 128                              # embed 96  -> 128 lanes
DH_PAD = 64                              # head  48  -> 64 lanes (own tensor per head)
NC_PAD = 512                             # classes 400 -> 512 lanes


def _round_up(x, m):
    return (x + m - 1) // m * m


# ---------------------------- fused Pallas kernel -----------------------------
def _fused_model_kernel(
        patches_ref, add_ref, patch_w_ref,
        qkv_w_ref, qkv_b_ref, proj_w_ref, proj_b_ref,
        fc1_w_ref, fc1_b_ref, fc2_w_ref, fc2_b_ref,
        head_w_ref, head_b_ref,
        logits_ref, *, n_real):
    """Whole ViT forward for one batch element; everything stays in VMEM."""
    f32 = jnp.float32
    bf16 = jnp.bfloat16
    n_pad = add_ref.shape[0]

    # Masks: real feature lanes (for the two-pass LN) and real key tokens.
    lane_mask = (lax.broadcasted_iota(jnp.int32, (1, D_PAD), 1)
                 < EMBED_DIM).astype(f32)
    key_mask = lax.broadcasted_iota(jnp.int32, (1, n_pad), 1) < n_real

    def ln(x):
        # Two-pass LN over the REAL width; padded lanes are zeroed so they
        # contribute nothing to the variance and stay zero in the output.
        # gamma/beta are folded into the following matmul weights at pad time.
        mean = jnp.sum(x, axis=-1, keepdims=True) * (1.0 / EMBED_DIM)
        cent = (x - mean) * lane_mask
        var = jnp.sum(cent * cent, axis=-1, keepdims=True) * (1.0 / EMBED_DIM)
        return cent * lax.rsqrt(var + LN_EPS)

    # --- patch embed; cls token + pos embed + patch bias folded into `add` ---
    tok = jnp.dot(patches_ref[0], patch_w_ref[...],
                  preferred_element_type=f32) + add_ref[...]

    for d in range(DEPTH):                               # static unroll
        # ---------------- multi-head self-attention ----------------
        h = ln(tok).astype(bf16)                         # [n_pad, 128] bf16
        base = d * 3 * NUM_HEADS
        attn = None
        for hh in range(NUM_HEADS):                      # static unroll
            q_i = base + hh
            k_i = base + NUM_HEADS + hh
            v_i = base + 2 * NUM_HEADS + hh
            # 1/sqrt(HEAD_DIM) is pre-folded into the Q weight & bias.
            q = jnp.dot(h, qkv_w_ref[q_i],
                        preferred_element_type=f32) + qkv_b_ref[q_i]
            k = jnp.dot(h, qkv_w_ref[k_i],
                        preferred_element_type=f32) + qkv_b_ref[k_i]
            v = jnp.dot(h, qkv_w_ref[v_i],
                        preferred_element_type=f32) + qkv_b_ref[v_i]
            # q @ k^T without explicit transpose: contract last dims of both.
            s = lax.dot_general(q.astype(bf16), k.astype(bf16),
                                (((1,), (1,)), ((), ())),
                                preferred_element_type=f32)
            s = jnp.where(key_mask, s, jnp.float32(-1e30))   # mask padded keys
            m = jnp.max(s, axis=-1, keepdims=True)
            p = jnp.exp(s - m)
            p = p * pl.reciprocal(jnp.sum(p, axis=-1, keepdims=True),
                                  approx=True)
            ctx = jnp.dot(p.astype(bf16), v.astype(bf16),
                          preferred_element_type=f32)        # [n_pad, 64]
            contrib = jnp.dot(ctx.astype(bf16),
                              proj_w_ref[d * NUM_HEADS + hh],
                              preferred_element_type=f32)    # [n_pad, 128]
            attn = contrib if attn is None else attn + contrib
        tok = tok + attn + proj_b_ref[d]

        # --------------------------- MLP ----------------------------
        h = ln(tok).astype(bf16)
        h1 = jnp.dot(h, fc1_w_ref[d],
                     preferred_element_type=f32) + fc1_b_ref[d]
        h1 = jax.nn.gelu(h1, approximate=True)
        m2 = jnp.dot(h1.astype(bf16), fc2_w_ref[d],
                     preferred_element_type=f32) + fc2_b_ref[d]
        tok = tok + m2

    # Final LN + classification head on the cls token (row 0).  Use a
    # sublane-aligned 8-row slab and keep only row 0 of the result.
    cls8 = ln(tok[0:8, :]).astype(bf16)
    logits8 = jnp.dot(cls8, head_w_ref[...],
                      preferred_element_type=f32) + head_b_ref[...]
    logits_ref[0] = logits8[0:1, :].astype(logits_ref.dtype)


@jax.jit
def _forward_impl(padded, x):
    """patchify + pad + single fused pallas_call (all under one jit)."""
    patches = patchify(x)                                  # [B, Np, patch_dim]
    B, np_tokens, pd = patches.shape
    n_real = np_tokens + 1                                 # +cls token
    n_pad = padded["add"].shape[0]
    pd_pad = padded["patch_w"].shape[0]
    if 1 + np_tokens > n_pad or pd > pd_pad:
        raise ValueError("padded params do not match the input shape")

    # Patch tokens live at rows 1..Np (row 0 is the cls token), zero-padded.
    pp = jnp.zeros((B, n_pad, pd_pad), jnp.bfloat16)
    pp = pp.at[:, 1:1 + np_tokens, :pd].set(patches.astype(jnp.bfloat16))

    def full(shape):
        zeros = (0,) * len(shape)
        return pl.BlockSpec(shape, lambda b, z=zeros: z)

    kernel = functools.partial(_fused_model_kernel, n_real=n_real)
    logits_pad = pl.pallas_call(
        kernel,
        out_shape=jax.ShapeDtypeStruct((B, 1, NC_PAD), jnp.float32),
        grid=(B,),
        in_specs=[
            pl.BlockSpec((1, n_pad, pd_pad), lambda b: (b, 0, 0)),   # patches
            full((n_pad, D_PAD)),                      # add (cls+pos+patch_b)
            full((pd_pad, D_PAD)),                     # patch_w
            full((DEPTH * 3 * NUM_HEADS, D_PAD, DH_PAD)),   # per-head qkv_w
            full((DEPTH * 3 * NUM_HEADS, 1, DH_PAD)),       # per-head qkv_b
            full((DEPTH * NUM_HEADS, DH_PAD, D_PAD)),       # per-head proj_w
            full((DEPTH, 1, D_PAD)),                        # proj_b
            full((DEPTH, D_PAD, MLP_DIM)), full((DEPTH, 1, MLP_DIM)),  # fc1
            full((DEPTH, MLP_DIM, D_PAD)), full((DEPTH, 1, D_PAD)),    # fc2
            full((D_PAD, NC_PAD)), full((1, NC_PAD)),  # head (final LN folded)
        ],
        out_specs=pl.BlockSpec((1, 1, NC_PAD), lambda b: (b, 0, 0)),
        compiler_params=pltpu.CompilerParams(
            dimension_semantics=("parallel",)),        # v7x: batch on 2 TCs
    )(
        pp, padded["add"], padded["patch_w"],
        padded["qkv_w"], padded["qkv_b"], padded["proj_w"], padded["proj_b"],
        padded["fc1_w"], padded["fc1_b"], padded["fc2_w"], padded["fc2_b"],
        padded["head_w"], padded["head_b"],
    )
    return logits_pad[:, 0, :NUM_CLASSES]


# ------------------------------ parameter init --------------------------------
def init_params(key, in_chans, num_tokens):
    patch_dim = in_chans * PATCH_T * PATCH_H * PATCH_W
    keys = iter(jax.random.split(key, 128))

    def w(shape, scale=0.02):
        return (scale * jax.random.normal(next(keys), shape)).astype(jnp.float32)

    def gamma(shape):
        return (1.0 + 0.1 * jax.random.normal(next(keys), shape)).astype(jnp.float32)

    params = {
        "patch_w": w((patch_dim, EMBED_DIM)),
        "patch_b": w((EMBED_DIM,)),
        "cls_token": w((1, 1, EMBED_DIM)),
        "pos_embed": w((1, num_tokens + 1, EMBED_DIM)),
        "ln_f_g": gamma((EMBED_DIM,)),
        "ln_f_b": w((EMBED_DIM,)),
        "head_w": w((EMBED_DIM, NUM_CLASSES)),
        "head_b": w((NUM_CLASSES,)),
        "blocks": [],
    }
    for _ in range(DEPTH):
        params["blocks"].append({
            "ln1_g": gamma((EMBED_DIM,)),
            "ln1_b": w((EMBED_DIM,)),
            "qkv_w": w((EMBED_DIM, 3 * EMBED_DIM)),
            "qkv_b": w((3 * EMBED_DIM,)),
            "proj_w": w((EMBED_DIM, EMBED_DIM)),
            "proj_b": w((EMBED_DIM,)),
            "ln2_g": gamma((EMBED_DIM,)),
            "ln2_b": w((EMBED_DIM,)),
            "fc1_w": w((EMBED_DIM, MLP_DIM)),
            "fc1_b": w((MLP_DIM,)),
            "fc2_w": w((MLP_DIM, EMBED_DIM)),
            "fc2_b": w((EMBED_DIM,)),
        })
    return params


def pad_params(params, *, n_pad, pd_pad):
    """One-time: fold LN gamma/beta + attention scale into the matmul weights,
    zero-pad to lane-dense shapes, split heads along a leading axis, cast the
    matmul weights to bf16 (biases stay f32)."""
    f32, bf16 = jnp.float32, jnp.bfloat16
    scale = 1.0 / float(HEAD_DIM) ** 0.5

    def pad2(w_, rows, cols, dtype):
        return jnp.pad(w_, ((0, rows - w_.shape[0]),
                            (0, cols - w_.shape[1]))).astype(dtype)

    def row(v, cols, dtype):
        return jnp.pad(v, (0, cols - v.shape[0])).reshape(1, cols).astype(dtype)

    def fold_ln(g, b, w_, b_):
        # (y * g + b) @ w + b_  ==  y @ (g[:, None] * w) + (b @ w + b_)
        return g[:, None] * w_, b_ + b @ w_

    def qkv_split(blk):
        w_, b_ = fold_ln(blk["ln1_g"], blk["ln1_b"], blk["qkv_w"], blk["qkv_b"])
        w_ = w_.at[:, :EMBED_DIM].multiply(scale)        # fold 1/sqrt(dh) into Q
        b_ = b_.at[:EMBED_DIM].multiply(scale)
        w4 = w_.reshape(EMBED_DIM, 3, NUM_HEADS, HEAD_DIM)
        w4 = jnp.pad(w4, ((0, D_PAD - EMBED_DIM), (0, 0), (0, 0),
                          (0, DH_PAD - HEAD_DIM)))
        w4 = jnp.transpose(w4, (1, 2, 0, 3)).reshape(3 * NUM_HEADS, D_PAD, DH_PAD)
        b3 = jnp.pad(b_.reshape(3, NUM_HEADS, HEAD_DIM),
                     ((0, 0), (0, 0), (0, DH_PAD - HEAD_DIM)))
        b3 = b3.reshape(3 * NUM_HEADS, 1, DH_PAD)
        return w4.astype(bf16), b3.astype(f32)

    def proj_split(w_):
        w3 = w_.reshape(NUM_HEADS, HEAD_DIM, EMBED_DIM)
        w3 = jnp.pad(w3, ((0, 0), (0, DH_PAD - HEAD_DIM),
                          (0, D_PAD - EMBED_DIM)))
        return w3.astype(bf16)                           # (H, DH_PAD, D_PAD)

    def fc1_fold(blk):
        w_, b_ = fold_ln(blk["ln2_g"], blk["ln2_b"], blk["fc1_w"], blk["fc1_b"])
        return pad2(w_, D_PAD, MLP_DIM, bf16), row(b_, MLP_DIM, f32)

    blocks = params["blocks"]
    qkv = [qkv_split(b) for b in blocks]
    fc1 = [fc1_fold(b) for b in blocks]

    np_tokens = params["pos_embed"].shape[1] - 1
    # Additive term: row 0 = cls_token + pos[0]; rows 1..Np = patch_b + pos[i].
    add = jnp.zeros((n_pad, D_PAD), f32)
    add = add.at[0, :EMBED_DIM].set(params["cls_token"][0, 0]
                                    + params["pos_embed"][0, 0])
    add = add.at[1:1 + np_tokens, :EMBED_DIM].set(
        params["pos_embed"][0, 1:] + params["patch_b"][None, :])

    head_w, head_b = fold_ln(params["ln_f_g"], params["ln_f_b"],
                             params["head_w"], params["head_b"])

    return {
        "add": add,
        "patch_w": pad2(params["patch_w"], pd_pad, D_PAD, bf16),
        "qkv_w": jnp.concatenate([q[0] for q in qkv], axis=0),
        "qkv_b": jnp.concatenate([q[1] for q in qkv], axis=0),
        "proj_w": jnp.concatenate([proj_split(b["proj_w"]) for b in blocks],
                                  axis=0),
        "proj_b": jnp.stack([row(b["proj_b"], D_PAD, f32) for b in blocks]),
        "fc1_w": jnp.stack([f[0] for f in fc1]),
        "fc1_b": jnp.stack([f[1] for f in fc1]),
        "fc2_w": jnp.stack([pad2(b["fc2_w"], MLP_DIM, D_PAD, bf16)
                            for b in blocks]),
        "fc2_b": jnp.stack([row(b["fc2_b"], D_PAD, f32) for b in blocks]),
        "head_w": pad2(head_w, D_PAD, NC_PAD, bf16),
        "head_b": row(head_b, NC_PAD, f32),
    }


def prepare_padded_params(params, *, in_chans, num_tokens):
    patch_dim = in_chans * PATCH_T * PATCH_H * PATCH_W
    n_real = num_tokens + 1
    n_pad = _round_up(max(n_real, 8), 8)       # 65 -> 72 (sublane multiple of 8)
    pd_pad = _round_up(patch_dim, 128)
    return pad_params(params, n_pad=n_pad, pd_pad=pd_pad)


# --------------------------------- forward ------------------------------------
def patchify(x):
    """NCTHW video -> [B, N, C*pt*ph*pw] non-overlapping 3D patches."""
    B, C, T, H, W = x.shape
    x = x.reshape(B, C, T // PATCH_T, PATCH_T, H // PATCH_H, PATCH_H,
                  W // PATCH_W, PATCH_W)
    x = x.transpose(0, 2, 4, 6, 1, 3, 5, 7)
    return x.reshape(B, (T // PATCH_T) * (H // PATCH_H) * (W // PATCH_W),
                     C * PATCH_T * PATCH_H * PATCH_W)


def feature_modelv2_forward(padded_params, x):
    """Mimics `feature_modelv2.forward`: x -> (self.feature_model([x]), [8,7,7])."""
    pathways = [x]                      # MViT takes a single-pathway list
    logits = _forward_impl(padded_params, pathways[0])   # [B, 400]
    return logits, [8, 7, 7]


# ------------------------- pure-JAX reference (check) --------------------------
def reference_forward(params, x):
    B = x.shape[0]
    tokens = patchify(x)
    _, np_tokens, pd = tokens.shape
    tok = tokens.reshape(B * np_tokens, pd) @ params["patch_w"] + params["patch_b"]
    tok = tok.reshape(B, np_tokens, EMBED_DIM)
    cls = jnp.broadcast_to(params["cls_token"], (B, 1, EMBED_DIM))
    tok = jnp.concatenate([cls, tok], axis=1) + params["pos_embed"]
    N = tok.shape[1]
    scale = 1.0 / float(HEAD_DIM) ** 0.5

    def ln(v, g, b):
        mean = jnp.mean(v, -1, keepdims=True)
        var = jnp.mean((v - mean) ** 2, -1, keepdims=True)
        return (v - mean) * lax.rsqrt(var + LN_EPS) * g + b

    for blk in params["blocks"]:
        h = ln(tok, blk["ln1_g"], blk["ln1_b"])
        qkv = h @ blk["qkv_w"] + blk["qkv_b"]
        qkv = qkv.reshape(B, N, 3, NUM_HEADS, HEAD_DIM)
        q = qkv[:, :, 0].transpose(0, 2, 1, 3)
        k = qkv[:, :, 1].transpose(0, 2, 1, 3)
        v = qkv[:, :, 2].transpose(0, 2, 1, 3)
        s = jnp.einsum("bhnd,bhmd->bhnm", q, k) * scale
        p = jax.nn.softmax(s, axis=-1)
        ctx = jnp.einsum("bhnm,bhmd->bhnd", p, v)
        ctx = ctx.transpose(0, 2, 1, 3).reshape(B, N, EMBED_DIM)
        tok = tok + (ctx @ blk["proj_w"] + blk["proj_b"])
        h = ln(tok, blk["ln2_g"], blk["ln2_b"])
        h1 = jax.nn.gelu(h @ blk["fc1_w"] + blk["fc1_b"], approximate=True)
        tok = tok + (h1 @ blk["fc2_w"] + blk["fc2_b"])
    h = ln(tok, params["ln_f_g"], params["ln_f_b"])
    return h[:, 0, :] @ params["head_w"] + params["head_b"]


# ----------------------------------- main --------------------------------------
if __name__ == "__main__":
    key = jax.random.PRNGKey(0)
    k_x, k_p = jax.random.split(key)

    # small video clip: batch=2, channels=3, frames=8, spatial=16x16 (NCTHW)
    x = jax.random.normal(k_x, (2, 3, 8, 16, 16), dtype=jnp.float32)

    num_tokens = (8 // PATCH_T) * (16 // PATCH_H) * (16 // PATCH_W)
    params = init_params(k_p, in_chans=3, num_tokens=num_tokens)

    # One-time parameter padding/folding — hoisted out of the per-call path.
    padded = prepare_padded_params(params, in_chans=3, num_tokens=num_tokens)
    padded = jax.tree_util.tree_map(jax.device_put, padded)

    logits, thw = feature_modelv2_forward(padded, x)
    logits = jax.block_until_ready(logits)

    assert logits.shape == (2, NUM_CLASSES), logits.shape
    assert thw == [8, 7, 7]

    ref = reference_forward(params, x)
    err = float(jnp.max(jnp.abs(logits - ref)))
    assert err < 3e-2, f"max abs error vs reference: {err}"
    print("KERNEL_OK")
</pallas_src>

<mosaic_0001>
module attributes {stable_mosaic.version = 11 : i64} {
  func.func @_fused_model_kernel(%arg0: i32, %arg1: memref<1x72x128xbf16, #tpu.memory_space<vmem>>, %arg2: memref<72x128xf32, #tpu.memory_space<vmem>>, %arg3: memref<128x128xbf16, #tpu.memory_space<vmem>>, %arg4: memref<12x128x64xbf16, #tpu.memory_space<vmem>>, %arg5: memref<12x1x64xf32, #tpu.memory_space<vmem>>, %arg6: memref<4x64x128xbf16, #tpu.memory_space<vmem>>, %arg7: memref<2x1x128xf32, #tpu.memory_space<vmem>>, %arg8: memref<2x128x384xbf16, #tpu.memory_space<vmem>>, %arg9: memref<2x1x384xf32, #tpu.memory_space<vmem>>, %arg10: memref<2x384x128xbf16, #tpu.memory_space<vmem>>, %arg11: memref<2x1x128xf32, #tpu.memory_space<vmem>>, %arg12: memref<128x512xbf16, #tpu.memory_space<vmem>>, %arg13: memref<1x512xf32, #tpu.memory_space<vmem>>, %arg14: memref<1x1x512xf32, #tpu.memory_space<vmem>>) attributes {dimension_semantics = [#tpu.dimension_semantics<parallel>], iteration_bounds = array<i64: 2>, scalar_prefetch = 0 : i64, scratch_operands = 0 : i64, tpu.core_type = #tpu.core_type<tc>, window_params = [{transform_indices = @transform_0, window_bounds = array<i64: 1, 72, 128>}, {pipeline_mode = #tpu.pipeline_mode<synchronous>, transform_indices = @transform_1, window_bounds = array<i64: 72, 128>}, {pipeline_mode = #tpu.pipeline_mode<synchronous>, transform_indices = @transform_2, window_bounds = array<i64: 128, 128>}, {pipeline_mode = #tpu.pipeline_mode<synchronous>, transform_indices = @transform_3, window_bounds = array<i64: 12, 128, 64>}, {pipeline_mode = #tpu.pipeline_mode<synchronous>, transform_indices = @transform_4, window_bounds = array<i64: 12, 1, 64>}, {pipeline_mode = #tpu.pipeline_mode<synchronous>, transform_indices = @transform_5, window_bounds = array<i64: 4, 64, 128>}, {pipeline_mode = #tpu.pipeline_mode<synchronous>, transform_indices = @transform_6, window_bounds = array<i64: 2, 1, 128>}, {pipeline_mode = #tpu.pipeline_mode<synchronous>, transform_indices = @transform_7, window_bounds = array<i64: 2, 128, 384>}, {pipeline_mode = #tpu.pipeline_mode<synchronous>, transform_indices = @transform_8, window_bounds = array<i64: 2, 1, 384>}, {pipeline_mode = #tpu.pipeline_mode<synchronous>, transform_indices = @transform_9, window_bounds = array<i64: 2, 384, 128>}, {pipeline_mode = #tpu.pipeline_mode<synchronous>, transform_indices = @transform_10, window_bounds = array<i64: 2, 1, 128>}, {pipeline_mode = #tpu.pipeline_mode<synchronous>, transform_indices = @transform_11, window_bounds = array<i64: 128, 512>}, {pipeline_mode = #tpu.pipeline_mode<synchronous>, transform_indices = @transform_12, window_bounds = array<i64: 1, 512>}, {transform_indices = @transform_13, window_bounds = array<i64: 1, 1, 512>}]} {
    %0 = tpu.iota {dimensions = array<i32: 1>} : vector<1x128xi32>
    %c96_i32 = arith.constant 96 : i32
    %1 = vector.broadcast %c96_i32 : i32 to vector<1x128xi32>
    %2 = arith.cmpi slt, %0, %1 : vector<1x128xi32>
    %3 = arith.extui %2 : vector<1x128xi1> to vector<1x128xi32>
    %4 = arith.sitofp %3 : vector<1x128xi32> to vector<1x128xf32>
    %5 = tpu.iota {dimensions = array<i32: 1>} : vector<1x72xi32>
    %c65_i32 = arith.constant 65 : i32
    %6 = vector.broadcast %c65_i32 : i32 to vector<1x72xi32>
    %7 = arith.cmpi slt, %5, %6 : vector<1x72xi32>
    %c0 = arith.constant 0 : index
    %c0_0 = arith.constant 0 : index
    %c0_1 = arith.constant 0 : index
    %8 = vector.load %arg1[%c0, %c0_0, %c0_1] : memref<1x72x128xbf16, #tpu.memory_space<vmem>>, vector<1x72x128xbf16>
    %9 = vector.shape_cast %8 : vector<1x72x128xbf16> to vector<72x128xbf16>
    %c0_2 = arith.constant 0 : index
    %c0_3 = arith.constant 0 : index
    %10 = vector.load %arg3[%c0_2, %c0_3] : memref<128x128xbf16, #tpu.memory_space<vmem>>, vector<128x128xbf16>
    %cst = arith.constant dense<0.000000e+00> : vector<72x128xf32>
    %11 = tpu.matmul %9, %10, %cst {dimension_numbers = #tpu.dot_dimension_numbers<[1], [0], [0], [1], [0, 0, 1, 1], [], []>} : vector<72x128xbf16>, vector<128x128xbf16>, vector<72x128xf32> -> vector<72x128xf32>
    %c0_4 = arith.constant 0 : index
    %c0_5 = arith.constant 0 : index
    %12 = vector.load %arg2[%c0_4, %c0_5] : memref<72x128xf32, #tpu.memory_space<vmem>>, vector<72x128xf32>
    %13 = arith.addf %11, %12 : vector<72x128xf32>
    %cst_6 = arith.constant dense<0.000000e+00> : vector<72xf32>
    %14 = vector.multi_reduction <add>, %13, %cst_6 [1] : vector<72x128xf32> to vector<72xf32>
    %15 = vector.shape_cast %14 : vector<72xf32> to vector<72x1xf32>
    %cst_7 = arith.constant 0.010416667 : f32
    %16 = vector.broadcast %cst_7 : f32 to vector<72x1xf32>
    %17 = arith.mulf %15, %16 : vector<72x1xf32>
    %18 = vector.broadcast %17 : vector<72x1xf32> to vector<72x128xf32>
    %19 = arith.subf %13, %18 : vector<72x128xf32>
    %20 = vector.broadcast %4 : vector<1x128xf32> to vector<72x128xf32>
    %21 = arith.mulf %19, %20 : vector<72x128xf32>
    %22 = arith.mulf %21, %21 : vector<72x128xf32>
    %cst_8 = arith.constant dense<0.000000e+00> : vector<72xf32>
    %23 = vector.multi_reduction <add>, %22, %cst_8 [1] : vector<72x128xf32> to vector<72xf32>
    %24 = vector.shape_cast %23 : vector<72xf32> to vector<72x1xf32>
    %cst_9 = arith.constant 0.010416667 : f32
    %25 = vector.broadcast %cst_9 : f32 to vector<72x1xf32>
    %26 = arith.mulf %24, %25 : vector<72x1xf32>
    %cst_10 = arith.constant 9.99999997E-7 : f32
    %27 = vector.broadcast %cst_10 : f32 to vector<72x1xf32>
    %28 = arith.addf %26, %27 : vector<72x1xf32>
    %29 = math.rsqrt %28 : vector<72x1xf32>
    %30 = vector.broadcast %29 : vector<72x1xf32> to vector<72x128xf32>
    %31 = arith.mulf %21, %30 : vector<72x128xf32>
    %32 = arith.truncf %31 : vector<72x128xf32> to vector<72x128xbf16>
    %c0_11 = arith.constant 0 : index
    %c0_12 = arith.constant 0 : index
    %c0_13 = arith.constant 0 : index
    %33 = vector.load %arg4[%c0_11, %c0_12, %c0_13] : memref<12x128x64xbf16, #tpu.memory_space<vmem>>, vector<1x128x64xbf16>
    %34 = vector.shape_cast %33 : vector<1x128x64xbf16> to vector<128x64xbf16>
    %cst_14 = arith.constant dense<0.000000e+00> : vector<72x64xf32>
    %35 = tpu.matmul %32, %34, %cst_14 {dimension_numbers = #tpu.dot_dimension_numbers<[1], [0], [0], [1], [0, 0, 1, 1], [], []>} : vector<72x128xbf16>, vector<128x64xbf16>, vector<72x64xf32> -> vector<72x64xf32>
    %c0_15 = arith.constant 0 : index
    %c0_16 = arith.constant 0 : index
    %c0_17 = arith.constant 0 : index
    %36 = vector.load %arg5[%c0_15, %c0_16, %c0_17] : memref<12x1x64xf32, #tpu.memory_space<vmem>>, vector<1x1x64xf32>
    %37 = vector.shape_cast %36 : vector<1x1x64xf32> to vector<1x64xf32>
    %38 = vector.broadcast %37 : vector<1x64xf32> to vector<72x64xf32>
    %39 = arith.addf %35, %38 : vector<72x64xf32>
    %c2 = arith.constant 2 : index
    %c0_18 = arith.constant 0 : index
    %c0_19 = arith.constant 0 : index
    %40 = vector.load %arg4[%c2, %c0_18, %c0_19] : memref<12x128x64xbf16, #tpu.memory_space<vmem>>, vector<1x128x64xbf16>
    %41 = vector.shape_cast %40 : vector<1x128x64xbf16> to vector<128x64xbf16>
    %cst_20 = arith.constant dense<0.000000e+00> : vector<72x64xf32>
    %42 = tpu.matmul %32, %41, %cst_20 {dimension_numbers = #tpu.dot_dimension_numbers<[1], [0], [0], [1], [0, 0, 1, 1], [], []>} : vector<72x128xbf16>, vector<128x64xbf16>, vector<72x64xf32> -> vector<72x64xf32>
    %c2_21 = arith.constant 2 : index
    %c0_22 = arith.constant 0 : index
    %c0_23 = arith.constant 0 : index
    %43 = vector.load %arg5[%c2_21, %c0_22, %c0_23] : memref<12x1x64xf32, #tpu.memory_space<vmem>>, vector<1x1x64xf32>
    %44 = vector.shape_cast %43 : vector<1x1x64xf32> to vector<1x64xf32>
    %45 = vector.broadcast %44 : vector<1x64xf32> to vector<72x64xf32>
    %46 = arith.addf %42, %45 : vector<72x64xf32>
    %c4 = arith.constant 4 : index
    %c0_24 = arith.constant 0 : index
    %c0_25 = arith.constant 0 : index
    %47 = vector.load %arg4[%c4, %c0_24, %c0_25] : memref<12x128x64xbf16, #tpu.memory_space<vmem>>, vector<1x128x64xbf16>
    %48 = vector.shape_cast %47 : vector<1x128x64xbf16> to vector<128x64xbf16>
    %cst_26 = arith.constant dense<0.000000e+00> : vector<72x64xf32>
    %49 = tpu.matmul %32, %48, %cst_26 {dimension_numbers = #tpu.dot_dimension_numbers<[1], [0], [0], [1], [0, 0, 1, 1], [], []>} : vector<72x128xbf16>, vector<128x64xbf16>, vector<72x64xf32> -> vector<72x64xf32>
    %c4_27 = arith.constant 4 : index
    %c0_28 = arith.constant 0 : index
    %c0_29 = arith.constant 0 : index
    %50 = vector.load %arg5[%c4_27, %c0_28, %c0_29] : memref<12x1x64xf32, #tpu.memory_space<vmem>>, vector<1x1x64xf32>
    %51 = vector.shape_cast %50 : vector<1x1x64xf32> to vector<1x64xf32>
    %52 = vector.broadcast %51 : vector<1x64xf32> to vector<72x64xf32>
    %53 = arith.addf %49, %52 : vector<72x64xf32>
    %54 = arith.truncf %39 : vector<72x64xf32> to vector<72x64xbf16>
    %55 = arith.truncf %46 : vector<72x64xf32> to vector<72x64xbf16>
    %cst_30 = arith.constant dense<0.000000e+00> : vector<72x72xf32>
    %56 = tpu.matmul %54, %55, %cst_30 {dimension_numbers = #tpu.dot_dimension_numbers<[1], [1], [0], [0], [0, 0, 1, 0], [], []>} : vector<72x64xbf16>, vector<72x64xbf16>, vector<72x72xf32> -> vector<72x72xf32>
    %cst_31 = arith.constant -1.000000e+30 : f32
    %57 = vector.shape_cast %7 : vector<1x72xi1> to vector<1x72xi1>
    %58 = vector.broadcast %57 : vector<1x72xi1> to vector<72x72xi1>
    %59 = vector.broadcast %cst_31 : f32 to vector<72x72xf32>
    %60 = arith.select %58, %56, %59 : vector<72x72xi1>, vector<72x72xf32>
    %cst_32 = arith.constant dense<0xFF800000> : vector<72xf32>
    %61 = vector.multi_reduction <maximumf>, %60, %cst_32 [1] : vector<72x72xf32> to vector<72xf32>
    %62 = vector.shape_cast %61 : vector<72xf32> to vector<72x1xf32>
    %63 = vector.broadcast %62 : vector<72x1xf32> to vector<72x72xf32>
    %64 = arith.subf %60, %63 : vector<72x72xf32>
    %65 = math.exp %64 : vector<72x72xf32>
    %cst_33 = arith.constant dense<0.000000e+00> : vector<72xf32>
    %66 = vector.multi_reduction <add>, %65, %cst_33 [1] : vector<72x72xf32> to vector<72xf32>
    %67 = vector.shape_cast %66 : vector<72xf32> to vector<72x1xf32>
    %68 = tpu.reciprocal %67 {approx = true} : vector<72x1xf32> -> vector<72x1xf32>
    %69 = vector.broadcast %68 : vector<72x1xf32> to vector<72x72xf32>
    %70 = arith.mulf %65, %69 : vector<72x72xf32>
    %71 = arith.truncf %70 : vector<72x72xf32> to vector<72x72xbf16>
    %72 = arith.truncf %53 : vector<72x64xf32> to vector<72x64xbf16>
    %cst_34 = arith.constant dense<0.000000e+00> : vector<72x64xf32>
    %73 = tpu.matmul %71, %72, %cst_34 {dimension_numbers = #tpu.dot_dimension_numbers<[1], [0], [0], [1], [0, 0, 1, 1], [], []>} : vector<72x72xbf16>, vector<72x64xbf16>, vector<72x64xf32> -> vector<72x64xf32>
    %74 = arith.truncf %73 : vector<72x64xf32> to vector<72x64xbf16>
    %c0_35 = arith.constant 0 : index
    %c0_36 = arith.constant 0 : index
    %c0_37 = arith.constant 0 : index
    %75 = vector.load %arg6[%c0_35, %c0_36, %c0_37] : memref<4x64x128xbf16, #tpu.memory_space<vmem>>, vector<1x64x128xbf16>
    %76 = vector.shape_cast %75 : vector<1x64x128xbf16> to vector<64x128xbf16>
    %cst_38 = arith.constant dense<0.000000e+00> : vector<72x128xf32>
    %77 = tpu.matmul %74, %76, %cst_38 {dimension_numbers = #tpu.dot_dimension_numbers<[1], [0], [0], [1], [0, 0, 1, 1], [], []>} : vector<72x64xbf16>, vector<64x128xbf16>, vector<72x128xf32> -> vector<72x128xf32>
    %c1 = arith.constant 1 : index
    %c0_39 = arith.constant 0 : index
    %c0_40 = arith.constant 0 : index
    %78 = vector.load %arg4[%c1, %c0_39, %c0_40] : memref<12x128x64xbf16, #tpu.memory_space<vmem>>, vector<1x128x64xbf16>
    %79 = vector.shape_cast %78 : vector<1x128x64xbf16> to vector<128x64xbf16>
    %cst_41 = arith.constant dense<0.000000e+00> : vector<72x64xf32>
    %80 = tpu.matmul %32, %79, %cst_41 {dimension_numbers = #tpu.dot_dimension_numbers<[1], [0], [0], [1], [0, 0, 1, 1], [], []>} : vector<72x128xbf16>, vector<128x64xbf16>, vector<72x64xf32> -> vector<72x64xf32>
    %c1_42 = arith.constant 1 : index
    %c0_43 = arith.constant 0 : index
    %c0_44 = arith.constant 0 : index
    %81 = vector.load %arg5[%c1_42, %c0_43, %c0_44] : memref<12x1x64xf32, #tpu.memory_space<vmem>>, vector<1x1x64xf32>
    %82 = vector.shape_cast %81 : vector<1x1x64xf32> to vector<1x64xf32>
    %83 = vector.broadcast %82 : vector<1x64xf32> to vector<72x64xf32>
    %84 = arith.addf %80, %83 : vector<72x64xf32>
    %c3 = arith.constant 3 : index
    %c0_45 = arith.constant 0 : index
    %c0_46 = arith.constant 0 : index
    %85 = vector.load %arg4[%c3, %c0_45, %c0_46] : memref<12x128x64xbf16, #tpu.memory_space<vmem>>, vector<1x128x64xbf16>
    %86 = vector.shape_cast %85 : vector<1x128x64xbf16> to vector<128x64xbf16>
    %cst_47 = arith.constant dense<0.000000e+00> : vector<72x64xf32>
    %87 = tpu.matmul %32, %86, %cst_47 {dimension_numbers = #tpu.dot_dimension_numbers<[1], [0], [0], [1], [0, 0, 1, 1], [], []>} : vector<72x128xbf16>, vector<128x64xbf16>, vector<72x64xf32> -> vector<72x64xf32>
    %c3_48 = arith.constant 3 : index
    %c0_49 = arith.constant 0 : index
    %c0_50 = arith.constant 0 : index
    %88 = vector.load %arg5[%c3_48, %c0_49, %c0_50] : memref<12x1x64xf32, #tpu.memory_space<vmem>>, vector<1x1x64xf32>
    %89 = vector.shape_cast %88 : vector<1x1x64xf32> to vector<1x64xf32>
    %90 = vector.broadcast %89 : vector<1x64xf32> to vector<72x64xf32>
    %91 = arith.addf %87, %90 : vector<72x64xf32>
    %c5 = arith.constant 5 : index
    %c0_51 = arith.constant 0 : index
    %c0_52 = arith.constant 0 : index
    %92 = vector.load %arg4[%c5, %c0_51, %c0_52] : memref<12x128x64xbf16, #tpu.memory_space<vmem>>, vector<1x128x64xbf16>
    %93 = vector.shape_cast %92 : vector<1x128x64xbf16> to vector<128x64xbf16>
    %cst_53 = arith.constant dense<0.000000e+00> : vector<72x64xf32>
    %94 = tpu.matmul %32, %93, %cst_53 {dimension_numbers = #tpu.dot_dimension_numbers<[1], [0], [0], [1], [0, 0, 1, 1], [], []>} : vector<72x128xbf16>, vector<128x64xbf16>, vector<72x64xf32> -> vector<72x64xf32>
    %c5_54 = arith.constant 5 : index
    %c0_55 = arith.constant 0 : index
    %c0_56 = arith.constant 0 : index
    %95 = vector.load %arg5[%c5_54, %c0_55, %c0_56] : memref<12x1x64xf32, #tpu.memory_space<vmem>>, vector<1x1x64xf32>
    %96 = vector.shape_cast %95 : vector<1x1x64xf32> to vector<1x64xf32>
    %97 = vector.broadcast %96 : vector<1x64xf32> to vector<72x64xf32>
    %98 = arith.addf %94, %97 : vector<72x64xf32>
    %99 = arith.truncf %84 : vector<72x64xf32> to vector<72x64xbf16>
    %100 = arith.truncf %91 : vector<72x64xf32> to vector<72x64xbf16>
    %cst_57 = arith.constant dense<0.000000e+00> : vector<72x72xf32>
    %101 = tpu.matmul %99, %100, %cst_57 {dimension_numbers = #tpu.dot_dimension_numbers<[1], [1], [0], [0], [0, 0, 1, 0], [], []>} : vector<72x64xbf16>, vector<72x64xbf16>, vector<72x72xf32> -> vector<72x72xf32>
    %cst_58 = arith.constant -1.000000e+30 : f32
    %102 = vector.shape_cast %7 : vector<1x72xi1> to vector<1x72xi1>
    %103 = vector.broadcast %102 : vector<1x72xi1> to vector<72x72xi1>
    %104 = vector.broadcast %cst_58 : f32 to vector<72x72xf32>
    %105 = arith.select %103, %101, %104 : vector<72x72xi1>, vector<72x72xf32>
    %cst_59 = arith.constant dense<0xFF800000> : vector<72xf32>
    %106 = vector.multi_reduction <maximumf>, %105, %cst_59 [1] : vector<72x72xf32> to vector<72xf32>
    %107 = vector.shape_cast %106 : vector<72xf32> to vector<72x1xf32>
    %108 = vector.broadcast %107 : vector<72x1xf32> to vector<72x72xf32>
    %109 = arith.subf %105, %108 : vector<72x72xf32>
    %110 = math.exp %109 : vector<72x72xf32>
    %cst_60 = arith.constant dense<0.000000e+00> : vector<72xf32>
    %111 = vector.multi_reduction <add>, %110, %cst_60 [1] : vector<72x72xf32> to vector<72xf32>
    %112 = vector.shape_cast %111 : vector<72xf32> to vector<72x1xf32>
    %113 = tpu.reciprocal %112 {approx = true} : vector<72x1xf32> -> vector<72x1xf32>
    %114 = vector.broadcast %113 : vector<72x1xf32> to vector<72x72xf32>
    %115 = arith.mulf %110, %114 : vector<72x72xf32>
    %116 = arith.truncf %115 : vector<72x72xf32> to vector<72x72xbf16>
    %117 = arith.truncf %98 : vector<72x64xf32> to vector<72x64xbf16>
    %cst_61 = arith.constant dense<0.000000e+00> : vector<72x64xf32>
    %118 = tpu.matmul %116, %117, %cst_61 {dimension_numbers = #tpu.dot_dimension_numbers<[1], [0], [0], [1], [0, 0, 1, 1], [], []>} : vector<72x72xbf16>, vector<72x64xbf16>, vector<72x64xf32> -> vector<72x64xf32>
    %119 = arith.truncf %118 : vector<72x64xf32> to vector<72x64xbf16>
    %c1_62 = arith.constant 1 : index
    %c0_63 = arith.constant 0 : index
    %c0_64 = arith.constant 0 : index
    %120 = vector.load %arg6[%c1_62, %c0_63, %c0_64] : memref<4x64x128xbf16, #tpu.memory_space<vmem>>, vector<1x64x128xbf16>
    %121 = vector.shape_cast %120 : vector<1x64x128xbf16> to vector<64x128xbf16>
    %cst_65 = arith.constant dense<0.000000e+00> : vector<72x128xf32>
    %122 = tpu.matmul %119, %121, %cst_65 {dimension_numbers = #tpu.dot_dimension_numbers<[1], [0], [0], [1], [0, 0, 1, 1], [], []>} : vector<72x64xbf16>, vector<64x128xbf16>, vector<72x128xf32> -> vector<72x128xf32>
    %123 = arith.addf %77, %122 : vector<72x128xf32>
    %124 = arith.addf %13, %123 : vector<72x128xf32>
    %c0_66 = arith.constant 0 : index
    %c0_67 = arith.constant 0 : index
    %c0_68 = arith.constant 0 : index
    %125 = vector.load %arg7[%c0_66, %c0_67, %c0_68] : memref<2x1x128xf32, #tpu.memory_space<vmem>>, vector<1x1x128xf32>
    %126 = vector.shape_cast %125 : vector<1x1x128xf32> to vector<1x128xf32>
    %127 = vector.broadcast %126 : vector<1x128xf32> to vector<72x128xf32>
    %128 = arith.addf %124, %127 : vector<72x128xf32>
    %cst_69 = arith.constant dense<0.000000e+00> : vector<72xf32>
    %129 = vector.multi_reduction <add>, %128, %cst_69 [1] : vector<72x128xf32> to vector<72xf32>
    %130 = vector.shape_cast %129 : vector<72xf32> to vector<72x1xf32>
    %cst_70 = arith.constant 0.010416667 : f32
    %131 = vector.broadcast %cst_70 : f32 to vector<72x1xf32>
    %132 = arith.mulf %130, %131 : vector<72x1xf32>
    %133 = vector.broadcast %132 : vector<72x1xf32> to vector<72x128xf32>
    %134 = arith.subf %128, %133 : vector<72x128xf32>
    %135 = vector.broadcast %4 : vector<1x128xf32> to vector<72x128xf32>
    %136 = arith.mulf %134, %135 : vector<72x128xf32>
    %137 = arith.mulf %136, %136 : vector<72x128xf32>
    %cst_71 = arith.constant dense<0.000000e+00> : vector<72xf32>
    %138 = vector.multi_reduction <add>, %137, %cst_71 [1] : vector<72x128xf32> to vector<72xf32>
    %139 = vector.shape_cast %138 : vector<72xf32> to vector<72x1xf32>
    %cst_72 = arith.constant 0.010416667 : f32
    %140 = vector.broadcast %cst_72 : f32 to vector<72x1xf32>
    %141 = arith.mulf %139, %140 : vector<72x1xf32>
    %cst_73 = arith.constant 9.99999997E-7 : f32
    %142 = vector.broadcast %cst_73 : f32 to vector<72x1xf32>
    %143 = arith.addf %141, %142 : vector<72x1xf32>
    %144 = math.rsqrt %143 : vector<72x1xf32>
    %145 = vector.broadcast %144 : vector<72x1xf32> to vector<72x128xf32>
    %146 = arith.mulf %136, %145 : vector<72x128xf32>
    %147 = arith.truncf %146 : vector<72x128xf32> to vector<72x128xbf16>
    %c0_74 = arith.constant 0 : index
    %c0_75 = arith.constant 0 : index
    %c0_76 = arith.constant 0 : index
    %148 = vector.load %arg8[%c0_74, %c0_75, %c0_76] : memref<2x128x384xbf16, #tpu.memory_space<vmem>>, vector<1x128x384xbf16>
    %149 = vector.shape_cast %148 : vector<1x128x384xbf16> to vector<128x384xbf16>
    %cst_77 = arith.constant dense<0.000000e+00> : vector<72x384xf32>
    %150 = tpu.matmul %147, %149, %cst_77 {dimension_numbers = #tpu.dot_dimension_numbers<[1], [0], [0], [1], [0, 0, 1, 1], [], []>} : vector<72x128xbf16>, vector<128x384xbf16>, vector<72x384xf32> -> vector<72x384xf32>
    %c0_78 = arith.constant 0 : index
    %c0_79 = arith.constant 0 : index
    %c0_80 = arith.constant 0 : index
    %151 = vector.load %arg9[%c0_78, %c0_79, %c0_80] : memref<2x1x384xf32, #tpu.memory_space<vmem>>, vector<1x1x384xf32>
    %152 = vector.shape_cast %151 : vector<1x1x384xf32> to vector<1x384xf32>
    %153 = vector.broadcast %152 : vector<1x384xf32> to vector<72x384xf32>
    %154 = arith.addf %150, %153 : vector<72x384xf32>
    %155 = arith.mulf %154, %154 : vector<72x384xf32>
    %156 = arith.mulf %154, %155 : vector<72x384xf32>
    %cst_81 = arith.constant 4.471500e-02 : f32
    %157 = vector.broadcast %cst_81 : f32 to vector<72x384xf32>
    %158 = arith.mulf %157, %156 : vector<72x384xf32>
    %159 = arith.addf %154, %158 : vector<72x384xf32>
    %cst_82 = arith.constant 0.797884583 : f32
    %160 = vector.broadcast %cst_82 : f32 to vector<72x384xf32>
    %161 = arith.mulf %160, %159 : vector<72x384xf32>
    %162 = math.tanh %161 : vector<72x384xf32>
    %cst_83 = arith.constant 1.000000e+00 : f32
    %163 = vector.broadcast %cst_83 : f32 to vector<72x384xf32>
    %164 = arith.addf %163, %162 : vector<72x384xf32>
    %cst_84 = arith.constant 5.000000e-01 : f32
    %165 = vector.broadcast %cst_84 : f32 to vector<72x384xf32>
    %166 = arith.mulf %165, %164 : vector<72x384xf32>
    %167 = arith.mulf %154, %166 : vector<72x384xf32>
    %168 = arith.truncf %167 : vector<72x384xf32> to vector<72x384xbf16>
    %c0_85 = arith.constant 0 : index
    %c0_86 = arith.constant 0 : index
    %c0_87 = arith.constant 0 : index
    %169 = vector.load %arg10[%c0_85, %c0_86, %c0_87] : memref<2x384x128xbf16, #tpu.memory_space<vmem>>, vector<1x384x128xbf16>
    %170 = vector.shape_cast %169 : vector<1x384x128xbf16> to vector<384x128xbf16>
    %cst_88 = arith.constant dense<0.000000e+00> : vector<72x128xf32>
    %171 = tpu.matmul %168, %170, %cst_88 {dimension_numbers = #tpu.dot_dimension_numbers<[1], [0], [0], [1], [0, 0, 1, 1], [], []>} : vector<72x384xbf16>, vector<384x128xbf16>, vector<72x128xf32> -> vector<72x128xf32>
    %c0_89 = arith.constant 0 : index
    %c0_90 = arith.constant 0 : index
    %c0_91 = arith.constant 0 : index
    %172 = vector.load %arg11[%c0_89, %c0_90, %c0_91] : memref<2x1x128xf32, #tpu.memory_space<vmem>>, vector<1x1x128xf32>
    %173 = vector.shape_cast %172 : vector<1x1x128xf32> to vector<1x128xf32>
    %174 = vector.broadcast %173 : vector<1x128xf32> to vector<72x128xf32>
    %175 = arith.addf %171, %174 : vector<72x128xf32>
    %176 = arith.addf %128, %175 : vector<72x128xf32>
    %cst_92 = arith.constant dense<0.000000e+00> : vector<72xf32>
    %177 = vector.multi_reduction <add>, %176, %cst_92 [1] : vector<72x128xf32> to vector<72xf32>
    %178 = vector.shape_cast %177 : vector<72xf32> to vector<72x1xf32>
    %cst_93 = arith.constant 0.010416667 : f32
    %179 = vector.broadcast %cst_93 : f32 to vector<72x1xf32>
    %180 = arith.mulf %178, %179 : vector<72x1xf32>
    %181 = vector.broadcast %180 : vector<72x1xf32> to vector<72x128xf32>
    %182 = arith.subf %176, %181 : vector<72x128xf32>
    %183 = vector.broadcast %4 : vector<1x128xf32> to vector<72x128xf32>
    %184 = arith.mulf %182, %183 : vector<72x128xf32>
    %185 = arith.mulf %184, %184 : vector<72x128xf32>
    %cst_94 = arith.constant dense<0.000000e+00> : vector<72xf32>
    %186 = vector.multi_reduction <add>, %185, %cst_94 [1] : vector<72x128xf32> to vector<72xf32>
    %187 = vector.shape_cast %186 : vector<72xf32> to vector<72x1xf32>
    %cst_95 = arith.constant 0.010416667 : f32
    %188 = vector.broadcast %cst_95 : f32 to vector<72x1xf32>
    %189 = arith.mulf %187, %188 : vector<72x1xf32>
    %cst_96 = arith.constant 9.99999997E-7 : f32
    %190 = vector.broadcast %cst_96 : f32 to vector<72x1xf32>
    %191 = arith.addf %189, %190 : vector<72x1xf32>
    %192 = math.rsqrt %191 : vector<72x1xf32>
    %193 = vector.broadcast %192 : vector<72x1xf32> to vector<72x128xf32>
    %194 = arith.mulf %184, %193 : vector<72x128xf32>
    %195 = arith.truncf %194 : vector<72x128xf32> to vector<72x128xbf16>
    %c6 = arith.constant 6 : index
    %c0_97 = arith.constant 0 : index
    %c0_98 = arith.constant 0 : index
    %196 = vector.load %arg4[%c6, %c0_97, %c0_98] : memref<12x128x64xbf16, #tpu.memory_space<vmem>>, vector<1x128x64xbf16>
    %197 = vector.shape_cast %196 : vector<1x128x64xbf16> to vector<128x64xbf16>
    %cst_99 = arith.constant dense<0.000000e+00> : vector<72x64xf32>
    %198 = tpu.matmul %195, %197, %cst_99 {dimension_numbers = #tpu.dot_dimension_numbers<[1], [0], [0], [1], [0, 0, 1, 1], [], []>} : vector<72x128xbf16>, vector<128x64xbf16>, vector<72x64xf32> -> vector<72x64xf32>
    %c6_100 = arith.constant 6 : index
    %c0_101 = arith.constant 0 : index
    %c0_102 = arith.constant 0 : index
    %199 = vector.load %arg5[%c6_100, %c0_101, %c0_102] : memref<12x1x64xf32, #tpu.memory_space<vmem>>, vector<1x1x64xf32>
    %200 = vector.shape_cast %199 : vector<1x1x64xf32> to vector<1x64xf32>
    %201 = vector.broadcast %200 : vector<1x64xf32> to vector<72x64xf32>
    %202 = arith.addf %198, %201 : vector<72x64xf32>
    %c8 = arith.constant 8 : index
    %c0_103 = arith.constant 0 : index
    %c0_104 = arith.constant 0 : index
    %203 = vector.load %arg4[%c8, %c0_103, %c0_104] : memref<12x128x64xbf16, #tpu.memory_space<vmem>>, vector<1x128x64xbf16>
    %204 = vector.shape_cast %203 : vector<1x128x64xbf16> to vector<128x64xbf16>
    %cst_105 = arith.constant dense<0.000000e+00> : vector<72x64xf32>
    %205 = tpu.matmul %195, %204, %cst_105 {dimension_numbers = #tpu.dot_dimension_numbers<[1], [0], [0], [1], [0, 0, 1, 1], [], []>} : vector<72x128xbf16>, vector<128x64xbf16>, vector<72x64xf32> -> vector<72x64xf32>
    %c8_106 = arith.constant 8 : index
    %c0_107 = arith.constant 0 : index
    %c0_108 = arith.constant 0 : index
    %206 = vector.load %arg5[%c8_106, %c0_107, %c0_108] : memref<12x1x64xf32, #tpu.memory_space<vmem>>, vector<1x1x64xf32>
    %207 = vector.shape_cast %206 : vector<1x1x64xf32> to vector<1x64xf32>
    %208 = vector.broadcast %207 : vector<1x64xf32> to vector<72x64xf32>
    %209 = arith.addf %205, %208 : vector<72x64xf32>
    %c10 = arith.constant 10 : index
    %c0_109 = arith.constant 0 : index
    %c0_110 = arith.constant 0 : index
    %210 = vector.load %arg4[%c10, %c0_109, %c0_110] : memref<12x128x64xbf16, #tpu.memory_space<vmem>>, vector<1x128x64xbf16>
    %211 = vector.shape_cast %210 : vector<1x128x64xbf16> to vector<128x64xbf16>
    %cst_111 = arith.constant dense<0.000000e+00> : vector<72x64xf32>
    %212 = tpu.matmul %195, %211, %cst_111 {dimension_numbers = #tpu.dot_dimension_numbers<[1], [0], [0], [1], [0, 0, 1, 1], [], []>} : vector<72x128xbf16>, vector<128x64xbf16>, vector<72x64xf32> -> vector<72x64xf32>
    %c10_112 = arith.constant 10 : index
    %c0_113 = arith.constant 0 : index
    %c0_114 = arith.constant 0 : index
    %213 = vector.load %arg5[%c10_112, %c0_113, %c0_114] : memref<12x1x64xf32, #tpu.memory_space<vmem>>, vector<1x1x64xf32>
    %214 = vector.shape_cast %213 : vector<1x1x64xf32> to vector<1x64xf32>
    %215 = vector.broadcast %214 : vector<1x64xf32> to vector<72x64xf32>
    %216 = arith.addf %212, %215 : vector<72x64xf32>
    %217 = arith.truncf %202 : vector<72x64xf32> to vector<72x64xbf16>
    %218 = arith.truncf %209 : vector<72x64xf32> to vector<72x64xbf16>
    %cst_115 = arith.constant dense<0.000000e+00> : vector<72x72xf32>
    %219 = tpu.matmul %217, %218, %cst_115 {dimension_numbers = #tpu.dot_dimension_numbers<[1], [1], [0], [0], [0, 0, 1, 0], [], []>} : vector<72x64xbf16>, vector<72x64xbf16>, vector<72x72xf32> -> vector<72x72xf32>
    %cst_116 = arith.constant -1.000000e+30 : f32
    %220 = vector.shape_cast %7 : vector<1x72xi1> to vector<1x72xi1>
    %221 = vector.broadcast %220 : vector<1x72xi1> to vector<72x72xi1>
    %222 = vector.broadcast %cst_116 : f32 to vector<72x72xf32>
    %223 = arith.select %221, %219, %222 : vector<72x72xi1>, vector<72x72xf32>
    %cst_117 = arith.constant dense<0xFF800000> : vector<72xf32>
    %224 = vector.multi_reduction <maximumf>, %223, %cst_117 [1] : vector<72x72xf32> to vector<72xf32>
    %225 = vector.shape_cast %224 : vector<72xf32> to vector<72x1xf32>
    %226 = vector.broadcast %225 : vector<72x1xf32> to vector<72x72xf32>
    %227 = arith.subf %223, %226 : vector<72x72xf32>
    %228 = math.exp %227 : vector<72x72xf32>
    %cst_118 = arith.constant dense<0.000000e+00> : vector<72xf32>
    %229 = vector.multi_reduction <add>, %228, %cst_118 [1] : vector<72x72xf32> to vector<72xf32>
    %230 = vector.shape_cast %229 : vector<72xf32> to vector<72x1xf32>
    %231 = tpu.reciprocal %230 {approx = true} : vector<72x1xf32> -> vector<72x1xf32>
    %232 = vector.broadcast %231 : vector<72x1xf32> to vector<72x72xf32>
    %233 = arith.mulf %228, %232 : vector<72x72xf32>
    %234 = arith.truncf %233 : vector<72x72xf32> to vector<72x72xbf16>
    %235 = arith.truncf %216 : vector<72x64xf32> to vector<72x64xbf16>
    %cst_119 = arith.constant dense<0.000000e+00> : vector<72x64xf32>
    %236 = tpu.matmul %234, %235, %cst_119 {dimension_numbers = #tpu.dot_dimension_numbers<[1], [0], [0], [1], [0, 0, 1, 1], [], []>} : vector<72x72xbf16>, vector<72x64xbf16>, vector<72x64xf32> -> vector<72x64xf32>
    %237 = arith.truncf %236 : vector<72x64xf32> to vector<72x64xbf16>
    %c2_120 = arith.constant 2 : index
    %c0_121 = arith.constant 0 : index
    %c0_122 = arith.constant 0 : index
    %238 = vector.load %arg6[%c2_120, %c0_121, %c0_122] : memref<4x64x128xbf16, #tpu.memory_space<vmem>>, vector<1x64x128xbf16>
    %239 = vector.shape_cast %238 : vector<1x64x128xbf16> to vector<64x128xbf16>
    %cst_123 = arith.constant dense<0.000000e+00> : vector<72x128xf32>
    %240 = tpu.matmul %237, %239, %cst_123 {dimension_numbers = #tpu.dot_dimension_numbers<[1], [0], [0], [1], [0, 0, 1, 1], [], []>} : vector<72x64xbf16>, vector<64x128xbf16>, vector<72x128xf32> -> vector<72x128xf32>
    %c7 = arith.constant 7 : index
    %c0_124 = arith.constant 0 : index
    %c0_125 = arith.constant 0 : index
    %241 = vector.load %arg4[%c7, %c0_124, %c0_125] : memref<12x128x64xbf16, #tpu.memory_space<vmem>>, vector<1x128x64xbf16>
    %242 = vector.shape_cast %241 : vector<1x128x64xbf16> to vector<128x64xbf16>
    %cst_126 = arith.constant dense<0.000000e+00> : vector<72x64xf32>
    %243 = tpu.matmul %195, %242, %cst_126 {dimension_numbers = #tpu.dot_dimension_numbers<[1], [0], [0], [1], [0, 0, 1, 1], [], []>} : vector<72x128xbf16>, vector<128x64xbf16>, vector<72x64xf32> -> vector<72x64xf32>
    %c7_127 = arith.constant 7 : index
    %c0_128 = arith.constant 0 : index
    %c0_129 = arith.constant 0 : index
    %244 = vector.load %arg5[%c7_127, %c0_128, %c0_129] : memref<12x1x64xf32, #tpu.memory_space<vmem>>, vector<1x1x64xf32>
    %245 = vector.shape_cast %244 : vector<1x1x64xf32> to vector<1x64xf32>
    %246 = vector.broadcast %245 : vector<1x64xf32> to vector<72x64xf32>
    %247 = arith.addf %243, %246 : vector<72x64xf32>
    %c9 = arith.constant 9 : index
    %c0_130 = arith.constant 0 : index
    %c0_131 = arith.constant 0 : index
    %248 = vector.load %arg4[%c9, %c0_130, %c0_131] : memref<12x128x64xbf16, #tpu.memory_space<vmem>>, vector<1x128x64xbf16>
    %249 = vector.shape_cast %248 : vector<1x128x64xbf16> to vector<128x64xbf16>
    %cst_132 = arith.constant dense<0.000000e+00> : vector<72x64xf32>
    %250 = tpu.matmul %195, %249, %cst_132 {dimension_numbers = #tpu.dot_dimension_numbers<[1], [0], [0], [1], [0, 0, 1, 1], [], []>} : vector<72x128xbf16>, vector<128x64xbf16>, vector<72x64xf32> -> vector<72x64xf32>
    %c9_133 = arith.constant 9 : index
    %c0_134 = arith.constant 0 : index
    %c0_135 = arith.constant 0 : index
    %251 = vector.load %arg5[%c9_133, %c0_134, %c0_135] : memref<12x1x64xf32, #tpu.memory_space<vmem>>, vector<1x1x64xf32>
    %252 = vector.shape_cast %251 : vector<1x1x64xf32> to vector<1x64xf32>
    %253 = vector.broadcast %252 : vector<1x64xf32> to vector<72x64xf32>
    %254 = arith.addf %250, %253 : vector<72x64xf32>
    %c11 = arith.constant 11 : index
    %c0_136 = arith.constant 0 : index
    %c0_137 = arith.constant 0 : index
    %255 = vector.load %arg4[%c11, %c0_136, %c0_137] : memref<12x128x64xbf16, #tpu.memory_space<vmem>>, vector<1x128x64xbf16>
    %256 = vector.shape_cast %255 : vector<1x128x64xbf16> to vector<128x64xbf16>
    %cst_138 = arith.constant dense<0.000000e+00> : vector<72x64xf32>
    %257 = tpu.matmul %195, %256, %cst_138 {dimension_numbers = #tpu.dot_dimension_numbers<[1], [0], [0], [1], [0, 0, 1, 1], [], []>} : vector<72x128xbf16>, vector<128x64xbf16>, vector<72x64xf32> -> vector<72x64xf32>
    %c11_139 = arith.constant 11 : index
    %c0_140 = arith.constant 0 : index
    %c0_141 = arith.constant 0 : index
    %258 = vector.load %arg5[%c11_139, %c0_140, %c0_141] : memref<12x1x64xf32, #tpu.memory_space<vmem>>, vector<1x1x64xf32>
    %259 = vector.shape_cast %258 : vector<1x1x64xf32> to vector<1x64xf32>
    %260 = vector.broadcast %259 : vector<1x64xf32> to vector<72x64xf32>
    %261 = arith.addf %257, %260 : vector<72x64xf32>
    %262 = arith.truncf %247 : vector<72x64xf32> to vector<72x64xbf16>
    %263 = arith.truncf %254 : vector<72x64xf32> to vector<72x64xbf16>
    %cst_142 = arith.constant dense<0.000000e+00> : vector<72x72xf32>
    %264 = tpu.matmul %262, %263, %cst_142 {dimension_numbers = #tpu.dot_dimension_numbers<[1], [1], [0], [0], [0, 0, 1, 0], [], []>} : vector<72x64xbf16>, vector<72x64xbf16>, vector<72x72xf32> -> vector<72x72xf32>
    %cst_143 = arith.constant -1.000000e+30 : f32
    %265 = vector.shape_cast %7 : vector<1x72xi1> to vector<1x72xi1>
    %266 = vector.broadcast %265 : vector<1x72xi1> to vector<72x72xi1>
    %267 = vector.broadcast %cst_143 : f32 to vector<72x72xf32>
    %268 = arith.select %266, %264, %267 : vector<72x72xi1>, vector<72x72xf32>
    %cst_144 = arith.constant dense<0xFF800000> : vector<72xf32>
    %269 = vector.multi_reduction <maximumf>, %268, %cst_144 [1] : vector<72x72xf32> to vector<72xf32>
    %270 = vector.shape_cast %269 : vector<72xf32> to vector<72x1xf32>
    %271 = vector.broadcast %270 : vector<72x1xf32> to vector<72x72xf32>
    %272 = arith.subf %268, %271 : vector<72x72xf32>
    %273 = math.exp %272 : vector<72x72xf32>
    %cst_145 = arith.constant dense<0.000000e+00> : vector<72xf32>
    %274 = vector.multi_reduction <add>, %273, %cst_145 [1] : vector<72x72xf32> to vector<72xf32>
    %275 = vector.shape_cast %274 : vector<72xf32> to vector<72x1xf32>
    %276 = tpu.reciprocal %275 {approx = true} : vector<72x1xf32> -> vector<72x1xf32>
    %277 = vector.broadcast %276 : vector<72x1xf32> to vector<72x72xf32>
    %278 = arith.mulf %273, %277 : vector<72x72xf32>
    %279 = arith.truncf %278 : vector<72x72xf32> to vector<72x72xbf16>
    %280 = arith.truncf %261 : vector<72x64xf32> to vector<72x64xbf16>
    %cst_146 = arith.constant dense<0.000000e+00> : vector<72x64xf32>
    %281 = tpu.matmul %279, %280, %cst_146 {dimension_numbers = #tpu.dot_dimension_numbers<[1], [0], [0], [1], [0, 0, 1, 1], [], []>} : vector<72x72xbf16>, vector<72x64xbf16>, vector<72x64xf32> -> vector<72x64xf32>
    %282 = arith.truncf %281 : vector<72x64xf32> to vector<72x64xbf16>
    %c3_147 = arith.constant 3 : index
    %c0_148 = arith.constant 0 : index
    %c0_149 = arith.constant 0 : index
    %283 = vector.load %arg6[%c3_147, %c0_148, %c0_149] : memref<4x64x128xbf16, #tpu.memory_space<vmem>>, vector<1x64x128xbf16>
    %284 = vector.shape_cast %283 : vector<1x64x128xbf16> to vector<64x128xbf16>
    %cst_150 = arith.constant dense<0.000000e+00> : vector<72x128xf32>
    %285 = tpu.matmul %282, %284, %cst_150 {dimension_numbers = #tpu.dot_dimension_numbers<[1], [0], [0], [1], [0, 0, 1, 1], [], []>} : vector<72x64xbf16>, vector<64x128xbf16>, vector<72x128xf32> -> vector<72x128xf32>
    %286 = arith.addf %240, %285 : vector<72x128xf32>
    %287 = arith.addf %176, %286 : vector<72x128xf32>
    %c1_151 = arith.constant 1 : index
    %c0_152 = arith.constant 0 : index
    %c0_153 = arith.constant 0 : index
    %288 = vector.load %arg7[%c1_151, %c0_152, %c0_153] : memref<2x1x128xf32, #tpu.memory_space<vmem>>, vector<1x1x128xf32>
    %289 = vector.shape_cast %288 : vector<1x1x128xf32> to vector<1x128xf32>
    %290 = vector.broadcast %289 : vector<1x128xf32> to vector<72x128xf32>
    %291 = arith.addf %287, %290 : vector<72x128xf32>
    %cst_154 = arith.constant dense<0.000000e+00> : vector<72xf32>
    %292 = vector.multi_reduction <add>, %291, %cst_154 [1] : vector<72x128xf32> to vector<72xf32>
    %293 = vector.shape_cast %292 : vector<72xf32> to vector<72x1xf32>
    %cst_155 = arith.constant 0.010416667 : f32
    %294 = vector.broadcast %cst_155 : f32 to vector<72x1xf32>
    %295 = arith.mulf %293, %294 : vector<72x1xf32>
    %296 = vector.broadcast %295 : vector<72x1xf32> to vector<72x128xf32>
    %297 = arith.subf %291, %296 : vector<72x128xf32>
    %298 = vector.broadcast %4 : vector<1x128xf32> to vector<72x128xf32>
    %299 = arith.mulf %297, %298 : vector<72x128xf32>
    %300 = arith.mulf %299, %299 : vector<72x128xf32>
    %cst_156 = arith.constant dense<0.000000e+00> : vector<72xf32>
    %301 = vector.multi_reduction <add>, %300, %cst_156 [1] : vector<72x128xf32> to vector<72xf32>
    %302 = vector.shape_cast %301 : vector<72xf32> to vector<72x1xf32>
    %cst_157 = arith.constant 0.010416667 : f32
    %303 = vector.broadcast %cst_157 : f32 to vector<72x1xf32>
    %304 = arith.mulf %302, %303 : vector<72x1xf32>
    %cst_158 = arith.constant 9.99999997E-7 : f32
    %305 = vector.broadcast %cst_158 : f32 to vector<72x1xf32>
    %306 = arith.addf %304, %305 : vector<72x1xf32>
    %307 = math.rsqrt %306 : vector<72x1xf32>
    %308 = vector.broadcast %307 : vector<72x1xf32> to vector<72x128xf32>
    %309 = arith.mulf %299, %308 : vector<72x128xf32>
    %310 = arith.truncf %309 : vector<72x128xf32> to vector<72x128xbf16>
    %c1_159 = arith.constant 1 : index
    %c0_160 = arith.constant 0 : index
    %c0_161 = arith.constant 0 : index
    %311 = vector.load %arg8[%c1_159, %c0_160, %c0_161] : memref<2x128x384xbf16, #tpu.memory_space<vmem>>, vector<1x128x384xbf16>
    %312 = vector.shape_cast %311 : vector<1x128x384xbf16> to vector<128x384xbf16>
    %cst_162 = arith.constant dense<0.000000e+00> : vector<72x384xf32>
    %313 = tpu.matmul %310, %312, %cst_162 {dimension_numbers = #tpu.dot_dimension_numbers<[1], [0], [0], [1], [0, 0, 1, 1], [], []>} : vector<72x128xbf16>, vector<128x384xbf16>, vector<72x384xf32> -> vector<72x384xf32>
    %c1_163 = arith.constant 1 : index
    %c0_164 = arith.constant 0 : index
    %c0_165 = arith.constant 0 : index
    %314 = vector.load %arg9[%c1_163, %c0_164, %c0_165] : memref<2x1x384xf32, #tpu.memory_space<vmem>>, vector<1x1x384xf32>
    %315 = vector.shape_cast %314 : vector<1x1x384xf32> to vector<1x384xf32>
    %316 = vector.broadcast %315 : vector<1x384xf32> to vector<72x384xf32>
    %317 = arith.addf %313, %316 : vector<72x384xf32>
    %318 = arith.mulf %317, %317 : vector<72x384xf32>
    %319 = arith.mulf %317, %318 : vector<72x384xf32>
    %cst_166 = arith.constant 4.471500e-02 : f32
    %320 = vector.broadcast %cst_166 : f32 to vector<72x384xf32>
    %321 = arith.mulf %320, %319 : vector<72x384xf32>
    %322 = arith.addf %317, %321 : vector<72x384xf32>
    %cst_167 = arith.constant 0.797884583 : f32
    %323 = vector.broadcast %cst_167 : f32 to vector<72x384xf32>
    %324 = arith.mulf %323, %322 : vector<72x384xf32>
    %325 = math.tanh %324 : vector<72x384xf32>
    %cst_168 = arith.constant 1.000000e+00 : f32
    %326 = vector.broadcast %cst_168 : f32 to vector<72x384xf32>
    %327 = arith.addf %326, %325 : vector<72x384xf32>
    %cst_169 = arith.constant 5.000000e-01 : f32
    %328 = vector.broadcast %cst_169 : f32 to vector<72x384xf32>
    %329 = arith.mulf %328, %327 : vector<72x384xf32>
    %330 = arith.mulf %317, %329 : vector<72x384xf32>
    %331 = arith.truncf %330 : vector<72x384xf32> to vector<72x384xbf16>
    %c1_170 = arith.constant 1 : index
    %c0_171 = arith.constant 0 : index
    %c0_172 = arith.constant 0 : index
    %332 = vector.load %arg10[%c1_170, %c0_171, %c0_172] : memref<2x384x128xbf16, #tpu.memory_space<vmem>>, vector<1x384x128xbf16>
    %333 = vector.shape_cast %332 : vector<1x384x128xbf16> to vector<384x128xbf16>
    %cst_173 = arith.constant dense<0.000000e+00> : vector<72x128xf32>
    %334 = tpu.matmul %331, %333, %cst_173 {dimension_numbers = #tpu.dot_dimension_numbers<[1], [0], [0], [1], [0, 0, 1, 1], [], []>} : vector<72x384xbf16>, vector<384x128xbf16>, vector<72x128xf32> -> vector<72x128xf32>
    %c1_174 = arith.constant 1 : index
    %c0_175 = arith.constant 0 : index
    %c0_176 = arith.constant 0 : index
    %335 = vector.load %arg11[%c1_174, %c0_175, %c0_176] : memref<2x1x128xf32, #tpu.memory_space<vmem>>, vector<1x1x128xf32>
    %336 = vector.shape_cast %335 : vector<1x1x128xf32> to vector<1x128xf32>
    %337 = vector.broadcast %336 : vector<1x128xf32> to vector<72x128xf32>
    %338 = arith.addf %334, %337 : vector<72x128xf32>
    %339 = arith.addf %291, %338 : vector<72x128xf32>
    %340 = vector.extract_strided_slice %339 {offsets = [0, 0], sizes = [8, 128], strides = [1, 1]} : vector<72x128xf32> to vector<8x128xf32>
    %cst_177 = arith.constant dense<0.000000e+00> : vector<8xf32>
    %341 = vector.multi_reduction <add>, %340, %cst_177 [1] : vector<8x128xf32> to vector<8xf32>
    %342 = vector.shape_cast %341 : vector<8xf32> to vector<8x1xf32>
    %cst_178 = arith.constant 0.010416667 : f32
    %343 = vector.broadcast %cst_178 : f32 to vector<8x1xf32>
    %344 = arith.mulf %342, %343 : vector<8x1xf32>
    %345 = vector.broadcast %344 : vector<8x1xf32> to vector<8x128xf32>
    %346 = arith.subf %340, %345 : vector<8x128xf32>
    %347 = vector.broadcast %4 : vector<1x128xf32> to vector<8x128xf32>
    %348 = arith.mulf %346, %347 : vector<8x128xf32>
    %349 = arith.mulf %348, %348 : vector<8x128xf32>
    %cst_179 = arith.constant dense<0.000000e+00> : vector<8xf32>
    %350 = vector.multi_reduction <add>, %349, %cst_179 [1] : vector<8x128xf32> to vector<8xf32>
    %351 = vector.shape_cast %350 : vector<8xf32> to vector<8x1xf32>
    %cst_180 = arith.constant 0.010416667 : f32
    %352 = vector.broadcast %cst_180 : f32 to vector<8x1xf32>
    %353 = arith.mulf %351, %352 : vector<8x1xf32>
    %cst_181 = arith.constant 9.99999997E-7 : f32
    %354 = vector.broadcast %cst_181 : f32 to vector<8x1xf32>
    %355 = arith.addf %353, %354 : vector<8x1xf32>
    %356 = math.rsqrt %355 : vector<8x1xf32>
    %357 = vector.broadcast %356 : vector<8x1xf32> to vector<8x128xf32>
    %358 = arith.mulf %348, %357 : vector<8x128xf32>
    %359 = arith.truncf %358 : vector<8x128xf32> to vector<8x128xbf16>
    %c0_182 = arith.constant 0 : index
    %c0_183 = arith.constant 0 : index
    %360 = vector.load %arg12[%c0_182, %c0_183] : memref<128x512xbf16, #tpu.memory_space<vmem>>, vector<128x512xbf16>
    %cst_184 = arith.constant dense<0.000000e+00> : vector<8x512xf32>
    %361 = tpu.matmul %359, %360, %cst_184 {dimension_numbers = #tpu.dot_dimension_numbers<[1], [0], [0], [1], [0, 0, 1, 1], [], []>} : vector<8x128xbf16>, vector<128x512xbf16>, vector<8x512xf32> -> vector<8x512xf32>
    %c0_185 = arith.constant 0 : index
    %c0_186 = arith.constant 0 : index
    %362 = vector.load %arg13[%c0_185, %c0_186] : memref<1x512xf32, #tpu.memory_space<vmem>>, vector<1x512xf32>
    %363 = vector.broadcast %362 : vector<1x512xf32> to vector<8x512xf32>
    %364 = arith.addf %361, %363 : vector<8x512xf32>
    %365 = vector.extract_strided_slice %364 {offsets = [0, 0], sizes = [1, 512], strides = [1, 1]} : vector<8x512xf32> to vector<1x512xf32>
    %c0_187 = arith.constant 0 : index
    %c0_188 = arith.constant 0 : index
    %c0_189 = arith.constant 0 : index
    %366 = vector.load %arg14[%c0_187, %c0_188, %c0_189] : memref<1x1x512xf32, #tpu.memory_space<vmem>>, vector<1x1x512xf32>
    %367 = vector.shape_cast %366 : vector<1x1x512xf32> to vector<1x512xf32>
    %368 = vector.shape_cast %365 : vector<1x512xf32> to vector<1x1x512xf32>
    tpu.vector_store %arg14[%c0_187, %c0_188, %c0_189], %368 {strides = array<i32>} : memref<1x1x512xf32, #tpu.memory_space<vmem>>, vector<1x1x512xf32>,
    return
  }
  func.func @transform_0(%arg0: i32) -> (i32, i32, i32) {
    %c0_i32 = arith.constant 0 : i32
    %c0_i32_0 = arith.constant 0 : i32
    %c0_i32_1 = arith.constant 0 : i32
    return %arg0, %c0_i32, %c0_i32_0 : i32, i32, i32
  }
  func.func @transform_1(%arg0: i32) -> (i32, i32) {
    %c0_i32 = arith.constant 0 : i32
    %c0_i32_0 = arith.constant 0 : i32
    %c0_i32_1 = arith.constant 0 : i32
    return %c0_i32, %c0_i32_0 : i32, i32
  }
  func.func @transform_2(%arg0: i32) -> (i32, i32) {
    %c0_i32 = arith.constant 0 : i32
    %c0_i32_0 = arith.constant 0 : i32
    %c0_i32_1 = arith.constant 0 : i32
    return %c0_i32, %c0_i32_0 : i32, i32
  }
  func.func @transform_3(%arg0: i32) -> (i32, i32, i32) {
    %c0_i32 = arith.constant 0 : i32
    %c0_i32_0 = arith.constant 0 : i32
    %c0_i32_1 = arith.constant 0 : i32
    %c0_i32_2 = arith.constant 0 : i32
    return %c0_i32, %c0_i32_0, %c0_i32_1 : i32, i32, i32
  }
  func.func @transform_4(%arg0: i32) -> (i32, i32, i32) {
    %c0_i32 = arith.constant 0 : i32
    %c0_i32_0 = arith.constant 0 : i32
    %c0_i32_1 = arith.constant 0 : i32
    %c0_i32_2 = arith.constant 0 : i32
    return %c0_i32, %c0_i32_0, %c0_i32_1 : i32, i32, i32
  }
  func.func @transform_5(%arg0: i32) -> (i32, i32, i32) {
    %c0_i32 = arith.constant 0 : i32
    %c0_i32_0 = arith.constant 0 : i32
    %c0_i32_1 = arith.constant 0 : i32
    %c0_i32_2 = arith.constant 0 : i32
    return %c0_i32, %c0_i32_0, %c0_i32_1 : i32, i32, i32
  }
  func.func @transform_6(%arg0: i32) -> (i32, i32, i32) {
    %c0_i32 = arith.constant 0 : i32
    %c0_i32_0 = arith.constant 0 : i32
    %c0_i32_1 = arith.constant 0 : i32
    %c0_i32_2 = arith.constant 0 : i32
    return %c0_i32, %c0_i32_0, %c0_i32_1 : i32, i32, i32
  }
  func.func @transform_7(%arg0: i32) -> (i32, i32, i32) {
    %c0_i32 = arith.constant 0 : i32
    %c0_i32_0 = arith.constant 0 : i32
    %c0_i32_1 = arith.constant 0 : i32
    %c0_i32_2 = arith.constant 0 : i32
    return %c0_i32, %c0_i32_0, %c0_i32_1 : i32, i32, i32
  }
  func.func @transform_8(%arg0: i32) -> (i32, i32, i32) {
    %c0_i32 = arith.constant 0 : i32
    %c0_i32_0 = arith.constant 0 : i32
    %c0_i32_1 = arith.constant 0 : i32
    %c0_i32_2 = arith.constant 0 : i32
    return %c0_i32, %c0_i32_0, %c0_i32_1 : i32, i32, i32
  }
  func.func @transform_9(%arg0: i32) -> (i32, i32, i32) {
    %c0_i32 = arith.constant 0 : i32
    %c0_i32_0 = arith.constant 0 : i32
    %c0_i32_1 = arith.constant 0 : i32
    %c0_i32_2 = arith.constant 0 : i32
    return %c0_i32, %c0_i32_0, %c0_i32_1 : i32, i32, i32
  }
  func.func @transform_10(%arg0: i32) -> (i32, i32, i32) {
    %c0_i32 = arith.constant 0 : i32
    %c0_i32_0 = arith.constant 0 : i32
    %c0_i32_1 = arith.constant 0 : i32
    %c0_i32_2 = arith.constant 0 : i32
    return %c0_i32, %c0_i32_0, %c0_i32_1 : i32, i32, i32
  }
  func.func @transform_11(%arg0: i32) -> (i32, i32) {
    %c0_i32 = arith.constant 0 : i32
    %c0_i32_0 = arith.constant 0 : i32
    %c0_i32_1 = arith.constant 0 : i32
    return %c0_i32, %c0_i32_0 : i32, i32
  }
  func.func @transform_12(%arg0: i32) -> (i32, i32) {
    %c0_i32 = arith.constant 0 : i32
    %c0_i32_0 = arith.constant 0 : i32
    %c0_i32_1 = arith.constant 0 : i32
    return %c0_i32, %c0_i32_0 : i32, i32
  }
  func.func @transform_13(%arg0: i32) -> (i32, i32, i32) {
    %c0_i32 = arith.constant 0 : i32
    %c0_i32_0 = arith.constant 0 : i32
    %c0_i32_1 = arith.constant 0 : i32
    return %arg0, %c0_i32, %c0_i32_0 : i32, i32, i32
  }
}

</mosaic_0001>

<bundles_post_ra>
// kernel: _forward_impl.1
= control target key start
LH: loop header
LB: loop body
LE: loop exit
PB: predicated region body
PF: predicated region fallthrough
CT: control target
= control target key end

     0   :  { %s8001_s25 = smov 0   ;;  %s10708_s0 = inlined_call_operand.vmem [shape: bf16[2,72,128], index: 0, kind: input, shape index: {}]   ;;  %s10709_s1 = inlined_call_operand.vmem [shape: f32[72,128], index: 1, kind: input, shape index: {}]   ;;  %s10710_s2 = inlined_call_operand.vmem [shape: bf16[128,128], index: 2, kind: input, shape index: {}]   ;;  %s10711_s3 = inlined_call_operand.vmem [shape: bf16[12,128,64], index: 3, kind: input, shape index: {}]   ;;  %s10712_s4 = inlined_call_operand.vmem [shape: f32[12,1,64], index: 4, kind: input, shape index: {}]   ;;  %s10713_s5 = inlined_call_operand.vmem [shape: bf16[4,64,128], index: 5, kind: input, shape index: {}]   ;;  %s10714_s6 = inlined_call_operand.vmem [shape: f32[2,1,128], index: 6, kind: input, shape index: {}]   ;;  %s10715_s7 = inlined_call_operand.vmem [shape: bf16[2,128,384], index: 7, kind: input, shape index: {}]   ;;  %s10716_s8 = inlined_call_operand.vmem [shape: f32[2,1,384], index: 8, kind: input, shape index: {}]   ;;  %s10717_s9 = inlined_call_operand.vmem [shape: bf16[2,384,128], index: 9, kind: input, shape index: {}]   ;;  %s10718_s10 = inlined_call_operand.vmem [shape: f32[2,1,128], index: 10, kind: input, shape index: {}]   ;;  %s10719_s11 = inlined_call_operand.vmem [shape: bf16[128,512], index: 11, kind: input, shape index: {}]   ;;  %s10720_s12 = inlined_call_operand.vmem [shape: f32[1,512], index: 12, kind: input, shape index: {}]   ;;  %s10721_s13 = inlined_call_operand.vmem [shape: f32[2,1,512], index: 13, kind: output, shape index: {}]  }
   0x1 LB: > { %s5938_s26 = sadd.s32 4294967295, %s7928_s25   ;;  %p5942_p0 = scmp.ge.s32.totalorder %s7928_s25, 1  ;;  %s7928_s25 = sphi %s8001_s25, %s23_s25  }
   0x2   : > { %p387_p1 = scmp.lt.s32.totalorder %s7928_s25, 3 }
   0x4   : > { %p388_p2 = pnand %p5942_p0, %p387_p1 }
   0x5   : > { %p430_p3 = scmp.lt.s32.totalorder (!%p388_p2), %s5938_s26, 1 }
   0x6   : > { %391 = sbr.rel (%p388_p2) target bundleno = 5132 (0x140c), region = 72 }
   0xb   : > { %v7321_v0 = vld [vmem:[%s10710_s2 + $0x38] sm:$0xff]  ;;  %v7320_v1 = vld [vmem:[%s10710_s2 + $0x30] sm:$0xff]  ;;  %v7319_v2 = vld [vmem:[%s10710_s2 + $0x28] sm:$0xff]  ;;  %s10729_s26 = smov (!%p430_p3, %s5938_s26), 1  ;;  %v440_v43 = vlaneseq  ;;  %v7930_v47 = vmov 0.0  }
   0xc   : > { %556 = vmatpush.bf16.msra.mxu0 %v7321_v0  ;;  %7562 = vmatpush.bf16.msra.mxu2 %v7321_v0  ;;  %v7318_v3 = vld [vmem:[%s10710_s2 + $0x20] sm:$0xff]  ;;  %v7317_v4 = vld [vmem:[%s10710_s2 + $0x18] sm:$0xff]  ;;  %v7316_v5 = vld [vmem:[%s10710_s2 + $0x10] sm:$0xff]  ;;  %s7570_s24 = smul.u32 36, %s10729_s26  ;;  %s5944_s21 = sshll.u32 %s10729_s26, 2 }
   0xd   : > { %v7315_v6 = vld [vmem:[%s10710_s2 + $0x8] sm:$0xff]  ;;  %v7314_v7 = vld [vmem:[%s10710_s2] sm:$0xff]  ;;  %v477_v22 = vld [vmem:[%s10709_s1 + $0x30] sm:$0xff]  ;;  %v8094_v44 = vand.u32 127, %v440_v43 }
   0xe   : > { %s434_s14 = scalar_lea.vmem %s10708_s0, %s7570_s24  ;;  %v471_v15 = vld [vmem:[%s10709_s1] sm:$0xff]  ;;  %v472_v18 = vld [vmem:[%s10709_s1 + $0x8] sm:$0xff]  ;;  %v473_v23 = vld [vmem:[%s10709_s1 + $0x10] sm:$0xff]  ;;  %s438_s24 = scalar_lea.vmem %s10721_s13, %s5944_s21 }
   0xf   : > { %v7310_v8 = vld [vmem:[%s434_s14] sm:$0xff]  ;;  %v7313_v9 = vld [vmem:[%s434_s14 + $0x18] sm:$0xff]  ;;  %v7311_v12 = vld [vmem:[%s434_s14 + $0x8] sm:$0xff]  ;;  %vm442_vm0 = vcmp.lt.s32.totalorder %v8094_v44, 96 }
  0x10   : > { %557 = vmatpush.bf16.msra.mxu0 %v7320_v1  ;;  %7563 = vmatpush.bf16.msra.mxu2 %v7320_v1  ;;  %v454_v10 = vld [vmem:[%s434_s14 + $0x20] sm:$0xf]  ;;  %v7312_v14 = vld [vmem:[%s434_s14 + $0x10] sm:$0xff]  ;;  %v474_v28 = vld [vmem:[%s10709_s1 + $0x18] sm:$0xff]  ;;  %v8097_v48 = vsel %vm442_vm0, 1.0, %v7930_v47 }
  0x11   : > { %v497_v11 = vunpack.c.l.b16 %v454_v10  ;;  %v478_v32 = vld [vmem:[%s10709_s1 + $0x38] sm:$0xff]  ;;  %v475_v33 = vld [vmem:[%s10709_s1 + $0x20] sm:$0xff]  ;;  %v476_v39 = vld [vmem:[%s10709_s1 + $0x28] sm:$0xff] }
  0x12   : > { %v479_v38 = vld [vmem:[%s10709_s1 + $0x40] sm:$0xff]  ;;  %v7343_v47 = vld [vmem:[%s10711_s3 + $0x128] sm:$0xff] }
  0x13   : > { %v502_v13 = vpack.c.b16 %v497_v11, %v497_v11 }
  0x14   : > { %558 = vmatpush.bf16.msra.mxu0 %v7319_v2  ;;  %7564 = vmatpush.bf16.msra.mxu2 %v7319_v2 }
  0x18   : > { %559 = vmatpush.bf16.msra.mxu0 %v7318_v3  ;;  %7565 = vmatpush.bf16.msra.mxu2 %v7318_v3 }
  0x1c   : > { %560 = vmatpush.bf16.msra.mxu0 %v7317_v4  ;;  %7566 = vmatpush.bf16.msra.mxu2 %v7317_v4 }
  0x20   : > { %561 = vmatpush.bf16.msra.mxu0 %v7316_v5  ;;  %7567 = vmatpush.bf16.msra.mxu2 %v7316_v5 }
  0x24   : > { %562 = vmatpush.bf16.msra.mxu0 %v7315_v6  ;;  %7568 = vmatpush.bf16.msra.mxu2 %v7315_v6 }
  0x28   : > { %563 = vmatpush.bf16.msra.mxu0 %v7314_v7  ;;  %7569 = vmatpush.bf16.msra.mxu2 %v7314_v7 }
  0x2b   : > { %564 = vmatmul.bf16.vlgmr.msra.gmra.mxu0 %v7310_v8  ;;  %579 = vmatmul.bf16.vlgmr.msra.gmra.mxu2 %v7313_v9 }
  0x3b   : > { %569 = vmatmul.bf16.gmra.mxu0 %v7311_v12  ;;  %584 = vmatmul.bf16.gmra.mxu2 %v502_v13 }
  0x4b   : > { %574 = vmatmul.bf16.gmra.mxu0 %v7312_v14 }
  0xa8   : > { %v565_v16 = vpop.f32.mrf.mxu0 }
  0xa9   : > { %v8042_v17 = vadd.f32 %v565_v16, %v471_v15 }
  0xab   : > { %589 = vadd.xlane.f32.xlu0 %v8042_v17 }
  0xae   : > { %v580_v19 = vpop.f32.mrf.mxu2 }
  0xaf   : > { %v8057_v25 = vadd.f32 %v580_v19, %v477_v22 }
  0xb0   : > { %v567_v20 = vpop.f32.mrf.mxu0 }
  0xb1   : > { %v8048_v21 = vadd.f32 %v567_v20, %v472_v18 }
  0xb3   : > { %591 = vadd.xlane.f32.xlu0 %v8048_v21 }
  0xb6   : > { %v582_v24 = vpop.f32.mrf.mxu2 }
  0xb7   : > { %v8075_v35 = vadd.f32 %v582_v24, %v478_v32 }
  0xb8   : > { %v570_v26 = vpop.f32.mrf.mxu0 }
  0xb9   : > { %v8059_v27 = vadd.f32 %v570_v26, %v473_v23 }
  0xbb   : > { %593 = vadd.xlane.f32.xlu1 %v8059_v27  ;;  %601 = vadd.xlane.f32.xlu0 %v8057_v25 }
  0xbe   : > { %v585_v29 = vpop.f32.mrf.mxu2 }
  0xbf   : > { %v8087_v40 = vadd.f32 %v585_v29, %v479_v38  ;;  %v7328_v38 = vld [vmem:[%s10711_s3 + $0x30] sm:$0xff] }
  0xc0   : > { %v572_v30 = vpop.f32.mrf.mxu0 }
  0xc1   : > { %v8066_v31 = vadd.f32 %v572_v30, %v474_v28 }
  0xc3   : > { %595 = vadd.xlane.f32.xlu1 %v8066_v31 }
  0xc6   : > { %v587_v34 = vpop.f32.mrf.mxu2 }
  0xc7   : > { %v7337_v34 = vld [vmem:[%s10711_s3 + $0xb8] sm:$0xff] }
  0xc8   : > { %v575_v36 = vpop.f32.mrf.mxu0  ;;  %954 = vmatpush.bf16.msrb.mxu2 %v7337_v34 }
  0xc9   : > { %v8077_v37 = vadd.f32 %v575_v36, %v475_v33  ;;  %v7329_v33 = vld [vmem:[%s10711_s3 + $0x38] sm:$0xff] }
  0xca   : > { %v7345_v36 = vld [vmem:[%s10711_s3 + $0x138] sm:$0xff]  ;;  %851 = vmatpush.bf16.msra.mxu1 %v7329_v33 }
  0xcb   : > { %597 = vadd.xlane.f32.xlu2 %v8077_v37  ;;  %603 = vadd.xlane.f32.xlu1 %v8075_v35 }
  0xcc   : > { %1057 = vmatpush.bf16.msra.mxu3 %v7345_v36 }
  0xce   : > { %852 = vmatpush.bf16.msra.mxu1 %v7328_v38 }
  0xd0   : > { %v577_v41 = vpop.f32.mrf.mxu0 }
  0xd1   : > { %v8089_v42 = vadd.f32 %v577_v41, %v476_v39  ;;  %v7336_v39 = vld [vmem:[%s10711_s3 + $0xb0] sm:$0xff] }
  0xd2   : > { %v7344_v41 = vld [vmem:[%s10711_s3 + $0x130] sm:$0xff]  ;;  %955 = vmatpush.bf16.msrb.mxu2 %v7336_v39 }
  0xd3   : > { %599 = vadd.xlane.f32.xlu2 %v8089_v42  ;;  %605 = vadd.xlane.f32.xlu1 %v8087_v40 }
  0xd4   : > { %1058 = vmatpush.bf16.msra.mxu3 %v7344_v41 }
  0xd8   : > { %1059 = vmatpush.bf16.msra.mxu3 %v7343_v47 }
 0x11e   : > { %v590_v45 = vpop.xlane.xlu0 %589 }
 0x11f   : > { %v607_v46 = vmul.f32 0.010416667, %v590_v45  ;;  %v7327_v45 = vld [vmem:[%s10711_s3 + $0x28] sm:$0xff] }
 0x120   : > { %853 = vmatpush.bf16.msra.mxu1 %v7327_v45 }
 0x121   : > { %v616_v49 = vsub.f32 %v8042_v17, %v607_v46  ;;  %v7335_v46 = vld [vmem:[%s10711_s3 + $0xa8] sm:$0xff] }
 0x122   : > { %956 = vmatpush.bf16.msrb.mxu2 %v7335_v46 }
 0x123   : > { %v8101_v50 = vmul.f32 %v8097_v48, %v616_v49  ;;  %v7326_v49 = vld [vmem:[%s10711_s3 + $0x20] sm:$0xff] }
 0x124   : > { %854 = vmatpush.bf16.msra.mxu1 %v7326_v49 }
 0x125   : > { %v634_v51 = vmul.f32 %v8101_v50, %v8101_v50 }
 0x126   : > { %v592_v52 = vpop.xlane.xlu0 %591 }
 0x127   : > { %v608_v53 = vmul.f32 0.010416667, %v592_v52  ;;  %643 = vadd.xlane.f32.xlu2 %v634_v51  ;;  %v7334_v51 = vld [vmem:[%s10711_s3 + $0xa0] sm:$0xff] }
 0x128   : > { %v7342_v52 = vld [vmem:[%s10711_s3 + $0x120] sm:$0xff]  ;;  %957 = vmatpush.bf16.msrb.mxu2 %v7334_v51 }
 0x129   : > { %v617_v54 = vsub.f32 %v8048_v21, %v608_v53  ;;  %1060 = vmatpush.bf16.msra.mxu3 %v7342_v52  ;;  %v7325_v53 = vld [vmem:[%s10711_s3 + $0x18] sm:$0xff] }
 0x12a   : > { %855 = vmatpush.bf16.msra.mxu1 %v7325_v53 }
 0x12b   : > { %v8107_v55 = vmul.f32 %v8097_v48, %v617_v54  ;;  %v7333_v54 = vld [vmem:[%s10711_s3 + $0x98] sm:$0xff] }
 0x12c   : > { %958 = vmatpush.bf16.msrb.mxu2 %v7333_v54 }
 0x12d   : > { %v635_v56 = vmul.f32 %v8107_v55, %v8107_v55 }
 0x12e   : > { %v594_v57 = vpop.xlane.xlu1 %593  ;;  %v602_v62 = vpop.xlane.xlu0 %601 }
 0x12f   : > { %v609_v58 = vmul.f32 0.010416667, %v594_v57  ;;  %645 = vadd.xlane.f32.xlu0 %v635_v56  ;;  %v613_v1 = vmul.f32 0.010416667, %v602_v62  ;;  %v7341_v56 = vld [vmem:[%s10711_s3 + $0x118] sm:$0xff]  ;;  %v7324_v57 = vld [vmem:[%s10711_s3 + $0x10] sm:$0xff] }
 0x130   : > { %1061 = vmatpush.bf16.msra.mxu3 %v7341_v56  ;;  %856 = vmatpush.bf16.msra.mxu1 %v7324_v57  ;;  %v7331_v62 = vld [vmem:[%s10711_s3 + $0x88] sm:$0xff] }
 0x131   : > { %v618_v59 = vsub.f32 %v8059_v27, %v609_v58  ;;  %v622_v4 = vsub.f32 %v8057_v25, %v613_v1  ;;  %v7332_v58 = vld [vmem:[%s10711_s3 + $0x90] sm:$0xff]  ;;  %v7330_v1 = vld [vmem:[%s10711_s3 + $0x80] sm:$0xff] }
 0x132   : > { %959 = vmatpush.bf16.msrb.mxu2 %v7332_v58 }
 0x133   : > { %v8113_v60 = vmul.f32 %v8097_v48, %v618_v59  ;;  %v8126_v11 = vmul.f32 %v8097_v48, %v622_v4  ;;  %v7340_v59 = vld [vmem:[%s10711_s3 + $0x110] sm:$0xff] }
 0x134   : > { %1062 = vmatpush.bf16.msra.mxu3 %v7340_v59 }
 0x135   : > { %v636_v61 = vmul.f32 %v8113_v60, %v8113_v60  ;;  %v640_v15 = vmul.f32 %v8126_v11, %v8126_v11 }
 0x136   : > { %v596_v63 = vpop.xlane.xlu1 %595  ;;  %960 = vmatpush.bf16.msrb.mxu2 %v7331_v62 }
 0x137   : > { %v610_v0 = vmul.f32 0.010416667, %v596_v63  ;;  %647 = vadd.xlane.f32.xlu2 %v636_v61  ;;  %v7323_v61 = vld [vmem:[%s10711_s3 + $0x8] sm:$0xff] }
 0x138   : > { %v7339_v63 = vld [vmem:[%s10711_s3 + $0x108] sm:$0xff]  ;;  %857 = vmatpush.bf16.msra.mxu1 %v7323_v61 }
 0x139   : > { %v619_v2 = vsub.f32 %v8066_v31, %v610_v0  ;;  %1063 = vmatpush.bf16.msra.mxu3 %v7339_v63  ;;  %v7322_v0 = vld [vmem:[%s10711_s3] sm:$0xff] }
 0x13a   : > { %961 = vmatpush.bf16.msrb.mxu2 %v7330_v1 }
 0x13b   : > { %v8119_v3 = vmul.f32 %v8097_v48, %v619_v2  ;;  %v7338_v2 = vld [vmem:[%s10711_s3 + $0x100] sm:$0xff] }
 0x13c   : > { %858 = vmatpush.bf16.msra.mxu1 %v7322_v0 }
 0x13d   : > { %v637_v5 = vmul.f32 %v8119_v3, %v8119_v3  ;;  %1064 = vmatpush.bf16.msra.mxu3 %v7338_v2 }
 0x13e   : > { %v598_v6 = vpop.xlane.xlu2 %597  ;;  %v604_v7 = vpop.xlane.xlu1 %603 }
 0x13f   : > { %v611_v8 = vmul.f32 0.010416667, %v598_v6  ;;  %649 = vadd.xlane.f32.xlu0 %v637_v5  ;;  %v614_v10 = vmul.f32 0.010416667, %v604_v7 }
 0x141   : > { %v620_v9 = vsub.f32 %v8077_v37, %v611_v8  ;;  %v623_v13 = vsub.f32 %v8075_v35, %v614_v10 }
 0x143   : > { %v8129_v12 = vmul.f32 %v8097_v48, %v620_v9  ;;  %v8138_v23 = vmul.f32 %v8097_v48, %v623_v13 }
 0x145   : > { %v638_v14 = vmul.f32 %v8129_v12, %v8129_v12  ;;  %v641_v28 = vmul.f32 %v8138_v23, %v8138_v23 }
 0x146   : > { %v600_v16 = vpop.xlane.xlu2 %599  ;;  %v606_v18 = vpop.xlane.xlu1 %605 }
 0x147   : > { %v612_v19 = vmul.f32 0.010416667, %v600_v16  ;;  %651 = vadd.xlane.f32.xlu1 %v638_v14  ;;  %655 = vadd.xlane.f32.xlu0 %v640_v15  ;;  %v615_v22 = vmul.f32 0.010416667, %v606_v18 }
 0x149   : > { %v621_v20 = vsub.f32 %v8089_v42, %v612_v19  ;;  %v624_v26 = vsub.f32 %v8087_v40, %v615_v22 }
 0x14b   : > { %v8141_v24 = vmul.f32 %v8097_v48, %v621_v20  ;;  %v8149_v30 = vmul.f32 %v8097_v48, %v624_v26 }
 0x14d   : > { %v639_v29 = vmul.f32 %v8141_v24, %v8141_v24  ;;  %v642_v32 = vmul.f32 %v8149_v30, %v8149_v30 }
 0x14f   : > { %657 = vadd.xlane.f32.xlu1 %v641_v28  ;;  %653 = vadd.xlane.f32.xlu2 %v639_v29 }
 0x157   : > { %659 = vadd.xlane.f32.xlu2 %v642_v32 }
 0x19a   : > { %v644_v4 = vpop.xlane.xlu2 %643 }
 0x19b   : > { %v661_v5 = vmul.f32 0.010416667, %v644_v4 }
 0x19d   : > { %v670_v6 = vadd.f32 1e-06, %v661_v5 }
 0x19f   : > { %7596 = vrsqrt.f32 %v670_v6  ;;  %vm685_vm2 = vweird.f32 %v670_v6 }
 0x1a2   : > { %v646_v7 = vpop.xlane.xlu0 %645 }
 0x1a3   : > { %v662_v8 = vmul.f32 0.010416667, %v646_v7 }
 0x1a5   : > { %v7597_v9 = vpop.eup %7596  ;;  %v671_v10 = vadd.f32 1e-06, %v662_v8 }
 0x1a6   : > { %v680_v13 = vmul.f32 %v7597_v9, %v670_v6  ;;  %vm686_vm1 = vweird.f32 %v7597_v9 }
 0x1a7   : > { %7598 = vrsqrt.f32 %v671_v10  ;;  %vm687_vm4 = vmor %vm685_vm2, %vm686_vm1  ;;  %vm695_vm5 = vweird.f32 %v671_v10 }
 0x1a8   : > { %v681_v14 = vmul.f32 %v7597_v9, %v680_v13 }
 0x1aa   : > { %v682_v15 = vmul.f32 0.5, %v681_v14  ;;  %v648_v16 = vpop.xlane.xlu2 %647 }
 0x1ab   : > { %v663_v18 = vmul.f32 0.010416667, %v648_v16 }
 0x1ac   : > { %v683_v22 = vsub.f32 1.5, %v682_v15 }
 0x1ad   : > { %v7599_v19 = vpop.eup %7598  ;;  %v672_v20 = vadd.f32 1e-06, %v663_v18 }
 0x1ae   : > { %v690_v26 = vmul.f32 %v7599_v19, %v671_v10  ;;  %v684_v29 = vmul.f32 %v7597_v9, %v683_v22  ;;  %vm696_vm3 = vweird.f32 %v7599_v19 }
 0x1af   : > { %7600 = vrsqrt.f32 %v672_v20  ;;  %vm697_vm6 = vmor %vm695_vm5, %vm696_vm3  ;;  %vm705_vm8 = vweird.f32 %v672_v20 }
 0x1b0   : > { %v691_v28 = vmul.f32 %v7599_v19, %v690_v26  ;;  %v688_v41 = vsel %vm687_vm4, %v7597_v9, %v684_v29 }
 0x1b1   : > { %v769_v51 = vmul.f32 %v688_v41, %v8101_v50  ;;  %v7356_v41 = vld [vmem:[%s10711_s3 + $0x70] sm:$0xff] }
 0x1b2   : > { %v692_v32 = vmul.f32 0.5, %v691_v28  ;;  %v650_v33 = vpop.xlane.xlu0 %649 }
 0x1b3   : > { %v664_v34 = vmul.f32 0.010416667, %v650_v33 }
 0x1b4   : > { %v693_v36 = vsub.f32 1.5, %v692_v32 }
 0x1b5   : > { %v7601_v38 = vpop.eup %7600  ;;  %v673_v39 = vadd.f32 1e-06, %v664_v34 }
 0x1b6   : > { %v694_v45 = vmul.f32 %v7599_v19, %v693_v36  ;;  %v700_v46 = vmul.f32 %v7601_v38, %v672_v20  ;;  %vm706_vm7 = vweird.f32 %v7601_v38 }
 0x1b7   : > { %7602 = vrsqrt.f32 %v673_v39  ;;  %vm707_vm10 = vmor %vm705_vm8, %vm706_vm7  ;;  %vm715_vm11 = vweird.f32 %v673_v39 }
 0x1b8   : > { %v698_v47 = vsel %vm697_vm6, %v7599_v19, %v694_v45  ;;  %v701_v49 = vmul.f32 %v7601_v38, %v700_v46  ;;  %v7364_v45 = vld [vmem:[%s10711_s3 + $0xf0] sm:$0xff] }
 0x1b9   : > { %v770_v52 = vmul.f32 %v698_v47, %v8107_v55 }
 0x1ba   : > { %v702_v53 = vmul.f32 0.5, %v701_v49  ;;  %v652_v54 = vpop.xlane.xlu1 %651  ;;  %v656_v50 = vpop.xlane.xlu0 %655 }
 0x1bb   : > { %v8227_v56 = vpack.c.bf16 %v770_v52, %v769_v51  ;;  %v665_v57 = vmul.f32 0.010416667, %v652_v54  ;;  %v667_v1 = vmul.f32 0.010416667, %v656_v50  ;;  %v7355_v54 = vld [vmem:[%s10711_s3 + $0x68] sm:$0xff] }
 0x1bc   : > { %v703_v61 = vsub.f32 1.5, %v702_v53 }
 0x1bd   : > { %v7603_v58 = vpop.eup %7602  ;;  %v8229_v59 = vadd.f32 1e-06, %v665_v57  ;;  %859 = vmatmul.bf16.vlgmr.msra.gmra.mxu1 %v8227_v56  ;;  %962 = vmatmul.bf16.vlgmr.msrb.gmra.mxu2 %v8227_v56  ;;  %v8241_v16 = vadd.f32 1e-06, %v667_v1  ;;  %v7363_v57 = vld [vmem:[%s10711_s3 + $0xe8] sm:$0xff] }
 0x1be   : > { %v710_v62 = vmul.f32 %v7603_v58, %v673_v39  ;;  %1065 = vmatmul.bf16.vlgmr.msra.gmra.mxu3 %v8227_v56  ;;  %v704_v63 = vmul.f32 %v7601_v38, %v703_v61  ;;  %vm716_vm9 = vweird.f32 %v7603_v58 }
 0x1bf   : > { %7604 = vrsqrt.f32 %v8229_v59  ;;  %vm717_vm12 = vmor %vm715_vm11, %vm716_vm9  ;;  %vm725_vm14 = vweird.f32 %v8229_v59  ;;  %vm745_vm7 = vweird.f32 %v8241_v16 }
 0x1c0   : > { %v711_v55 = vmul.f32 %v7603_v58, %v710_v62  ;;  %v708_v13 = vsel %vm707_vm10, %v7601_v38, %v704_v63  ;;  %v7362_v63 = vld [vmem:[%s10711_s3 + $0xe0] sm:$0xff] }
 0x1c1   : > { %v771_v20 = vmul.f32 %v708_v13, %v8113_v60  ;;  %v7357_v60 = vld [vmem:[%s10711_s3 + $0x78] sm:$0xff]  ;;  %v7352_v13 = vld [vmem:[%s10711_s3 + $0x50] sm:$0xff] }
 0x1c2   : > { %v712_v0 = vmul.f32 0.5, %v711_v55  ;;  %v658_v2 = vpop.xlane.xlu1 %657  ;;  %v654_v4 = vpop.xlane.xlu2 %653  ;;  %1420 = vmatpush.bf16.msra.mxu2 %v7357_v60  ;;  %v7350_v60 = vld [vmem:[%s10711_s3 + $0x40] sm:$0xff] }
 0x1c3   : > { %v668_v5 = vmul.f32 0.010416667, %v658_v2  ;;  %v666_v6 = vmul.f32 0.010416667, %v654_v4 }
 0x1c4   : > { %v713_v7 = vsub.f32 1.5, %v712_v0 }
 0x1c5   : > { %v8235_v8 = vpop.eup %7604  ;;  %v8237_v9 = vadd.f32 1e-06, %v668_v5  ;;  %v675_v10 = vadd.f32 1e-06, %v666_v6 }
 0x1c6   : > { %v714_v14 = vmul.f32 %v7603_v58, %v713_v7  ;;  %v720_v15 = vmul.f32 %v8235_v8, %v8229_v59  ;;  %vm726_vm13 = vweird.f32 %v8235_v8  ;;  %1421 = vmatpush.bf16.msra.mxu2 %v7356_v41  ;;  %v7354_v59 = vld [vmem:[%s10711_s3 + $0x60] sm:$0xff] }
 0x1c7   : > { %7606 = vrsqrt.f32 %v8237_v9  ;;  %vm727_vm0 = vmor %vm725_vm14, %vm726_vm13  ;;  %vm735_vm1 = vweird.f32 %v675_v10  ;;  %vm755_vm5 = vweird.f32 %v8237_v9  ;;  %vm1100_vm13 = vcmask 523264  }
 0x1c8   : > { %v718_v18 = vsel %vm717_vm12, %v7603_v58, %v714_v14  ;;  %v721_v19 = vmul.f32 %v8235_v8, %v720_v15  ;;  %7608 = vrsqrt.f32 %v675_v10  ;;  %v7360_v14 = vld [vmem:[%s10711_s3 + $0xd0] sm:$0xff]  ;;  %vm1300_vm12 = vcmask 1043456  }
 0x1c9   : > { %v772_v22 = vmul.f32 %v718_v18, %v8119_v3  ;;  %7610 = vrsqrt.f32 %v8241_v16  ;;  %v7365_v3 = vld [vmem:[%s10711_s3 + $0xf8] sm:$0xff]  ;;  %vm445_vm14 = vcmp.lt.s32.totalorder %v8094_v44, 65 }
 0x1ca   : > { %v722_v28 = vmul.f32 0.5, %v721_v19  ;;  %v660_v32 = vpop.xlane.xlu2 %659  ;;  %1523 = vmatpush.bf16.msrb.mxu3 %v7365_v3  ;;  %1422 = vmatpush.bf16.msra.mxu2 %v7355_v54  ;;  %v7358_v3 = vld [vmem:[%s10711_s3 + $0xc0] sm:$0xff]  ;;  %v7481_v44 = vld [vmem:[%s10713_s5 + $0x78] sm:$0xff] }
 0x1cb   : > { %v8248_v26 = vpack.c.bf16 %v772_v22, %v771_v20  ;;  %v669_v39 = vmul.f32 0.010416667, %v660_v32  ;;  %v7351_v20 = vld [vmem:[%s10711_s3 + $0x48] sm:$0xff] }
 0x1cc   : > { %v723_v34 = vsub.f32 1.5, %v722_v28  ;;  %v7359_v22 = vld [vmem:[%s10711_s3 + $0xc8] sm:$0xff] }
 0x1cd   : > { %v8250_v29 = vpop.eup %7606  ;;  %864 = vmatmul.bf16.gmra.mxu1 %v8248_v26  ;;  %967 = vmatmul.bf16.gmra.mxu2 %v8248_v26  ;;  %v8275_v53 = vadd.f32 1e-06, %v669_v39 }
 0x1ce   : > { %v7609_v33 = vpop.eup %7608  ;;  %1070 = vmatmul.bf16.gmra.mxu3 %v8248_v26  ;;  %v750_v46 = vmul.f32 %v8250_v29, %v8237_v9  ;;  %v724_v49 = vmul.f32 %v8235_v8, %v723_v34  ;;  %1423 = vmatpush.bf16.msra.mxu2 %v7354_v59  ;;  %vm756_vm3 = vweird.f32 %v8250_v29 }
 0x1cf   : > { %v730_v36 = vmul.f32 %v7609_v33, %v675_v10  ;;  %v8261_v38 = vpop.eup %7610  ;;  %1524 = vmatpush.bf16.msrb.mxu3 %v7364_v45  ;;  %vm736_vm15 = vweird.f32 %v7609_v33  ;;  %7612 = vrsqrt.f32 %v8275_v53  ;;  %v7353_v10 = vld [vmem:[%s10711_s3 + $0x58] sm:$0xff]  ;;  %vm757_vm6 = vmor %vm755_vm5, %vm756_vm3  ;;  %vm765_vm10 = vweird.f32 %v8275_v53 }
 0x1d0   : > { %v740_v51 = vmul.f32 %v8261_v38, %v8241_v16  ;;  %v751_v58 = vmul.f32 %v8250_v29, %v750_v46  ;;  %v728_v62 = vsel %vm727_vm0, %v8235_v8, %v724_v49  ;;  %vm737_vm2 = vmor %vm735_vm1, %vm736_vm15  ;;  %vm746_vm4 = vweird.f32 %v8261_v38 }
 0x1d1   : > { %v731_v47 = vmul.f32 %v7609_v33, %v730_v36  ;;  %v773_v2 = vmul.f32 %v728_v62, %v8129_v12  ;;  %v7361_v12 = vld [vmem:[%s10711_s3 + $0xd8] sm:$0xff]  ;;  %vm747_vm8 = vmor %vm745_vm7, %vm746_vm4  ;;  %vm1175_vm15 = vcmask 588800  }
 0x1d2   : > { %v741_v50 = vmul.f32 %v8261_v38, %v740_v51  ;;  %v752_v0 = vmul.f32 0.5, %v751_v58  ;;  %1424 = vmatpush.bf16.msra.mxu2 %v7353_v10 }
 0x1d3   : > { %v732_v52 = vmul.f32 0.5, %v731_v47  ;;  %1525 = vmatpush.bf16.msrb.mxu3 %v7363_v57 }
 0x1d4   : > { %v742_v5 = vmul.f32 0.5, %v741_v50  ;;  %v753_v7 = vsub.f32 1.5, %v752_v0 }
 0x1d5   : > { %v733_v61 = vsub.f32 1.5, %v732_v52  ;;  %v7613_v8 = vpop.eup %7612 }
 0x1d6   : > { %v754_v15 = vmul.f32 %v8250_v29, %v753_v7  ;;  %v760_v18 = vmul.f32 %v7613_v8, %v8275_v53  ;;  %1425 = vmatpush.bf16.msra.mxu2 %v7352_v13  ;;  %vm766_vm9 = vweird.f32 %v7613_v8  ;;  %v8385_v7 = vld [vmem:[%s10712_s4] ss:$0 sm:$0xff]  ;;  %v7582_v13 = vld [vmem:[%s10712_s4 + $0x4] ss:$0 sm:$0xff] }
 0x1d7   : > { %v734_v55 = vmul.f32 %v7609_v33, %v733_v61  ;;  %1526 = vmatpush.bf16.msrb.mxu3 %v7362_v63  ;;  %vm767_vm11 = vmor %vm765_vm10, %vm766_vm9 }
 0x1d8   : > { %v758_v28 = vsel %vm757_vm6, %v8250_v29, %v754_v15  ;;  %v761_v32 = vmul.f32 %v7613_v8, %v760_v18 }
 0x1d9   : > { %v738_v1 = vsel %vm737_vm2, %v7609_v33, %v734_v55  ;;  %v776_v9 = vmul.f32 %v758_v28, %v8138_v23 }
 0x1da   : > { %v774_v4 = vmul.f32 %v738_v1, %v8141_v24  ;;  %v743_v24 = vsub.f32 1.5, %v742_v5  ;;  %1426 = vmatpush.bf16.msra.mxu2 %v7351_v20  ;;  %v762_v34 = vmul.f32 0.5, %v761_v32 }
 0x1db   : > { %1527 = vmatpush.bf16.msrb.mxu3 %v7361_v12 }
 0x1dc   : > { %v8296_v6 = vpack.c.bf16 %v774_v4, %v773_v2  ;;  %v744_v19 = vmul.f32 %v8261_v38, %v743_v24  ;;  %v763_v36 = vsub.f32 1.5, %v762_v34  ;;  %v7581_v24 = vld [vmem:[%s10712_s4 + $0x2] ss:$0 sm:$0xff] }
 0x1de   : > { %869 = vmatmul.bf16.gmra.mxu1 %v8296_v6  ;;  %972 = vmatmul.bf16.gmra.mxu2 %v8296_v6  ;;  %v748_v33 = vsel %vm747_vm8, %v8261_v38, %v744_v19  ;;  %v764_v23 = vmul.f32 %v7613_v8, %v763_v36 }
 0x1df   : > { %1075 = vmatmul.bf16.gmra.mxu3 %v8296_v6  ;;  %v775_v16 = vmul.f32 %v748_v33, %v8126_v11  ;;  %1427 = vmatpush.bf16.msra.mxu2 %v7350_v60 }
 0x1e0   : > { %1528 = vmatpush.bf16.msrb.mxu3 %v7360_v14  ;;  %v768_v38 = vsel %vm767_vm11, %v7613_v8, %v764_v23 }
 0x1e1   : > { %v8336_v29 = vpack.c.bf16 %v776_v9, %v775_v16  ;;  %v777_v39 = vmul.f32 %v768_v38, %v8149_v30 }
 0x1e3   : > { %v8343_v11 = vpack.c.bf16 %v777_v39, %v777_v39 }
 0x1e4   : > { %1529 = vmatpush.bf16.msrb.mxu3 %v7359_v22 }
 0x1e8   : > { %1530 = vmatpush.bf16.msrb.mxu3 %v7358_v3 }
 0x1ee   : > { %874 = vmatmul.bf16.gmra.mxu1 %v8336_v29  ;;  %977 = vmatmul.bf16.gmra.mxu2 %v8336_v29 }
 0x1ef   : > { %1080 = vmatmul.bf16.gmra.mxu3 %v8336_v29 }
 0x1fe   : > { %879 = vmatmul.bf16.gmra.mxu1 %v8343_v11  ;;  %982 = vmatmul.bf16.gmra.mxu2 %v8343_v11 }
 0x1ff   : > { %1085 = vmatmul.bf16.gmra.mxu3 %v8343_v11 }
 0x20e   : > { %1428 = vmatmul.bf16.vlgmr.msra.gmra.mxu2 %v8227_v56 }
 0x20f   : > { %1531 = vmatmul.bf16.vlgmr.msrb.gmra.mxu3 %v8227_v56 }
 0x21e   : > { %1433 = vmatmul.bf16.gmra.mxu2 %v8248_v26 }
 0x21f   : > { %1536 = vmatmul.bf16.gmra.mxu3 %v8248_v26 }
 0x22e   : > { %1438 = vmatmul.bf16.gmra.mxu2 %v8296_v6 }
 0x22f   : > { %1541 = vmatmul.bf16.gmra.mxu3 %v8296_v6 }
 0x23a   : > { %v8354_v30 = vpop.f32.mrf.mxu1 }
 0x23e   : > { %1443 = vmatmul.bf16.gmra.mxu2 %v8336_v29 }
 0x23f   : > { %1546 = vmatmul.bf16.gmra.mxu3 %v8336_v29 }
 0x240   : > { %v8358_v41 = vpop.f32.mrf.mxu2 }
 0x241   : > { %v8360_v45 = vpop.f32.mrf.mxu3 }
 0x242   : > { %v8362_v46 = vpop.f32.mrf.mxu1 }
 0x248   : > { %v8364_v47 = vpop.f32.mrf.mxu2 }
 0x249   : > { %v1068_v49 = vpop.f32.mrf.mxu3 }
 0x24a   : > { %v8366_v51 = vpop.f32.mrf.mxu1 }
 0x24e   : > { %1448 = vmatmul.bf16.gmra.mxu2 %v8343_v11 }
 0x24f   : > { %1551 = vmatmul.bf16.gmra.mxu3 %v8343_v11 }
 0x250   : > { %v8370_v52 = vpop.f32.mrf.mxu2 }
 0x251   : > { %v1071_v53 = vpop.f32.mrf.mxu3 }
 0x252   : > { %v8372_v54 = vpop.f32.mrf.mxu1 }
 0x258   : > { %v970_v57 = vpop.f32.mrf.mxu2 }
 0x259   : > { %v1073_v58 = vpop.f32.mrf.mxu3 }
 0x25b   : > { %v8374_v61 = vpop.f32.mrf.mxu1 }
 0x261   : > { %v973_v62 = vpop.f32.mrf.mxu2 }
 0x262   : > { %v1076_v50 = vpop.f32.mrf.mxu3 }
 0x263   : > { %v8376_v55 = vpop.f32.mrf.mxu1 }
 0x269   : > { %v975_v59 = vpop.f32.mrf.mxu2 }
 0x26a   : > { %v1078_v63 = vpop.f32.mrf.mxu3 }
 0x26b   : > { %v8378_v0 = vpop.f32.mrf.mxu1  ;;  %v1079_v36 = vadd.f32 %v7582_v13, %v1078_v63 }
 0x271   : > { %v978_v1 = vpop.f32.mrf.mxu2 }
 0x272   : > { %v1081_v2 = vpop.f32.mrf.mxu3  ;;  %v979_v3 = vadd.f32 %v7581_v24, %v978_v1  ;;  %v1069_v1 = vadd.f32 %v7582_v13, %v1068_v49 }
 0x273   : > { %v8380_v4 = vpop.f32.mrf.mxu1  ;;  %v1082_v34 = vadd.f32 %v7582_v13, %v1081_v2 }
 0x279   : > { %v980_v5 = vpop.f32.mrf.mxu2 }
 0x27a   : > { %v1083_v8 = vpop.f32.mrf.mxu3  ;;  %v981_v32 = vadd.f32 %v7581_v24, %v980_v5 }
 0x27b   : > { %v880_v10 = vpop.f32.mrf.mxu1  ;;  %v1084_v33 = vadd.f32 %v7582_v13, %v1083_v8 }
 0x27c   : > { %v8388_v12 = vadd.f32 %v8385_v7, %v880_v10  ;;  %v1098_v39 = vpack.c.bf16 %v981_v32, %v979_v3  ;;  %v1077_v10 = vadd.f32 %v7582_v13, %v1076_v50  ;;  %v971_v50 = vadd.f32 %v7581_v24, %v970_v57 }
 0x27d   : > { %v1283_v38 = vpack.c.bf16 %v1084_v33, %v1082_v34  ;;  %v969_v32 = vadd.f32 %v7581_v24, %v8370_v52  ;;  %v966_v33 = vadd.f32 %v7581_v24, %v8364_v47  ;;  %v863_v3 = vadd.f32 %v8385_v7, %v8362_v46 }
 0x27e   : > { %v1126_v5 = vsel %vm1100_vm13, %v1098_v39, 0  ;;  %v1282_v8 = vpack.c.bf16 %v1079_v36, %v1077_v10  ;;  %v861_v47 = vadd.f32 %v8385_v7, %v8354_v30  ;;  %v866_v46 = vadd.f32 %v8385_v7, %v8366_v51  ;;  %v7373_v30 = vld [vmem:[%s10711_s3 + $0x178] sm:$0xff]  ;;  %v7371_v51 = vld [vmem:[%s10711_s3 + $0x168] sm:$0xff] }
 0x27f   : > { %v1096_v49 = vpack.c.bf16 %v971_v50, %v969_v32 }
 0x280   : > { %v1090_v36 = vpack.c.bf16 %v863_v3, %v861_v47 }
 0x281   : > { %v983_v14 = vpop.f32.mrf.mxu2 }
 0x282   : > { %v984_v15 = vadd.f32 %v7581_v24, %v983_v14  ;;  %v1086_v18 = vpop.f32.mrf.mxu3  ;;  %v1074_v14 = vadd.f32 %v7582_v13, %v1073_v58 }
 0x283   : > { %v1087_v19 = vadd.f32 %v7582_v13, %v1086_v18  ;;  %v882_v20 = vpop.f32.mrf.mxu1  ;;  %v1072_v18 = vadd.f32 %v7582_v13, %v1071_v53 }
 0x284   : > { %v1099_v22 = vpack.c.bf16 %v984_v15, %v984_v15  ;;  %v976_v15 = vadd.f32 %v7581_v24, %v975_v59 }
 0x285   : > { %v1284_v28 = vpack.c.bf16 %v1087_v19, %v1087_v19  ;;  %v974_v19 = vadd.f32 %v7581_v24, %v973_v62  ;;  %v1281_v63 = vpack.c.bf16 %v1074_v14, %v1072_v18  ;;  %v7372_v14 = vld [vmem:[%s10711_s3 + $0x170] sm:$0xff] }
 0x286   : > { %v1129_v9 = vsel %vm1100_vm13, %v1099_v22, 0 }
 0x287   : > { %1134 = vmatpush.bf16.xpose.msrb.mxu0 %v1129_v9  ;;  %v1302_v60 = vsel %vm1300_vm12, %v1284_v28, 0  ;;  %v1097_v22 = vpack.c.bf16 %v976_v15, %v974_v19  ;;  %v1067_v28 = vadd.f32 %v7582_v13, %v8360_v45  ;;  %v1120_v9 = vsel %vm1100_vm13, %v1096_v49, 0  ;;  %v7367_v49 = vld [vmem:[%s10711_s3 + $0x148] sm:$0xff] }
 0x288   : > { %1307 = vmatpush.bf16.msrb.mxu1 %v1302_v60  ;;  %v964_v45 = vadd.f32 %v7581_v24, %v8358_v41  ;;  %v871_v19 = vadd.f32 %v8385_v7, %v8374_v61  ;;  %v7584_v61 = vld [vmem:[%s10712_s4 + $0x3] ss:$0 sm:$0xff] }
 0x289   : > { %v985_v16 = vpop.f32.mrf.mxu2  ;;  %v1123_v58 = vsel %vm1100_vm13, %v1097_v22, 0  ;;  %v1280_v59 = vpack.c.bf16 %v1069_v1, %v1067_v28  ;;  %v7369_v22 = vld [vmem:[%s10711_s3 + $0x158] sm:$0xff]  ;;  %v7368_v28 = vld [vmem:[%s10711_s3 + $0x150] sm:$0xff] }
 0x28a   : > { %v1088_v23 = vpop.f32.mrf.mxu3  ;;  %v1095_v60 = vpack.c.bf16 %v966_v33, %v964_v45 }
 0x28b   : > { %v868_v23 = vadd.f32 %v8385_v7, %v8372_v54 }
 0x28c   : > { %1308 = vmatpush.bf16.msrb.mxu1 %v1283_v38  ;;  %v1117_v52 = vsel %vm1100_vm13, %v1095_v60, 0  ;;  %v878_v60 = vadd.f32 %v8385_v7, %v8380_v4 }
 0x28d   : > { %v1091_v10 = vpack.c.bf16 %v868_v23, %v866_v46 }
 0x28f   : > { %1135 = vmatpush.bf16.xpose.msrb.mxu0 %v1126_v5  ;;  %v873_v5 = vadd.f32 %v8385_v7, %v8376_v55  ;;  %v8461_v55 = vld [vmem:[%s10712_s4 + $0x1] ss:$0 sm:$0xff] }
 0x290   : > { %1309 = vmatpush.bf16.msrb.mxu1 %v1282_v8  ;;  %v7370_v8 = vld [vmem:[%s10711_s3 + $0x160] sm:$0xff] }
 0x291   : > { %v8399_v20 = vpop.f32.mrf.mxu2 }
 0x292   : > { %v8401_v2 = vpop.f32.mrf.mxu3 }
 0x294   : > { %1310 = vmatpush.bf16.msrb.mxu1 %v1281_v63  ;;  %v1092_v63 = vpack.c.bf16 %v873_v5, %v871_v19 }
 0x297   : > { %1136 = vmatpush.bf16.xpose.msrb.mxu0 %v1123_v58 }
 0x298   : > { %1311 = vmatpush.bf16.msrb.mxu1 %v1280_v59 }
 0x299   : > { %v8406_v53 = vpop.f32.mrf.mxu2 }
 0x29a   : > { %v8408_v62 = vpop.f32.mrf.mxu3 }
 0x29f   : > { %1137 = vmatpush.bf16.xpose.msrb.mxu0 %v1120_v9 }
 0x2a1   : > { %v8413_v57 = vpop.f32.mrf.mxu2 }
 0x2a2   : > { %v8415_v13 = vpop.f32.mrf.mxu3 }
 0x2a7   : > { %1138 = vmatpush.bf16.xpose.msrb.mxu0 %v1117_v52  ;;  %v7366_v52 = vld [vmem:[%s10711_s3 + $0x140] sm:$0xff] }
 0x2a9   : > { %v8420_v34 = vpop.f32.mrf.mxu2 }
 0x2aa   : > { %v1539_v16 = vpop.f32.mrf.mxu3 }
 0x2ab   : > { %v1540_v5 = vadd.f32 %v7584_v61, %v1539_v16 }
 0x2ae   : > { %6124 = vmatmul.msk.bf16.vlgmr.msrb.gmra.mxu0 %vm1100_vm13, %v1090_v36  ;;  %v876_v36 = vadd.f32 %v8385_v7, %v8378_v0  ;;  %v1094_v0 = vpack.c.bf16 %v8388_v12, %v8388_v12  ;;  %v1535_v7 = vadd.f32 %v7584_v61, %v8408_v62 }
 0x2af   : > { %1626 = vmatpush.bf16.msra.mxu0 %v7373_v30 }
 0x2b1   : > { %v8425_v41 = vpop.f32.mrf.mxu2 }
 0x2b2   : > { %v1542_v24 = vpop.f32.mrf.mxu3 }
 0x2b3   : > { %1627 = vmatpush.bf16.msra.mxu0 %v7372_v14  ;;  %v1543_v14 = vadd.f32 %v7584_v61, %v1542_v24  ;;  %v1533_v24 = vadd.f32 %v7584_v61, %v8401_v2 }
 0x2b7   : > { %1628 = vmatpush.bf16.msra.mxu0 %v7371_v51 }
 0x2b9   : > { %v8429_v38 = vpop.f32.mrf.mxu2 }
 0x2ba   : > { %v1544_v39 = vpop.f32.mrf.mxu3 }
 0x2bb   : > { %1629 = vmatpush.bf16.msra.mxu0 %v7370_v8  ;;  %v1545_v30 = vadd.f32 %v7584_v61, %v1544_v39 }
 0x2bd   : > { %v1666_v51 = vpack.c.bf16 %v1545_v30, %v1543_v14 }
 0x2be   : > { %6125 = vmatmul.msk.bf16.gmra.mxu0 %vm1100_vm13, %v1091_v10  ;;  %v1093_v10 = vpack.c.bf16 %v878_v60, %v876_v36 }
 0x2bf   : > { %1630 = vmatpush.bf16.msra.mxu0 %v7369_v22  ;;  %v1691_v8 = vsel %vm1100_vm13, %v1666_v51, 0 }
 0x2c1   : > { %v8440_v15 = vpop.f32.mrf.mxu2 }
 0x2c2   : > { %v1547_v54 = vpop.f32.mrf.mxu3 }
 0x2c3   : > { %1631 = vmatpush.bf16.msra.mxu0 %v7368_v28  ;;  %v1548_v3 = vadd.f32 %v7584_v61, %v1547_v54  ;;  %v1538_v54 = vadd.f32 %v7584_v61, %v8415_v13 }
 0x2c5   : > { %v1665_v19 = vpack.c.bf16 %v1540_v5, %v1538_v54 }
 0x2c7   : > { %1632 = vmatpush.bf16.msra.mxu0 %v7367_v49  ;;  %v1688_v39 = vsel %vm1100_vm13, %v1665_v19, 0 }
 0x2c9   : > { %v8450_v18 = vpop.f32.mrf.mxu2 }
 0x2ca   : > { %v1549_v1 = vpop.f32.mrf.mxu3 }
 0x2cb   : > { %v1550_v9 = vadd.f32 %v7584_v61, %v1549_v1  ;;  %1633 = vmatpush.bf16.msra.mxu0 %v7366_v52  ;;  %v1664_v1 = vpack.c.bf16 %v1535_v7, %v1533_v24 }
 0x2cd   : > { %v1667_v46 = vpack.c.bf16 %v1550_v9, %v1548_v3  ;;  %v1685_v16 = vsel %vm1100_vm13, %v1664_v1, 0 }
 0x2ce   : > { %6126 = vmatmul.msk.bf16.gmra.mxu0 %vm1100_vm13, %v1092_v63 }
 0x2cf   : > { %v1694_v4 = vsel %vm1100_vm13, %v1667_v46, 0 }
 0x2d1   : > { %v1449_v50 = vpop.f32.mrf.mxu2 }
 0x2d2   : > { %v8470_v58 = vadd.f32 %v8461_v55, %v1449_v50  ;;  %v1552_v59 = vpop.f32.mrf.mxu3 }
 0x2d3   : > { %v1553_v32 = vadd.f32 %v7584_v61, %v1552_v59 }
 0x2d5   : > { %v1668_v33 = vpack.c.bf16 %v1553_v32, %v1553_v32 }
 0x2d7   : > { %v1697_v45 = vsel %vm1100_vm13, %v1668_v33, 0 }
 0x2d8   : > { %1702 = vmatpush.bf16.xpose.msra.mxu1 %v1697_v45 }
 0x2d9   : > { %v1451_v47 = vpop.f32.mrf.mxu2 }
 0x2da   : > { %v1554_v23 = vpop.f32.mrf.mxu3 }
 0x2de   : > { %6127 = vmatmul.msk.bf16.gmra.mxu0 %vm1100_vm13, %v1093_v10 }
 0x2e0   : > { %1703 = vmatpush.bf16.xpose.msra.mxu1 %v1694_v4 }
 0x2e8   : > { %1704 = vmatpush.bf16.xpose.msra.mxu1 %v1691_v8 }
 0x2ee   : > { %6128 = vmatmul.msk.bf16.gmra.mxu0 %vm1100_vm13, %v1094_v0 }
 0x2f0   : > { %1705 = vmatpush.bf16.xpose.msra.mxu1 %v1688_v39 }
 0x2f8   : > { %1706 = vmatpush.bf16.xpose.msra.mxu1 %v1685_v16 }
 0x2fe   : > { %1634 = vmatmul.bf16.vlgmr.msra.gmra.mxu0 %v8227_v56 }
 0x30e   : > { %1639 = vmatmul.bf16.gmra.mxu0 %v8248_v26 }
 0x31e   : > { %1644 = vmatmul.bf16.gmra.mxu0 %v8296_v6 }
 0x32b   : > { %v1140_v12 = vpop.f32.mrf.mxu0 }
 0x32c   : > { %v1166_v62 = vsel %vm445_vm14, %v1140_v12, -1e+30 }
 0x32d   : > { %v1176_v13 = vsel %vm1175_vm15, %v1166_v62, -inf }
 0x32e   : > { %1177 = vmax.xlane.f32.xlu0 %v1176_v13  ;;  %1649 = vmatmul.bf16.gmra.mxu0 %v8336_v29 }
 0x333   : > { %v1142_v2 = vpop.f32.mrf.mxu0 }
 0x334   : > { %v1167_v56 = vsel %vm445_vm14, %v1142_v2, -1e+30 }
 0x335   : > { %v1179_v26 = vsel %vm1175_vm15, %v1167_v56, -inf }
 0x336   : > { %1180 = vmax.xlane.f32.xlu1 %v1179_v26 }
 0x33b   : > { %v1145_v6 = vpop.f32.mrf.mxu0 }
 0x33c   : > { %v1168_v63 = vsel %vm445_vm14, %v1145_v6, -1e+30 }
 0x33d   : > { %v1182_v22 = vsel %vm1175_vm15, %v1168_v63, -inf }
 0x33e   : > { %1183 = vmax.xlane.f32.xlu2 %v1182_v22  ;;  %1654 = vmatmul.bf16.gmra.mxu0 %v8343_v11 }
 0x343   : > { %v1147_v28 = vpop.f32.mrf.mxu0 }
 0x344   : > { %v1169_v29 = vsel %vm445_vm14, %v1147_v28, -1e+30  ;;  %v7585_v28 = vld [vmem:[%s10712_s4 + $0x5] ss:$0 sm:$0xff] }
 0x345   : > { %v1185_v61 = vsel %vm1175_vm15, %v1169_v29, -inf }
 0x346   : > { %1186 = vmax.xlane.f32.xlu0 %v1185_v61 }
 0x34b   : > { %v1150_v50 = vpop.f32.mrf.mxu0 }
 0x34c   : > { %v8514_v59 = vsel %vm445_vm14, %v1150_v50, -1e+30 }
 0x34d   : > { %v1188_v32 = vsel %vm1175_vm15, %v8514_v59, -inf }
 0x34e   : > { %1189 = vmax.xlane.f32.xlu1 %v1188_v32 }
 0x353   : > { %v1152_v49 = vpop.f32.mrf.mxu0 }
 0x354   : > { %v8520_v11 = vsel %vm445_vm14, %v1152_v49, -1e+30 }
 0x355   : > { %v1191_v33 = vsel %vm1175_vm15, %v8520_v11, -inf }
 0x356   : > { %1192 = vmax.xlane.f32.xlu2 %v1191_v33 }
 0x35b   : > { %v1155_v9 = vpop.f32.mrf.mxu0 }
 0x35c   : > { %v8526_v45 = vsel %vm445_vm14, %v1155_v9, -1e+30 }
 0x35d   : > { %v1194_v60 = vsel %vm1175_vm15, %v8526_v45, -inf }
 0x35e   : > { %1195 = vmax.xlane.f32.xlu0 %v1194_v60 }
 0x363   : > { %v1157_v52 = vpop.f32.mrf.mxu0 }
 0x364   : > { %v8532_v3 = vsel %vm445_vm14, %v1157_v52, -1e+30 }
 0x365   : > { %v1197_v47 = vsel %vm1175_vm15, %v8532_v3, -inf }
 0x366   : > { %1198 = vmax.xlane.f32.xlu1 %v1197_v47 }
 0x36b   : > { %v1160_v36 = vpop.f32.mrf.mxu0 }
 0x36c   : > { %v8538_v23 = vsel %vm445_vm14, %v1160_v36, -1e+30 }
 0x36d   : > { %v1200_v46 = vsel %vm1175_vm15, %v8538_v23, -inf }
 0x36e   : > { %1201 = vmax.xlane.f32.xlu1 %v1200_v46 }
 0x373   : > { %v1162_v10 = vpop.f32.mrf.mxu0 }
 0x37b   : > { %v8542_v30 = vpop.f32.mrf.mxu0 }
 0x383   : > { %v1637_v4 = vpop.f32.mrf.mxu0 }
 0x38b   : > { %v1640_v14 = vpop.f32.mrf.mxu0 }
 0x393   : > { %v1642_v51 = vpop.f32.mrf.mxu0 }
 0x39b   : > { %v1645_v5 = vpop.f32.mrf.mxu0 }
 0x3a1   : > { %v1178_v8 = vpop.xlane.xlu0 %1177 }
 0x3a2   : > { %v1203_v54 = vsub.f32 %v1166_v62, %v1178_v8 }
 0x3a3   : > { %v1647_v19 = vpop.f32.mrf.mxu0 }
 0x3a4   : > { %v1212_v0 = vmul.f32 1.442695, %v1203_v54 }
 0x3a6   : > { %7614 = vpow2.f32 %v1212_v0 }
 0x3a9   : > { %v1181_v7 = vpop.xlane.xlu1 %1180 }
 0x3aa   : > { %v1204_v39 = vsub.f32 %v1167_v56, %v1181_v7  ;;  %v1646_v7 = vadd.f32 %v7585_v28, %v1645_v5 }
 0x3ab   : > { %v1650_v24 = vpop.f32.mrf.mxu0 }
 0x3ac   : > { %v8544_v1 = vpop.eup %7614  ;;  %v1214_v16 = vmul.f32 1.442695, %v1204_v39  ;;  %v1651_v47 = vadd.f32 %v7585_v28, %v1650_v24  ;;  %v1641_v24 = vadd.f32 %v7585_v28, %v1640_v14 }
 0x3ad   : > { %v1230_v12 = vsel %vm1175_vm15, %v8544_v1, 0.0 }
 0x3ae   : > { %7616 = vpow2.f32 %v1214_v16  ;;  %1231 = vadd.xlane.f32.xlu2 %v1230_v12  ;;  %v1643_v16 = vadd.f32 %v7585_v28, %v1642_v51 }
 0x3b1   : > { %v1184_v13 = vpop.xlane.xlu2 %1183 }
 0x3b2   : > { %v1205_v2 = vsub.f32 %v1168_v63, %v1184_v13 }
 0x3b3   : > { %v1652_v26 = vpop.f32.mrf.mxu0 }
 0x3b4   : > { %v8548_v6 = vpop.eup %7616  ;;  %v1216_v62 = vmul.f32 1.442695, %v1205_v2  ;;  %v1653_v60 = vadd.f32 %v7585_v28, %v1652_v26  ;;  %v1846_v2 = vpack.c.bf16 %v1643_v16, %v1641_v24 }
 0x3b5   : > { %v1233_v22 = vsel %vm1175_vm15, %v8548_v6, 0.0 }
 0x3b6   : > { %7618 = vpow2.f32 %v1216_v62  ;;  %1234 = vadd.xlane.f32.xlu0 %v1233_v22  ;;  %v1848_v10 = vpack.c.bf16 %v1653_v60, %v1651_v47  ;;  %v1636_v22 = vadd.f32 %v7585_v28, %v8542_v30 }
 0x3b9   : > { %v1187_v56 = vpop.xlane.xlu0 %1186 }
 0x3ba   : > { %v1206_v61 = vsub.f32 %v1169_v29, %v1187_v56  ;;  %v1648_v29 = vadd.f32 %v7585_v28, %v1647_v19  ;;  %v1638_v19 = vadd.f32 %v7585_v28, %v1637_v4 }
 0x3bb   : > { %v1655_v50 = vpop.f32.mrf.mxu0 }
 0x3bc   : > { %v8555_v32 = vpop.eup %7618  ;;  %v1218_v49 = vmul.f32 1.442695, %v1206_v61  ;;  %v1656_v63 = vadd.f32 %v7585_v28, %v1655_v50  ;;  %v1847_v12 = vpack.c.bf16 %v1648_v29, %v1646_v7  ;;  %v1845_v56 = vpack.c.bf16 %v1638_v19, %v1636_v22 }
 0x3bd   : > { %v1236_v33 = vsel %vm1175_vm15, %v8555_v32, 0.0 }
 0x3be   : > { %7620 = vpow2.f32 %v1218_v49  ;;  %v1849_v9 = vpack.c.bf16 %v1656_v63, %v1656_v63  ;;  %1237 = vadd.xlane.f32.xlu2 %v1236_v33 }
 0x3c0   : > { %v1866_v52 = vsel %vm1300_vm12, %v1849_v9, 0 }
 0x3c1   : > { %v1190_v36 = vpop.xlane.xlu1 %1189  ;;  %1871 = vmatpush.bf16.msrb.mxu2 %v1866_v52 }
 0x3c2   : > { %v1207_v46 = vsub.f32 %v8514_v59, %v1190_v36 }
 0x3c3   : > { %v1657_v8 = vpop.f32.mrf.mxu0 }
 0x3c4   : > { %v8561_v54 = vpop.eup %7620  ;;  %v1220_v0 = vmul.f32 1.442695, %v1207_v46 }
 0x3c5   : > { %1872 = vmatpush.bf16.msrb.mxu2 %v1848_v10  ;;  %v1239_v39 = vsel %vm1175_vm15, %v8561_v54, 0.0 }
 0x3c6   : > { %7622 = vpow2.f32 %v1220_v0  ;;  %1240 = vadd.xlane.f32.xlu0 %v1239_v39 }
 0x3c9   : > { %v1193_v13 = vpop.xlane.xlu2 %1192  ;;  %1873 = vmatpush.bf16.msrb.mxu2 %v1847_v12 }
 0x3ca   : > { %v1208_v59 = vsub.f32 %v8520_v11, %v1193_v13 }
 0x3cc   : > { %v7623_v26 = vpop.eup %7622  ;;  %v1222_v62 = vmul.f32 1.442695, %v1208_v59 }
 0x3cd   : > { %1874 = vmatpush.bf16.msrb.mxu2 %v1846_v2  ;;  %v1242_v5 = vsel %vm1175_vm15, %v7623_v26, 0.0 }
 0x3ce   : > { %7624 = vpow2.f32 %v1222_v62  ;;  %1243 = vadd.xlane.f32.xlu1 %v1242_v5 }
 0x3d1   : > { %v1196_v61 = vpop.xlane.xlu0 %1195  ;;  %1875 = vmatpush.bf16.msrb.mxu2 %v1845_v56 }
 0x3d2   : > { %v1209_v14 = vsub.f32 %v8526_v45, %v1196_v61 }
 0x3d4   : > { %v7625_v51 = vpop.eup %7624  ;;  %v1224_v50 = vmul.f32 1.442695, %v1209_v14 }
 0x3d5   : > { %v1245_v11 = vsel %vm1175_vm15, %v7625_v51, 0.0 }
 0x3d6   : > { %7626 = vpow2.f32 %v1224_v50  ;;  %1246 = vadd.xlane.f32.xlu2 %v1245_v11 }
 0x3d9   : > { %v1199_v4 = vpop.xlane.xlu1 %1198 }
 0x3da   : > { %v1210_v49 = vsub.f32 %v8532_v3, %v1199_v4 }
 0x3dc   : > { %v7627_v30 = vpop.eup %7626  ;;  %v1226_v28 = vmul.f32 1.442695, %v1210_v49 }
 0x3dd   : > { %v1248_v63 = vsel %vm1175_vm15, %v7627_v30, 0.0 }
 0x3de   : > { %7628 = vpow2.f32 %v1226_v28  ;;  %1249 = vadd.xlane.f32.xlu0 %v1248_v63  ;;  %v1430_v63 = vadd.f32 %v8461_v55, %v8399_v20  ;;  %v7347_v20 = vld [vmem:[%s10713_s5 + $0x8] sm:$0xff] }
 0x3e1   : > { %v1202_v33 = vpop.xlane.xlu1 %1201 }
 0x3e2   : > { %v1211_v9 = vsub.f32 %v8538_v23, %v1202_v33 }
 0x3e4   : > { %v7629_v60 = vpop.eup %7628  ;;  %v1228_v45 = vmul.f32 1.442695, %v1211_v9  ;;  %v1437_v9 = vadd.f32 %v8461_v55, %v8420_v34  ;;  %v7346_v34 = vld [vmem:[%s10713_s5] sm:$0xff] }
 0x3e5   : > { %v1251_v52 = vsel %vm1175_vm15, %v7629_v60, 0.0 }
 0x3e6   : > { %7630 = vpow2.f32 %v1228_v45  ;;  %1252 = vadd.xlane.f32.xlu1 %v1251_v52  ;;  %v1440_v52 = vadd.f32 %v8461_v55, %v8425_v41  ;;  %v1663_v41 = vpack.c.bf16 %v8470_v58, %v8470_v58 }
 0x3ec   : > { %v7631_v47 = vpop.eup %7630 }
 0x3ed   : > { %v1254_v36 = vsel %vm1175_vm15, %v7631_v47, 0.0 }
 0x3ee   : > { %1255 = vadd.xlane.f32.xlu2 %v1254_v36  ;;  %v1447_v36 = vadd.f32 %v8461_v55, %v8450_v18 }
 0x421   : > { %v1232_v3 = vpop.xlane.xlu2 %1231 }
 0x422   : > { %7632 = vrcp.f32 %v1232_v3  ;;  %v1445_v3 = vadd.f32 %v8461_v55, %v8440_v15 }
 0x428   : > { %v7633_v29 = vpop.eup %7632 }
 0x429   : > { %v1235_v46 = vpop.xlane.xlu0 %1234  ;;  %v1266_v8 = vmul.f32 %v7633_v29, %v8544_v1  ;;  %v1662_v29 = vpack.c.bf16 %v1447_v36, %v1445_v3 }
 0x42a   : > { %7634 = vrcp.f32 %v1235_v46 }
 0x430   : > { %v7635_v10 = vpop.eup %7634 }
 0x431   : > { %v1267_v23 = vmul.f32 %v7635_v10, %v8548_v6  ;;  %v1238_v7 = vpop.xlane.xlu2 %1237 }
 0x432   : > { %7636 = vrcp.f32 %v1238_v7 }
 0x433   : > { %v1275_v0 = vpack.c.bf16 %v1267_v23, %v1266_v8 }
 0x435   : > { %6129 = vmatmul.msk.bf16.vlgmr.msrb.gmra.mxu1 %vm1175_vm15, %v1275_v0 }
 0x438   : > { %v7637_v16 = vpop.eup %7636 }
 0x439   : > { %v1241_v39 = vpop.xlane.xlu0 %1240  ;;  %v1268_v24 = vmul.f32 %v7637_v16, %v8555_v32 }
 0x43a   : > { %7638 = vrcp.f32 %v1241_v39 }
 0x440   : > { %v7639_v12 = vpop.eup %7638 }
 0x441   : > { %v1269_v13 = vmul.f32 %v7639_v12, %v8561_v54  ;;  %v1244_v19 = vpop.xlane.xlu1 %1243 }
 0x442   : > { %7640 = vrcp.f32 %v1244_v19 }
 0x443   : > { %v1276_v59 = vpack.c.bf16 %v1269_v13, %v1268_v24 }
 0x445   : > { %6130 = vmatmul.msk.bf16.gmra.mxu1 %vm1175_vm15, %v1276_v59 }
 0x448   : > { %v7641_v6 = vpop.eup %7640 }
 0x449   : > { %v1247_v1 = vpop.xlane.xlu2 %1246  ;;  %v1270_v62 = vmul.f32 %v7641_v6, %v7623_v26 }
 0x44a   : > { %7642 = vrcp.f32 %v1247_v1 }
 0x450   : > { %v7643_v2 = vpop.eup %7642 }
 0x451   : > { %v1271_v22 = vmul.f32 %v7643_v2, %v7625_v51  ;;  %v1250_v56 = vpop.xlane.xlu0 %1249  ;;  %v1432_v51 = vadd.f32 %v8461_v55, %v8406_v53  ;;  %v7348_v53 = vld [vmem:[%s10713_s5 + $0x10] sm:$0xff] }
 0x452   : > { %7644 = vrcp.f32 %v1250_v56 }
 0x453   : > { %v1277_v5 = vpack.c.bf16 %v1271_v22, %v1270_v62  ;;  %v1659_v33 = vpack.c.bf16 %v1432_v51, %v1430_v63 }
 0x455   : > { %6131 = vmatmul.msk.bf16.gmra.mxu1 %vm1175_vm15, %v1277_v5 }
 0x458   : > { %v7645_v32 = vpop.eup %7644 }
 0x459   : > { %v1253_v61 = vpop.xlane.xlu1 %1252  ;;  %v1272_v14 = vmul.f32 %v7645_v32, %v7627_v30  ;;  %v7349_v30 = vld [vmem:[%s10713_s5 + $0x18] sm:$0xff] }
 0x45a   : > { %7646 = vrcp.f32 %v1253_v61  ;;  %2030 = vmatpush.bf16.msrb.mxu0 %v7349_v30 }
 0x45e   : > { %2031 = vmatpush.bf16.msrb.mxu0 %v7348_v53 }
 0x460   : > { %v7647_v54 = vpop.eup %7646 }
 0x461   : > { %v1273_v50 = vmul.f32 %v7647_v54, %v7629_v60  ;;  %v1256_v11 = vpop.xlane.xlu2 %1255  ;;  %v1435_v60 = vadd.f32 %v8461_v55, %v8413_v57  ;;  %v1442_v57 = vadd.f32 %v8461_v55, %v8429_v38 }
 0x462   : > { %7648 = vrcp.f32 %v1256_v11  ;;  %2032 = vmatpush.bf16.msrb.mxu0 %v7347_v20 }
 0x463   : > { %v1278_v4 = vpack.c.bf16 %v1273_v50, %v1272_v14  ;;  %v1660_v45 = vpack.c.bf16 %v1437_v9, %v1435_v60 }
 0x465   : > { %6132 = vmatmul.msk.bf16.gmra.mxu1 %vm1175_vm15, %v1278_v4 }
 0x466   : > { %2033 = vmatpush.bf16.msrb.mxu0 %v7346_v34 }
 0x468   : > { %v7649_v49 = vpop.eup %7648 }
 0x469   : > { %v1274_v28 = vmul.f32 %v7649_v49, %v7631_v47  ;;  %v1661_v47 = vpack.c.bf16 %v1442_v57, %v1440_v52 }
 0x46b   : > { %v1279_v26 = vpack.c.bf16 %v1274_v28, %v1274_v28 }
 0x475   : > { %6133 = vmatmul.msk.bf16.gmra.mxu1 %vm1175_vm15, %v1279_v26 }
 0x485   : > { %6281 = vmatmul.msk.bf16.vlgmr.msra.gmra.mxu1 %vm1100_vm13, %v1659_v33 }
 0x495   : > { %6282 = vmatmul.msk.bf16.gmra.mxu1 %vm1100_vm13, %v1660_v45 }
 0x4a5   : > { %6283 = vmatmul.msk.bf16.gmra.mxu1 %vm1100_vm13, %v1661_v47 }
 0x4b2   : > { %v1313_v46 = vpop.f32.mrf.mxu1 }
 0x4b5   : > { %6284 = vmatmul.msk.bf16.gmra.mxu1 %vm1100_vm13, %v1662_v29 }
 0x4ba   : > { %v1315_v10 = vpop.f32.mrf.mxu1 }
 0x4bb   : > { %v1337_v8 = vpack.c.bf16 %v1315_v10, %v1313_v46 }
 0x4bd   : > { %6336 = vmatmul.msk.bf16.vlgmr.msrb.gmra.mxu0 %vm1100_vm13, %v1337_v8 }
 0x4c2   : > { %v1318_v38 = vpop.f32.mrf.mxu1 }
 0x4c5   : > { %6285 = vmatmul.msk.bf16.gmra.mxu1 %vm1100_vm13, %v1663_v41 }
 0x4ca   : > { %v1320_v23 = vpop.f32.mrf.mxu1 }
 0x4cb   : > { %v1338_v0 = vpack.c.bf16 %v1320_v23, %v1318_v38 }
 0x4cd   : > { %6337 = vmatmul.msk.bf16.gmra.mxu0 %vm1100_vm13, %v1338_v0 }
 0x4d2   : > { %v1323_v18 = vpop.f32.mrf.mxu1 }
 0x4da   : > { %v1325_v15 = vpop.f32.mrf.mxu1 }
 0x4db   : > { %v1339_v55 = vpack.c.bf16 %v1325_v15, %v1323_v18 }
 0x4dd   : > { %6338 = vmatmul.msk.bf16.gmra.mxu0 %vm1100_vm13, %v1339_v55 }
 0x4e2   : > { %v1328_v7 = vpop.f32.mrf.mxu1 }
 0x4ea   : > { %v1330_v39 = vpop.f32.mrf.mxu1 }
 0x4eb   : > { %v1340_v16 = vpack.c.bf16 %v1330_v39, %v1328_v7 }
 0x4ed   : > { %6339 = vmatmul.msk.bf16.gmra.mxu0 %vm1100_vm13, %v1340_v16 }
 0x4f2   : > { %v1333_v12 = vpop.f32.mrf.mxu1 }
 0x4f3   : > { %v1341_v13 = vpack.c.bf16 %v1333_v12, %v1333_v12 }
 0x4fa   : > { %v1335_v24 = vpop.f32.mrf.mxu1 }
 0x4fd   : > { %6340 = vmatmul.msk.bf16.gmra.mxu0 %vm1100_vm13, %v1341_v13 }
 0x502   : > { %v1708_v58 = vpop.f32.mrf.mxu1 }
 0x503   : > { %v1732_v59 = vsel %vm445_vm14, %v1708_v58, -1e+30 }
 0x504   : > { %v1741_v19 = vsel %vm1175_vm15, %v1732_v59, -inf }
 0x505   : > { %1742 = vmax.xlane.f32.xlu0 %v1741_v19 }
 0x50a   : > { %v1710_v1 = vpop.f32.mrf.mxu1 }
 0x50b   : > { %v1733_v6 = vsel %vm445_vm14, %v1710_v1, -1e+30 }
 0x50c   : > { %v1744_v2 = vsel %vm1175_vm15, %v1733_v6, -inf }
 0x50d   : > { %1745 = vmax.xlane.f32.xlu1 %v1744_v2 }
 0x512   : > { %v1713_v62 = vpop.f32.mrf.mxu1 }
 0x513   : > { %v1734_v22 = vsel %vm445_vm14, %v1713_v62, -1e+30 }
 0x514   : > { %v1747_v5 = vsel %vm1175_vm15, %v1734_v22, -inf }
 0x515   : > { %1748 = vmax.xlane.f32.xlu2 %v1747_v5 }
 0x51a   : > { %v1715_v56 = vpop.f32.mrf.mxu1 }
 0x51b   : > { %v1735_v61 = vsel %vm445_vm14, %v1715_v56, -1e+30 }
 0x51c   : > { %v1750_v32 = vsel %vm1175_vm15, %v1735_v61, -inf }
 0x51d   : > { %1751 = vmax.xlane.f32.xlu0 %v1750_v32 }
 0x522   : > { %v1718_v54 = vpop.f32.mrf.mxu1 }
 0x523   : > { %v1736_v14 = vsel %vm445_vm14, %v1718_v54, -1e+30 }
 0x524   : > { %v1753_v50 = vsel %vm1175_vm15, %v1736_v14, -inf }
 0x525   : > { %1754 = vmax.xlane.f32.xlu1 %v1753_v50 }
 0x52a   : > { %v1720_v11 = vpop.f32.mrf.mxu1 }
 0x52b   : > { %v1737_v4 = vsel %vm445_vm14, %v1720_v11, -1e+30 }
 0x52c   : > { %v1756_v49 = vsel %vm1175_vm15, %v1737_v4, -inf }
 0x52d   : > { %1757 = vmax.xlane.f32.xlu2 %v1756_v49 }
 0x532   : > { %v1723_v28 = vpop.f32.mrf.mxu1 }
 0x533   : > { %v8644_v26 = vsel %vm445_vm14, %v1723_v28, -1e+30 }
 0x534   : > { %v1759_v51 = vsel %vm1175_vm15, %v8644_v26, -inf }
 0x535   : > { %1760 = vmax.xlane.f32.xlu0 %v1759_v51 }
 0x53a   : > { %v1725_v63 = vpop.f32.mrf.mxu1  ;;  %v8648_v33 = vpop.f32.mrf.mxu0 }
 0x53b   : > { %v8652_v30 = vsel %vm445_vm14, %v1725_v63, -1e+30 }
 0x53c   : > { %v1762_v9 = vsel %vm1175_vm15, %v8652_v30, -inf }
 0x53d   : > { %1763 = vmax.xlane.f32.xlu1 %v1762_v9 }
 0x542   : > { %v1728_v60 = vpop.f32.mrf.mxu1  ;;  %v8656_v53 = vpop.f32.mrf.mxu0 }
 0x543   : > { %v1740_v5 = vsel %vm445_vm14, %v1728_v60, -1e+30 }
 0x544   : > { %v1765_v50 = vsel %vm1175_vm15, %v1740_v5, -inf }
 0x54a   : > { %v1730_v45 = vpop.f32.mrf.mxu1  ;;  %v8658_v20 = vpop.f32.mrf.mxu0 }
 0x552   : > { %v8660_v34 = vpop.f32.mrf.mxu0 }
 0x55a   : > { %v8662_v57 = vpop.f32.mrf.mxu0 }
 0x562   : > { %v8664_v52 = vpop.f32.mrf.mxu0 }
 0x56a   : > { %v8666_v47 = vpop.f32.mrf.mxu0 }
 0x572   : > { %v8668_v36 = vpop.f32.mrf.mxu0 }
 0x578   : > { %v1743_v3 = vpop.xlane.xlu0 %1742 }
 0x579   : > { %v1768_v46 = vsub.f32 %v1732_v59, %v1743_v3 }
 0x57a   : > { %v8670_v29 = vpop.f32.mrf.mxu0 }
 0x57b   : > { %v1777_v10 = vmul.f32 1.442695, %v1768_v46 }
 0x57d   : > { %7650 = vpow2.f32 %v1777_v10 }
 0x580   : > { %v1746_v8 = vpop.xlane.xlu1 %1745 }
 0x581   : > { %v1769_v38 = vsub.f32 %v1733_v6, %v1746_v8 }
 0x582   : > { %v2057_v41 = vpop.f32.mrf.mxu0 }
 0x583   : > { %v7651_v23 = vpop.eup %7650  ;;  %v1779_v0 = vmul.f32 1.442695, %v1769_v38 }
 0x584   : > { %v1795_v18 = vsel %vm1175_vm15, %v7651_v23, 0.0 }
 0x585   : > { %7652 = vpow2.f32 %v1779_v0  ;;  %1796 = vadd.xlane.f32.xlu2 %v1795_v18 }
 0x588   : > { %v1749_v15 = vpop.xlane.xlu2 %1748 }
 0x589   : > { %v1770_v55 = vsub.f32 %v1734_v22, %v1749_v15 }
 0x58b   : > { %v7653_v7 = vpop.eup %7652  ;;  %v1781_v39 = vmul.f32 1.442695, %v1770_v55 }
 0x58c   : > { %v1798_v16 = vsel %vm1175_vm15, %v7653_v7, 0.0 }
 0x58d   : > { %7654 = vpow2.f32 %v1781_v39  ;;  %1799 = vadd.xlane.f32.xlu0 %v1798_v16 }
 0x590   : > { %v1752_v12 = vpop.xlane.xlu0 %1751 }
 0x591   : > { %v1771_v24 = vsub.f32 %v1735_v61, %v1752_v12 }
 0x593   : > { %v7655_v13 = vpop.eup %7654  ;;  %v1783_v58 = vmul.f32 1.442695, %v1771_v24 }
 0x594   : > { %v1801_v59 = vsel %vm1175_vm15, %v7655_v13, 0.0 }
 0x595   : > { %7656 = vpow2.f32 %v1783_v58  ;;  %1802 = vadd.xlane.f32.xlu1 %v1801_v59 }
 0x598   : > { %v1755_v19 = vpop.xlane.xlu1 %1754 }
 0x599   : > { %v1772_v1 = vsub.f32 %v1736_v14, %v1755_v19 }
 0x59b   : > { %v7657_v6 = vpop.eup %7656  ;;  %v1785_v2 = vmul.f32 1.442695, %v1772_v1 }
 0x59c   : > { %v1804_v62 = vsel %vm1175_vm15, %v7657_v6, 0.0 }
 0x59d   : > { %7658 = vpow2.f32 %v1785_v2  ;;  %1805 = vadd.xlane.f32.xlu2 %v1804_v62 }
 0x5a0   : > { %v1758_v22 = vpop.xlane.xlu2 %1757 }
 0x5a1   : > { %v1773_v56 = vsub.f32 %v1737_v4, %v1758_v22 }
 0x5a3   : > { %v7659_v61 = vpop.eup %7658  ;;  %v1787_v32 = vmul.f32 1.442695, %v1773_v56 }
 0x5a4   : > { %v1807_v54 = vsel %vm1175_vm15, %v7659_v61, 0.0 }
 0x5a5   : > { %7660 = vpow2.f32 %v1787_v32  ;;  %1808 = vadd.xlane.f32.xlu0 %v1807_v54  ;;  %1766 = vmax.xlane.f32.xlu2 %v1765_v50 }
 0x5a8   : > { %v1761_v14 = vpop.xlane.xlu0 %1760 }
 0x5a9   : > { %v1774_v11 = vsub.f32 %v8644_v26, %v1761_v14 }
 0x5ab   : > { %v7661_v49 = vpop.eup %7660  ;;  %v1789_v28 = vmul.f32 1.442695, %v1774_v11 }
 0x5ac   : > { %v1810_v51 = vsel %vm1175_vm15, %v7661_v49, 0.0 }
 0x5ad   : > { %7662 = vpow2.f32 %v1789_v28  ;;  %1811 = vadd.xlane.f32.xlu1 %v1810_v51 }
 0x5b0   : > { %v1764_v63 = vpop.xlane.xlu1 %1763 }
 0x5b1   : > { %v1775_v4 = vsub.f32 %v8652_v30, %v1764_v63 }
 0x5b3   : > { %v7663_v9 = vpop.eup %7662  ;;  %v1791_v60 = vmul.f32 1.442695, %v1775_v4  ;;  %v7375_v4 = vld [vmem:[%s10713_s5 + $0x28] sm:$0xff] }
 0x5b4   : > { %v1813_v45 = vsel %vm1175_vm15, %v7663_v9, 0.0 }
 0x5b5   : > { %7664 = vpow2.f32 %v1791_v60  ;;  %1814 = vadd.xlane.f32.xlu0 %v1813_v45 }
 0x5bb   : > { %v7665_v3 = vpop.eup %7664 }
 0x5bc   : > { %v1816_v46 = vsel %vm1175_vm15, %v7665_v3, 0.0 }
 0x5bd   : > { %1817 = vadd.xlane.f32.xlu1 %v1816_v46 }
 0x5f8   : > { %v1797_v26 = vpop.xlane.xlu2 %1796 }
 0x5f9   : > { %7666 = vrcp.f32 %v1797_v26 }
 0x5ff   : > { %v7667_v8 = vpop.eup %7666 }
 0x600   : > { %v1800_v10 = vpop.xlane.xlu0 %1799  ;;  %v1831_v41 = vmul.f32 %v7667_v8, %v7651_v23  ;;  %v7377_v23 = vld [vmem:[%s10713_s5 + $0x38] sm:$0xff] }
 0x601   : > { %7668 = vrcp.f32 %v1800_v10  ;;  %1958 = vmatpush.bf16.msra.mxu3 %v7377_v23 }
 0x607   : > { %v7669_v38 = vpop.eup %7668 }
 0x608   : > { %v1832_v0 = vmul.f32 %v7669_v38, %v7653_v7  ;;  %v1803_v30 = vpop.xlane.xlu1 %1802  ;;  %v7376_v7 = vld [vmem:[%s10713_s5 + $0x30] sm:$0xff] }
 0x609   : > { %7670 = vrcp.f32 %v1803_v30  ;;  %1959 = vmatpush.bf16.msra.mxu3 %v7376_v7 }
 0x60a   : > { %v1840_v18 = vpack.c.bf16 %v1832_v0, %v1831_v41 }
 0x60c   : > { %6286 = vmatmul.msk.bf16.vlgmr.msrb.gmra.mxu2 %vm1175_vm15, %v1840_v18 }
 0x60d   : > { %1960 = vmatpush.bf16.msra.mxu3 %v7375_v4 }
 0x60f   : > { %v7671_v55 = vpop.eup %7670 }
 0x610   : > { %v1806_v15 = vpop.xlane.xlu2 %1805  ;;  %v1833_v16 = vmul.f32 %v7671_v55, %v7655_v13 }
 0x611   : > { %7672 = vrcp.f32 %v1806_v15 }
 0x617   : > { %v7673_v39 = vpop.eup %7672 }
 0x618   : > { %v1834_v12 = vmul.f32 %v7673_v39, %v7657_v6  ;;  %v1767_v24 = vpop.xlane.xlu2 %1766  ;;  %v1809_v1 = vpop.xlane.xlu0 %1808 }
 0x619   : > { %v1776_v58 = vsub.f32 %v1740_v5, %v1767_v24 }
 0x61a   : > { %v1841_v59 = vpack.c.bf16 %v1834_v12, %v1833_v16  ;;  %v8711_v12 = vld [vmem:[%s10714_s6] ss:$0 sm:$0xff] }
 0x61b   : > { %v1793_v19 = vmul.f32 1.442695, %v1776_v58 }
 0x61c   : > { %6287 = vmatmul.msk.bf16.gmra.mxu2 %vm1175_vm15, %v1841_v59 }
 0x61d   : > { %7674 = vpow2.f32 %v1793_v19 }
 0x61e   : > { %7676 = vrcp.f32 %v1809_v1 }
 0x620   : > { %v1812_v13 = vpop.xlane.xlu1 %1811 }
 0x621   : > { %7678 = vrcp.f32 %v1812_v13 }
 0x623   : > { %v7675_v6 = vpop.eup %7674 }
 0x624   : > { %v1819_v2 = vsel %vm1175_vm15, %v7675_v6, 0.0  ;;  %v7677_v62 = vpop.eup %7676 }
 0x625   : > { %1820 = vadd.xlane.f32.xlu2 %v1819_v2  ;;  %v1835_v5 = vmul.f32 %v7677_v62, %v7659_v61  ;;  %v7374_v61 = vld [vmem:[%s10713_s5 + $0x20] sm:$0xff] }
 0x626   : > { %1961 = vmatpush.bf16.msra.mxu3 %v7374_v61 }
 0x627   : > { %v7679_v22 = vpop.eup %7678 }
 0x628   : > { %v1836_v56 = vmul.f32 %v7679_v22, %v7661_v49  ;;  %v1815_v54 = vpop.xlane.xlu0 %1814 }
 0x629   : > { %7680 = vrcp.f32 %v1815_v54 }
 0x62a   : > { %v1842_v32 = vpack.c.bf16 %v1836_v56, %v1835_v5 }
 0x62c   : > { %6288 = vmatmul.msk.bf16.gmra.mxu2 %vm1175_vm15, %v1842_v32 }
 0x62f   : > { %v7681_v14 = vpop.eup %7680 }
 0x630   : > { %v1818_v50 = vpop.xlane.xlu1 %1817  ;;  %v1837_v28 = vmul.f32 %v7681_v14, %v7663_v9 }
 0x631   : > { %7682 = vrcp.f32 %v1818_v50 }
 0x637   : > { %v7683_v11 = vpop.eup %7682 }
 0x638   : > { %v1838_v51 = vmul.f32 %v7683_v11, %v7665_v3 }
 0x63a   : > { %v1843_v63 = vpack.c.bf16 %v1838_v51, %v1837_v28 }
 0x63c   : > { %6289 = vmatmul.msk.bf16.gmra.mxu2 %vm1175_vm15, %v1843_v63 }
 0x68f   : > { %v1877_v49 = vpop.f32.mrf.mxu2 }
 0x697   : > { %v1879_v60 = vpop.f32.mrf.mxu2 }
 0x698   : > { %v1901_v45 = vpack.c.bf16 %v1879_v60, %v1877_v49  ;;  %v1821_v46 = vpop.xlane.xlu2 %1820 }
 0x699   : > { %7684 = vrcp.f32 %v1821_v46 }
 0x69a   : > { %6315 = vmatmul.msk.bf16.vlgmr.msra.gmra.mxu3 %vm1100_vm13, %v1901_v45 }
 0x69f   : > { %v7685_v9 = vpop.eup %7684  ;;  %v1882_v3 = vpop.f32.mrf.mxu2 }
 0x6a0   : > { %v1839_v26 = vmul.f32 %v7685_v9, %v7675_v6 }
 0x6a2   : > { %v1844_v10 = vpack.c.bf16 %v1839_v26, %v1839_v26 }
 0x6a4   : > { %6290 = vmatmul.msk.bf16.gmra.mxu2 %vm1175_vm15, %v1844_v10 }
 0x6a7   : > { %v1884_v8 = vpop.f32.mrf.mxu2 }
 0x6a8   : > { %v1902_v38 = vpack.c.bf16 %v1884_v8, %v1882_v3 }
 0x6aa   : > { %6316 = vmatmul.msk.bf16.gmra.mxu3 %vm1100_vm13, %v1902_v38 }
 0x6af   : > { %v1887_v41 = vpop.f32.mrf.mxu2 }
 0x6b7   : > { %v1889_v0 = vpop.f32.mrf.mxu2 }
 0x6b8   : > { %v1903_v18 = vpack.c.bf16 %v1889_v0, %v1887_v41 }
 0x6ba   : > { %6317 = vmatmul.msk.bf16.gmra.mxu3 %vm1100_vm13, %v1903_v18 }
 0x6bf   : > { %v1892_v30 = vpop.f32.mrf.mxu2 }
 0x6c7   : > { %v1894_v15 = vpop.f32.mrf.mxu2 }
 0x6c8   : > { %v1904_v55 = vpack.c.bf16 %v1894_v15, %v1892_v30 }
 0x6ca   : > { %6318 = vmatmul.msk.bf16.gmra.mxu3 %vm1100_vm13, %v1904_v55 }
 0x71d   : > { %v1963_v39 = vpop.f32.mrf.mxu3 }
 0x71e   : > { %v2036_v16 = vadd.f32 %v8648_v33, %v1963_v39 }
 0x720   : > { %v2059_v24 = vadd.f32 %v2036_v16, %v8042_v17 }
 0x722   : > { %v8715_v58 = vadd.f32 %v8711_v12, %v2059_v24 }
 0x724   : > { %2081 = vadd.xlane.f32.xlu0 %v8715_v58 }
 0x725   : > { %v1965_v59 = vpop.f32.mrf.mxu3 }
 0x726   : > { %v2038_v19 = vadd.f32 %v8656_v53, %v1965_v59 }
 0x727   : > { %v1897_v1 = vpop.f32.mrf.mxu2 }
 0x728   : > { %v2060_v23 = vadd.f32 %v2038_v19, %v8048_v21  ;;  %v1905_v7 = vpack.c.bf16 %v1897_v1, %v1897_v1 }
 0x72a   : > { %6319 = vmatmul.msk.bf16.gmra.mxu3 %vm1100_vm13, %v1905_v7  ;;  %v8722_v33 = vadd.f32 %v8711_v12, %v2060_v23 }
 0x72c   : > { %2083 = vadd.xlane.f32.xlu1 %v8722_v33 }
 0x72d   : > { %v1968_v17 = vpop.f32.mrf.mxu3 }
 0x72e   : > { %v2041_v13 = vadd.f32 %v8658_v20, %v1968_v17 }
 0x72f   : > { %v1899_v6 = vpop.f32.mrf.mxu2 }
 0x730   : > { %v2061_v2 = vadd.f32 %v2041_v13, %v8059_v27 }
 0x732   : > { %v8728_v62 = vadd.f32 %v8711_v12, %v2061_v2 }
 0x734   : > { %2085 = vadd.xlane.f32.xlu2 %v8728_v62 }
 0x735   : > { %v1970_v21 = vpop.f32.mrf.mxu3 }
 0x736   : > { %v2043_v53 = vadd.f32 %v8660_v34, %v1970_v21 }
 0x738   : > { %v2062_v22 = vadd.f32 %v2043_v53, %v8066_v31 }
 0x73a   : > { %v8734_v5 = vadd.f32 %v8711_v12, %v2062_v22 }
 0x73c   : > { %2087 = vadd.xlane.f32.xlu0 %v8734_v5 }
 0x73d   : > { %v1973_v56 = vpop.f32.mrf.mxu3 }
 0x73e   : > { %v2046_v20 = vadd.f32 %v8662_v57, %v1973_v56 }
 0x740   : > { %v2063_v27 = vadd.f32 %v2046_v20, %v8077_v37 }
 0x742   : > { %v8740_v32 = vadd.f32 %v8711_v12, %v2063_v27 }
 0x744   : > { %2089 = vadd.xlane.f32.xlu1 %v8740_v32 }
 0x745   : > { %v1975_v54 = vpop.f32.mrf.mxu3 }
 0x746   : > { %v2048_v34 = vadd.f32 %v8664_v52, %v1975_v54 }
 0x748   : > { %v2064_v31 = vadd.f32 %v2048_v34, %v8089_v42  ;;  %v6427_v34 = vld [vmem:[%s10715_s7 + $0xa8] sm:$0xf] }
 0x74a   : > { %v8746_v50 = vadd.f32 %v8711_v12, %v2064_v31  ;;  %v7400_v31 = vld [vmem:[%s10715_s7 + $0xb0] sm:$0xf0] }
 0x74c   : > { %2091 = vadd.xlane.f32.xlu2 %v8746_v50 }
 0x74d   : > { %v1978_v14 = vpop.f32.mrf.mxu3 }
 0x74e   : > { %v2051_v57 = vadd.f32 %v8666_v47, %v1978_v14  ;;  %v7399_v14 = vld [vmem:[%s10715_s7 + $0xac] sm:$0xf] }
 0x750   : > { %v2065_v37 = vadd.f32 %v2051_v57, %v8057_v25  ;;  %v6428_v57 = vor.u32 %v7400_v31, %v6427_v34  ;;  %v6367_v31 = vld [vmem:[%s10715_s7 + $0x30] sm:$0xf] }
 0x752   : > { %v8752_v11 = vadd.f32 %v8711_v12, %v2065_v37  ;;  %v6429_v37 = vld [vmem:[%s10715_s7 + $0xb4] sm:$0xf0]  ;;  %2443 = vmatpush.bf16.msrb.mxu1 %v6428_v57  ;;  %v7384_v57 = vld [vmem:[%s10715_s7 + $0x34] sm:$0xf] }
 0x754   : > { %2093 = vadd.xlane.f32.xlu0 %v8752_v11 }
 0x755   : > { %v1980_v28 = vpop.f32.mrf.mxu3 }
 0x756   : > { %v2053_v52 = vadd.f32 %v8668_v36, %v1980_v28  ;;  %v6435_v28 = vld [vmem:[%s10715_s7 + $0xb0] sm:$0xf] }
 0x758   : > { %v2066_v42 = vadd.f32 %v2053_v52, %v8075_v35  ;;  %v7401_v52 = vld [vmem:[%s10715_s7 + $0xb8] sm:$0xf0] }
 0x75a   : > { %v8758_v51 = vadd.f32 %v8711_v12, %v2066_v42  ;;  %v6432_v42 = vor.u32 %v7399_v14, %v6429_v37  ;;  %v7385_v14 = vld [vmem:[%s10715_s7 + $0x38] sm:$0xf0] }
 0x75b   : > { %v6368_v37 = vor.u32 %v7385_v14, %v6367_v31 }
 0x75c   : > { %2095 = vadd.xlane.f32.xlu1 %v8758_v51  ;;  %2476 = vmatpush.bf16.msra.mxu2 %v6432_v42  ;;  %v7386_v42 = vld [vmem:[%s10715_s7 + $0x40] sm:$0xf0] }
 0x797   : > { %v2082_v63 = vpop.xlane.xlu0 %2081 }
 0x798   : > { %v2099_v4 = vmul.f32 0.010416667, %v2082_v63  ;;  %v6436_v63 = vor.u32 %v7401_v52, %v6435_v28  ;;  %v6369_v28 = vld [vmem:[%s10715_s7 + $0x3c] sm:$0xf0]  ;;  %v6375_v52 = vld [vmem:[%s10715_s7 + $0x38] sm:$0xf] }
 0x79a   : > { %v2108_v47 = vsub.f32 %v8715_v58, %v2099_v4  ;;  %2509 = vmatpush.bf16.msrb.mxu3 %v6436_v63  ;;  %v6415_v4 = vld [vmem:[%s10715_s7 + $0x90] sm:$0xf]  ;;  %v6372_v63 = vor.u32 %v7384_v57, %v6369_v28 }
 0x79c   : > { %v8763_v25 = vmul.f32 %v8097_v48, %v2108_v47  ;;  %v7397_v47 = vld [vmem:[%s10715_s7 + $0x98] sm:$0xf0] }
 0x79e   : > { %v2126_v61 = vmul.f32 %v8763_v25, %v8763_v25 }
 0x79f   : > { %v2084_v49 = vpop.xlane.xlu1 %2083 }
 0x7a0   : > { %v2100_v60 = vmul.f32 0.010416667, %v2084_v49  ;;  %2135 = vadd.xlane.f32.xlu2 %v2126_v61  ;;  %v7396_v61 = vld [vmem:[%s10715_s7 + $0x94] sm:$0xf]  ;;  %v6416_v49 = vor.u32 %v7397_v47, %v6415_v4  ;;  %v6376_v4 = vor.u32 %v7386_v42, %v6375_v52  ;;  %v6355_v47 = vld [vmem:[%s10715_s7 + $0x18] sm:$0xf] }
 0x7a2   : > { %v2109_v35 = vsub.f32 %v8722_v33, %v2100_v60  ;;  %v6417_v60 = vld [vmem:[%s10715_s7 + $0x9c] sm:$0xf0]  ;;  %2444 = vmatpush.bf16.msrb.mxu1 %v6416_v49  ;;  %v7381_v49 = vld [vmem:[%s10715_s7 + $0x1c] sm:$0xf] }
 0x7a4   : > { %v8769_v36 = vmul.f32 %v8097_v48, %v2109_v35  ;;  %v6423_v35 = vld [vmem:[%s10715_s7 + $0x98] sm:$0xf] }
 0x7a6   : > { %v2127_v45 = vmul.f32 %v8769_v36, %v8769_v36 }
 0x7a7   : > { %v2086_v46 = vpop.xlane.xlu2 %2085 }
 0x7a8   : > { %v2101_v9 = vmul.f32 0.010416667, %v2086_v46  ;;  %2137 = vadd.xlane.f32.xlu0 %v2127_v45  ;;  %v7398_v45 = vld [vmem:[%s10715_s7 + $0xa0] sm:$0xf0]  ;;  %v6420_v46 = vor.u32 %v7396_v61, %v6417_v60 }
 0x7a9   : > { %v7382_v61 = vld [vmem:[%s10715_s7 + $0x20] sm:$0xf0] }
 0x7aa   : > { %v2110_v3 = vsub.f32 %v8728_v62, %v2101_v9  ;;  %v6424_v9 = vor.u32 %v7398_v45, %v6423_v35  ;;  %2477 = vmatpush.bf16.msra.mxu2 %v6420_v46  ;;  %v6356_v60 = vor.u32 %v7382_v61, %v6355_v47  ;;  %v6357_v35 = vld [vmem:[%s10715_s7 + $0x24] sm:$0xf0]  ;;  %v6363_v45 = vld [vmem:[%s10715_s7 + $0x20] sm:$0xf]  ;;  %v7383_v46 = vld [vmem:[%s10715_s7 + $0x28] sm:$0xf0] }
 0x7ac   : > { %v8775_v26 = vmul.f32 %v8097_v48, %v2110_v3  ;;  %2510 = vmatpush.bf16.msrb.mxu3 %v6424_v9  ;;  %v6403_v3 = vld [vmem:[%s10715_s7 + $0x78] sm:$0xf]  ;;  %v6360_v9 = vor.u32 %v7381_v49, %v6357_v35 }
 0x7ad   : > { %v1983_v10 = vpop.f32.mrf.mxu3 }
 0x7ae   : > { %v2056_v8 = vadd.f32 %v8670_v29, %v1983_v10  ;;  %v2128_v38 = vmul.f32 %v8775_v26, %v8775_v26  ;;  %v7394_v10 = vld [vmem:[%s10715_s7 + $0x80] sm:$0xf0] }
 0x7af   : > { %v2088_v41 = vpop.xlane.xlu0 %2087 }
 0x7b0   : > { %v2067_v0 = vadd.f32 %v2056_v8, %v8087_v40  ;;  %v2102_v18 = vmul.f32 0.010416667, %v2088_v41  ;;  %2139 = vadd.xlane.f32.xlu1 %v2128_v38  ;;  %v7393_v8 = vld [vmem:[%s10715_s7 + $0x7c] sm:$0xf]  ;;  %v6404_v38 = vor.u32 %v7394_v10, %v6403_v3  ;;  %v6405_v41 = vld [vmem:[%s10715_s7 + $0x84] sm:$0xf0]  ;;  %v6364_v3 = vor.u32 %v7383_v46, %v6363_v45 }
 0x7b1   : > { %v6343_v10 = vld [vmem:[%s10715_s7] sm:$0xf] }
 0x7b2   : > { %v2111_v30 = vsub.f32 %v8734_v5, %v2102_v18  ;;  %v8783_v15 = vadd.f32 %v8711_v12, %v2067_v0  ;;  %v6411_v0 = vld [vmem:[%s10715_s7 + $0x80] sm:$0xf]  ;;  %v7395_v18 = vld [vmem:[%s10715_s7 + $0x88] sm:$0xf0]  ;;  %2445 = vmatpush.bf16.msrb.mxu1 %v6404_v38  ;;  %v7378_v38 = vld [vmem:[%s10715_s7 + $0x4] sm:$0xf] }
 0x7b4   : > { %2097 = vadd.xlane.f32.xlu0 %v8783_v15  ;;  %v8787_v55 = vmul.f32 %v8097_v48, %v2111_v30  ;;  %v6408_v30 = vor.u32 %v7393_v8, %v6405_v41  ;;  %v7379_v8 = vld [vmem:[%s10715_s7 + $0x8] sm:$0xf0] }
 0x7b5   : > { %v1985_v39 = vpop.f32.mrf.mxu3  ;;  %v6344_v41 = vor.u32 %v7379_v8, %v6343_v10 }
 0x7b6   : > { %v2129_v29 = vmul.f32 %v8787_v55, %v8787_v55  ;;  %v6412_v39 = vor.u32 %v7395_v18, %v6411_v0  ;;  %2478 = vmatpush.bf16.msra.mxu2 %v6408_v30  ;;  %v6345_v0 = vld [vmem:[%s10715_s7 + $0xc] sm:$0xf0]  ;;  %v6351_v18 = vld [vmem:[%s10715_s7 + $0x8] sm:$0xf]  ;;  %v7380_v30 = vld [vmem:[%s10715_s7 + $0x10] sm:$0xf0] }
 0x7b7   : > { %v2090_v16 = vpop.xlane.xlu1 %2089 }
 0x7b8   : > { %v2103_v24 = vmul.f32 0.010416667, %v2090_v16  ;;  %2141 = vadd.xlane.f32.xlu2 %v2129_v29  ;;  %2511 = vmatpush.bf16.msrb.mxu3 %v6412_v39  ;;  %v6391_v29 = vld [vmem:[%s10715_s7 + $0x60] sm:$0xf]  ;;  %v7391_v16 = vld [vmem:[%s10715_s7 + $0x68] sm:$0xf0] }
 0x7ba   : > { %v2112_v40 = vsub.f32 %v8740_v32, %v2103_v24  ;;  %v7390_v24 = vld [vmem:[%s10715_s7 + $0x64] sm:$0xf] }
 0x7bc   : > { %v8793_v59 = vmul.f32 %v8097_v48, %v2112_v40  ;;  %v6392_v40 = vor.u32 %v7391_v16, %v6391_v29  ;;  %v6348_v29 = vor.u32 %v7378_v38, %v6345_v0  ;;  %v6352_v16 = vor.u32 %v7380_v30, %v6351_v18 }
 0x7be   : > { %v2130_v12 = vmul.f32 %v8793_v59, %v8793_v59  ;;  %2446 = vmatpush.bf16.msrb.mxu1 %v6392_v40 }
 0x7bf   : > { %v2092_v19 = vpop.xlane.xlu2 %2091 }
 0x7c0   : > { %v2104_v1 = vmul.f32 0.010416667, %v2092_v19  ;;  %2143 = vadd.xlane.f32.xlu1 %v2130_v12  ;;  %v6393_v12 = vld [vmem:[%s10715_s7 + $0x6c] sm:$0xf0]  ;;  %v6399_v19 = vld [vmem:[%s10715_s7 + $0x68] sm:$0xf] }
 0x7c2   : > { %v2113_v23 = vsub.f32 %v8746_v50, %v2104_v1  ;;  %v7392_v1 = vld [vmem:[%s10715_s7 + $0x70] sm:$0xf0] }
 0x7c4   : > { %v8799_v7 = vmul.f32 %v8097_v48, %v2113_v23  ;;  %v6396_v23 = vor.u32 %v7390_v24, %v6393_v12 }
 0x7c6   : > { %v2131_v17 = vmul.f32 %v8799_v7, %v8799_v7  ;;  %2479 = vmatpush.bf16.msra.mxu2 %v6396_v23 }
 0x7c7   : > { %v2094_v13 = vpop.xlane.xlu0 %2093 }
 0x7c8   : > { %v2105_v6 = vmul.f32 0.010416667, %v2094_v13  ;;  %2145 = vadd.xlane.f32.xlu2 %v2131_v17  ;;  %v6400_v17 = vor.u32 %v7392_v1, %v6399_v19  ;;  %v6379_v13 = vld [vmem:[%s10715_s7 + $0x48] sm:$0xf] }
 0x7ca   : > { %v2114_v2 = vsub.f32 %v8752_v11, %v2105_v6  ;;  %2512 = vmatpush.bf16.msrb.mxu3 %v6400_v17  ;;  %v7388_v6 = vld [vmem:[%s10715_s7 + $0x50] sm:$0xf0] }
 0x7cc   : > { %v8805_v21 = vmul.f32 %v8097_v48, %v2114_v2  ;;  %v7387_v2 = vld [vmem:[%s10715_s7 + $0x4c] sm:$0xf] }
 0x7ce   : > { %v2132_v53 = vmul.f32 %v8805_v21, %v8805_v21 }
 0x7cf   : > { %v2096_v22 = vpop.xlane.xlu1 %2095 }
 0x7d0   : > { %v2106_v56 = vmul.f32 0.010416667, %v2096_v22  ;;  %2147 = vadd.xlane.f32.xlu0 %v2132_v53  ;;  %v6380_v53 = vor.u32 %v7388_v6, %v6379_v13  ;;  %v6381_v22 = vld [vmem:[%s10715_s7 + $0x54] sm:$0xf0] }
 0x7d2   : > { %v2115_v20 = vsub.f32 %v8758_v51, %v2106_v56  ;;  %v6387_v56 = vld [vmem:[%s10715_s7 + $0x50] sm:$0xf]  ;;  %2447 = vmatpush.bf16.msrb.mxu1 %v6380_v53 }
 0x7d4   : > { %v8811_v27 = vmul.f32 %v8097_v48, %v2115_v20  ;;  %v7389_v20 = vld [vmem:[%s10715_s7 + $0x58] sm:$0xf0] }
 0x7d5   : > { %v6388_v34 = vor.u32 %v7389_v20, %v6387_v56 }
 0x7d6   : > { %v2133_v54 = vmul.f32 %v8811_v27, %v8811_v27  ;;  %2448 = vmatpush.bf16.msrb.mxu1 %v6368_v37 }
 0x7d7   : > { %2513 = vmatpush.bf16.msrb.mxu3 %v6388_v34 }
 0x7d8   : > { %2149 = vadd.xlane.f32.xlu1 %v2133_v54  ;;  %v6384_v54 = vor.u32 %v7387_v2, %v6381_v22 }
 0x7da   : > { %2480 = vmatpush.bf16.msra.mxu2 %v6384_v54  ;;  %2449 = vmatpush.bf16.msrb.mxu1 %v6356_v60 }
 0x7db   : > { %2514 = vmatpush.bf16.msrb.mxu3 %v6376_v4 }
 0x7de   : > { %2481 = vmatpush.bf16.msra.mxu2 %v6372_v63  ;;  %2450 = vmatpush.bf16.msrb.mxu1 %v6344_v41 }
 0x7df   : > { %2515 = vmatpush.bf16.msrb.mxu3 %v6364_v3 }
 0x7e2   : > { %2482 = vmatpush.bf16.msra.mxu2 %v6360_v9 }
 0x7e3   : > { %2516 = vmatpush.bf16.msrb.mxu3 %v6352_v16 }
 0x7e6   : > { %2483 = vmatpush.bf16.msra.mxu2 %v6348_v29 }
 0x813   : > { %v2136_v39 = vpop.xlane.xlu2 %2135 }
 0x814   : > { %v2153_v24 = vmul.f32 0.010416667, %v2136_v39 }
 0x816   : > { %v2162_v40 = vadd.f32 1e-06, %v2153_v24 }
 0x818   : > { %7686 = vrsqrt.f32 %v2162_v40  ;;  %vm2177_vm1 = vweird.f32 %v2162_v40 }
 0x81b   : > { %v2138_v12 = vpop.xlane.xlu0 %2137 }
 0x81c   : > { %v2154_v19 = vmul.f32 0.010416667, %v2138_v12 }
 0x81e   : > { %v7687_v1 = vpop.eup %7686  ;;  %v2163_v23 = vadd.f32 1e-06, %v2154_v19 }
 0x81f   : > { %v2172_v17 = vmul.f32 %v7687_v1, %v2162_v40  ;;  %vm2178_vm0 = vweird.f32 %v7687_v1 }
 0x820   : > { %7688 = vrsqrt.f32 %v2163_v23  ;;  %vm2179_vm3 = vmor %vm2177_vm1, %vm2178_vm0  ;;  %vm2187_vm4 = vweird.f32 %v2163_v23 }
 0x821   : > { %v2173_v13 = vmul.f32 %v7687_v1, %v2172_v17 }
 0x823   : > { %v2174_v6 = vmul.f32 0.5, %v2173_v13  ;;  %v2140_v2 = vpop.xlane.xlu1 %2139 }
 0x824   : > { %v2155_v53 = vmul.f32 0.010416667, %v2140_v2 }
 0x825   : > { %v2175_v20 = vsub.f32 1.5, %v2174_v6 }
 0x826   : > { %v7689_v22 = vpop.eup %7688  ;;  %v2164_v56 = vadd.f32 1e-06, %v2155_v53 }
 0x827   : > { %v2182_v54 = vmul.f32 %v7689_v22, %v2163_v23  ;;  %v2098_v34 = vpop.xlane.xlu0 %2097  ;;  %v2176_v37 = vmul.f32 %v7687_v1, %v2175_v20  ;;  %vm2188_vm2 = vweird.f32 %v7689_v22 }
 0x828   : > { %7690 = vrsqrt.f32 %v2164_v56  ;;  %v2107_v31 = vmul.f32 0.010416667, %v2098_v34  ;;  %vm2189_vm5 = vmor %vm2187_vm4, %vm2188_vm2  ;;  %vm2197_vm7 = vweird.f32 %v2164_v56 }
 0x829   : > { %v2183_v14 = vmul.f32 %v7689_v22, %v2182_v54  ;;  %v2180_v60 = vsel %vm2179_vm3, %v7687_v1, %v2176_v37 }
 0x82a   : > { %v2116_v57 = vsub.f32 %v8783_v15, %v2107_v31  ;;  %v2261_v3 = vmul.f32 %v2180_v60, %v8763_v25 }
 0x82b   : > { %v2184_v28 = vmul.f32 0.5, %v2183_v14  ;;  %v2142_v52 = vpop.xlane.xlu2 %2141 }
 0x82c   : > { %v2156_v42 = vmul.f32 0.010416667, %v2142_v52  ;;  %v8961_v63 = vmul.f32 %v8097_v48, %v2116_v57 }
 0x82d   : > { %v2185_v4 = vsub.f32 1.5, %v2184_v28 }
 0x82e   : > { %v7691_v47 = vpop.eup %7690  ;;  %v2165_v61 = vadd.f32 1e-06, %v2156_v42  ;;  %v2134_v49 = vmul.f32 %v8961_v63, %v8961_v63 }
 0x82f   : > { %v2186_v35 = vmul.f32 %v7689_v22, %v2185_v4  ;;  %v2192_v45 = vmul.f32 %v7691_v47, %v2164_v56  ;;  %vm2198_vm6 = vweird.f32 %v7691_v47 }
 0x830   : > { %7692 = vrsqrt.f32 %v2165_v61  ;;  %2151 = vadd.xlane.f32.xlu2 %v2134_v49  ;;  %vm2199_vm9 = vmor %vm2197_vm7, %vm2198_vm6  ;;  %vm2207_vm10 = vweird.f32 %v2165_v61 }
 0x831   : > { %v2190_v46 = vsel %vm2189_vm5, %v7689_v22, %v2186_v35  ;;  %v2193_v9 = vmul.f32 %v7691_v47, %v2192_v45 }
 0x832   : > { %v2262_v10 = vmul.f32 %v2190_v46, %v8769_v36 }
 0x833   : > { %v2194_v8 = vmul.f32 0.5, %v2193_v9  ;;  %v2144_v38 = vpop.xlane.xlu1 %2143 }
 0x834   : > { %v2270_v41 = vpack.c.bf16 %v2262_v10, %v2261_v3  ;;  %v2157_v0 = vmul.f32 0.010416667, %v2144_v38 }
 0x835   : > { %v2195_v39 = vsub.f32 1.5, %v2194_v8 }
 0x836   : > { %v7693_v18 = vpop.eup %7692  ;;  %v2166_v30 = vadd.f32 1e-06, %v2157_v0  ;;  %2451 = vmatmul.bf16.vlgmr.msrb.gmra.mxu1 %v2270_v41  ;;  %2484 = vmatmul.bf16.vlgmr.msra.gmra.mxu2 %v2270_v41 }
 0x837   : > { %v2202_v29 = vmul.f32 %v7693_v18, %v2165_v61  ;;  %2517 = vmatmul.bf16.vlgmr.msrb.gmra.mxu3 %v2270_v41  ;;  %v2196_v24 = vmul.f32 %v7691_v47, %v2195_v39  ;;  %vm2208_vm8 = vweird.f32 %v7693_v18 }
 0x838   : > { %7694 = vrsqrt.f32 %v2166_v30  ;;  %vm2209_vm11 = vmor %vm2207_vm10, %vm2208_vm8  ;;  %vm2217_vm1 = vweird.f32 %v2166_v30 }
 0x839   : > { %v2203_v16 = vmul.f32 %v7693_v18, %v2202_v29  ;;  %v2200_v13 = vsel %vm2199_vm9, %v7691_v47, %v2196_v24 }
 0x83a   : > { %v2263_v53 = vmul.f32 %v2200_v13, %v8775_v26  ;;  %v7406_v13 = vld [vmem:[%s10717_s9 + $0x20] sm:$0xff] }
 0x83b   : > { %v2204_v40 = vmul.f32 0.5, %v2203_v16  ;;  %v2146_v12 = vpop.xlane.xlu2 %2145 }
 0x83c   : > { %v2158_v25 = vmul.f32 0.010416667, %v2146_v12 }
 0x83d   : > { %v2205_v36 = vsub.f32 1.5, %v2204_v40 }
 0x83e   : > { %v7695_v19 = vpop.eup %7694  ;;  %v2167_v1 = vadd.f32 1e-06, %v2158_v25  ;;  %v7409_v25 = vld [vmem:[%s10717_s9 + $0x38] sm:$0xff] }
 0x83f   : > { %v2206_v23 = vmul.f32 %v7693_v18, %v2205_v36  ;;  %v2212_v17 = vmul.f32 %v7695_v19, %v2166_v30  ;;  %vm2218_vm0 = vweird.f32 %v7695_v19  ;;  %2996 = vmatpush.bf16.msra.mxu0 %v7409_v25  ;;  %v7408_v36 = vld [vmem:[%s10717_s9 + $0x30] sm:$0xff] }
 0x840   : > { %7696 = vrsqrt.f32 %v2167_v1  ;;  %vm2219_vm3 = vmor %vm2217_vm1, %vm2218_vm0  ;;  %vm2227_vm4 = vweird.f32 %v2167_v1 }
 0x841   : > { %v2213_v6 = vmul.f32 %v7695_v19, %v2212_v17  ;;  %v2210_v2 = vsel %vm2209_vm11, %v7693_v18, %v2206_v23  ;;  %v7424_v23 = vld [vmem:[%s10717_s9 + $0xb0] sm:$0xff] }
 0x842   : > { %v2264_v22 = vmul.f32 %v2210_v2, %v8787_v55  ;;  %v7415_v2 = vld [vmem:[%s10717_s9 + $0x68] sm:$0xff] }
 0x843   : > { %v2214_v20 = vmul.f32 0.5, %v2213_v6  ;;  %v2148_v54 = vpop.xlane.xlu0 %2147  ;;  %2997 = vmatpush.bf16.msra.mxu0 %v7408_v36 }
 0x844   : > { %v2159_v56 = vmul.f32 0.010416667, %v2148_v54  ;;  %v2271_v34 = vpack.c.bf16 %v2264_v22, %v2263_v53  ;;  %v7423_v53 = vld [vmem:[%s10717_s9 + $0xa8] sm:$0xff]  ;;  %v7414_v54 = vld [vmem:[%s10717_s9 + $0x60] sm:$0xff] }
 0x845   : > { %v2215_v57 = vsub.f32 1.5, %v2214_v20  ;;  %v7405_v20 = vld [vmem:[%s10717_s9 + $0x18] sm:$0xff] }
 0x846   : > { %v7697_v31 = vpop.eup %7696  ;;  %v2168_v14 = vadd.f32 1e-06, %v2159_v56  ;;  %2456 = vmatmul.bf16.gmra.mxu1 %v2271_v34  ;;  %2489 = vmatmul.bf16.gmra.mxu2 %v2271_v34  ;;  %v7422_v56 = vld [vmem:[%s10717_s9 + $0xa0] sm:$0xff] }
 0x847   : > { %v2222_v37 = vmul.f32 %v7697_v31, %v2167_v1  ;;  %2522 = vmatmul.bf16.gmra.mxu3 %v2271_v34  ;;  %v2216_v52 = vmul.f32 %v7695_v19, %v2215_v57  ;;  %vm2228_vm2 = vweird.f32 %v7697_v31  ;;  %v7416_v1 = vld [vmem:[%s10717_s9 + $0x70] sm:$0xff]  ;;  %v7413_v57 = vld [vmem:[%s10717_s9 + $0x58] sm:$0xff] }
 0x848   : > { %7698 = vrsqrt.f32 %v2168_v14  ;;  %vm2229_vm5 = vmor %vm2227_vm4, %vm2228_vm2  ;;  %vm2237_vm7 = vweird.f32 %v2168_v14  ;;  %v7404_v34 = vld [vmem:[%s10717_s9 + $0x10] sm:$0xff] }
 0x849   : > { %v2223_v28 = vmul.f32 %v7697_v31, %v2222_v37  ;;  %v2220_v35 = vsel %vm2219_vm3, %v7695_v19, %v2216_v52  ;;  %v7407_v19 = vld [vmem:[%s10717_s9 + $0x28] sm:$0xff]  ;;  %v7421_v37 = vld [vmem:[%s10717_s9 + $0x98] sm:$0xff] }
 0x84a   : > { %v2265_v9 = vmul.f32 %v2220_v35, %v8793_v59  ;;  %2998 = vmatpush.bf16.msra.mxu0 %v7407_v19 }
 0x84b   : > { %v2224_v42 = vmul.f32 0.5, %v2223_v28  ;;  %v2150_v4 = vpop.xlane.xlu1 %2149 }
 0x84c   : > { %v2160_v26 = vmul.f32 0.010416667, %v2150_v4 }
 0x84d   : > { %v2225_v55 = vsub.f32 1.5, %v2224_v42  ;;  %v7403_v42 = vld [vmem:[%s10717_s9 + $0x8] sm:$0xff] }
 0x84e   : > { %v7699_v47 = vpop.eup %7698  ;;  %v2169_v61 = vadd.f32 1e-06, %v2160_v26  ;;  %2999 = vmatpush.bf16.msra.mxu0 %v7406_v13  ;;  %v7412_v26 = vld [vmem:[%s10717_s9 + $0x50] sm:$0xff] }
 0x84f   : > { %v2226_v49 = vmul.f32 %v7697_v31, %v2225_v55  ;;  %v2232_v60 = vmul.f32 %v7699_v47, %v2168_v14  ;;  %vm2238_vm6 = vweird.f32 %v7699_v47  ;;  %v7420_v55 = vld [vmem:[%s10717_s9 + $0x90] sm:$0xff] }
 0x850   : > { %7700 = vrsqrt.f32 %v2169_v61  ;;  %vm2239_vm9 = vmor %vm2237_vm7, %vm2238_vm6  ;;  %vm2247_vm10 = vweird.f32 %v2169_v61 }
 0x851   : > { %v2233_v45 = vmul.f32 %v7699_v47, %v2232_v60  ;;  %v2230_v46 = vsel %vm2229_vm5, %v7697_v31, %v2226_v49  ;;  %v2307_v31 = vld [vmem:[%s10716_s8] sm:$0x7] }
 0x852   : > { %v2266_v3 = vmul.f32 %v2230_v46, %v8799_v7  ;;  %3000 = vmatpush.bf16.msra.mxu0 %v7405_v20  ;;  %v9024_v52 = vperm.slane %v2307_v31, 0  ;;  %v7402_v60 = vld [vmem:[%s10717_s9] sm:$0xff]  ;;  %v9043_v46 = vperm.slane %v2307_v31, 1 }
 0x853   : > { %v2234_v10 = vmul.f32 0.5, %v2233_v45 }
 0x854   : > { %v2272_v8 = vpack.c.bf16 %v2266_v3, %v2265_v9  ;;  %v7411_v9 = vld [vmem:[%s10717_s9 + $0x48] sm:$0xff] }
 0x855   : > { %v2235_v41 = vsub.f32 1.5, %v2234_v10  ;;  %v7419_v3 = vld [vmem:[%s10717_s9 + $0x88] sm:$0xff]  ;;  %v9051_v10 = vperm.slane %v2307_v31, 2 }
 0x856   : > { %v7701_v38 = vpop.eup %7700  ;;  %2461 = vmatmul.bf16.gmra.mxu1 %v2272_v8  ;;  %2494 = vmatmul.bf16.gmra.mxu2 %v2272_v8 }
 0x857   : > { %v2242_v0 = vmul.f32 %v7701_v38, %v2169_v61  ;;  %2527 = vmatmul.bf16.gmra.mxu3 %v2272_v8  ;;  %v2236_v30 = vmul.f32 %v7699_v47, %v2235_v41  ;;  %vm2248_vm8 = vweird.f32 %v7701_v38  ;;  %3001 = vmatpush.bf16.msra.mxu0 %v7404_v34 }
 0x858   : > { %vm2249_vm11 = vmor %vm2247_vm10, %vm2248_vm8 }
 0x859   : > { %v2243_v18 = vmul.f32 %v7701_v38, %v2242_v0  ;;  %v2240_v59 = vsel %vm2239_vm9, %v7699_v47, %v2236_v30 }
 0x85a   : > { %v2267_v24 = vmul.f32 %v2240_v59, %v8805_v21  ;;  %v7417_v21 = vld [vmem:[%s10717_s9 + $0x78] sm:$0xff]  ;;  %v7418_v59 = vld [vmem:[%s10717_s9 + $0x80] sm:$0xff] }
 0x85b   : > { %v2244_v39 = vmul.f32 0.5, %v2243_v18  ;;  %3029 = vmatpush.bf16.msra.mxu1 %v7417_v21  ;;  %3002 = vmatpush.bf16.msra.mxu0 %v7403_v42 }
 0x85d   : > { %v2245_v29 = vsub.f32 1.5, %v2244_v39 }
 0x85f   : > { %v2246_v16 = vmul.f32 %v7701_v38, %v2245_v29  ;;  %3030 = vmatpush.bf16.msra.mxu1 %v7416_v1  ;;  %3003 = vmatpush.bf16.msra.mxu0 %v7402_v60 }
 0x861   : > { %v2250_v7 = vsel %vm2249_vm11, %v7701_v38, %v2246_v16  ;;  %v7410_v16 = vld [vmem:[%s10717_s9 + $0x40] sm:$0xff] }
 0x862   : > { %v2268_v40 = vmul.f32 %v2250_v7, %v8811_v27  ;;  %v7425_v27 = vld [vmem:[%s10717_s9 + $0xb8] sm:$0xff] }
 0x863   : > { %3062 = vmatpush.bf16.msrb.mxu2 %v7425_v27  ;;  %3031 = vmatpush.bf16.msra.mxu1 %v7415_v2 }
 0x864   : > { %v2273_v12 = vpack.c.bf16 %v2268_v40, %v2267_v24 }
 0x866   : > { %2466 = vmatmul.bf16.gmra.mxu1 %v2273_v12  ;;  %2499 = vmatmul.bf16.gmra.mxu2 %v2273_v12 }
 0x867   : > { %2532 = vmatmul.bf16.gmra.mxu3 %v2273_v12  ;;  %3063 = vmatpush.bf16.msrb.mxu2 %v7424_v23 }
 0x868   : > { %3032 = vmatpush.bf16.msra.mxu1 %v7414_v54 }
 0x86b   : > { %3064 = vmatpush.bf16.msrb.mxu2 %v7423_v53 }
 0x86c   : > { %3033 = vmatpush.bf16.msra.mxu1 %v7413_v57 }
 0x86f   : > { %3065 = vmatpush.bf16.msrb.mxu2 %v7422_v56 }
 0x870   : > { %3034 = vmatpush.bf16.msra.mxu1 %v7412_v26 }
 0x873   : > { %3066 = vmatpush.bf16.msrb.mxu2 %v7421_v37 }
 0x874   : > { %3035 = vmatpush.bf16.msra.mxu1 %v7411_v9 }
 0x877   : > { %3067 = vmatpush.bf16.msrb.mxu2 %v7420_v55 }
 0x878   : > { %3036 = vmatpush.bf16.msra.mxu1 %v7410_v16 }
 0x87b   : > { %3068 = vmatpush.bf16.msrb.mxu2 %v7419_v3 }
 0x87f   : > { %3069 = vmatpush.bf16.msrb.mxu2 %v7418_v59 }
 0x8a3   : > { %v2152_v17 = vpop.xlane.xlu2 %2151 }
 0x8a4   : > { %v2161_v6 = vmul.f32 0.010416667, %v2152_v17 }
 0x8a6   : > { %v2170_v22 = vadd.f32 1e-06, %v2161_v6 }
 0x8a8   : > { %7702 = vrsqrt.f32 %v2170_v22  ;;  %vm2257_vm1 = vweird.f32 %v2170_v22 }
 0x8ae   : > { %v7703_v14 = vpop.eup %7702 }
 0x8af   : > { %v2252_v28 = vmul.f32 %v7703_v14, %v2170_v22  ;;  %vm2258_vm0 = vweird.f32 %v7703_v14 }
 0x8b0   : > { %vm2259_vm2 = vmor %vm2257_vm1, %vm2258_vm0 }
 0x8b1   : > { %v2253_v4 = vmul.f32 %v7703_v14, %v2252_v28 }
 0x8b3   : > { %v2254_v47 = vmul.f32 0.5, %v2253_v4  ;;  %v2452_v61 = vpop.f32.mrf.mxu1 }
 0x8b4   : > { %v9036_v49 = vadd.f32 %v2452_v61, %v9024_v52 }
 0x8b5   : > { %v2255_v35 = vsub.f32 1.5, %v2254_v47 }
 0x8b6   : > { %v2542_v45 = vmul.f32 %v9036_v49, %v9036_v49 }
 0x8b7   : > { %v2256_v8 = vmul.f32 %v7703_v14, %v2255_v35 }
 0x8b8   : > { %v2569_v38 = vmul.f32 %v2542_v45, %v9036_v49 }
 0x8b9   : > { %v2485_v41 = vpop.f32.mrf.mxu2  ;;  %v2260_v0 = vsel %vm2259_vm2, %v7703_v14, %v2256_v8 }
 0x8ba   : > { %v2596_v18 = vmul.f32 0.044715, %v2569_v38  ;;  %v9055_v30 = vadd.f32 %v2485_v41, %v9043_v46  ;;  %v2518_v39 = vpop.f32.mrf.mxu3  ;;  %v2269_v29 = vmul.f32 %v2260_v0, %v8961_v63 }
 0x8bb   : > { %v9065_v7 = vadd.f32 %v2518_v39, %v9051_v10  ;;  %v2454_v24 = vpop.f32.mrf.mxu1 }
 0x8bc   : > { %v2623_v40 = vadd.f32 %v2596_v18, %v9036_v49  ;;  %v2543_v12 = vmul.f32 %v9055_v30, %v9055_v30  ;;  %v9071_v25 = vadd.f32 %v2454_v24, %v9024_v52  ;;  %v2274_v63 = vpack.c.bf16 %v2269_v29, %v2269_v29 }
 0x8bd   : > { %v2544_v36 = vmul.f32 %v9065_v7, %v9065_v7 }
 0x8be   : > { %v2650_v21 = vmul.f32 0.7978846, %v2623_v40  ;;  %v2570_v27 = vmul.f32 %v2543_v12, %v9055_v30  ;;  %v2545_v19 = vmul.f32 %v9071_v25, %v9071_v25  ;;  %2471 = vmatmul.bf16.gmra.mxu1 %v2274_v63  ;;  %2504 = vmatmul.bf16.gmra.mxu2 %v2274_v63 }
 0x8bf   : > { %v2571_v1 = vmul.f32 %v2544_v36, %v9065_v7  ;;  %2537 = vmatmul.bf16.gmra.mxu3 %v2274_v63 }
 0x8c0   : > { %7704 = vtanh.f32 %v2650_v21  ;;  %v2597_v23 = vmul.f32 0.044715, %v2570_v27  ;;  %v2572_v17 = vmul.f32 %v2545_v19, %v9071_v25 }
 0x8c1   : > { %v2598_v13 = vmul.f32 0.044715, %v2571_v1  ;;  %v2487_v6 = vpop.f32.mrf.mxu2 }
 0x8c2   : > { %v2624_v2 = vadd.f32 %v2597_v23, %v9055_v30  ;;  %v2599_v53 = vmul.f32 0.044715, %v2572_v17  ;;  %v9082_v22 = vadd.f32 %v2487_v6, %v9043_v46  ;;  %v2520_v20 = vpop.f32.mrf.mxu3 }
 0x8c3   : > { %v2625_v54 = vadd.f32 %v2598_v13, %v9065_v7  ;;  %v9086_v56 = vadd.f32 %v2520_v20, %v9051_v10  ;;  %v2457_v34 = vpop.f32.mrf.mxu1 }
 0x8c4   : > { %v2651_v31 = vmul.f32 0.7978846, %v2624_v2  ;;  %v2626_v14 = vadd.f32 %v2599_v53, %v9071_v25  ;;  %v2546_v57 = vmul.f32 %v9082_v22, %v9082_v22  ;;  %v9092_v37 = vadd.f32 %v2457_v34, %v9024_v52 }
 0x8c5   : > { %v2652_v28 = vmul.f32 0.7978846, %v2625_v54  ;;  %v2547_v42 = vmul.f32 %v9086_v56, %v9086_v56 }
 0x8c6   : > { %v7705_v4 = vpop.eup %7704  ;;  %7706 = vtanh.f32 %v2651_v31  ;;  %v2653_v26 = vmul.f32 0.7978846, %v2626_v14  ;;  %v2573_v55 = vmul.f32 %v2546_v57, %v9082_v22  ;;  %v2548_v47 = vmul.f32 %v9092_v37, %v9092_v37 }
 0x8c7   : > { %7708 = vtanh.f32 %v2652_v28  ;;  %v2574_v61 = vmul.f32 %v2547_v42, %v9086_v56  ;;  %v2704_v45 = vadd.f32 1.0, %v7705_v4 }
 0x8c8   : > { %7710 = vtanh.f32 %v2653_v26  ;;  %v2600_v60 = vmul.f32 0.044715, %v2573_v55  ;;  %v2575_v35 = vmul.f32 %v2548_v47, %v9092_v37 }
 0x8c9   : > { %v2601_v9 = vmul.f32 0.044715, %v2574_v61  ;;  %v2490_v3 = vpop.f32.mrf.mxu2  ;;  %v2731_v36 = vmul.f32 0.5, %v2704_v45 }
 0x8ca   : > { %v2627_v8 = vadd.f32 %v2600_v60, %v9082_v22  ;;  %v2602_v38 = vmul.f32 0.044715, %v2575_v35  ;;  %v9103_v41 = vadd.f32 %v2490_v3, %v9043_v46  ;;  %v2523_v0 = vpop.f32.mrf.mxu3 }
 0x8cb   : > { %v2628_v18 = vadd.f32 %v2601_v9, %v9086_v56  ;;  %v9107_v39 = vadd.f32 %v2523_v0, %v9051_v10  ;;  %v2459_v29 = vpop.f32.mrf.mxu1  ;;  %v2758_v34 = vmul.f32 %v2731_v36, %v9036_v49 }
 0x8cc   : > { %v7707_v16 = vpop.eup %7706  ;;  %v2654_v59 = vmul.f32 0.7978846, %v2627_v8  ;;  %v2629_v24 = vadd.f32 %v2602_v38, %v9092_v37  ;;  %v2549_v40 = vmul.f32 %v9103_v41, %v9103_v41  ;;  %v9113_v12 = vadd.f32 %v2459_v29, %v9024_v52 }
 0x8cd   : > { %v7709_v63 = vpop.eup %7708  ;;  %v2705_v21 = vadd.f32 1.0, %v7707_v16  ;;  %v2655_v27 = vmul.f32 0.7978846, %v2628_v18  ;;  %v2550_v19 = vmul.f32 %v9107_v39, %v9107_v39 }
 0x8ce   : > { %v7711_v1 = vpop.eup %7710  ;;  %v2706_v23 = vadd.f32 1.0, %v7709_v63  ;;  %7712 = vtanh.f32 %v2654_v59  ;;  %v2656_v17 = vmul.f32 0.7978846, %v2629_v24  ;;  %v2576_v13 = vmul.f32 %v2549_v40, %v9103_v41 }
 0x8cf   : > { %v2732_v6 = vmul.f32 0.5, %v2705_v21  ;;  %v2707_v2 = vadd.f32 1.0, %v7711_v1  ;;  %7714 = vtanh.f32 %v2655_v27  ;;  %v2577_v53 = vmul.f32 %v2550_v19, %v9107_v39 }
 0x8d0   : > { %7716 = vtanh.f32 %v2656_v17  ;;  %v2603_v20 = vmul.f32 0.044715, %v2576_v13  ;;  %v2551_v54 = vmul.f32 %v9113_v12, %v9113_v12  ;;  %v2733_v28 = vmul.f32 0.5, %v2706_v23 }
 0x8d1   : > { %v2734_v31 = vmul.f32 0.5, %v2707_v2  ;;  %v2604_v14 = vmul.f32 0.044715, %v2577_v53  ;;  %v2492_v57 = vpop.f32.mrf.mxu2  ;;  %v2759_v47 = vmul.f32 %v2732_v6, %v9055_v30 }
 0x8d2   : > { %v2630_v42 = vadd.f32 %v2603_v20, %v9103_v41  ;;  %v2578_v4 = vmul.f32 %v2551_v54, %v9113_v12  ;;  %v9125_v26 = vadd.f32 %v2492_v57, %v9043_v46  ;;  %v2525_v55 = vpop.f32.mrf.mxu3  ;;  %v2760_v63 = vmul.f32 %v2733_v28, %v9065_v7 }
 0x8d3   : > { %v2761_v61 = vmul.f32 %v2734_v31, %v9071_v25  ;;  %v2631_v60 = vadd.f32 %v2604_v14, %v9107_v39  ;;  %v9131_v49 = vadd.f32 %v2525_v55, %v9051_v10  ;;  %v2462_v35 = vpop.f32.mrf.mxu1 }
 0x8d4   : > { %v7713_v45 = vpop.eup %7712  ;;  %v2657_v9 = vmul.f32 0.7978846, %v2630_v42  ;;  %v2605_v3 = vmul.f32 0.044715, %v2578_v4  ;;  %v2552_v8 = vmul.f32 %v9125_v26, %v9125_v26  ;;  %v9136_v38 = vadd.f32 %v2462_v35, %v9024_v52 }
 0x8d5   : > { %v7715_v0 = vpop.eup %7714  ;;  %v2785_v18 = vpack.c.bf16 %v2761_v61, %v2758_v34  ;;  %v2708_v30 = vadd.f32 1.0, %v7713_v45  ;;  %v2658_v29 = vmul.f32 0.7978846, %v2631_v60  ;;  %v2553_v25 = vmul.f32 %v9131_v49, %v9131_v49 }
 0x8d6   : > { %v7717_v16 = vpop.eup %7716  ;;  %v2709_v59 = vadd.f32 1.0, %v7715_v0  ;;  %7718 = vtanh.f32 %v2657_v9  ;;  %v2632_v24 = vadd.f32 %v2605_v3, %v9113_v12  ;;  %v2579_v40 = vmul.f32 %v2552_v8, %v9125_v26 }
 0x8d7   : > { %v2735_v36 = vmul.f32 0.5, %v2708_v30  ;;  %v2580_v21 = vmul.f32 %v2553_v25, %v9131_v49  ;;  %v2554_v27 = vmul.f32 %v9136_v38, %v9136_v38  ;;  %3004 = vmatmul.bf16.vlgmr.msra.gmra.mxu0 %v2785_v18  ;;  %7720 = vtanh.f32 %v2658_v29 }
 0x8d8   : > { %v2736_v19 = vmul.f32 0.5, %v2709_v59  ;;  %v2659_v1 = vmul.f32 0.7978846, %v2632_v24  ;;  %v2606_v23 = vmul.f32 0.044715, %v2579_v40  ;;  %v2710_v53 = vadd.f32 1.0, %v7717_v16 }
 0x8d9   : > { %v2762_v17 = vmul.f32 %v2735_v36, %v9082_v22  ;;  %v2607_v13 = vmul.f32 0.044715, %v2580_v21  ;;  %v2581_v6 = vmul.f32 %v2554_v27, %v9136_v38  ;;  %v2495_v2 = vpop.f32.mrf.mxu2 }
 0x8da   : > { %v2763_v7 = vmul.f32 %v2736_v19, %v9086_v56  ;;  %v2633_v20 = vadd.f32 %v2606_v23, %v9125_v26  ;;  %v9151_v54 = vadd.f32 %v2495_v2, %v9043_v46  ;;  %v2528_v34 = vpop.f32.mrf.mxu3  ;;  %7722 = vtanh.f32 %v2659_v1 }
 0x8db   : > { %v2786_v31 = vpack.c.bf16 %v2762_v17, %v2759_v47  ;;  %v2634_v14 = vadd.f32 %v2607_v13, %v9131_v49  ;;  %v2608_v57 = vmul.f32 0.044715, %v2581_v6  ;;  %v9155_v22 = vadd.f32 %v2528_v34, %v9051_v10  ;;  %v2464_v28 = vpop.f32.mrf.mxu1 }
 0x8dc   : > { %v7719_v42 = vpop.eup %7718  ;;  %v2787_v4 = vpack.c.bf16 %v2763_v7, %v2760_v63  ;;  %v2660_v55 = vmul.f32 0.7978846, %v2633_v20  ;;  %v2555_v56 = vmul.f32 %v9151_v54, %v9151_v54  ;;  %v9160_v61 = vadd.f32 %v2464_v28, %v9024_v52 }
 0x8dd   : > { %v2661_v60 = vmul.f32 0.7978846, %v2634_v14  ;;  %v2635_v35 = vadd.f32 %v2608_v57, %v9136_v38  ;;  %v2556_v47 = vmul.f32 %v9155_v22, %v9155_v22  ;;  %3037 = vmatmul.bf16.vlgmr.msra.gmra.mxu1 %v2786_v31  ;;  %v2737_v45 = vmul.f32 0.5, %v2710_v53  ;;  %v7721_v9 = vpop.eup %7720 }
 0x8de   : > { %v2582_v3 = vmul.f32 %v2555_v56, %v9151_v54  ;;  %v2557_v8 = vmul.f32 %v9160_v61, %v9160_v61  ;;  %3070 = vmatmul.bf16.vlgmr.msrb.gmra.mxu2 %v2787_v4  ;;  %7724 = vtanh.f32 %v2660_v55  ;;  %v2711_v0 = vadd.f32 1.0, %v7719_v42 }
 0x8df   : > { %v2662_v18 = vmul.f32 0.7978846, %v2635_v35  ;;  %v2583_v30 = vmul.f32 %v2556_v47, %v9155_v22  ;;  %7726 = vtanh.f32 %v2661_v60  ;;  %v2764_v63 = vmul.f32 %v2737_v45, %v9092_v37 }
 0x8e0   : > { %v7723_v29 = vpop.eup %7722  ;;  %v2609_v25 = vmul.f32 0.044715, %v2582_v3  ;;  %v2584_v16 = vmul.f32 %v2557_v8, %v9160_v61  ;;  %v2738_v36 = vmul.f32 0.5, %v2711_v0  ;;  %v2712_v2 = vadd.f32 1.0, %v7721_v9 }
 0x8e1   : > { %v2610_v59 = vmul.f32 0.044715, %v2583_v30  ;;  %v2497_v24 = vpop.f32.mrf.mxu2  ;;  %v2713_v40 = vadd.f32 1.0, %v7723_v29  ;;  %7728 = vtanh.f32 %v2662_v18 }
 0x8e2   : > { %v2636_v21 = vadd.f32 %v2609_v25, %v9151_v54  ;;  %v2611_v27 = vmul.f32 0.044715, %v2584_v16  ;;  %v9173_v19 = vadd.f32 %v2497_v24, %v9043_v46  ;;  %v2530_v1 = vpop.f32.mrf.mxu3  ;;  %v2765_v60 = vmul.f32 %v2738_v36, %v9103_v41 }
 0x8e3   : > { %v2637_v23 = vadd.f32 %v2610_v59, %v9155_v22  ;;  %v9177_v17 = vadd.f32 %v2530_v1, %v9051_v10  ;;  %v2467_v13 = vpop.f32.mrf.mxu1  ;;  %v2740_v6 = vmul.f32 0.5, %v2713_v40  ;;  %v2739_v29 = vmul.f32 0.5, %v2712_v2 }
 0x8e4   : > { %v7725_v53 = vpop.eup %7724  ;;  %v2663_v7 = vmul.f32 0.7978846, %v2636_v21  ;;  %v2638_v37 = vadd.f32 %v2611_v27, %v9160_v61  ;;  %v2558_v20 = vmul.f32 %v9173_v19, %v9173_v19  ;;  %v9183_v34 = vadd.f32 %v2467_v13, %v9024_v52 }
 0x8e5   : > { %v7727_v31 = vpop.eup %7726  ;;  %v2664_v14 = vmul.f32 0.7978846, %v2637_v23  ;;  %v2559_v57 = vmul.f32 %v9177_v17, %v9177_v17  ;;  %v2767_v28 = vmul.f32 %v2740_v6, %v9113_v12  ;;  %v2714_v42 = vadd.f32 1.0, %v7725_v53 }
 0x8e6   : > { %v2665_v4 = vmul.f32 0.7978846, %v2638_v37  ;;  %v2585_v55 = vmul.f32 %v2558_v20, %v9173_v19  ;;  %v2560_v56 = vmul.f32 %v9183_v34, %v9183_v34  ;;  %7730 = vtanh.f32 %v2663_v7 }
 0x8e7   : > { %v2586_v35 = vmul.f32 %v2559_v57, %v9177_v17  ;;  %v2788_v47 = vpack.c.bf16 %v2767_v28, %v2764_v63  ;;  %v2741_v45 = vmul.f32 0.5, %v2714_v42  ;;  %v7729_v9 = vpop.eup %7728  ;;  %7732 = vtanh.f32 %v2664_v14 }
 0x8e8   : > { %v2612_v3 = vmul.f32 0.044715, %v2585_v55  ;;  %v2587_v8 = vmul.f32 %v2560_v56, %v9183_v34  ;;  %v2715_v12 = vadd.f32 1.0, %v7727_v31  ;;  %7734 = vtanh.f32 %v2665_v4 }
 0x8e9   : > { %v2613_v0 = vmul.f32 0.044715, %v2586_v35  ;;  %3009 = vmatmul.bf16.gmra.mxu0 %v2788_v47  ;;  %v2500_v18 = vpop.f32.mrf.mxu2  ;;  %v2768_v30 = vmul.f32 %v2741_v45, %v9125_v26  ;;  %v2716_v27 = vadd.f32 1.0, %v7729_v9  ;;  %v2766_v7 = vmul.f32 %v2739_v29, %v9107_v39 }
 0x8ea   : > { %v2639_v41 = vadd.f32 %v2612_v3, %v9173_v19  ;;  %v2614_v25 = vmul.f32 0.044715, %v2587_v8  ;;  %v9197_v16 = vadd.f32 %v2500_v18, %v9043_v46  ;;  %v2533_v59 = vpop.f32.mrf.mxu3  ;;  %v2742_v24 = vmul.f32 0.5, %v2715_v12 }
 0x8eb   : > { %v2640_v40 = vadd.f32 %v2613_v0, %v9177_v17  ;;  %v9201_v63 = vadd.f32 %v2533_v59, %v9051_v10  ;;  %v2469_v36 = vpop.f32.mrf.mxu1  ;;  %v2789_v21 = vpack.c.bf16 %v2768_v30, %v2765_v60  ;;  %v2743_v55 = vmul.f32 0.5, %v2716_v27 }
 0x8ec   : > { %v2666_v1 = vmul.f32 0.7978846, %v2639_v41  ;;  %v2641_v26 = vadd.f32 %v2614_v25, %v9183_v34  ;;  %v2561_v23 = vmul.f32 %v9197_v16, %v9197_v16  ;;  %v9207_v13 = vadd.f32 %v2469_v36, %v9024_v52  ;;  %v7731_v6 = vpop.eup %7730 }
 0x8ed   : > { %v2667_v2 = vmul.f32 0.7978846, %v2640_v40  ;;  %v2562_v53 = vmul.f32 %v9201_v63, %v9201_v63  ;;  %3042 = vmatmul.bf16.gmra.mxu1 %v2789_v21  ;;  %v2769_v37 = vmul.f32 %v2742_v24, %v9131_v49  ;;  %v7733_v20 = vpop.eup %7732  ;;  %v2717_v47 = vadd.f32 1.0, %v7731_v6 }
 0x8ee   : > { %v2668_v31 = vmul.f32 0.7978846, %v2641_v26  ;;  %v2588_v14 = vmul.f32 %v2561_v23, %v9197_v16  ;;  %v2563_v57 = vmul.f32 %v9207_v13, %v9207_v13  ;;  %7736 = vtanh.f32 %v2666_v1  ;;  %v7735_v28 = vpop.eup %7734 }
 0x8ef   : > { %v2589_v42 = vmul.f32 %v2562_v53, %v9201_v63  ;;  %v2790_v4 = vpack.c.bf16 %v2769_v37, %v2766_v7  ;;  %7738 = vtanh.f32 %v2667_v2  ;;  %v2719_v39 = vadd.f32 1.0, %v7735_v28 }
 0x8f0   : > { %v2615_v56 = vmul.f32 0.044715, %v2588_v14  ;;  %v2590_v60 = vmul.f32 %v2563_v57, %v9207_v13  ;;  %7740 = vtanh.f32 %v2668_v31  ;;  %v2718_v45 = vadd.f32 1.0, %v7733_v20 }
 0x8f1   : > { %v2616_v49 = vmul.f32 0.044715, %v2589_v42  ;;  %3075 = vmatmul.bf16.gmra.mxu2 %v2790_v4  ;;  %v2502_v35 = vpop.f32.mrf.mxu2  ;;  %v2746_v0 = vmul.f32 0.5, %v2719_v39  ;;  %v2770_v29 = vmul.f32 %v2743_v55, %v9136_v38  ;;  %v2744_v1 = vmul.f32 0.5, %v2717_v47 }
 0x8f2   : > { %v2642_v9 = vadd.f32 %v2615_v56, %v9197_v16  ;;  %v2617_v3 = vmul.f32 0.044715, %v2590_v60  ;;  %v9220_v8 = vadd.f32 %v2502_v35, %v9043_v46  ;;  %v2535_v12 = vpop.f32.mrf.mxu3  ;;  %v2745_v26 = vmul.f32 0.5, %v2718_v45 }
 0x8f3   : > { %v2643_v18 = vadd.f32 %v2616_v49, %v9201_v63  ;;  %v9224_v30 = vadd.f32 %v2535_v12, %v9051_v10  ;;  %v2773_v40 = vmul.f32 %v2746_v0, %v9160_v61  ;;  %v2771_v14 = vmul.f32 %v2744_v1, %v9151_v54 }
 0x8f4   : > { %v7737_v41 = vpop.eup %7736  ;;  %v2669_v25 = vmul.f32 0.7978846, %v2642_v9  ;;  %v2644_v59 = vadd.f32 %v2617_v3, %v9207_v13  ;;  %v2564_v24 = vmul.f32 %v9220_v8, %v9220_v8  ;;  %v2772_v4 = vmul.f32 %v2745_v26, %v9155_v22 }
 0x8f5   : > { %v7739_v36 = vpop.eup %7738  ;;  %v2565_v21 = vmul.f32 %v9224_v30, %v9224_v30  ;;  %v2720_v27 = vadd.f32 1.0, %v7737_v41  ;;  %v2670_v23 = vmul.f32 0.7978846, %v2643_v18  ;;  %v2791_v2 = vpack.c.bf16 %v2773_v40, %v2770_v29 }
 0x8f6   : > { %v2671_v6 = vmul.f32 0.7978846, %v2644_v59  ;;  %v2591_v38 = vmul.f32 %v2564_v24, %v9220_v8  ;;  %v7741_v53 = vpop.eup %7740  ;;  %7742 = vtanh.f32 %v2669_v25  ;;  %v2721_v20 = vadd.f32 1.0, %v7739_v36 }
 0x8f7   : > { %v2592_v7 = vmul.f32 %v2565_v21, %v9224_v30  ;;  %v2747_v37 = vmul.f32 0.5, %v2720_v27  ;;  %v2722_v39 = vadd.f32 1.0, %v7741_v53 }
 0x8f8   : > { %v2618_v31 = vmul.f32 0.044715, %v2591_v38  ;;  %7744 = vtanh.f32 %v2671_v6  ;;  %v2748_v28 = vmul.f32 0.5, %v2721_v20 }
 0x8f9   : > { %v2619_v61 = vmul.f32 0.044715, %v2592_v7  ;;  %3014 = vmatmul.bf16.gmra.mxu0 %v2791_v2  ;;  %v2774_v57 = vmul.f32 %v2747_v37, %v9173_v19  ;;  %7746 = vtanh.f32 %v2670_v23  ;;  %v2749_v9 = vmul.f32 0.5, %v2722_v39 }
 0x8fa   : > { %v2645_v42 = vadd.f32 %v2618_v31, %v9220_v8  ;;  %v2775_v60 = vmul.f32 %v2748_v28, %v9177_v17 }
 0x8fb   : > { %v2646_v55 = vadd.f32 %v2619_v61, %v9224_v30  ;;  %v2792_v56 = vpack.c.bf16 %v2774_v57, %v2771_v14  ;;  %v2776_v0 = vmul.f32 %v2749_v9, %v9183_v34 }
 0x8fc   : > { %v2672_v49 = vmul.f32 0.7978846, %v2645_v42  ;;  %v7743_v35 = vpop.eup %7742  ;;  %v2793_v45 = vpack.c.bf16 %v2775_v60, %v2772_v4 }
 0x8fd   : > { %v2673_v47 = vmul.f32 0.7978846, %v2646_v55  ;;  %3047 = vmatmul.bf16.gmra.mxu1 %v2792_v56  ;;  %v2723_v22 = vadd.f32 1.0, %v7743_v35 }
 0x8fe   : > { %v7745_v54 = vpop.eup %7744  ;;  %7748 = vtanh.f32 %v2672_v49 }
 0x8ff   : > { %v2725_v19 = vadd.f32 1.0, %v7745_v54  ;;  %7750 = vtanh.f32 %v2673_v47  ;;  %v7747_v3 = vpop.eup %7746  ;;  %v2750_v24 = vmul.f32 0.5, %v2723_v22 }
 0x900   : > { %v2724_v17 = vadd.f32 1.0, %v7747_v3 }
 0x901   : > { %3080 = vmatmul.bf16.gmra.mxu2 %v2793_v45  ;;  %v2752_v12 = vmul.f32 0.5, %v2725_v19  ;;  %v2777_v1 = vmul.f32 %v2750_v24, %v9197_v16 }
 0x902   : > { %v2751_v21 = vmul.f32 0.5, %v2724_v17 }
 0x903   : > { %v2779_v18 = vmul.f32 %v2752_v12, %v9207_v13 }
 0x904   : > { %v7749_v29 = vpop.eup %7748  ;;  %v2778_v13 = vmul.f32 %v2751_v21, %v9201_v63 }
 0x905   : > { %v7751_v41 = vpop.eup %7750  ;;  %v2794_v25 = vpack.c.bf16 %v2779_v18, %v2776_v0  ;;  %v2726_v59 = vadd.f32 1.0, %v7749_v29  ;;  %v9253_v29 = vld [vmem:[%s10718_s10] ss:$0 sm:$0xff] }
 0x906   : > { %v2727_v40 = vadd.f32 1.0, %v7751_v41 }
 0x907   : > { %v2753_v36 = vmul.f32 0.5, %v2726_v59 }
 0x908   : > { %v2754_v27 = vmul.f32 0.5, %v2727_v40 }
 0x909   : > { %3019 = vmatmul.bf16.gmra.mxu0 %v2794_v25  ;;  %v2780_v26 = vmul.f32 %v2753_v36, %v9220_v8 }
 0x90a   : > { %v2781_v23 = vmul.f32 %v2754_v27, %v9224_v30 }
 0x90b   : > { %v2795_v34 = vpack.c.bf16 %v2780_v26, %v2777_v1 }
 0x90c   : > { %v2796_v6 = vpack.c.bf16 %v2781_v23, %v2778_v13 }
 0x90d   : > { %3052 = vmatmul.bf16.gmra.mxu1 %v2795_v34 }
 0x911   : > { %3085 = vmatmul.bf16.gmra.mxu2 %v2796_v6 }
 0x93b   : > { %v2472_v38 = vpop.f32.mrf.mxu1 }
 0x93c   : > { %v2473_v2 = vadd.f32 %v2472_v38, %v9024_v52 }
 0x93e   : > { %v2566_v53 = vmul.f32 %v2473_v2, %v2473_v2 }
 0x940   : > { %v2593_v7 = vmul.f32 %v2566_v53, %v2473_v2 }
 0x941   : > { %v2505_v37 = vpop.f32.mrf.mxu2 }
 0x942   : > { %v2620_v20 = vmul.f32 0.044715, %v2593_v7  ;;  %v2506_v31 = vadd.f32 %v2505_v37, %v9043_v46  ;;  %v2538_v16 = vpop.f32.mrf.mxu3 }
 0x943   : > { %v2539_v8 = vadd.f32 %v2538_v16, %v9051_v10  ;;  %v2474_v61 = vpop.f32.mrf.mxu1 }
 0x944   : > { %v2647_v30 = vadd.f32 %v2620_v20, %v2473_v2  ;;  %v2567_v14 = vmul.f32 %v2506_v31, %v2506_v31 }
 0x945   : > { %v2568_v57 = vmul.f32 %v2539_v8, %v2539_v8 }
 0x946   : > { %v2674_v63 = vmul.f32 0.7978846, %v2647_v30  ;;  %v2594_v28 = vmul.f32 %v2567_v14, %v2506_v31 }
 0x947   : > { %v2595_v42 = vmul.f32 %v2568_v57, %v2539_v8 }
 0x948   : > { %v2621_v4 = vmul.f32 0.044715, %v2594_v28  ;;  %7752 = vtanh.f32 %v2674_v63 }
 0x949   : > { %v2622_v55 = vmul.f32 0.044715, %v2595_v42  ;;  %v2507_v52 = vpop.f32.mrf.mxu2 }
 0x94a   : > { %v2648_v56 = vadd.f32 %v2621_v4, %v2506_v31  ;;  %v2540_v60 = vpop.f32.mrf.mxu3 }
 0x94b   : > { %v2649_v39 = vadd.f32 %v2622_v55, %v2539_v8 }
 0x94c   : > { %v2675_v49 = vmul.f32 0.7978846, %v2648_v56 }
 0x94d   : > { %v2676_v35 = vmul.f32 0.7978846, %v2649_v39 }
 0x94e   : > { %v7753_v46 = vpop.eup %7752  ;;  %7754 = vtanh.f32 %v2675_v49 }
 0x94f   : > { %v2728_v47 = vadd.f32 1.0, %v7753_v46  ;;  %7756 = vtanh.f32 %v2676_v35 }
 0x951   : > { %v2755_v10 = vmul.f32 0.5, %v2728_v47 }
 0x953   : > { %v2782_v45 = vmul.f32 %v2755_v10, %v2473_v2 }
 0x954   : > { %v7755_v54 = vpop.eup %7754  ;;  %v3005_v19 = vpop.f32.mrf.mxu0 }
 0x955   : > { %v7757_v9 = vpop.eup %7756  ;;  %v2797_v3 = vpack.c.bf16 %v2782_v45, %v2782_v45  ;;  %v2729_v12 = vadd.f32 1.0, %v7755_v54  ;;  %v3006_v36 = vadd.f32 %v9253_v29, %v3005_v19 }
 0x956   : > { %v2730_v22 = vadd.f32 1.0, %v7757_v9 }
 0x957   : > { %3024 = vmatmul.bf16.gmra.mxu0 %v2797_v3  ;;  %v2756_v0 = vmul.f32 0.5, %v2729_v12 }
 0x958   : > { %v2757_v18 = vmul.f32 0.5, %v2730_v22 }
 0x959   : > { %v2783_v17 = vmul.f32 %v2756_v0, %v2506_v31 }
 0x95a   : > { %v3038_v41 = vpop.f32.mrf.mxu1  ;;  %v2784_v25 = vmul.f32 %v2757_v18, %v2539_v8 }
 0x95b   : > { %v2798_v59 = vpack.c.bf16 %v2783_v17, %v2783_v17  ;;  %v3039_v21 = vadd.f32 %v3038_v41, %v3006_v36 }
 0x95c   : > { %v3007_v24 = vpop.f32.mrf.mxu0  ;;  %v2799_v40 = vpack.c.bf16 %v2784_v25, %v2784_v25 }
 0x95d   : > { %3057 = vmatmul.bf16.gmra.mxu1 %v2798_v59  ;;  %v3008_v34 = vadd.f32 %v9253_v29, %v3007_v24 }
 0x95e   : > { %3090 = vmatmul.bf16.gmra.mxu2 %v2799_v40 }
 0x961   : > { %v3071_v27 = vpop.f32.mrf.mxu2 }
 0x962   : > { %v3072_v1 = vadd.f32 %v3071_v27, %v3039_v21  ;;  %v3040_v26 = vpop.f32.mrf.mxu1 }
 0x963   : > { %v3041_v6 = vadd.f32 %v3040_v26, %v3008_v34 }
 0x964   : > { %v9257_v23 = vadd.f32 %v3072_v1, %v8715_v58 }
 0x966   : > { %v3010_v13 = vpop.f32.mrf.mxu0  ;;  %3104 = vadd.xlane.f32.xlu0 %v9257_v23 }
 0x967   : > { %v3011_v20 = vadd.f32 %v9253_v29, %v3010_v13 }
 0x969   : > { %v3073_v38 = vpop.f32.mrf.mxu2 }
 0x96a   : > { %v3074_v2 = vadd.f32 %v3073_v38, %v3041_v6  ;;  %v3043_v53 = vpop.f32.mrf.mxu1 }
 0x96b   : > { %v3044_v58 = vadd.f32 %v3043_v53, %v3011_v20 }
 0x96c   : > { %v9262_v7 = vadd.f32 %v3074_v2, %v8722_v33 }
 0x96e   : > { %v3012_v37 = vpop.f32.mrf.mxu0  ;;  %3106 = vadd.xlane.f32.xlu1 %v9262_v7 }
 0x96f   : > { %v3013_v14 = vadd.f32 %v9253_v29, %v3012_v37 }
 0x972   : > { %v3045_v31 = vpop.f32.mrf.mxu1 }
 0x973   : > { %v3046_v33 = vadd.f32 %v3045_v31, %v3013_v14 }
 0x974   : > { %v3076_v16 = vpop.f32.mrf.mxu2 }
 0x975   : > { %v3077_v8 = vadd.f32 %v3076_v16, %v3044_v58 }
 0x976   : > { %v3015_v30 = vpop.f32.mrf.mxu0 }
 0x977   : > { %v9267_v61 = vadd.f32 %v3077_v8, %v8728_v62  ;;  %v3016_v4 = vadd.f32 %v9253_v29, %v3015_v30 }
 0x979   : > { %3108 = vadd.xlane.f32.xlu2 %v9267_v61 }
 0x97a   : > { %v3048_v57 = vpop.f32.mrf.mxu1 }
 0x97b   : > { %v3049_v52 = vadd.f32 %v3048_v57, %v3016_v4 }
 0x97c   : > { %v3078_v63 = vpop.f32.mrf.mxu2 }
 0x97d   : > { %v3079_v28 = vadd.f32 %v3078_v63, %v3046_v33 }
 0x97e   : > { %v3017_v55 = vpop.f32.mrf.mxu0 }
 0x97f   : > { %v9272_v42 = vadd.f32 %v3079_v28, %v8734_v5  ;;  %v3018_v49 = vadd.f32 %v9253_v29, %v3017_v55 }
 0x981   : > { %3110 = vadd.xlane.f32.xlu0 %v9272_v42 }
 0x982   : > { %v3050_v56 = vpop.f32.mrf.mxu1 }
 0x983   : > { %v3051_v35 = vadd.f32 %v3050_v56, %v3018_v49 }
 0x984   : > { %v3081_v62 = vpop.f32.mrf.mxu2 }
 0x985   : > { %v3082_v60 = vadd.f32 %v3081_v62, %v3049_v52 }
 0x986   : > { %v3020_v46 = vpop.f32.mrf.mxu0 }
 0x987   : > { %v9277_v39 = vadd.f32 %v3082_v60, %v8740_v32  ;;  %v3021_v54 = vadd.f32 %v9253_v29, %v3020_v46 }
 0x989   : > { %3112 = vadd.xlane.f32.xlu1 %v9277_v39 }
 0x98a   : > { %v3053_v10 = vpop.f32.mrf.mxu1 }
 0x98b   : > { %v3054_v19 = vadd.f32 %v3053_v10, %v3021_v54 }
 0x98c   : > { %v3083_v5 = vpop.f32.mrf.mxu2 }
 0x98d   : > { %v3084_v47 = vadd.f32 %v3083_v5, %v3051_v35 }
 0x98e   : > { %v3022_v3 = vpop.f32.mrf.mxu0 }
 0x98f   : > { %v9282_v45 = vadd.f32 %v3084_v47, %v8746_v50  ;;  %v3023_v0 = vadd.f32 %v9253_v29, %v3022_v3 }
 0x991   : > { %3114 = vadd.xlane.f32.xlu2 %v9282_v45 }
 0x992   : > { %v3055_v22 = vpop.f32.mrf.mxu1 }
 0x993   : > { %v3056_v18 = vadd.f32 %v3055_v22, %v3023_v0 }
 0x994   : > { %v3086_v9 = vpop.f32.mrf.mxu2 }
 0x995   : > { %v3087_v32 = vadd.f32 %v3086_v9, %v3054_v19 }
 0x997   : > { %v9287_v12 = vadd.f32 %v3087_v32, %v8752_v11 }
 0x999   : > { %3116 = vadd.xlane.f32.xlu0 %v9287_v12 }
 0x99c   : > { %v3088_v17 = vpop.f32.mrf.mxu2 }
 0x99d   : > { %v3089_v50 = vadd.f32 %v3088_v17, %v3056_v18  ;;  %v7433_v18 = vld [vmem:[%s10711_s3 + $0x1b8] sm:$0xff] }
 0x99e   : > { %v7441_v17 = vld [vmem:[%s10711_s3 + $0x238] sm:$0xff]  ;;  %3368 = vmatpush.bf16.msra.mxu3 %v7433_v18 }
 0x99f   : > { %v9292_v41 = vadd.f32 %v3089_v50, %v8758_v51  ;;  %v7449_v50 = vld [vmem:[%s10711_s3 + $0x2b8] sm:$0xff]  ;;  %3471 = vmatpush.bf16.msrb.mxu0 %v7441_v17 }
 0x9a0   : > { %3574 = vmatpush.bf16.msrb.mxu1 %v7449_v50 }
 0x9a1   : > { %3118 = vadd.xlane.f32.xlu1 %v9292_v41 }
 0x9d4   : > { %v3025_v25 = vpop.f32.mrf.mxu0 }
 0x9d5   : > { %v3026_v21 = vadd.f32 %v9253_v29, %v3025_v25  ;;  %v7432_v25 = vld [vmem:[%s10711_s3 + $0x1b0] sm:$0xff] }
 0x9d6   : > { %3369 = vmatpush.bf16.msra.mxu3 %v7432_v25 }
 0x9d9   : > { %v3105_v59 = vpop.xlane.xlu0 %3104 }
 0x9da   : > { %v3122_v24 = vmul.f32 0.010416667, %v3105_v59  ;;  %v3058_v40 = vpop.f32.mrf.mxu1  ;;  %v7440_v59 = vld [vmem:[%s10711_s3 + $0x230] sm:$0xff] }
 0x9db   : > { %v3059_v1 = vadd.f32 %v3058_v40, %v3026_v21  ;;  %3472 = vmatpush.bf16.msrb.mxu0 %v7440_v59  ;;  %v7431_v40 = vld [vmem:[%s10711_s3 + $0x1a8] sm:$0xff]  ;;  %v7430_v21 = vld [vmem:[%s10711_s3 + $0x1a0] sm:$0xff] }
 0x9dc   : > { %v3131_v11 = vsub.f32 %v9257_v23, %v3122_v24  ;;  %v3027_v36 = vpop.f32.mrf.mxu0  ;;  %v7448_v24 = vld [vmem:[%s10711_s3 + $0x2b0] sm:$0xff]  ;;  %3370 = vmatpush.bf16.msra.mxu3 %v7431_v40 }
 0x9dd   : > { %3575 = vmatpush.bf16.msrb.mxu1 %v7448_v24  ;;  %v7447_v36 = vld [vmem:[%s10711_s3 + $0x2a8] sm:$0xff] }
 0x9de   : > { %v9298_v27 = vmul.f32 %v8097_v48, %v3131_v11  ;;  %v7439_v11 = vld [vmem:[%s10711_s3 + $0x228] sm:$0xff] }
 0x9df   : > { %3473 = vmatpush.bf16.msrb.mxu0 %v7439_v11 }
 0x9e0   : > { %v3149_v26 = vmul.f32 %v9298_v27, %v9298_v27  ;;  %3371 = vmatpush.bf16.msra.mxu3 %v7430_v21 }
 0x9e1   : > { %v3091_v51 = vpop.f32.mrf.mxu2  ;;  %v3107_v34 = vpop.xlane.xlu1 %3106  ;;  %3576 = vmatpush.bf16.msrb.mxu1 %v7447_v36 }
 0x9e2   : > { %v3092_v13 = vadd.f32 %v3091_v51, %v3059_v1  ;;  %v3123_v6 = vmul.f32 0.010416667, %v3107_v34  ;;  %3158 = vadd.xlane.f32.xlu2 %v3149_v26  ;;  %v3060_v38 = vpop.f32.mrf.mxu1  ;;  %v7438_v1 = vld [vmem:[%s10711_s3 + $0x220] sm:$0xff]  ;;  %v7429_v51 = vld [vmem:[%s10711_s3 + $0x198] sm:$0xff] }
 0x9e3   : > { %v7446_v26 = vld [vmem:[%s10711_s3 + $0x2a0] sm:$0xff]  ;;  %3474 = vmatpush.bf16.msrb.mxu0 %v7438_v1  ;;  %v7437_v34 = vld [vmem:[%s10711_s3 + $0x218] sm:$0xff]  ;;  %v7436_v38 = vld [vmem:[%s10711_s3 + $0x210] sm:$0xff] }
 0x9e4   : > { %v9303_v2 = vadd.f32 %v3092_v13, %v8783_v15  ;;  %v3132_v53 = vsub.f32 %v9262_v7, %v3123_v6  ;;  %v7445_v13 = vld [vmem:[%s10711_s3 + $0x298] sm:$0xff]  ;;  %3372 = vmatpush.bf16.msra.mxu3 %v7429_v51  ;;  %v7428_v6 = vld [vmem:[%s10711_s3 + $0x190] sm:$0xff] }
 0x9e5   : > { %3577 = vmatpush.bf16.msrb.mxu1 %v7446_v26 }
 0x9e6   : > { %3120 = vadd.xlane.f32.xlu1 %v9303_v2  ;;  %v9308_v29 = vmul.f32 %v8097_v48, %v3132_v53  ;;  %v7444_v53 = vld [vmem:[%s10711_s3 + $0x290] sm:$0xff] }
 0x9e7   : > { %3475 = vmatpush.bf16.msrb.mxu0 %v7437_v34 }
 0x9e8   : > { %v3150_v37 = vmul.f32 %v9308_v29, %v9308_v29  ;;  %3373 = vmatpush.bf16.msra.mxu3 %v7428_v6 }
 0x9e9   : > { %v3093_v20 = vpop.f32.mrf.mxu2  ;;  %3578 = vmatpush.bf16.msrb.mxu1 %v7445_v13 }
 0x9ea   : > { %3160 = vadd.xlane.f32.xlu0 %v3150_v37  ;;  %v7427_v20 = vld [vmem:[%s10711_s3 + $0x188] sm:$0xff] }
 0x9eb   : > { %3476 = vmatpush.bf16.msrb.mxu0 %v7436_v38 }
 0x9ec   : > { %v3109_v31 = vpop.xlane.xlu2 %3108  ;;  %3374 = vmatpush.bf16.msra.mxu3 %v7427_v20 }
 0x9ed   : > { %v3124_v58 = vmul.f32 0.010416667, %v3109_v31  ;;  %3579 = vmatpush.bf16.msrb.mxu1 %v7444_v53  ;;  %v7435_v31 = vld [vmem:[%s10711_s3 + $0x208] sm:$0xff] }
 0x9ef   : > { %v3133_v16 = vsub.f32 %v9267_v61, %v3124_v58  ;;  %v7443_v58 = vld [vmem:[%s10711_s3 + $0x288] sm:$0xff]  ;;  %3477 = vmatpush.bf16.msrb.mxu0 %v7435_v31 }
 0x9f1   : > { %v9314_v8 = vmul.f32 %v8097_v48, %v3133_v16  ;;  %3580 = vmatpush.bf16.msrb.mxu1 %v7443_v58 }
 0x9f3   : > { %v3151_v15 = vmul.f32 %v9314_v8, %v9314_v8 }
 0x9f4   : > { %v3111_v30 = vpop.xlane.xlu0 %3110 }
 0x9f5   : > { %v3125_v14 = vmul.f32 0.010416667, %v3111_v30  ;;  %3162 = vadd.xlane.f32.xlu2 %v3151_v15 }
 0x9f7   : > { %v3134_v57 = vsub.f32 %v9272_v42, %v3125_v14  ;;  %v7426_v14 = vld [vmem:[%s10711_s3 + $0x180] sm:$0xff] }
 0x9f8   : > { %3375 = vmatpush.bf16.msra.mxu3 %v7426_v14 }
 0x9f9   : > { %v9320_v33 = vmul.f32 %v8097_v48, %v3134_v57  ;;  %v7434_v57 = vld [vmem:[%s10711_s3 + $0x200] sm:$0xff] }
 0x9fa   : > { %3478 = vmatpush.bf16.msrb.mxu0 %v7434_v57 }
 0x9fb   : > { %v3152_v63 = vmul.f32 %v9320_v33, %v9320_v33 }
 0x9fc   : > { %v3113_v28 = vpop.xlane.xlu1 %3112 }
 0x9fd   : > { %v3126_v4 = vmul.f32 0.010416667, %v3113_v28  ;;  %3164 = vadd.xlane.f32.xlu0 %v3152_v63  ;;  %v7442_v63 = vld [vmem:[%s10711_s3 + $0x280] sm:$0xff] }
 0x9fe   : > { %3581 = vmatpush.bf16.msrb.mxu1 %v7442_v63 }
 0x9ff   : > { %v3135_v55 = vsub.f32 %v9277_v39, %v3126_v4 }
 0xa01   : > { %v9326_v52 = vmul.f32 %v8097_v48, %v3135_v55 }
 0xa03   : > { %v3153_v62 = vmul.f32 %v9326_v52, %v9326_v52 }
 0xa04   : > { %v3115_v56 = vpop.xlane.xlu2 %3114 }
 0xa05   : > { %v3127_v60 = vmul.f32 0.010416667, %v3115_v56  ;;  %3166 = vadd.xlane.f32.xlu1 %v3153_v62 }
 0xa07   : > { %v3136_v49 = vsub.f32 %v9282_v45, %v3127_v60 }
 0xa09   : > { %v9332_v35 = vmul.f32 %v8097_v48, %v3136_v49 }
 0xa0b   : > { %v3154_v46 = vmul.f32 %v9332_v35, %v9332_v35 }
 0xa0c   : > { %v3117_v5 = vpop.xlane.xlu0 %3116 }
 0xa0d   : > { %v3128_v47 = vmul.f32 0.010416667, %v3117_v5  ;;  %3168 = vadd.xlane.f32.xlu2 %v3154_v46 }
 0xa0f   : > { %v3137_v10 = vsub.f32 %v9287_v12, %v3128_v47 }
 0xa11   : > { %v9338_v54 = vmul.f32 %v8097_v48, %v3137_v10 }
 0xa13   : > { %v3155_v19 = vmul.f32 %v9338_v54, %v9338_v54 }
 0xa14   : > { %v3119_v9 = vpop.xlane.xlu1 %3118 }
 0xa15   : > { %v3129_v32 = vmul.f32 0.010416667, %v3119_v9  ;;  %3170 = vadd.xlane.f32.xlu0 %v3155_v19 }
 0xa17   : > { %v3138_v3 = vsub.f32 %v9292_v41, %v3129_v32 }
 0xa19   : > { %v9344_v22 = vmul.f32 %v8097_v48, %v3138_v3 }
 0xa1b   : > { %v3156_v0 = vmul.f32 %v9344_v22, %v9344_v22 }
 0xa1d   : > { %3172 = vadd.xlane.f32.xlu1 %v3156_v0 }
 0xa55   : > { %v3159_v37 = vpop.xlane.xlu2 %3158 }
 0xa56   : > { %v3176_v16 = vmul.f32 0.010416667, %v3159_v37 }
 0xa58   : > { %v3185_v15 = vadd.f32 1e-06, %v3176_v16 }
 0xa59   : > { %v3121_v30 = vpop.xlane.xlu1 %3120 }
 0xa5a   : > { %7758 = vrsqrt.f32 %v3185_v15  ;;  %v3130_v28 = vmul.f32 0.010416667, %v3121_v30  ;;  %vm3200_vm4 = vweird.f32 %v3185_v15 }
 0xa5c   : > { %v3139_v4 = vsub.f32 %v9303_v2, %v3130_v28 }
 0xa5d   : > { %v3161_v55 = vpop.xlane.xlu0 %3160 }
 0xa5e   : > { %v3177_v62 = vmul.f32 0.010416667, %v3161_v55  ;;  %v9422_v56 = vmul.f32 %v8097_v48, %v3139_v4 }
 0xa60   : > { %v7759_v60 = vpop.eup %7758  ;;  %v3186_v49 = vadd.f32 1e-06, %v3177_v62  ;;  %v3157_v46 = vmul.f32 %v9422_v56, %v9422_v56 }
 0xa61   : > { %v3195_v5 = vmul.f32 %v7759_v60, %v3185_v15  ;;  %vm3201_vm3 = vweird.f32 %v7759_v60 }
 0xa62   : > { %7760 = vrsqrt.f32 %v3186_v49  ;;  %3174 = vadd.xlane.f32.xlu2 %v3157_v46  ;;  %vm3202_vm6 = vmor %vm3200_vm4, %vm3201_vm3  ;;  %vm3210_vm7 = vweird.f32 %v3186_v49 }
 0xa63   : > { %v3196_v47 = vmul.f32 %v7759_v60, %v3195_v5 }
 0xa65   : > { %v3197_v10 = vmul.f32 0.5, %v3196_v47 }
 0xa67   : > { %v3198_v32 = vsub.f32 1.5, %v3197_v10 }
 0xa68   : > { %v7761_v19 = vpop.eup %7760  ;;  %v3163_v9 = vpop.xlane.xlu2 %3162 }
 0xa69   : > { %v3205_v3 = vmul.f32 %v7761_v19, %v3186_v49  ;;  %v3178_v0 = vmul.f32 0.010416667, %v3163_v9  ;;  %v3199_v50 = vmul.f32 %v7759_v60, %v3198_v32  ;;  %vm3211_vm5 = vweird.f32 %v7761_v19 }
 0xa6a   : > { %vm3212_vm8 = vmor %vm3210_vm7, %vm3211_vm5 }
 0xa6b   : > { %v3206_v18 = vmul.f32 %v7761_v19, %v3205_v3  ;;  %v3187_v17 = vadd.f32 1e-06, %v3178_v0  ;;  %v3203_v40 = vsel %vm3202_vm6, %v7759_v60, %v3199_v50 }
 0xa6c   : > { %v3284_v51 = vmul.f32 %v3203_v40, %v9298_v27 }
 0xa6d   : > { %v3207_v25 = vmul.f32 0.5, %v3206_v18  ;;  %7762 = vrsqrt.f32 %v3187_v17  ;;  %vm3220_vm10 = vweird.f32 %v3187_v17 }
 0xa6f   : > { %v3208_v59 = vsub.f32 1.5, %v3207_v25 }
 0xa70   : > { %v3165_v24 = vpop.xlane.xlu0 %3164 }
 0xa71   : > { %v3209_v11 = vmul.f32 %v7761_v19, %v3208_v59  ;;  %v3179_v36 = vmul.f32 0.010416667, %v3165_v24 }
 0xa73   : > { %v7763_v21 = vpop.eup %7762  ;;  %v3213_v1 = vsel %vm3212_vm8, %v7761_v19, %v3209_v11  ;;  %v3188_v26 = vadd.f32 1e-06, %v3179_v36 }
 0xa74   : > { %v3285_v34 = vmul.f32 %v3213_v1, %v9308_v29  ;;  %v3215_v13 = vmul.f32 %v7763_v21, %v3187_v17  ;;  %vm3221_vm9 = vweird.f32 %v7763_v21 }
 0xa75   : > { %7764 = vrsqrt.f32 %v3188_v26  ;;  %vm3222_vm0 = vmor %vm3220_vm10, %vm3221_vm9  ;;  %vm3230_vm1 = vweird.f32 %v3188_v26 }
 0xa76   : > { %v9428_v6 = vpack.c.bf16 %v3285_v34, %v3284_v51  ;;  %v3216_v38 = vmul.f32 %v7763_v21, %v3215_v13 }
 0xa78   : > { %v3217_v53 = vmul.f32 0.5, %v3216_v38  ;;  %v3167_v37 = vpop.xlane.xlu1 %3166  ;;  %3376 = vmatmul.bf16.vlgmr.msra.gmra.mxu3 %v9428_v6  ;;  %3479 = vmatmul.bf16.vlgmr.msrb.gmra.mxu0 %v9428_v6 }
 0xa79   : > { %v3180_v20 = vmul.f32 0.010416667, %v3167_v37  ;;  %3582 = vmatmul.bf16.vlgmr.msrb.gmra.mxu1 %v9428_v6 }
 0xa7a   : > { %v3218_v16 = vsub.f32 1.5, %v3217_v53 }
 0xa7b   : > { %v7765_v31 = vpop.eup %7764  ;;  %v3189_v58 = vadd.f32 1e-06, %v3180_v20 }
 0xa7c   : > { %v3225_v27 = vmul.f32 %v7765_v31, %v3188_v26  ;;  %v3219_v15 = vmul.f32 %v7763_v21, %v3218_v16  ;;  %vm3231_vm11 = vweird.f32 %v7765_v31 }
 0xa7d   : > { %7766 = vrsqrt.f32 %v3189_v58  ;;  %vm3232_vm2 = vmor %vm3230_vm1, %vm3231_vm11  ;;  %vm3240_vm4 = vweird.f32 %v3189_v58 }
 0xa7e   : > { %v3226_v29 = vmul.f32 %v7765_v31, %v3225_v27  ;;  %v3223_v55 = vsel %vm3222_vm0, %v7763_v21, %v3219_v15 }
 0xa7f   : > { %v3286_v5 = vmul.f32 %v3223_v55, %v9314_v8  ;;  %v7467_v55 = vld [vmem:[%s10711_s3 + $0x268] sm:$0xff] }
 0xa80   : > { %v3227_v30 = vmul.f32 0.5, %v3226_v29  ;;  %v3169_v14 = vpop.xlane.xlu2 %3168 }
 0xa81   : > { %v3181_v57 = vmul.f32 0.010416667, %v3169_v14 }
 0xa82   : > { %v3228_v63 = vsub.f32 1.5, %v3227_v30 }
 0xa83   : > { %v7767_v28 = vpop.eup %7766  ;;  %v3190_v4 = vadd.f32 1e-06, %v3181_v57 }
 0xa84   : > { %v3229_v62 = vmul.f32 %v7765_v31, %v3228_v63  ;;  %v3235_v60 = vmul.f32 %v7767_v28, %v3189_v58  ;;  %vm3241_vm3 = vweird.f32 %v7767_v28  ;;  %v7461_v63 = vld [vmem:[%s10711_s3 + $0x1f8] sm:$0xff] }
 0xa85   : > { %7768 = vrsqrt.f32 %v3190_v4  ;;  %vm3242_vm6 = vmor %vm3240_vm4, %vm3241_vm3  ;;  %vm3250_vm7 = vweird.f32 %v3190_v4  ;;  %3933 = vmatpush.bf16.msra.mxu0 %v7461_v63 }
 0xa86   : > { %v3233_v49 = vsel %vm3232_vm2, %v7765_v31, %v3229_v62  ;;  %v3236_v46 = vmul.f32 %v7767_v28, %v3235_v60  ;;  %v7458_v62 = vld [vmem:[%s10711_s3 + $0x1e0] sm:$0xff] }
 0xa87   : > { %v3287_v47 = vmul.f32 %v3233_v49, %v9320_v33  ;;  %v7466_v60 = vld [vmem:[%s10711_s3 + $0x260] sm:$0xff]  ;;  %v7457_v49 = vld [vmem:[%s10711_s3 + $0x1d8] sm:$0xff] }
 0xa88   : > { %v3237_v10 = vmul.f32 0.5, %v3236_v46  ;;  %v3171_v19 = vpop.xlane.xlu0 %3170  ;;  %v7465_v46 = vld [vmem:[%s10711_s3 + $0x258] sm:$0xff] }
 0xa89   : > { %v9435_v9 = vpack.c.bf16 %v3287_v47, %v3286_v5  ;;  %v3182_v32 = vmul.f32 0.010416667, %v3171_v19  ;;  %v7464_v19 = vld [vmem:[%s10711_s3 + $0x250] sm:$0xff] }
 0xa8a   : > { %v3238_v18 = vsub.f32 1.5, %v3237_v10  ;;  %v7456_v10 = vld [vmem:[%s10711_s3 + $0x1d0] sm:$0xff] }
 0xa8b   : > { %v7769_v3 = vpop.eup %7768  ;;  %v3191_v0 = vadd.f32 1e-06, %v3182_v32  ;;  %3381 = vmatmul.bf16.gmra.mxu3 %v9435_v9  ;;  %3484 = vmatmul.bf16.gmra.mxu0 %v9435_v9 }
 0xa8c   : > { %v3245_v17 = vmul.f32 %v7769_v3, %v3190_v4  ;;  %3587 = vmatmul.bf16.gmra.mxu1 %v9435_v9  ;;  %v3239_v8 = vmul.f32 %v7767_v28, %v3238_v18  ;;  %vm3251_vm5 = vweird.f32 %v7769_v3  ;;  %v7459_v4 = vld [vmem:[%s10711_s3 + $0x1e8] sm:$0xff] }
 0xa8d   : > { %7770 = vrsqrt.f32 %v3191_v0  ;;  %vm3252_vm8 = vmor %vm3250_vm7, %vm3251_vm5  ;;  %vm3260_vm10 = vweird.f32 %v3191_v0 }
 0xa8e   : > { %v3246_v50 = vmul.f32 %v7769_v3, %v3245_v17  ;;  %v3243_v36 = vsel %vm3242_vm6, %v7767_v28, %v3239_v8  ;;  %v7469_v28 = vld [vmem:[%s10711_s3 + $0x278] sm:$0xff]  ;;  %v7462_v8 = vld [vmem:[%s10711_s3 + $0x240] sm:$0xff] }
 0xa8f   : > { %v3288_v34 = vmul.f32 %v3243_v36, %v9326_v52  ;;  %4036 = vmatpush.bf16.msra.mxu1 %v7469_v28 }
 0xa90   : > { %v3247_v33 = vmul.f32 0.5, %v3246_v50  ;;  %v3173_v25 = vpop.xlane.xlu1 %3172  ;;  %v7454_v50 = vld [vmem:[%s10711_s3 + $0x1c0] sm:$0xff] }
 0xa91   : > { %v3183_v59 = vmul.f32 0.010416667, %v3173_v25 }
 0xa92   : > { %v3248_v24 = vsub.f32 1.5, %v3247_v33 }
 0xa93   : > { %v7771_v40 = vpop.eup %7770  ;;  %v3192_v11 = vadd.f32 1e-06, %v3183_v59 }
 0xa94   : > { %v3249_v21 = vmul.f32 %v7769_v3, %v3248_v24  ;;  %v3255_v1 = vmul.f32 %v7771_v40, %v3191_v0  ;;  %vm3261_vm9 = vweird.f32 %v7771_v40  ;;  %v7463_v0 = vld [vmem:[%s10711_s3 + $0x248] sm:$0xff] }
 0xa95   : > { %7772 = vrsqrt.f32 %v3192_v11  ;;  %vm3262_vm0 = vmor %vm3260_vm10, %vm3261_vm9  ;;  %vm3270_vm1 = vweird.f32 %v3192_v11 }
 0xa96   : > { %v3253_v26 = vsel %vm3252_vm8, %v7769_v3, %v3249_v21  ;;  %v3256_v51 = vmul.f32 %v7771_v40, %v3255_v1  ;;  %v7455_v3 = vld [vmem:[%s10711_s3 + $0x1c8] sm:$0xff] }
 0xa97   : > { %v3289_v13 = vmul.f32 %v3253_v26, %v9332_v35 }
 0xa98   : > { %v3257_v38 = vmul.f32 0.5, %v3256_v51 }
 0xa99   : > { %v9442_v53 = vpack.c.bf16 %v3289_v13, %v3288_v34 }
 0xa9a   : > { %v3258_v20 = vsub.f32 1.5, %v3257_v38 }
 0xa9b   : > { %v7773_v37 = vpop.eup %7772  ;;  %3386 = vmatmul.bf16.gmra.mxu3 %v9442_v53  ;;  %3489 = vmatmul.bf16.gmra.mxu0 %v9442_v53 }
 0xa9c   : > { %v3265_v31 = vmul.f32 %v7773_v37, %v3192_v11  ;;  %3592 = vmatmul.bf16.gmra.mxu1 %v9442_v53  ;;  %v3259_v16 = vmul.f32 %v7771_v40, %v3258_v20  ;;  %vm3271_vm11 = vweird.f32 %v7773_v37 }
 0xa9d   : > { %vm3272_vm2 = vmor %vm3270_vm1, %vm3271_vm11 }
 0xa9e   : > { %v3266_v58 = vmul.f32 %v7773_v37, %v3265_v31  ;;  %v3263_v35 = vsel %vm3262_vm0, %v7771_v40, %v3259_v16 }
 0xa9f   : > { %v3290_v30 = vmul.f32 %v3263_v35, %v9338_v54  ;;  %v7460_v54 = vld [vmem:[%s10711_s3 + $0x1f0] sm:$0xff] }
 0xaa0   : > { %v3267_v27 = vmul.f32 0.5, %v3266_v58  ;;  %3934 = vmatpush.bf16.msra.mxu0 %v7460_v54 }
 0xaa2   : > { %v3268_v52 = vsub.f32 1.5, %v3267_v27 }
 0xaa4   : > { %v3269_v29 = vmul.f32 %v7773_v37, %v3268_v52  ;;  %3935 = vmatpush.bf16.msra.mxu0 %v7459_v4  ;;  %v7588_v4 = vld [vmem:[%s10712_s4 + $0x8] ss:$0 sm:$0xff] }
 0xaa6   : > { %v3273_v15 = vsel %vm3272_vm2, %v7773_v37, %v3269_v29 }
 0xaa7   : > { %v3291_v14 = vmul.f32 %v3273_v15, %v9344_v22  ;;  %v7468_v22 = vld [vmem:[%s10711_s3 + $0x270] sm:$0xff] }
 0xaa8   : > { %4037 = vmatpush.bf16.msra.mxu1 %v7468_v22  ;;  %3936 = vmatpush.bf16.msra.mxu0 %v7458_v62 }
 0xaa9   : > { %v9449_v57 = vpack.c.bf16 %v3291_v14, %v3290_v30 }
 0xaab   : > { %3391 = vmatmul.bf16.gmra.mxu3 %v9449_v57  ;;  %3494 = vmatmul.bf16.gmra.mxu0 %v9449_v57 }
 0xaac   : > { %3597 = vmatmul.bf16.gmra.mxu1 %v9449_v57  ;;  %3937 = vmatpush.bf16.msra.mxu0 %v7457_v49 }
 0xaad   : > { %4038 = vmatpush.bf16.msra.mxu1 %v7467_v55  ;;  %v7589_v55 = vld [vmem:[%s10712_s4 + $0xa] ss:$0 sm:$0xff] }
 0xab0   : > { %3938 = vmatpush.bf16.msra.mxu0 %v7456_v10  ;;  %v9551_v10 = vld [vmem:[%s10712_s4 + $0x6] ss:$0 sm:$0xff] }
 0xab1   : > { %4039 = vmatpush.bf16.msra.mxu1 %v7466_v60 }
 0xab4   : > { %3939 = vmatpush.bf16.msra.mxu0 %v7455_v3 }
 0xab5   : > { %4040 = vmatpush.bf16.msra.mxu1 %v7465_v46 }
 0xab8   : > { %3940 = vmatpush.bf16.msra.mxu0 %v7454_v50 }
 0xab9   : > { %4041 = vmatpush.bf16.msra.mxu1 %v7464_v19 }
 0xabd   : > { %4042 = vmatpush.bf16.msra.mxu1 %v7463_v0 }
 0xac1   : > { %4043 = vmatpush.bf16.msra.mxu1 %v7462_v8 }
 0xac5   : > { %4471 = vmatpush.bf16.msrb.mxu1 %v7481_v44 }
 0xad5   : > { %v3175_v5 = vpop.xlane.xlu2 %3174 }
 0xad6   : > { %v3184_v47 = vmul.f32 0.010416667, %v3175_v5 }
 0xad8   : > { %v3193_v32 = vadd.f32 1e-06, %v3184_v47 }
 0xada   : > { %7774 = vrsqrt.f32 %v3193_v32  ;;  %vm3280_vm4 = vweird.f32 %v3193_v32 }
 0xae0   : > { %v7775_v18 = vpop.eup %7774 }
 0xae1   : > { %v3275_v17 = vmul.f32 %v7775_v18, %v3193_v32  ;;  %vm3281_vm3 = vweird.f32 %v7775_v18 }
 0xae2   : > { %vm3282_vm5 = vmor %vm3280_vm4, %vm3281_vm3 }
 0xae3   : > { %v3276_v33 = vmul.f32 %v7775_v18, %v3275_v17 }
 0xae5   : > { %v3277_v25 = vmul.f32 0.5, %v3276_v33 }
 0xae7   : > { %v3278_v59 = vsub.f32 1.5, %v3277_v25 }
 0xae9   : > { %v3279_v24 = vmul.f32 %v7775_v18, %v3278_v59 }
 0xaeb   : > { %v3283_v40 = vsel %vm3282_vm5, %v7775_v18, %v3279_v24 }
 0xaec   : > { %v3292_v11 = vmul.f32 %v3283_v40, %v9422_v56 }
 0xaee   : > { %v9503_v36 = vpack.c.bf16 %v3292_v11, %v3292_v11 }
 0xaf0   : > { %3396 = vmatmul.bf16.gmra.mxu3 %v9503_v36  ;;  %3499 = vmatmul.bf16.gmra.mxu0 %v9503_v36 }
 0xaf1   : > { %3602 = vmatmul.bf16.gmra.mxu1 %v9503_v36 }
 0xaf5   : > { %v9512_v21 = vpop.f32.mrf.mxu0 }
 0xaf6   : > { %v9514_v1 = vpop.f32.mrf.mxu1 }
 0xafb   : > { %v9518_v56 = vpop.f32.mrf.mxu3 }
 0xafd   : > { %v9520_v26 = vpop.f32.mrf.mxu0 }
 0xafe   : > { %v3585_v51 = vpop.f32.mrf.mxu1 }
 0xb00   : > { %3941 = vmatmul.bf16.vlgmr.msra.gmra.mxu0 %v9428_v6 }
 0xb01   : > { %4044 = vmatmul.bf16.vlgmr.msra.gmra.mxu1 %v9428_v6 }
 0xb03   : > { %v9522_v34 = vpop.f32.mrf.mxu3 }
 0xb08   : > { %v9526_v13 = vpop.f32.mrf.mxu0 }
 0xb09   : > { %v3588_v38 = vpop.f32.mrf.mxu1 }
 0xb0e   : > { %v9528_v37 = vpop.f32.mrf.mxu3 }
 0xb10   : > { %3946 = vmatmul.bf16.gmra.mxu0 %v9435_v9  ;;  %v3487_v20 = vpop.f32.mrf.mxu0 }
 0xb11   : > { %4049 = vmatmul.bf16.gmra.mxu1 %v9435_v9  ;;  %v3590_v31 = vpop.f32.mrf.mxu1 }
 0xb16   : > { %v9532_v58 = vpop.f32.mrf.mxu3 }
 0xb18   : > { %v3490_v16 = vpop.f32.mrf.mxu0 }
 0xb19   : > { %v3593_v27 = vpop.f32.mrf.mxu1 }
 0xb1a   : > { %v3594_v11 = vadd.f32 %v7589_v55, %v3593_v27  ;;  %v3584_v27 = vadd.f32 %v7589_v55, %v9514_v1  ;;  %v3481_v1 = vadd.f32 %v7588_v4, %v9512_v21 }
 0xb1e   : > { %v9534_v52 = vpop.f32.mrf.mxu3 }
 0xb20   : > { %3951 = vmatmul.bf16.gmra.mxu0 %v9442_v53  ;;  %v3492_v35 = vpop.f32.mrf.mxu0 }
 0xb21   : > { %4054 = vmatmul.bf16.gmra.mxu1 %v9442_v53  ;;  %v3595_v29 = vpop.f32.mrf.mxu1 }
 0xb22   : > { %v3596_v25 = vadd.f32 %v7589_v55, %v3595_v29 }
 0xb26   : > { %v9536_v15 = vpop.f32.mrf.mxu3 }
 0xb28   : > { %v3495_v30 = vpop.f32.mrf.mxu0 }
 0xb29   : > { %v3598_v14 = vpop.f32.mrf.mxu1  ;;  %v3496_v17 = vadd.f32 %v7588_v4, %v3495_v30  ;;  %v3589_v30 = vadd.f32 %v7589_v55, %v3588_v38 }
 0xb2a   : > { %v3599_v50 = vadd.f32 %v7589_v55, %v3598_v14  ;;  %v3491_v14 = vadd.f32 %v7588_v4, %v3490_v16 }
 0xb2e   : > { %v9538_v63 = vpop.f32.mrf.mxu3 }
 0xb30   : > { %3956 = vmatmul.bf16.gmra.mxu0 %v9449_v57  ;;  %v3497_v28 = vpop.f32.mrf.mxu0 }
 0xb31   : > { %4059 = vmatmul.bf16.gmra.mxu1 %v9449_v57  ;;  %v3600_v54 = vpop.f32.mrf.mxu1  ;;  %v3498_v19 = vadd.f32 %v7588_v4, %v3497_v28  ;;  %v3591_v28 = vadd.f32 %v7589_v55, %v3590_v31 }
 0xb32   : > { %v3601_v32 = vadd.f32 %v7589_v55, %v3600_v54  ;;  %v3493_v54 = vadd.f32 %v7588_v4, %v3492_v35  ;;  %v3488_v35 = vadd.f32 %v7588_v4, %v3487_v20 }
 0xb33   : > { %v3615_v40 = vpack.c.bf16 %v3498_v19, %v3496_v17 }
 0xb34   : > { %v3796_v59 = vpack.c.bf16 %v3601_v32, %v3599_v50  ;;  %v3614_v32 = vpack.c.bf16 %v3493_v54, %v3491_v14  ;;  %v3380_v50 = vadd.f32 %v9551_v10, %v9522_v34  ;;  %v3383_v34 = vadd.f32 %v9551_v10, %v9528_v37  ;;  %v7476_v54 = vld [vmem:[%s10711_s3 + $0x2f0] sm:$0xff]  ;;  %v7475_v37 = vld [vmem:[%s10711_s3 + $0x2e8] sm:$0xff] }
 0xb35   : > { %v3388_v14 = vadd.f32 %v9551_v10, %v9534_v52  ;;  %v7592_v52 = vld [vmem:[%s10712_s4 + $0x9] ss:$0 sm:$0xff] }
 0xb36   : > { %v9540_v22 = vpop.f32.mrf.mxu3  ;;  %v3639_v19 = vsel %vm1100_vm13, %v3614_v32, 0  ;;  %v7473_v32 = vld [vmem:[%s10711_s3 + $0x2d8] sm:$0xff] }
 0xb40   : > { %3961 = vmatmul.bf16.gmra.mxu0 %v9503_v36 }
 0xb41   : > { %4064 = vmatmul.bf16.gmra.mxu1 %v9503_v36 }
 0xb6d   : > { %v3500_v62 = vpop.f32.mrf.mxu0 }
 0xb6e   : > { %v3501_v60 = vadd.f32 %v7588_v4, %v3500_v62  ;;  %v3603_v49 = vpop.f32.mrf.mxu1  ;;  %v3795_v62 = vpack.c.bf16 %v3596_v25, %v3594_v11 }
 0xb6f   : > { %v3604_v46 = vadd.f32 %v7589_v55, %v3603_v49 }
 0xb70   : > { %v3616_v5 = vpack.c.bf16 %v3501_v60, %v3501_v60  ;;  %v3642_v60 = vsel %vm1100_vm13, %v3615_v40, 0 }
 0xb71   : > { %v3797_v47 = vpack.c.bf16 %v3604_v46, %v3604_v46 }
 0xb72   : > { %v3645_v3 = vsel %vm1100_vm13, %v3616_v5, 0  ;;  %v3586_v5 = vadd.f32 %v7589_v55, %v3585_v51 }
 0xb73   : > { %v3814_v0 = vsel %vm1300_vm12, %v3797_v47, 0  ;;  %v3397_v18 = vpop.f32.mrf.mxu3  ;;  %3650 = vmatpush.bf16.xpose.msra.mxu2 %v3645_v3  ;;  %v3794_v47 = vpack.c.bf16 %v3591_v28, %v3589_v30  ;;  %v3486_v3 = vadd.f32 %v7588_v4, %v9526_v13 }
 0xb74   : > { %v9556_v8 = vadd.f32 %v9551_v10, %v3397_v18  ;;  %3819 = vmatpush.bf16.msrb.mxu3 %v3814_v0  ;;  %v3793_v31 = vpack.c.bf16 %v3586_v5, %v3584_v27  ;;  %v3483_v0 = vadd.f32 %v7588_v4, %v9520_v26  ;;  %v3378_v26 = vadd.f32 %v9551_v10, %v9518_v56  ;;  %v7477_v56 = vld [vmem:[%s10711_s3 + $0x2f8] sm:$0xff]  ;;  %v7472_v27 = vld [vmem:[%s10711_s3 + $0x2d0] sm:$0xff] }
 0xb75   : > { %v3502_v33 = vpop.f32.mrf.mxu0  ;;  %v3613_v51 = vpack.c.bf16 %v3488_v35, %v3486_v3 }
 0xb76   : > { %v3605_v24 = vpop.f32.mrf.mxu1  ;;  %v3612_v17 = vpack.c.bf16 %v3483_v0, %v3481_v1 }
 0xb77   : > { %v3636_v18 = vsel %vm1100_vm13, %v3613_v51, 0  ;;  %v3385_v24 = vadd.f32 %v9551_v10, %v9532_v58  ;;  %v7471_v51 = vld [vmem:[%s10711_s3 + $0x2c8] sm:$0xff] }
 0xb78   : > { %3820 = vmatpush.bf16.msrb.mxu3 %v3796_v59  ;;  %v3633_v13 = vsel %vm1100_vm13, %v3612_v17, 0  ;;  %v3607_v59 = vpack.c.bf16 %v3380_v50, %v3378_v26  ;;  %v3395_v17 = vadd.f32 %v9551_v10, %v9540_v22 }
 0xb79   : > { %v3608_v28 = vpack.c.bf16 %v3385_v24, %v3383_v34 }
 0xb7b   : > { %v3399_v49 = vpop.f32.mrf.mxu3  ;;  %3651 = vmatpush.bf16.xpose.msra.mxu2 %v3642_v60  ;;  %v3390_v60 = vadd.f32 %v9551_v10, %v9536_v15  ;;  %v9621_v15 = vld [vmem:[%s10712_s4 + $0x7] ss:$0 sm:$0xff] }
 0xb7c   : > { %3821 = vmatpush.bf16.msrb.mxu3 %v3795_v62  ;;  %v7474_v49 = vld [vmem:[%s10711_s3 + $0x2e0] sm:$0xff] }
 0xb7d   : > { %v9559_v46 = vpop.f32.mrf.mxu0 }
 0xb7e   : > { %v9561_v29 = vpop.f32.mrf.mxu1 }
 0xb80   : > { %3822 = vmatpush.bf16.msrb.mxu3 %v3794_v47  ;;  %v3609_v47 = vpack.c.bf16 %v3390_v60, %v3388_v14 }
 0xb83   : > { %3652 = vmatpush.bf16.xpose.msra.mxu2 %v3639_v19 }
 0xb84   : > { %3823 = vmatpush.bf16.msrb.mxu3 %v3793_v31 }
 0xb85   : > { %v9566_v38 = vpop.f32.mrf.mxu0 }
 0xb86   : > { %v9568_v16 = vpop.f32.mrf.mxu1 }
 0xb8b   : > { %3653 = vmatpush.bf16.xpose.msra.mxu2 %v3636_v18 }
 0xb8d   : > { %v9573_v55 = vpop.f32.mrf.mxu0 }
 0xb8e   : > { %v9575_v20 = vpop.f32.mrf.mxu1 }
 0xb93   : > { %3654 = vmatpush.bf16.xpose.msra.mxu2 %v3633_v13  ;;  %v7470_v13 = vld [vmem:[%s10711_s3 + $0x2c0] sm:$0xff] }
 0xb95   : > { %v9580_v33 = vpop.f32.mrf.mxu0 }
 0xb96   : > { %v4052_v25 = vpop.f32.mrf.mxu1 }
 0xb97   : > { %v4053_v60 = vadd.f32 %v7592_v52, %v4052_v25 }
 0xb9a   : > { %6680 = vmatmul.msk.bf16.vlgmr.msra.gmra.mxu2 %vm1100_vm13, %v3607_v59  ;;  %v3393_v59 = vadd.f32 %v9551_v10, %v9538_v63  ;;  %v3611_v63 = vpack.c.bf16 %v9556_v8, %v9556_v8  ;;  %v4048_v10 = vadd.f32 %v7592_v52, %v9568_v16 }
 0xb9b   : > { %4139 = vmatpush.bf16.msrb.mxu2 %v7477_v56 }
 0xb9d   : > { %v9585_v21 = vpop.f32.mrf.mxu0 }
 0xb9e   : > { %v4055_v4 = vpop.f32.mrf.mxu1 }
 0xb9f   : > { %4140 = vmatpush.bf16.msrb.mxu2 %v7476_v54  ;;  %v4056_v54 = vadd.f32 %v7592_v52, %v4055_v4  ;;  %v4046_v4 = vadd.f32 %v7592_v52, %v9561_v29 }
 0xba3   : > { %4141 = vmatpush.bf16.msrb.mxu2 %v7475_v37 }
 0xba5   : > { %v9589_v40 = vpop.f32.mrf.mxu0 }
 0xba6   : > { %v4057_v11 = vpop.f32.mrf.mxu1 }
 0xba7   : > { %4142 = vmatpush.bf16.msrb.mxu2 %v7474_v49  ;;  %v4058_v56 = vadd.f32 %v7592_v52, %v4057_v11 }
 0xba9   : > { %v4179_v37 = vpack.c.bf16 %v4058_v56, %v4056_v54 }
 0xbaa   : > { %6681 = vmatmul.msk.bf16.gmra.mxu2 %vm1100_vm13, %v3608_v28  ;;  %v3610_v28 = vpack.c.bf16 %v3395_v17, %v3393_v59 }
 0xbab   : > { %4143 = vmatpush.bf16.msrb.mxu2 %v7473_v32  ;;  %v4204_v49 = vsel %vm1100_vm13, %v4179_v37, 0 }
 0xbad   : > { %v9600_v62 = vpop.f32.mrf.mxu0 }
 0xbae   : > { %v4060_v58 = vpop.f32.mrf.mxu1 }
 0xbaf   : > { %4144 = vmatpush.bf16.msrb.mxu2 %v7472_v27  ;;  %v4061_v50 = vadd.f32 %v7592_v52, %v4060_v58  ;;  %v4051_v58 = vadd.f32 %v7592_v52, %v9575_v20 }
 0xbb1   : > { %v4178_v14 = vpack.c.bf16 %v4053_v60, %v4051_v58 }
 0xbb3   : > { %4145 = vmatpush.bf16.msrb.mxu2 %v7471_v51  ;;  %v4201_v11 = vsel %vm1100_vm13, %v4178_v14, 0 }
 0xbb5   : > { %v9610_v30 = vpop.f32.mrf.mxu0 }
 0xbb6   : > { %v4062_v5 = vpop.f32.mrf.mxu1 }
 0xbb7   : > { %v4063_v18 = vadd.f32 %v7592_v52, %v4062_v5  ;;  %4146 = vmatpush.bf16.msrb.mxu2 %v7470_v13  ;;  %v4177_v5 = vpack.c.bf16 %v4048_v10, %v4046_v4 }
 0xbb9   : > { %v4180_v34 = vpack.c.bf16 %v4063_v18, %v4061_v50  ;;  %v4198_v25 = vsel %vm1100_vm13, %v4177_v5, 0 }
 0xbba   : > { %6682 = vmatmul.msk.bf16.gmra.mxu2 %vm1100_vm13, %v3609_v47 }
 0xbbb   : > { %v4207_v22 = vsel %vm1100_vm13, %v4180_v34, 0 }
 0xbbd   : > { %v3962_v31 = vpop.f32.mrf.mxu0 }
 0xbbe   : > { %v9630_v35 = vadd.f32 %v9621_v15, %v3962_v31  ;;  %v4065_v19 = vpop.f32.mrf.mxu1 }
 0xbbf   : > { %v4066_v3 = vadd.f32 %v7592_v52, %v4065_v19 }
 0xbc1   : > { %v4181_v0 = vpack.c.bf16 %v4066_v3, %v4066_v3 }
 0xbc3   : > { %v4210_v1 = vsel %vm1100_vm13, %v4181_v0, 0 }
 0xbc4   : > { %4215 = vmatpush.bf16.xpose.msra.mxu3 %v4210_v1 }
 0xbc5   : > { %v3964_v26 = vpop.f32.mrf.mxu0 }
 0xbc6   : > { %v4067_v24 = vpop.f32.mrf.mxu1 }
 0xbca   : > { %6683 = vmatmul.msk.bf16.gmra.mxu2 %vm1100_vm13, %v3610_v28 }
 0xbcc   : > { %4216 = vmatpush.bf16.xpose.msra.mxu3 %v4207_v22 }
 0xbd4   : > { %4217 = vmatpush.bf16.xpose.msra.mxu3 %v4204_v49 }
 0xbda   : > { %6684 = vmatmul.msk.bf16.gmra.mxu2 %vm1100_vm13, %v3611_v63 }
 0xbdc   : > { %4218 = vmatpush.bf16.xpose.msra.mxu3 %v4201_v11 }
 0xbe4   : > { %4219 = vmatpush.bf16.xpose.msra.mxu3 %v4198_v25 }
 0xbea   : > { %4147 = vmatmul.bf16.vlgmr.msrb.gmra.mxu2 %v9428_v6 }
 0xbfa   : > { %4152 = vmatmul.bf16.gmra.mxu2 %v9435_v9 }
 0xc0a   : > { %4157 = vmatmul.bf16.gmra.mxu2 %v9442_v53 }
 0xc1a   : > { %4162 = vmatmul.bf16.gmra.mxu2 %v9449_v57 }
 0xc1d   : > { %v3656_v8 = vpop.f32.mrf.mxu2 }
 0xc1e   : > { %v3680_v16 = vsel %vm445_vm14, %v3656_v8, -1e+30 }
 0xc1f   : > { %v3689_v20 = vsel %vm1175_vm15, %v3680_v16, -inf }
 0xc20   : > { %3690 = vmax.xlane.f32.xlu0 %v3689_v20 }
 0xc25   : > { %v3658_v29 = vpop.f32.mrf.mxu2 }
 0xc26   : > { %v3681_v47 = vsel %vm445_vm14, %v3658_v29, -1e+30 }
 0xc27   : > { %v3692_v32 = vsel %vm1175_vm15, %v3681_v47, -inf }
 0xc28   : > { %3693 = vmax.xlane.f32.xlu1 %v3692_v32 }
 0xc2a   : > { %4167 = vmatmul.bf16.gmra.mxu2 %v9503_v36 }
 0xc2d   : > { %v3661_v6 = vpop.f32.mrf.mxu2 }
 0xc2e   : > { %v3682_v9 = vsel %vm445_vm14, %v3661_v6, -1e+30 }
 0xc2f   : > { %v3695_v53 = vsel %vm1175_vm15, %v3682_v9, -inf }
 0xc30   : > { %3696 = vmax.xlane.f32.xlu2 %v3695_v53 }
 0xc35   : > { %v3663_v57 = vpop.f32.mrf.mxu2 }
 0xc36   : > { %v3683_v27 = vsel %vm445_vm14, %v3663_v57, -1e+30  ;;  %v7593_v57 = vld [vmem:[%s10712_s4 + $0xb] ss:$0 sm:$0xff] }
 0xc37   : > { %v3698_v52 = vsel %vm1175_vm15, %v3683_v27, -inf }
 0xc38   : > { %3699 = vmax.xlane.f32.xlu0 %v3698_v52 }
 0xc3d   : > { %v3666_v31 = vpop.f32.mrf.mxu2 }
 0xc3e   : > { %v9673_v19 = vsel %vm445_vm14, %v3666_v31, -1e+30 }
 0xc3f   : > { %v3701_v36 = vsel %vm1175_vm15, %v9673_v19, -inf }
 0xc40   : > { %3702 = vmax.xlane.f32.xlu1 %v3701_v36 }
 0xc45   : > { %v3668_v3 = vpop.f32.mrf.mxu2 }
 0xc46   : > { %v9679_v51 = vsel %vm445_vm14, %v3668_v3, -1e+30 }
 0xc47   : > { %v3704_v0 = vsel %vm1175_vm15, %v9679_v51, -inf }
 0xc48   : > { %3705 = vmax.xlane.f32.xlu2 %v3704_v0 }
 0xc4d   : > { %v3671_v18 = vpop.f32.mrf.mxu2 }
 0xc4e   : > { %v9685_v1 = vsel %vm445_vm14, %v3671_v18, -1e+30 }
 0xc4f   : > { %v3707_v17 = vsel %vm1175_vm15, %v9685_v1, -inf }
 0xc50   : > { %3708 = vmax.xlane.f32.xlu0 %v3707_v17 }
 0xc55   : > { %v3673_v13 = vpop.f32.mrf.mxu2 }
 0xc56   : > { %v9691_v50 = vsel %vm445_vm14, %v3673_v13, -1e+30 }
 0xc57   : > { %v3710_v26 = vsel %vm1175_vm15, %v9691_v50, -inf }
 0xc58   : > { %3711 = vmax.xlane.f32.xlu1 %v3710_v26 }
 0xc5d   : > { %v3676_v59 = vpop.f32.mrf.mxu2 }
 0xc5e   : > { %v9697_v24 = vsel %vm445_vm14, %v3676_v59, -1e+30 }
 0xc5f   : > { %v3713_v34 = vsel %vm1175_vm15, %v9697_v24, -inf }
 0xc60   : > { %3714 = vmax.xlane.f32.xlu1 %v3713_v34 }
 0xc65   : > { %v3678_v28 = vpop.f32.mrf.mxu2 }
 0xc6d   : > { %v9701_v56 = vpop.f32.mrf.mxu2 }
 0xc75   : > { %v4150_v22 = vpop.f32.mrf.mxu2 }
 0xc7d   : > { %v4153_v54 = vpop.f32.mrf.mxu2 }
 0xc85   : > { %v4155_v37 = vpop.f32.mrf.mxu2 }
 0xc8d   : > { %v4158_v60 = vpop.f32.mrf.mxu2 }
 0xc93   : > { %v3691_v49 = vpop.xlane.xlu0 %3690 }
 0xc94   : > { %v3716_v58 = vsub.f32 %v3680_v16, %v3691_v49 }
 0xc95   : > { %v4160_v14 = vpop.f32.mrf.mxu2 }
 0xc96   : > { %v3725_v63 = vmul.f32 1.442695, %v3716_v58 }
 0xc98   : > { %7776 = vpow2.f32 %v3725_v63 }
 0xc9b   : > { %v3694_v10 = vpop.xlane.xlu1 %3693 }
 0xc9c   : > { %v3717_v11 = vsub.f32 %v3681_v47, %v3694_v10  ;;  %v4159_v10 = vadd.f32 %v7593_v57, %v4158_v60 }
 0xc9d   : > { %v4163_v4 = vpop.f32.mrf.mxu2 }
 0xc9e   : > { %v9703_v5 = vpop.eup %7776  ;;  %v3727_v25 = vmul.f32 1.442695, %v3717_v11  ;;  %v4164_v26 = vadd.f32 %v7593_v57, %v4163_v4  ;;  %v4154_v4 = vadd.f32 %v7593_v57, %v4153_v54 }
 0xc9f   : > { %v3743_v8 = vsel %vm1175_vm15, %v9703_v5, 0.0 }
 0xca0   : > { %7778 = vpow2.f32 %v3727_v25  ;;  %3744 = vadd.xlane.f32.xlu2 %v3743_v8  ;;  %v4156_v25 = vadd.f32 %v7593_v57, %v4155_v37 }
 0xca3   : > { %v3697_v20 = vpop.xlane.xlu2 %3696 }
 0xca4   : > { %v3718_v29 = vsub.f32 %v3682_v9, %v3697_v20 }
 0xca5   : > { %v4165_v32 = vpop.f32.mrf.mxu2 }
 0xca6   : > { %v9707_v6 = vpop.eup %7778  ;;  %v3729_v16 = vmul.f32 1.442695, %v3718_v29  ;;  %v4166_v17 = vadd.f32 %v7593_v57, %v4165_v32  ;;  %v4359_v29 = vpack.c.bf16 %v4156_v25, %v4154_v4 }
 0xca7   : > { %v3746_v53 = vsel %vm1175_vm15, %v9707_v6, 0.0 }
 0xca8   : > { %7780 = vpow2.f32 %v3729_v16  ;;  %3747 = vadd.xlane.f32.xlu0 %v3746_v53  ;;  %v4361_v28 = vpack.c.bf16 %v4166_v17, %v4164_v26  ;;  %v4149_v53 = vadd.f32 %v7593_v57, %v9701_v56 }
 0xcab   : > { %v3700_v47 = vpop.xlane.xlu0 %3699 }
 0xcac   : > { %v3719_v52 = vsub.f32 %v3683_v27, %v3700_v47  ;;  %v4161_v27 = vadd.f32 %v7593_v57, %v4160_v14  ;;  %v4151_v14 = vadd.f32 %v7593_v57, %v4150_v22 }
 0xcad   : > { %v4168_v31 = vpop.f32.mrf.mxu2 }
 0xcae   : > { %v9714_v36 = vpop.eup %7780  ;;  %v3731_v3 = vmul.f32 1.442695, %v3719_v52  ;;  %v4169_v9 = vadd.f32 %v7593_v57, %v4168_v31  ;;  %v4360_v8 = vpack.c.bf16 %v4161_v27, %v4159_v10  ;;  %v4358_v47 = vpack.c.bf16 %v4151_v14, %v4149_v53 }
 0xcaf   : > { %v3749_v0 = vsel %vm1175_vm15, %v9714_v36, 0.0 }
 0xcb0   : > { %7782 = vpow2.f32 %v3731_v3  ;;  %v4362_v18 = vpack.c.bf16 %v4169_v9, %v4169_v9  ;;  %3750 = vadd.xlane.f32.xlu2 %v3749_v0 }
 0xcb2   : > { %v4379_v13 = vsel %vm1300_vm12, %v4362_v18, 0 }
 0xcb3   : > { %v3703_v59 = vpop.xlane.xlu1 %3702  ;;  %4384 = vmatpush.bf16.msrb.mxu0 %v4379_v13 }
 0xcb4   : > { %v3720_v34 = vsub.f32 %v9673_v19, %v3703_v59 }
 0xcb5   : > { %v4170_v49 = vpop.f32.mrf.mxu2 }
 0xcb6   : > { %v9720_v58 = vpop.eup %7782  ;;  %v3733_v63 = vmul.f32 1.442695, %v3720_v34 }
 0xcb7   : > { %4385 = vmatpush.bf16.msrb.mxu0 %v4361_v28  ;;  %v3752_v11 = vsel %vm1175_vm15, %v9720_v58, 0.0 }
 0xcb8   : > { %7784 = vpow2.f32 %v3733_v63  ;;  %3753 = vadd.xlane.f32.xlu0 %v3752_v11 }
 0xcbb   : > { %v3706_v20 = vpop.xlane.xlu2 %3705  ;;  %4386 = vmatpush.bf16.msrb.mxu0 %v4360_v8 }
 0xcbc   : > { %v3721_v19 = vsub.f32 %v9679_v51, %v3706_v20 }
 0xcbe   : > { %v7785_v32 = vpop.eup %7784  ;;  %v3735_v16 = vmul.f32 1.442695, %v3721_v19 }
 0xcbf   : > { %4387 = vmatpush.bf16.msrb.mxu0 %v4359_v29  ;;  %v3755_v60 = vsel %vm1175_vm15, %v7785_v32, 0.0 }
 0xcc0   : > { %7786 = vpow2.f32 %v3735_v16  ;;  %3756 = vadd.xlane.f32.xlu1 %v3755_v60 }
 0xcc3   : > { %v3709_v52 = vpop.xlane.xlu0 %3708  ;;  %4388 = vmatpush.bf16.msrb.mxu0 %v4358_v47 }
 0xcc4   : > { %v3722_v54 = vsub.f32 %v9685_v1, %v3709_v52 }
 0xcc6   : > { %v7787_v37 = vpop.eup %7786  ;;  %v3737_v31 = vmul.f32 1.442695, %v3722_v54 }
 0xcc7   : > { %v3758_v51 = vsel %vm1175_vm15, %v7787_v37, 0.0 }
 0xcc8   : > { %7788 = vpow2.f32 %v3737_v31  ;;  %3759 = vadd.xlane.f32.xlu2 %v3758_v51 }
 0xccb   : > { %v3712_v22 = vpop.xlane.xlu1 %3711 }
 0xccc   : > { %v3723_v3 = vsub.f32 %v9691_v50, %v3712_v22 }
 0xcce   : > { %v7789_v56 = vpop.eup %7788  ;;  %v3739_v57 = vmul.f32 1.442695, %v3723_v3 }
 0xccf   : > { %v3761_v9 = vsel %vm1175_vm15, %v7789_v56, 0.0 }
 0xcd0   : > { %7790 = vpow2.f32 %v3739_v57  ;;  %3762 = vadd.xlane.f32.xlu0 %v3761_v9  ;;  %v3943_v9 = vadd.f32 %v9621_v15, %v9559_v46  ;;  %v7452_v46 = vld [vmem:[%s10713_s5 + $0x50] sm:$0xff] }
 0xcd3   : > { %v3715_v0 = vpop.xlane.xlu1 %3714 }
 0xcd4   : > { %v3724_v18 = vsub.f32 %v9697_v24, %v3715_v0 }
 0xcd6   : > { %v7791_v17 = vpop.eup %7790  ;;  %v3741_v1 = vmul.f32 1.442695, %v3724_v18  ;;  %v3950_v18 = vadd.f32 %v9621_v15, %v9580_v33  ;;  %v3953_v33 = vadd.f32 %v9621_v15, %v9585_v21 }
 0xcd7   : > { %v3764_v13 = vsel %vm1175_vm15, %v7791_v17, 0.0 }
 0xcd8   : > { %7792 = vpow2.f32 %v3741_v1  ;;  %3765 = vadd.xlane.f32.xlu1 %v3764_v13  ;;  %v3955_v13 = vadd.f32 %v9621_v15, %v9589_v40 }
 0xcde   : > { %v7793_v26 = vpop.eup %7792 }
 0xcdf   : > { %v3767_v59 = vsel %vm1175_vm15, %v7793_v26, 0.0 }
 0xce0   : > { %3768 = vadd.xlane.f32.xlu2 %v3767_v59  ;;  %v3960_v59 = vadd.f32 %v9621_v15, %v9610_v30 }
 0xd13   : > { %v3745_v50 = vpop.xlane.xlu2 %3744 }
 0xd14   : > { %7794 = vrcp.f32 %v3745_v50  ;;  %v3958_v50 = vadd.f32 %v9621_v15, %v9600_v62 }
 0xd1a   : > { %v7795_v27 = vpop.eup %7794 }
 0xd1b   : > { %v3748_v34 = vpop.xlane.xlu0 %3747  ;;  %v3779_v49 = vmul.f32 %v7795_v27, %v9703_v5 }
 0xd1c   : > { %7796 = vrcp.f32 %v3748_v34  ;;  %v4175_v34 = vpack.c.bf16 %v3960_v59, %v3958_v50 }
 0xd22   : > { %v7797_v28 = vpop.eup %7796 }
 0xd23   : > { %v3780_v24 = vmul.f32 %v7797_v28, %v9707_v6  ;;  %v3751_v10 = vpop.xlane.xlu2 %3750  ;;  %v4176_v28 = vpack.c.bf16 %v9630_v35, %v9630_v35 }
 0xd24   : > { %7798 = vrcp.f32 %v3751_v10 }
 0xd25   : > { %v3788_v63 = vpack.c.bf16 %v3780_v24, %v3779_v49 }
 0xd27   : > { %6685 = vmatmul.msk.bf16.vlgmr.msrb.gmra.mxu3 %vm1175_vm15, %v3788_v63 }
 0xd2a   : > { %v7799_v25 = vpop.eup %7798 }
 0xd2b   : > { %v3754_v11 = vpop.xlane.xlu0 %3753  ;;  %v3781_v4 = vmul.f32 %v7799_v25, %v9714_v36 }
 0xd2c   : > { %7800 = vrcp.f32 %v3754_v11 }
 0xd32   : > { %v7801_v8 = vpop.eup %7800 }
 0xd33   : > { %v3782_v20 = vmul.f32 %v7801_v8, %v9720_v58  ;;  %v3757_v14 = vpop.xlane.xlu1 %3756 }
 0xd34   : > { %7802 = vrcp.f32 %v3757_v14 }
 0xd35   : > { %v3789_v19 = vpack.c.bf16 %v3782_v20, %v3781_v4 }
 0xd37   : > { %6686 = vmatmul.msk.bf16.gmra.mxu3 %vm1175_vm15, %v3789_v19 }
 0xd3a   : > { %v7803_v6 = vpop.eup %7802 }
 0xd3b   : > { %v3760_v5 = vpop.xlane.xlu2 %3759  ;;  %v3783_v16 = vmul.f32 %v7803_v6, %v7785_v32 }
 0xd3c   : > { %7804 = vrcp.f32 %v3760_v5 }
 0xd42   : > { %v7805_v29 = vpop.eup %7804 }
 0xd43   : > { %v3784_v53 = vmul.f32 %v7805_v29, %v7787_v37  ;;  %v3763_v47 = vpop.xlane.xlu0 %3762  ;;  %v3945_v37 = vadd.f32 %v9621_v15, %v9566_v38  ;;  %v7451_v38 = vld [vmem:[%s10713_s5 + $0x48] sm:$0xff] }
 0xd44   : > { %7806 = vrcp.f32 %v3763_v47 }
 0xd45   : > { %v3790_v60 = vpack.c.bf16 %v3784_v53, %v3783_v16  ;;  %v4172_v0 = vpack.c.bf16 %v3945_v37, %v3943_v9 }
 0xd47   : > { %6687 = vmatmul.msk.bf16.gmra.mxu3 %vm1175_vm15, %v3790_v60 }
 0xd4a   : > { %v7807_v36 = vpop.eup %7806 }
 0xd4b   : > { %v3766_v52 = vpop.xlane.xlu1 %3765  ;;  %v3785_v54 = vmul.f32 %v7807_v36, %v7789_v56  ;;  %v7453_v56 = vld [vmem:[%s10713_s5 + $0x58] sm:$0xff] }
 0xd4c   : > { %7808 = vrcp.f32 %v3766_v52  ;;  %4543 = vmatpush.bf16.msra.mxu2 %v7453_v56 }
 0xd50   : > { %4544 = vmatpush.bf16.msra.mxu2 %v7452_v46 }
 0xd52   : > { %v7809_v58 = vpop.eup %7808 }
 0xd53   : > { %v3786_v31 = vmul.f32 %v7809_v58, %v7791_v17  ;;  %v3769_v51 = vpop.xlane.xlu2 %3768  ;;  %v3948_v17 = vadd.f32 %v9621_v15, %v9573_v55  ;;  %v7450_v55 = vld [vmem:[%s10713_s5 + $0x40] sm:$0xff] }
 0xd54   : > { %7810 = vrcp.f32 %v3769_v51  ;;  %4545 = vmatpush.bf16.msra.mxu2 %v7451_v38 }
 0xd55   : > { %v3791_v22 = vpack.c.bf16 %v3786_v31, %v3785_v54  ;;  %v4173_v1 = vpack.c.bf16 %v3950_v18, %v3948_v17 }
 0xd57   : > { %6688 = vmatmul.msk.bf16.gmra.mxu3 %vm1175_vm15, %v3791_v22 }
 0xd58   : > { %4546 = vmatpush.bf16.msra.mxu2 %v7450_v55 }
 0xd5a   : > { %v7811_v3 = vpop.eup %7810 }
 0xd5b   : > { %v3787_v57 = vmul.f32 %v7811_v3, %v7793_v26  ;;  %v4174_v26 = vpack.c.bf16 %v3955_v13, %v3953_v33 }
 0xd5d   : > { %v3792_v32 = vpack.c.bf16 %v3787_v57, %v3787_v57 }
 0xd67   : > { %6689 = vmatmul.msk.bf16.gmra.mxu3 %vm1175_vm15, %v3792_v32 }
 0xd77   : > { %6845 = vmatmul.msk.bf16.vlgmr.msra.gmra.mxu3 %vm1100_vm13, %v4172_v0 }
 0xd87   : > { %6846 = vmatmul.msk.bf16.gmra.mxu3 %vm1100_vm13, %v4173_v1 }
 0xd97   : > { %6847 = vmatmul.msk.bf16.gmra.mxu3 %vm1100_vm13, %v4174_v26 }
 0xda7   : > { %6848 = vmatmul.msk.bf16.gmra.mxu3 %vm1100_vm13, %v4175_v34 }
 0xdaa   : > { %v3825_v40 = vpop.f32.mrf.mxu3 }
 0xdb2   : > { %v3827_v27 = vpop.f32.mrf.mxu3 }
 0xdb3   : > { %v3849_v21 = vpack.c.bf16 %v3827_v27, %v3825_v40 }
 0xdb5   : > { %6900 = vmatmul.msk.bf16.vlgmr.msra.gmra.mxu2 %vm1100_vm13, %v3849_v21 }
 0xdb7   : > { %6849 = vmatmul.msk.bf16.gmra.mxu3 %vm1100_vm13, %v4176_v28 }
 0xdba   : > { %v3830_v49 = vpop.f32.mrf.mxu3 }
 0xdc2   : > { %v3832_v24 = vpop.f32.mrf.mxu3 }
 0xdc3   : > { %v3850_v63 = vpack.c.bf16 %v3832_v24, %v3830_v49 }
 0xdc5   : > { %6901 = vmatmul.msk.bf16.gmra.mxu2 %vm1100_vm13, %v3850_v63 }
 0xdca   : > { %v3835_v30 = vpop.f32.mrf.mxu3 }
 0xdd2   : > { %v3837_v62 = vpop.f32.mrf.mxu3 }
 0xdd3   : > { %v3851_v15 = vpack.c.bf16 %v3837_v62, %v3835_v30 }
 0xdd5   : > { %6902 = vmatmul.msk.bf16.gmra.mxu2 %vm1100_vm13, %v3851_v15 }
 0xdda   : > { %v3840_v10 = vpop.f32.mrf.mxu3 }
 0xde2   : > { %v3842_v11 = vpop.f32.mrf.mxu3 }
 0xde3   : > { %v3852_v25 = vpack.c.bf16 %v3842_v11, %v3840_v10 }
 0xde5   : > { %6903 = vmatmul.msk.bf16.gmra.mxu2 %vm1100_vm13, %v3852_v25 }
 0xdea   : > { %v3845_v35 = vpop.f32.mrf.mxu3 }
 0xdeb   : > { %v3853_v4 = vpack.c.bf16 %v3845_v35, %v3845_v35 }
 0xdf2   : > { %v3847_v8 = vpop.f32.mrf.mxu3 }
 0xdf5   : > { %6904 = vmatmul.msk.bf16.gmra.mxu2 %vm1100_vm13, %v3853_v4 }
 0xdfa   : > { %v4221_v20 = vpop.f32.mrf.mxu3 }
 0xdfb   : > { %v4245_v19 = vsel %vm445_vm14, %v4221_v20, -1e+30 }
 0xdfc   : > { %v4254_v14 = vsel %vm1175_vm15, %v4245_v19, -inf }
 0xdfd   : > { %4255 = vmax.xlane.f32.xlu0 %v4254_v14 }
 0xe02   : > { %v4223_v5 = vpop.f32.mrf.mxu3 }
 0xe03   : > { %v4246_v6 = vsel %vm445_vm14, %v4223_v5, -1e+30 }
 0xe04   : > { %v4257_v29 = vsel %vm1175_vm15, %v4246_v6, -inf }
 0xe05   : > { %4258 = vmax.xlane.f32.xlu1 %v4257_v29 }
 0xe0a   : > { %v4226_v16 = vpop.f32.mrf.mxu3 }
 0xe0b   : > { %v4247_v53 = vsel %vm445_vm14, %v4226_v16, -1e+30 }
 0xe0c   : > { %v4260_v60 = vsel %vm1175_vm15, %v4247_v53, -inf }
 0xe0d   : > { %4261 = vmax.xlane.f32.xlu1 %v4260_v60 }
 0xe12   : > { %v4228_v47 = vpop.f32.mrf.mxu3 }
 0xe13   : > { %v4248_v21 = vsel %vm445_vm14, %v4228_v47, -1e+30 }
 0xe14   : > { %v4263_v63 = vsel %vm1175_vm15, %v4248_v21, -inf }
 0xe1a   : > { %v4231_v52 = vpop.f32.mrf.mxu3 }
 0xe1b   : > { %v4249_v30 = vsel %vm445_vm14, %v4231_v52, -1e+30 }
 0xe1c   : > { %v4266_v10 = vsel %vm1175_vm15, %v4249_v30, -inf }
 0xe22   : > { %v4233_v36 = vpop.f32.mrf.mxu3 }
 0xe23   : > { %v9794_v58 = vsel %vm445_vm14, %v4233_v36, -1e+30 }
 0xe24   : > { %v4269_v54 = vsel %vm1175_vm15, %v9794_v58, -inf }
 0xe25   : > { %4270 = vmax.xlane.f32.xlu1 %v4269_v54 }
 0xe2a   : > { %v4236_v31 = vpop.f32.mrf.mxu3 }
 0xe2b   : > { %v4251_v62 = vsel %vm445_vm14, %v4236_v31, -1e+30 }
 0xe2c   : > { %v4272_v25 = vsel %vm1175_vm15, %v4251_v62, -inf }
 0xe32   : > { %v4238_v51 = vpop.f32.mrf.mxu3 }
 0xe33   : > { %v4252_v35 = vsel %vm445_vm14, %v4238_v51, -1e+30 }
 0xe34   : > { %v4275_v8 = vsel %vm1175_vm15, %v4252_v35, -inf }
 0xe38   : > { %v9798_v22 = vpop.f32.mrf.mxu2 }
 0xe3a   : > { %v4241_v3 = vpop.f32.mrf.mxu3 }
 0xe3b   : > { %v4253_v4 = vsel %vm445_vm14, %v4241_v3, -1e+30 }
 0xe3c   : > { %v4278_v20 = vsel %vm1175_vm15, %v4253_v4, -inf }
 0xe40   : > { %v9800_v57 = vpop.f32.mrf.mxu2 }
 0xe42   : > { %v4243_v32 = vpop.f32.mrf.mxu3 }
 0xe48   : > { %v9802_v37 = vpop.f32.mrf.mxu2 }
 0xe50   : > { %v9804_v9 = vpop.f32.mrf.mxu2 }
 0xe58   : > { %v9806_v0 = vpop.f32.mrf.mxu2 }
 0xe60   : > { %v9808_v56 = vpop.f32.mrf.mxu2 }
 0xe68   : > { %v9810_v18 = vpop.f32.mrf.mxu2 }
 0xe70   : > { %v4256_v17 = vpop.xlane.xlu0 %4255  ;;  %v9812_v1 = vpop.f32.mrf.mxu2 }
 0xe71   : > { %v4281_v46 = vsub.f32 %v4245_v19, %v4256_v17 }
 0xe73   : > { %v4290_v38 = vmul.f32 1.442695, %v4281_v46 }
 0xe75   : > { %7812 = vpow2.f32 %v4290_v38 }
 0xe78   : > { %v4259_v13 = vpop.xlane.xlu1 %4258  ;;  %v9814_v33 = vpop.f32.mrf.mxu2 }
 0xe79   : > { %v4282_v55 = vsub.f32 %v4246_v6, %v4259_v13 }
 0xe7b   : > { %v7813_v26 = vpop.eup %7812  ;;  %v4292_v59 = vmul.f32 1.442695, %v4282_v55 }
 0xe7c   : > { %v4308_v50 = vsel %vm1175_vm15, %v7813_v26, 0.0 }
 0xe7d   : > { %7814 = vpow2.f32 %v4292_v59  ;;  %4309 = vadd.xlane.f32.xlu2 %v4308_v50 }
 0xe80   : > { %v4262_v34 = vpop.xlane.xlu1 %4261  ;;  %v4570_v40 = vpop.f32.mrf.mxu2 }
 0xe81   : > { %v4283_v27 = vsub.f32 %v4247_v53, %v4262_v34 }
 0xe83   : > { %v7815_v28 = vpop.eup %7814  ;;  %v4294_v49 = vmul.f32 1.442695, %v4283_v27 }
 0xe84   : > { %v4311_v24 = vsel %vm1175_vm15, %v7815_v28, 0.0 }
 0xe85   : > { %7816 = vpow2.f32 %v4294_v49  ;;  %4312 = vadd.xlane.f32.xlu0 %v4311_v24  ;;  %4264 = vmax.xlane.f32.xlu2 %v4263_v63 }
 0xe8b   : > { %v9825_v15 = vpop.eup %7816 }
 0xe8c   : > { %v4314_v11 = vsel %vm1175_vm15, %v9825_v15, 0.0 }
 0xe8d   : > { %4267 = vmax.xlane.f32.xlu0 %v4266_v10  ;;  %4315 = vadd.xlane.f32.xlu1 %v4314_v11 }
 0xe8e   : > { %4273 = vmax.xlane.f32.xlu2 %v4272_v25  ;;  %v7480_v25 = vld [vmem:[%s10713_s5 + $0x70] sm:$0xff] }
 0xe8f   : > { %4472 = vmatpush.bf16.msrb.mxu1 %v7480_v25 }
 0xe95   : > { %4276 = vmax.xlane.f32.xlu0 %v4275_v8  ;;  %v7478_v8 = vld [vmem:[%s10713_s5 + $0x60] sm:$0xff] }
 0xe98   : > { %v4271_v14 = vpop.xlane.xlu1 %4270 }
 0xe99   : > { %v4286_v16 = vsub.f32 %v9794_v58, %v4271_v14 }
 0xe9b   : > { %v4300_v52 = vmul.f32 1.442695, %v4286_v16 }
 0xe9d   : > { %4279 = vmax.xlane.f32.xlu0 %v4278_v20 }
 0xef0   : > { %v4310_v19 = vpop.xlane.xlu2 %4309 }
 0xef1   : > { %7818 = vrcp.f32 %v4310_v19 }
 0xef7   : > { %v7819_v60 = vpop.eup %7818 }
 0xef8   : > { %v4313_v5 = vpop.xlane.xlu0 %4312  ;;  %v4265_v6 = vpop.xlane.xlu2 %4264  ;;  %v4344_v36 = vmul.f32 %v7819_v60, %v7813_v26 }
 0xef9   : > { %7820 = vrcp.f32 %v4313_v5  ;;  %v4284_v29 = vsub.f32 %v4248_v21, %v4265_v6 }
 0xefb   : > { %v4296_v53 = vmul.f32 1.442695, %v4284_v29 }
 0xefd   : > { %7822 = vpow2.f32 %v4296_v53 }
 0xefe   : > { %7824 = vpow2.f32 %v4300_v52 }
 0xeff   : > { %v7821_v47 = vpop.eup %7820 }
 0xf00   : > { %v4345_v54 = vmul.f32 %v7821_v47, %v7815_v28  ;;  %v4268_v31 = vpop.xlane.xlu0 %4267 }
 0xf01   : > { %v4285_v51 = vsub.f32 %v4249_v30, %v4268_v31  ;;  %v4274_v3 = vpop.xlane.xlu2 %4273 }
 0xf02   : > { %v4353_v32 = vpack.c.bf16 %v4345_v54, %v4344_v36  ;;  %v4287_v17 = vsub.f32 %v4251_v62, %v4274_v3 }
 0xf03   : > { %v7823_v46 = vpop.eup %7822  ;;  %v4298_v58 = vmul.f32 1.442695, %v4285_v51 }
 0xf04   : > { %v4302_v38 = vmul.f32 1.442695, %v4287_v17  ;;  %6850 = vmatmul.msk.bf16.vlgmr.msrb.gmra.mxu0 %vm1175_vm15, %v4353_v32  ;;  %v4317_v13 = vsel %vm1175_vm15, %v7823_v46, 0.0  ;;  %v7825_v59 = vpop.eup %7824 }
 0xf05   : > { %7826 = vpow2.f32 %v4298_v58  ;;  %4318 = vadd.xlane.f32.xlu2 %v4317_v13  ;;  %v4323_v21 = vsel %vm1175_vm15, %v7825_v59, 0.0 }
 0xf06   : > { %7828 = vpow2.f32 %v4302_v38 }
 0xf08   : > { %v4277_v55 = vpop.xlane.xlu0 %4276 }
 0xf09   : > { %v4288_v26 = vsub.f32 %v4252_v35, %v4277_v55  ;;  %v7479_v35 = vld [vmem:[%s10713_s5 + $0x68] sm:$0xff] }
 0xf0a   : > { %4473 = vmatpush.bf16.msrb.mxu1 %v7479_v35 }
 0xf0b   : > { %v7827_v50 = vpop.eup %7826  ;;  %v4304_v34 = vmul.f32 1.442695, %v4288_v26 }
 0xf0c   : > { %v7829_v40 = vpop.eup %7828  ;;  %v4320_v27 = vsel %vm1175_vm15, %v7827_v50, 0.0 }
 0xf0d   : > { %7830 = vpow2.f32 %v4304_v34  ;;  %4321 = vadd.xlane.f32.xlu1 %v4320_v27  ;;  %4324 = vadd.xlane.f32.xlu2 %v4323_v21  ;;  %v4326_v28 = vsel %vm1175_vm15, %v7829_v40, 0.0 }
 0xf0e   : > { %4327 = vadd.xlane.f32.xlu0 %v4326_v28  ;;  %4474 = vmatpush.bf16.msrb.mxu1 %v7478_v8 }
 0xf10   : > { %v4280_v49 = vpop.xlane.xlu0 %4279 }
 0xf11   : > { %v4289_v24 = vsub.f32 %v4253_v4, %v4280_v49  ;;  %v4316_v4 = vpop.xlane.xlu1 %4315 }
 0xf13   : > { %v7831_v63 = vpop.eup %7830  ;;  %v4306_v30 = vmul.f32 1.442695, %v4289_v24 }
 0xf14   : > { %v4329_v62 = vsel %vm1175_vm15, %v7831_v63, 0.0 }
 0xf15   : > { %7832 = vpow2.f32 %v4306_v30  ;;  %4330 = vadd.xlane.f32.xlu1 %v4329_v62 }
 0xf16   : > { %7834 = vrcp.f32 %v4316_v4 }
 0xf1b   : > { %v7833_v10 = vpop.eup %7832 }
 0xf1c   : > { %v4332_v11 = vsel %vm1175_vm15, %v7833_v10, 0.0  ;;  %v7835_v19 = vpop.eup %7834 }
 0xf1d   : > { %4333 = vadd.xlane.f32.xlu2 %v4332_v11  ;;  %v4346_v5 = vmul.f32 %v7835_v19, %v9825_v15 }
 0xf78   : > { %v4319_v20 = vpop.xlane.xlu2 %4318 }
 0xf79   : > { %7836 = vrcp.f32 %v4319_v20 }
 0xf7f   : > { %v7837_v14 = vpop.eup %7836 }
 0xf80   : > { %v4347_v6 = vmul.f32 %v7837_v14, %v7823_v46  ;;  %v4322_v29 = vpop.xlane.xlu1 %4321  ;;  %v4325_v53 = vpop.xlane.xlu2 %4324 }
 0xf81   : > { %v4390_v16 = vpop.f32.mrf.mxu0  ;;  %7838 = vrcp.f32 %v4322_v29  ;;  %v4328_v15 = vpop.xlane.xlu0 %4327 }
 0xf82   : > { %v4354_v60 = vpack.c.bf16 %v4347_v6, %v4346_v5  ;;  %7840 = vrcp.f32 %v4325_v53 }
 0xf84   : > { %6851 = vmatmul.msk.bf16.gmra.mxu0 %vm1175_vm15, %v4354_v60 }
 0xf87   : > { %v7839_v47 = vpop.eup %7838 }
 0xf88   : > { %v7841_v36 = vpop.eup %7840  ;;  %v4348_v54 = vmul.f32 %v7839_v47, %v7827_v50  ;;  %v4331_v51 = vpop.xlane.xlu1 %4330 }
 0xf89   : > { %v4392_v44 = vpop.f32.mrf.mxu0  ;;  %v4349_v31 = vmul.f32 %v7841_v36, %v7825_v59  ;;  %7842 = vrcp.f32 %v4331_v51 }
 0xf8a   : > { %v4414_v52 = vpack.c.bf16 %v4392_v44, %v4390_v16  ;;  %7844 = vrcp.f32 %v4328_v15 }
 0xf8b   : > { %v4355_v3 = vpack.c.bf16 %v4349_v31, %v4348_v54 }
 0xf8c   : > { %6879 = vmatmul.msk.bf16.vlgmr.msrb.gmra.mxu1 %vm1100_vm13, %v4414_v52 }
 0xf8f   : > { %v7843_v32 = vpop.eup %7842 }
 0xf90   : > { %v7845_v17 = vpop.eup %7844  ;;  %v4351_v46 = vmul.f32 %v7843_v32, %v7831_v63  ;;  %v4334_v38 = vpop.xlane.xlu2 %4333 }
 0xf91   : > { %v4350_v58 = vmul.f32 %v7845_v17, %v7829_v40  ;;  %7846 = vrcp.f32 %v4334_v38  ;;  %v9867_v40 = vld [vmem:[%s10714_s6 + $0x1] ss:$0 sm:$0xff] }
 0xf93   : > { %v4356_v13 = vpack.c.bf16 %v4351_v46, %v4350_v58 }
 0xf94   : > { %6852 = vmatmul.msk.bf16.gmra.mxu0 %vm1175_vm15, %v4355_v3 }
 0xf97   : > { %v7847_v55 = vpop.eup %7846 }
 0xf98   : > { %v4352_v26 = vmul.f32 %v7847_v55, %v7833_v10 }
 0xf9a   : > { %v4357_v50 = vpack.c.bf16 %v4352_v26, %v4352_v26 }
 0xfa4   : > { %6853 = vmatmul.msk.bf16.gmra.mxu0 %vm1175_vm15, %v4356_v13 }
 0xfb4   : > { %6854 = vmatmul.msk.bf16.gmra.mxu0 %vm1175_vm15, %v4357_v50 }
0x1001   : > { %v4395_v59 = vpop.f32.mrf.mxu0 }
0x1009   : > { %v4397_v34 = vpop.f32.mrf.mxu0  ;;  %v4476_v27 = vpop.f32.mrf.mxu1 }
0x100a   : > { %v4415_v21 = vpack.c.bf16 %v4397_v34, %v4395_v59  ;;  %v4549_v28 = vadd.f32 %v9798_v22, %v4476_v27 }
0x100c   : > { %v4572_v49 = vadd.f32 %v4549_v28, %v9257_v23  ;;  %6880 = vmatmul.msk.bf16.gmra.mxu1 %vm1100_vm13, %v4415_v21  ;;  %v7033_v21 = vld [vmem:[%s10715_s7 + $0x170] sm:$0xf]  ;;  %v7505_v28 = vld [vmem:[%s10715_s7 + $0x178] sm:$0xf0] }
0x100e   : > { %v9872_v24 = vadd.f32 %v9867_v40, %v4572_v49  ;;  %v7034_v49 = vor.u32 %v7505_v28, %v7033_v21 }
0x1010   : > { %4595 = vadd.xlane.f32.xlu0 %v9872_v24  ;;  %5025 = vmatpush.bf16.msra.mxu1 %v7034_v49  ;;  %v6961_v49 = vld [vmem:[%s10715_s7 + $0xe0] sm:$0xf] }
0x1011   : > { %v4400_v63 = vpop.f32.mrf.mxu0  ;;  %v4478_v30 = vpop.f32.mrf.mxu1 }
0x1012   : > { %v4551_v62 = vadd.f32 %v9800_v57, %v4478_v30  ;;  %v7501_v30 = vld [vmem:[%s10715_s7 + $0x158] sm:$0xf0] }
0x1014   : > { %v4573_v22 = vadd.f32 %v4551_v62, %v9262_v7  ;;  %v7500_v62 = vld [vmem:[%s10715_s7 + $0x154] sm:$0xf] }
0x1016   : > { %v4587_v10 = vadd.f32 %v9867_v40, %v4573_v22 }
0x1018   : > { %4597 = vadd.xlane.f32.xlu1 %v4587_v10 }
0x1019   : > { %v4402_v11 = vpop.f32.mrf.mxu0 }
0x101a   : > { %v4416_v25 = vpack.c.bf16 %v4402_v11, %v4400_v63  ;;  %v7013_v63 = vld [vmem:[%s10715_s7 + $0x150] sm:$0xf]  ;;  %v7021_v11 = vld [vmem:[%s10715_s7 + $0x158] sm:$0xf] }
0x101b   : > { %v7014_v22 = vor.u32 %v7501_v30, %v7013_v63  ;;  %v7487_v63 = vld [vmem:[%s10715_s7 + $0xe8] sm:$0xf0] }
0x101c   : > { %6881 = vmatmul.msk.bf16.gmra.mxu1 %vm1100_vm13, %v4416_v25  ;;  %v7502_v25 = vld [vmem:[%s10715_s7 + $0x160] sm:$0xf0] }
0x1021   : > { %v4405_v23 = vpop.f32.mrf.mxu0 }
0x1029   : > { %v4407_v35 = vpop.f32.mrf.mxu0 }
0x102a   : > { %v4417_v8 = vpack.c.bf16 %v4407_v35, %v4405_v23  ;;  %v7022_v35 = vor.u32 %v7502_v25, %v7021_v11  ;;  %v7483_v11 = vld [vmem:[%s10715_s7 + $0xc8] sm:$0xf0] }
0x102c   : > { %6882 = vmatmul.msk.bf16.gmra.mxu1 %vm1100_vm13, %v4417_v8  ;;  %v7001_v8 = vld [vmem:[%s10715_s7 + $0x138] sm:$0xf] }
0x102d   : > { %5026 = vmatpush.bf16.msra.mxu1 %v7022_v35  ;;  %v6943_v35 = vld [vmem:[%s10715_s7 + $0xcc] sm:$0xf0] }
0x1031   : > { %v4410_v4 = vpop.f32.mrf.mxu0 }
0x1032   : > { %v4418_v19 = vpack.c.bf16 %v4410_v4, %v4410_v4  ;;  %v7498_v4 = vld [vmem:[%s10715_s7 + $0x140] sm:$0xf0] }
0x1039   : > { %v4412_v20 = vpop.f32.mrf.mxu0 }
0x103a   : > { %v7497_v20 = vld [vmem:[%s10715_s7 + $0x13c] sm:$0xf] }
0x103c   : > { %6883 = vmatmul.msk.bf16.gmra.mxu1 %vm1100_vm13, %v4418_v19  ;;  %v7002_v19 = vor.u32 %v7498_v4, %v7001_v8  ;;  %v6949_v8 = vld [vmem:[%s10715_s7 + $0xc8] sm:$0xf] }
0x1083   : > { %v4596_v57 = vpop.xlane.xlu0 %4595 }
0x1084   : > { %v4613_v14 = vmul.f32 0.010416667, %v4596_v57  ;;  %v7003_v57 = vld [vmem:[%s10715_s7 + $0x144] sm:$0xf0] }
0x1086   : > { %v4622_v7 = vsub.f32 %v9872_v24, %v4613_v14  ;;  %v7009_v14 = vld [vmem:[%s10715_s7 + $0x140] sm:$0xf] }
0x1088   : > { %v9883_v5 = vmul.f32 %v8097_v48, %v4622_v7  ;;  %v7499_v7 = vld [vmem:[%s10715_s7 + $0x148] sm:$0xf0] }
0x1089   : > { %v4481_v6 = vpop.f32.mrf.mxu1 }
0x108a   : > { %v4554_v29 = vadd.f32 %v9802_v37, %v4481_v6  ;;  %v4640_v16 = vmul.f32 %v9883_v5, %v9883_v5  ;;  %v7006_v6 = vor.u32 %v7497_v20, %v7003_v57 }
0x108b   : > { %v4598_v53 = vpop.xlane.xlu1 %4597 }
0x108c   : > { %v4574_v60 = vadd.f32 %v4554_v29, %v9267_v61  ;;  %v4614_v44 = vmul.f32 0.010416667, %v4598_v53  ;;  %4649 = vadd.xlane.f32.xlu2 %v4640_v16  ;;  %v7010_v29 = vor.u32 %v7499_v7, %v7009_v14  ;;  %v6989_v16 = vld [vmem:[%s10715_s7 + $0x120] sm:$0xf]  ;;  %v7495_v53 = vld [vmem:[%s10715_s7 + $0x128] sm:$0xf0] }
0x108e   : > { %v4623_v47 = vsub.f32 %v4587_v10, %v4614_v44  ;;  %v9890_v52 = vadd.f32 %v9867_v40, %v4574_v60  ;;  %v7015_v10 = vld [vmem:[%s10715_s7 + $0x15c] sm:$0xf0]  ;;  %5027 = vmatpush.bf16.msra.mxu1 %v7010_v29  ;;  %v7494_v60 = vld [vmem:[%s10715_s7 + $0x124] sm:$0xf]  ;;  %v6990_v44 = vor.u32 %v7495_v53, %v6989_v16 }
0x108f   : > { %v7018_v23 = vor.u32 %v7500_v62, %v7015_v10  ;;  %v6941_v10 = vld [vmem:[%s10715_s7 + $0xc0] sm:$0xf] }
0x1090   : > { %4599 = vadd.xlane.f32.xlu1 %v9890_v52  ;;  %v9894_v36 = vmul.f32 %v8097_v48, %v4623_v47  ;;  %v6991_v47 = vld [vmem:[%s10715_s7 + $0x12c] sm:$0xf0]  ;;  %v6942_v25 = vor.u32 %v7483_v11, %v6941_v10 }
0x1091   : > { %v4483_v54 = vpop.f32.mrf.mxu1 }
0x1092   : > { %v4556_v37 = vadd.f32 %v9804_v9, %v4483_v54  ;;  %v4641_v31 = vmul.f32 %v9894_v36, %v9894_v36  ;;  %v6997_v54 = vld [vmem:[%s10715_s7 + $0x128] sm:$0xf] }
0x1094   : > { %v4575_v51 = vadd.f32 %v4556_v37, %v9272_v42  ;;  %4651 = vadd.xlane.f32.xlu0 %v4641_v31  ;;  %v7496_v37 = vld [vmem:[%s10715_s7 + $0x130] sm:$0xf0]  ;;  %v6994_v31 = vor.u32 %v7494_v60, %v6991_v47 }
0x1096   : > { %v9901_v61 = vadd.f32 %v9867_v40, %v4575_v51  ;;  %v6998_v51 = vor.u32 %v7496_v37, %v6997_v54 }
0x1098   : > { %4601 = vadd.xlane.f32.xlu2 %v9901_v61  ;;  %5028 = vmatpush.bf16.msra.mxu1 %v6998_v51 }
0x1099   : > { %v4486_v3 = vpop.f32.mrf.mxu1 }
0x109a   : > { %v4559_v15 = vadd.f32 %v9806_v0, %v4486_v3  ;;  %v6977_v3 = vld [vmem:[%s10715_s7 + $0x108] sm:$0xf] }
0x109c   : > { %v4576_v32 = vadd.f32 %v4559_v15, %v9277_v39  ;;  %v7492_v15 = vld [vmem:[%s10715_s7 + $0x110] sm:$0xf0] }
0x109e   : > { %v9907_v17 = vadd.f32 %v9867_v40, %v4576_v32  ;;  %v7491_v32 = vld [vmem:[%s10715_s7 + $0x10c] sm:$0xf] }
0x10a0   : > { %4603 = vadd.xlane.f32.xlu0 %v9907_v17 }
0x10a1   : > { %v4488_v9 = vpop.f32.mrf.mxu1 }
0x10a2   : > { %v4561_v46 = vadd.f32 %v9808_v56, %v4488_v9  ;;  %v6978_v9 = vor.u32 %v7492_v15, %v6977_v3 }
0x10a4   : > { %v4577_v42 = vadd.f32 %v4561_v46, %v9282_v45  ;;  %v6979_v46 = vld [vmem:[%s10715_s7 + $0x114] sm:$0xf0] }
0x10a6   : > { %v9913_v58 = vadd.f32 %v9867_v40, %v4577_v42  ;;  %v6985_v42 = vld [vmem:[%s10715_s7 + $0x110] sm:$0xf] }
0x10a8   : > { %4605 = vadd.xlane.f32.xlu1 %v9913_v58 }
0x10a9   : > { %v4491_v38 = vpop.f32.mrf.mxu1 }
0x10aa   : > { %v4564_v0 = vadd.f32 %v9810_v18, %v4491_v38  ;;  %v7493_v38 = vld [vmem:[%s10715_s7 + $0x118] sm:$0xf0] }
0x10ac   : > { %v4578_v39 = vadd.f32 %v4564_v0, %v9287_v12  ;;  %v6982_v0 = vor.u32 %v7491_v32, %v6979_v46 }
0x10ae   : > { %v9919_v13 = vadd.f32 %v9867_v40, %v4578_v39  ;;  %v6986_v39 = vor.u32 %v7493_v38, %v6985_v42 }
0x10b0   : > { %4607 = vadd.xlane.f32.xlu2 %v9919_v13  ;;  %5029 = vmatpush.bf16.msra.mxu1 %v6986_v39 }
0x10b1   : > { %v4493_v55 = vpop.f32.mrf.mxu1 }
0x10b2   : > { %v4566_v56 = vadd.f32 %v9812_v1, %v4493_v55  ;;  %v7504_v1 = vld [vmem:[%s10715_s7 + $0x170] sm:$0xf0]  ;;  %v6965_v55 = vld [vmem:[%s10715_s7 + $0xf0] sm:$0xf] }
0x10b4   : > { %v4579_v45 = vadd.f32 %v4566_v56, %v9292_v41  ;;  %v7025_v41 = vld [vmem:[%s10715_s7 + $0x168] sm:$0xf]  ;;  %v7489_v56 = vld [vmem:[%s10715_s7 + $0xf8] sm:$0xf0] }
0x10b5   : > { %v7026_v27 = vor.u32 %v7504_v1, %v7025_v41 }
0x10b6   : > { %v9925_v26 = vadd.f32 %v9867_v40, %v4579_v45  ;;  %v7488_v45 = vld [vmem:[%s10715_s7 + $0xf4] sm:$0xf] }
0x10b7   : > { %4959 = vmatpush.bf16.msrb.mxu3 %v7026_v27  ;;  %v7486_v27 = vld [vmem:[%s10715_s7 + $0xe0] sm:$0xf0] }
0x10b8   : > { %4609 = vadd.xlane.f32.xlu0 %v9925_v26 }
0x10b9   : > { %v4496_v50 = vpop.f32.mrf.mxu1 }
0x10ba   : > { %v4569_v18 = vadd.f32 %v9814_v33, %v4496_v50  ;;  %v7503_v33 = vld [vmem:[%s10715_s7 + $0x16c] sm:$0xf]  ;;  %v6966_v50 = vor.u32 %v7489_v56, %v6965_v55 }
0x10bb   : > { %4960 = vmatpush.bf16.msrb.mxu3 %v7014_v22  ;;  %v6962_v22 = vor.u32 %v7487_v63, %v6961_v49 }
0x10bc   : > { %v4580_v12 = vadd.f32 %v4569_v18, %v9303_v2  ;;  %v7027_v2 = vld [vmem:[%s10715_s7 + $0x174] sm:$0xf0]  ;;  %v6967_v18 = vld [vmem:[%s10715_s7 + $0xfc] sm:$0xf0] }
0x10bd   : > { %v6970_v41 = vor.u32 %v7488_v45, %v6967_v18 }
0x10be   : > { %v9931_v59 = vadd.f32 %v9867_v40, %v4580_v12  ;;  %v7030_v40 = vor.u32 %v7503_v33, %v7027_v2  ;;  %v6973_v12 = vld [vmem:[%s10715_s7 + $0xf8] sm:$0xf]  ;;  %v7485_v2 = vld [vmem:[%s10715_s7 + $0xdc] sm:$0xf] }
0x10bf   : > { %4961 = vmatpush.bf16.msrb.mxu3 %v7002_v19  ;;  %v6953_v33 = vld [vmem:[%s10715_s7 + $0xd8] sm:$0xf]  ;;  %v7484_v19 = vld [vmem:[%s10715_s7 + $0xd0] sm:$0xf0] }
0x10c0   : > { %4611 = vadd.xlane.f32.xlu1 %v9931_v59  ;;  %4992 = vmatpush.bf16.msra.mxu0 %v7030_v40  ;;  %v6954_v28 = vor.u32 %v7486_v27, %v6953_v33  ;;  %v6955_v40 = vld [vmem:[%s10715_s7 + $0xe4] sm:$0xf0]  ;;  %v6950_v14 = vor.u32 %v7484_v19, %v6949_v8 }
0x10c1   : > { %v4498_v34 = vpop.f32.mrf.mxu1  ;;  %v6958_v62 = vor.u32 %v7485_v2, %v6955_v40 }
0x10c2   : > { %v7490_v34 = vld [vmem:[%s10715_s7 + $0x100] sm:$0xf0] }
0x10c3   : > { %4962 = vmatpush.bf16.msrb.mxu3 %v6990_v44  ;;  %v6974_v1 = vor.u32 %v7490_v34, %v6973_v12 }
0x10c4   : > { %4993 = vmatpush.bf16.msra.mxu0 %v7018_v23  ;;  %v7482_v23 = vld [vmem:[%s10715_s7 + $0xc4] sm:$0xf] }
0x10c5   : > { %5030 = vmatpush.bf16.msra.mxu1 %v6974_v1  ;;  %v6946_v20 = vor.u32 %v7482_v23, %v6943_v35 }
0x10c7   : > { %4963 = vmatpush.bf16.msrb.mxu3 %v6978_v9 }
0x10c8   : > { %4994 = vmatpush.bf16.msra.mxu0 %v7006_v6 }
0x10c9   : > { %5031 = vmatpush.bf16.msra.mxu1 %v6962_v22 }
0x10cb   : > { %4964 = vmatpush.bf16.msrb.mxu3 %v6966_v50 }
0x10cc   : > { %4995 = vmatpush.bf16.msra.mxu0 %v6994_v31 }
0x10cd   : > { %5032 = vmatpush.bf16.msra.mxu1 %v6950_v14 }
0x10cf   : > { %4965 = vmatpush.bf16.msrb.mxu3 %v6954_v28 }
0x10d0   : > { %4996 = vmatpush.bf16.msra.mxu0 %v6982_v0 }
0x10d3   : > { %4966 = vmatpush.bf16.msrb.mxu3 %v6942_v25 }
0x10d4   : > { %4997 = vmatpush.bf16.msra.mxu0 %v6970_v41 }
0x10d8   : > { %4998 = vmatpush.bf16.msra.mxu0 %v6958_v62 }
0x10dc   : > { %4999 = vmatpush.bf16.msra.mxu0 %v6946_v20 }
0x10ff   : > { %v4650_v21 = vpop.xlane.xlu2 %4649 }
0x1100   : > { %v4667_v30 = vmul.f32 0.010416667, %v4650_v21 }
0x1102   : > { %v4676_v4 = vadd.f32 1e-06, %v4667_v30 }
0x1103   : > { %v4600_v57 = vpop.xlane.xlu1 %4599 }
0x1104   : > { %7848 = vrsqrt.f32 %v4676_v4  ;;  %v4615_v7 = vmul.f32 0.010416667, %v4600_v57  ;;  %vm4691_vm13 = vweird.f32 %v4676_v4 }
0x1106   : > { %v4624_v6 = vsub.f32 %v9890_v52, %v4615_v7 }
0x1107   : > { %v4652_v29 = vpop.xlane.xlu0 %4651 }
0x1108   : > { %v4668_v16 = vmul.f32 0.010416667, %v4652_v29  ;;  %v10080_v53 = vmul.f32 %v8097_v48, %v4624_v6 }
0x110a   : > { %v7849_v60 = vpop.eup %7848  ;;  %v4677_v44 = vadd.f32 1e-06, %v4668_v16  ;;  %v4642_v47 = vmul.f32 %v10080_v53, %v10080_v53 }
0x110b   : > { %v4686_v54 = vmul.f32 %v7849_v60, %v4676_v4  ;;  %v4602_v37 = vpop.xlane.xlu2 %4601  ;;  %vm4692_vm12 = vweird.f32 %v7849_v60 }
0x110c   : > { %7850 = vrsqrt.f32 %v4677_v44  ;;  %v4616_v31 = vmul.f32 0.010416667, %v4602_v37  ;;  %4653 = vadd.xlane.f32.xlu2 %v4642_v47  ;;  %vm4693_vm15 = vmor %vm4691_vm13, %vm4692_vm12  ;;  %vm4701_vm6 = vweird.f32 %v4677_v44  ;;  %v7512_v37 = vld [vmem:[%s10717_s9 + $0xf0] sm:$0xff] }
0x110d   : > { %v4687_v51 = vmul.f32 %v7849_v60, %v4686_v54 }
0x110e   : > { %v4625_v52 = vsub.f32 %v9901_v61, %v4616_v31 }
0x110f   : > { %v4688_v3 = vmul.f32 0.5, %v4687_v51 }
0x1110   : > { %v10086_v15 = vmul.f32 %v8097_v48, %v4625_v52 }
0x1111   : > { %v4689_v46 = vsub.f32 1.5, %v4688_v3  ;;  %v7511_v3 = vld [vmem:[%s10717_s9 + $0xe8] sm:$0xff] }
0x1112   : > { %v7851_v32 = vpop.eup %7850  ;;  %v4643_v9 = vmul.f32 %v10086_v15, %v10086_v15 }
0x1113   : > { %v4696_v42 = vmul.f32 %v7851_v32, %v4677_v44  ;;  %v4604_v38 = vpop.xlane.xlu0 %4603  ;;  %v4690_v56 = vmul.f32 %v7849_v60, %v4689_v46  ;;  %vm4702_vm14 = vweird.f32 %v7851_v32 }
0x1114   : > { %v4617_v0 = vmul.f32 0.010416667, %v4604_v38  ;;  %4655 = vadd.xlane.f32.xlu0 %v4643_v9  ;;  %vm4703_vm7 = vmor %vm4701_vm6, %vm4702_vm14 }
0x1115   : > { %v4697_v39 = vmul.f32 %v7851_v32, %v4696_v42  ;;  %v4694_v12 = vsel %vm4693_vm15, %v7849_v60, %v4690_v56 }
0x1116   : > { %v4626_v55 = vsub.f32 %v9907_v17, %v4617_v0  ;;  %v4775_v33 = vmul.f32 %v4694_v12, %v9883_v5 }
0x1117   : > { %v4698_v45 = vmul.f32 0.5, %v4697_v39 }
0x1118   : > { %v10092_v61 = vmul.f32 %v8097_v48, %v4626_v55  ;;  %v7510_v55 = vld [vmem:[%s10717_s9 + $0xe0] sm:$0xff] }
0x1119   : > { %v4699_v50 = vsub.f32 1.5, %v4698_v45 }
0x111a   : > { %v4644_v18 = vmul.f32 %v10092_v61, %v10092_v61 }
0x111b   : > { %v4700_v34 = vmul.f32 %v7851_v32, %v4699_v50  ;;  %v4606_v41 = vpop.xlane.xlu1 %4605 }
0x111c   : > { %v4618_v1 = vmul.f32 0.010416667, %v4606_v41  ;;  %4657 = vadd.xlane.f32.xlu1 %v4644_v18 }
0x111d   : > { %v4704_v17 = vsel %vm4703_vm7, %v7851_v32, %v4700_v34 }
0x111e   : > { %v4776_v27 = vmul.f32 %v4704_v17, %v9894_v36  ;;  %v4627_v2 = vsub.f32 %v9913_v58, %v4618_v1  ;;  %v7509_v1 = vld [vmem:[%s10717_s9 + $0xd8] sm:$0xff] }
0x1120   : > { %v4784_v21 = vpack.c.bf16 %v4776_v27, %v4775_v33  ;;  %v10100_v28 = vmul.f32 %v8097_v48, %v4627_v2 }
0x1122   : > { %4967 = vmatmul.bf16.vlgmr.msrb.gmra.mxu3 %v4784_v21  ;;  %5000 = vmatmul.bf16.vlgmr.msra.gmra.mxu0 %v4784_v21  ;;  %v4645_v40 = vmul.f32 %v10100_v28, %v10100_v28 }
0x1123   : > { %5033 = vmatmul.bf16.vlgmr.msra.gmra.mxu1 %v4784_v21  ;;  %v4608_v49 = vpop.xlane.xlu2 %4607  ;;  %v10150_v21 = vld [vmem:[%s10716_s8 + $0x3] sm:$0x7] }
0x1124   : > { %v4619_v63 = vmul.f32 0.010416667, %v4608_v49  ;;  %4659 = vadd.xlane.f32.xlu2 %v4645_v40 }
0x1126   : > { %v4628_v30 = vsub.f32 %v9919_v13, %v4619_v63 }
0x1128   : > { %v10106_v5 = vmul.f32 %v8097_v48, %v4628_v30 }
0x112a   : > { %v4646_v36 = vmul.f32 %v10106_v5, %v10106_v5 }
0x112b   : > { %v4610_v58 = vpop.xlane.xlu0 %4609 }
0x112c   : > { %v4620_v62 = vmul.f32 0.010416667, %v4610_v58  ;;  %4661 = vadd.xlane.f32.xlu0 %v4646_v36 }
0x112e   : > { %v4629_v22 = vsub.f32 %v9925_v26, %v4620_v62 }
0x1130   : > { %v10112_v10 = vmul.f32 %v8097_v48, %v4629_v22 }
0x1132   : > { %v4647_v11 = vmul.f32 %v10112_v10, %v10112_v10 }
0x1133   : > { %v4612_v25 = vpop.xlane.xlu1 %4611 }
0x1134   : > { %v4621_v23 = vmul.f32 0.010416667, %v4612_v25  ;;  %4663 = vadd.xlane.f32.xlu1 %v4647_v11  ;;  %v7507_v11 = vld [vmem:[%s10717_s9 + $0xc8] sm:$0xff] }
0x1136   : > { %v4630_v13 = vsub.f32 %v9931_v59, %v4621_v23  ;;  %v7513_v59 = vld [vmem:[%s10717_s9 + $0xf8] sm:$0xff] }
0x1137   : > { %5514 = vmatpush.bf16.msrb.mxu2 %v7513_v59 }
0x1138   : > { %v10118_v35 = vmul.f32 %v8097_v48, %v4630_v13 }
0x113a   : > { %v4648_v8 = vmul.f32 %v10118_v35, %v10118_v35 }
0x113b   : > { %5515 = vmatpush.bf16.msrb.mxu2 %v7512_v37 }
0x113c   : > { %4665 = vadd.xlane.f32.xlu2 %v4648_v8  ;;  %v7521_v8 = vld [vmem:[%s10717_s9 + $0x138] sm:$0xff] }
0x113d   : > { %5539 = vmatpush.bf16.msra.mxu3 %v7521_v8 }
0x113f   : > { %5516 = vmatpush.bf16.msrb.mxu2 %v7511_v3 }
0x1143   : > { %5517 = vmatpush.bf16.msrb.mxu2 %v7510_v55 }
0x1147   : > { %5518 = vmatpush.bf16.msrb.mxu2 %v7509_v1  ;;  %v10239_v1 = vperm.slane %v10150_v21, 2 }
0x117f   : > { %v4654_v4 = vpop.xlane.xlu2 %4653 }
0x1180   : > { %v4669_v26 = vmul.f32 0.010416667, %v4654_v4  ;;  %v7529_v4 = vld [vmem:[%s10717_s9 + $0x178] sm:$0xff] }
0x1181   : > { %5564 = vmatpush.bf16.msrb.mxu0 %v7529_v4 }
0x1182   : > { %v4678_v20 = vadd.f32 1e-06, %v4669_v26 }
0x1184   : > { %7852 = vrsqrt.f32 %v4678_v20  ;;  %vm4711_vm9 = vweird.f32 %v4678_v20 }
0x1187   : > { %v4656_v19 = vpop.xlane.xlu0 %4655 }
0x1188   : > { %v4670_v57 = vmul.f32 0.010416667, %v4656_v19 }
0x118a   : > { %v7853_v14 = vpop.eup %7852  ;;  %v4679_v7 = vadd.f32 1e-06, %v4670_v57  ;;  %v7506_v57 = vld [vmem:[%s10717_s9 + $0xc0] sm:$0xff] }
0x118b   : > { %v4706_v6 = vmul.f32 %v7853_v14, %v4678_v20  ;;  %vm4712_vm8 = vweird.f32 %v7853_v14 }
0x118c   : > { %7854 = vrsqrt.f32 %v4679_v7  ;;  %vm4713_vm11 = vmor %vm4711_vm9, %vm4712_vm8  ;;  %vm4721_vm0 = vweird.f32 %v4679_v7 }
0x118d   : > { %v4707_v29 = vmul.f32 %v7853_v14, %v4706_v6  ;;  %v7528_v6 = vld [vmem:[%s10717_s9 + $0x170] sm:$0xff] }
0x118e   : > { %5565 = vmatpush.bf16.msrb.mxu0 %v7528_v6 }
0x118f   : > { %v4708_v16 = vmul.f32 0.5, %v4707_v29  ;;  %v4658_v60 = vpop.xlane.xlu1 %4657 }
0x1190   : > { %v4671_v44 = vmul.f32 0.010416667, %v4658_v60 }
0x1191   : > { %v4709_v31 = vsub.f32 1.5, %v4708_v16 }
0x1192   : > { %v7855_v47 = vpop.eup %7854  ;;  %v10125_v54 = vadd.f32 1e-06, %v4671_v44 }
0x1193   : > { %v4716_v51 = vmul.f32 %v7855_v47, %v4679_v7  ;;  %v4710_v32 = vmul.f32 %v7853_v14, %v4709_v31  ;;  %vm4722_vm10 = vweird.f32 %v7855_v47  ;;  %v7520_v7 = vld [vmem:[%s10717_s9 + $0x130] sm:$0xff] }
0x1194   : > { %7856 = vrsqrt.f32 %v10125_v54  ;;  %vm4723_vm1 = vmor %vm4721_vm0, %vm4722_vm10  ;;  %vm4731_vm4 = vweird.f32 %v10125_v54  ;;  %5540 = vmatpush.bf16.msra.mxu3 %v7520_v7 }
0x1195   : > { %v4717_v52 = vmul.f32 %v7855_v47, %v4716_v51  ;;  %v4714_v50 = vsel %vm4713_vm11, %v7853_v14, %v4710_v32  ;;  %v7519_v32 = vld [vmem:[%s10717_s9 + $0x128] sm:$0xff] }
0x1196   : > { %v4777_v34 = vmul.f32 %v4714_v50, %v10080_v53  ;;  %v10155_v53 = vperm.slane %v10150_v21, 0 }
0x1197   : > { %v4718_v9 = vmul.f32 0.5, %v4717_v52  ;;  %v4660_v46 = vpop.xlane.xlu2 %4659 }
0x1198   : > { %v4672_v42 = vmul.f32 0.010416667, %v4660_v46  ;;  %5541 = vmatpush.bf16.msra.mxu3 %v7519_v32 }
0x1199   : > { %v4719_v38 = vsub.f32 1.5, %v4718_v9  ;;  %v7527_v9 = vld [vmem:[%s10717_s9 + $0x168] sm:$0xff] }
0x119a   : > { %v10134_v0 = vpop.eup %7856  ;;  %v4681_v39 = vadd.f32 1e-06, %v4672_v42  ;;  %5566 = vmatpush.bf16.msrb.mxu0 %v7527_v9 }
0x119b   : > { %v4720_v56 = vmul.f32 %v7855_v47, %v4719_v38  ;;  %v4726_v45 = vmul.f32 %v10134_v0, %v10125_v54  ;;  %vm4732_vm2 = vweird.f32 %v10134_v0 }
0x119c   : > { %7858 = vrsqrt.f32 %v4681_v39  ;;  %vm10198_vm5 = vmor %vm4731_vm4, %vm4732_vm2  ;;  %vm4741_vm12 = vweird.f32 %v4681_v39  ;;  %vm5873_vm4 = vcmask 1040384  }
0x119d   : > { %v4727_v18 = vmul.f32 %v10134_v0, %v4726_v45  ;;  %v4724_v12 = vsel %vm4723_vm1, %v7855_v47, %v4720_v56 }
0x119e   : > { %v4778_v41 = vmul.f32 %v4724_v12, %v10086_v15  ;;  %v7508_v15 = vld [vmem:[%s10717_s9 + $0xd0] sm:$0xff] }
0x119f   : > { %v4662_v17 = vpop.xlane.xlu0 %4661  ;;  %v4728_v33 = vmul.f32 0.5, %v4727_v18  ;;  %5519 = vmatpush.bf16.msrb.mxu2 %v7508_v15  ;;  %v10161_v62 = vpop.f32.mrf.mxu0 }
0x11a0   : > { %v4673_v27 = vmul.f32 0.010416667, %v4662_v17  ;;  %v4785_v2 = vpack.c.bf16 %v4778_v41, %v4777_v34  ;;  %v10169_v23 = vpop.f32.mrf.mxu1  ;;  %v7518_v41 = vld [vmem:[%s10717_s9 + $0x120] sm:$0xff] }
0x11a1   : > { %v4729_v30 = vsub.f32 1.5, %v4728_v33  ;;  %5542 = vmatpush.bf16.msra.mxu3 %v7518_v41 }
0x11a2   : > { %v7859_v40 = vpop.eup %7858  ;;  %v10152_v49 = vadd.f32 1e-06, %v4673_v27  ;;  %4972 = vmatmul.bf16.gmra.mxu3 %v4785_v2  ;;  %5005 = vmatmul.bf16.gmra.mxu0 %v4785_v2 }
0x11a3   : > { %v4736_v63 = vmul.f32 %v7859_v40, %v4681_v39  ;;  %5038 = vmatmul.bf16.gmra.mxu1 %v4785_v2  ;;  %v4730_v26 = vmul.f32 %v10134_v0, %v4729_v30  ;;  %5520 = vmatpush.bf16.msrb.mxu2 %v7507_v11  ;;  %vm4742_vm3 = vweird.f32 %v7859_v40  ;;  %v7517_v30 = vld [vmem:[%s10717_s9 + $0x118] sm:$0xff] }
0x11a4   : > { %7860 = vrsqrt.f32 %v10152_v49  ;;  %vm10204_vm13 = vmor %vm4741_vm12, %vm4742_vm3  ;;  %vm4751_vm15 = vweird.f32 %v10152_v49  ;;  %vm5877_vm12 = vcmask 1041408  }
0x11a5   : > { %v4737_v36 = vmul.f32 %v7859_v40, %v4736_v63  ;;  %v4968_v58 = vpop.f32.mrf.mxu3  ;;  %v4734_v31 = vsel %vm10198_vm5, %v10134_v0, %v4730_v26  ;;  %5543 = vmatpush.bf16.msra.mxu3 %v7517_v30  ;;  %vm5875_vm5 = vcmask 1042434  }
0x11a6   : > { %v10164_v22 = vadd.f32 %v4968_v58, %v10155_v53  ;;  %v4779_v0 = vmul.f32 %v4734_v31, %v10092_v61  ;;  %v7526_v61 = vld [vmem:[%s10717_s9 + $0x160] sm:$0xff] }
0x11a7   : > { %v4738_v25 = vmul.f32 0.5, %v4737_v36  ;;  %v4664_v13 = vpop.xlane.xlu1 %4663  ;;  %5521 = vmatpush.bf16.msrb.mxu2 %v7506_v57  ;;  %v5003_v18 = vpop.f32.mrf.mxu0  ;;  %5567 = vmatpush.bf16.msrb.mxu0 %v7526_v61  ;;  %v7525_v36 = vld [vmem:[%s10717_s9 + $0x158] sm:$0xff] }
0x11a8   : > { %v5058_v20 = vmul.f32 %v10164_v22, %v10164_v22  ;;  %v4674_v19 = vmul.f32 0.010416667, %v4664_v13  ;;  %v5036_v12 = vpop.f32.mrf.mxu1 }
0x11a9   : > { %v4739_v14 = vsub.f32 1.5, %v4738_v25  ;;  %v10265_v25 = vadd.f32 %v10169_v23, %v10239_v1  ;;  %v7516_v23 = vld [vmem:[%s10717_s9 + $0x110] sm:$0xff] }
0x11aa   : > { %v10190_v29 = vpop.eup %7860  ;;  %v5085_v59 = vmul.f32 %v5058_v20, %v10164_v22  ;;  %v10194_v16 = vadd.f32 1e-06, %v4674_v19  ;;  %v7524_v19 = vld [vmem:[%s10717_s9 + $0x150] sm:$0xff]  ;;  %5544 = vmatpush.bf16.msra.mxu3 %v7516_v23 }
0x11ab   : > { %v4740_v44 = vmul.f32 %v7859_v40, %v4739_v14  ;;  %v4746_v47 = vmul.f32 %v10190_v29, %v10152_v49  ;;  %vm4752_vm14 = vweird.f32 %v10190_v29  ;;  %5568 = vmatpush.bf16.msrb.mxu0 %v7525_v36  ;;  %v5060_v7 = vmul.f32 %v10265_v25, %v10265_v25 }
0x11ac   : > { %v5112_v54 = vmul.f32 0.044715, %v5085_v59  ;;  %7862 = vrsqrt.f32 %v10194_v16  ;;  %vm10284_vm7 = vmor %vm4751_vm15, %vm4752_vm14  ;;  %vm4761_vm8 = vweird.f32 %v10194_v16 }
0x11ad   : > { %v4747_v51 = vmul.f32 %v10190_v29, %v4746_v47  ;;  %v4970_v52 = vpop.f32.mrf.mxu3  ;;  %v4744_v3 = vsel %vm10204_vm13, %v7859_v40, %v4740_v44  ;;  %v10248_v40 = vadd.f32 %v5036_v12, %v10239_v1  ;;  %vm5882_vm13 = vcmp.lt.s32.totalorder %v440_v43, 512 }
0x11ae   : > { %v5139_v46 = vadd.f32 %v5112_v54, %v10164_v22  ;;  %v10223_v42 = vadd.f32 %v4970_v52, %v10155_v53  ;;  %v4780_v39 = vmul.f32 %v4744_v3, %v10100_v28  ;;  %v10236_v28 = vperm.slane %v10150_v21, 1 }
0x11af   : > { %v4666_v38 = vpop.xlane.xlu2 %4665  ;;  %v4748_v50 = vmul.f32 0.5, %v4747_v51  ;;  %v5063_v4 = vmul.f32 %v10248_v40, %v10248_v40  ;;  %5569 = vmatpush.bf16.msrb.mxu0 %v7524_v19  ;;  %v7515_v51 = vld [vmem:[%s10717_s9 + $0x108] sm:$0xff]  ;;  %v5087_v3 = vmul.f32 %v5060_v7, %v10265_v25 }
0x11b0   : > { %v5166_v55 = vmul.f32 0.7978846, %v5139_v46  ;;  %v5061_v56 = vmul.f32 %v10223_v42, %v10223_v42  ;;  %v4675_v45 = vmul.f32 0.010416667, %v4666_v38  ;;  %v4786_v34 = vpack.c.bf16 %v4780_v39, %v4779_v0  ;;  %5545 = vmatpush.bf16.msra.mxu3 %v7515_v51 }
0x11b1   : > { %v10245_v2 = vadd.f32 %v5003_v18, %v10236_v28  ;;  %v4749_v63 = vsub.f32 1.5, %v4748_v50  ;;  %v10259_v58 = vadd.f32 %v10161_v62, %v10236_v28  ;;  %v5090_v47 = vmul.f32 %v5063_v4, %v10248_v40  ;;  %v7514_v50 = vld [vmem:[%s10717_s9 + $0x100] sm:$0xff] }
0x11b2   : > { %v5088_v17 = vmul.f32 %v5061_v56, %v10223_v42  ;;  %v10242_v33 = vadd.f32 1e-06, %v4675_v45  ;;  %4977 = vmatmul.bf16.gmra.mxu3 %v4786_v34  ;;  %5010 = vmatmul.bf16.gmra.mxu0 %v4786_v34  ;;  %v7863_v27 = vpop.eup %7862  ;;  %7864 = vtanh.f32 %v5166_v55  ;;  %v5114_v41 = vmul.f32 0.044715, %v5087_v3 }
0x11b3   : > { %5043 = vmatmul.bf16.gmra.mxu1 %v4786_v34  ;;  %v4756_v21 = vmul.f32 %v7863_v27, %v10194_v16  ;;  %v5062_v8 = vmul.f32 %v10245_v2, %v10245_v2  ;;  %v4750_v20 = vmul.f32 %v10190_v29, %v4749_v63  ;;  %v5059_v14 = vmul.f32 %v10259_v58, %v10259_v58  ;;  %v7523_v16 = vld [vmem:[%s10717_s9 + $0x148] sm:$0xff]  ;;  %v7522_v34 = vld [vmem:[%s10717_s9 + $0x140] sm:$0xff] }
0x11b4   : > { %v5115_v15 = vmul.f32 0.044715, %v5088_v17  ;;  %7866 = vrsqrt.f32 %v10242_v33  ;;  %vm4762_vm6 = vweird.f32 %v7863_v27  ;;  %v5117_v55 = vmul.f32 0.044715, %v5090_v47  ;;  %5570 = vmatpush.bf16.msrb.mxu0 %v7523_v16  ;;  %5546 = vmatpush.bf16.msra.mxu3 %v7514_v50 }
0x11b5   : > { %v4757_v13 = vmul.f32 %v7863_v27, %v4756_v21  ;;  %v5089_v44 = vmul.f32 %v5062_v8, %v10245_v2  ;;  %v4754_v31 = vsel %vm10284_vm7, %v10190_v29, %v4750_v20  ;;  %v5086_v52 = vmul.f32 %v5059_v14, %v10259_v58  ;;  %vm4763_vm9 = vmor %vm4761_vm8, %vm4762_vm6 }
0x11b6   : > { %v5142_v11 = vadd.f32 %v5115_v15, %v10223_v42  ;;  %v4781_v38 = vmul.f32 %v4754_v31, %v10106_v5  ;;  %v5141_v21 = vadd.f32 %v5114_v41, %v10265_v25  ;;  %vm4771_vm11 = vweird.f32 %v10242_v33 }
0x11b7   : > { %v4758_v62 = vmul.f32 0.5, %v4757_v13  ;;  %v5116_v29 = vmul.f32 0.044715, %v5089_v44  ;;  %v5113_v18 = vmul.f32 0.044715, %v5086_v52 }
0x11b8   : > { %v5169_v26 = vmul.f32 0.7978846, %v5142_v11  ;;  %v7865_v57 = vpop.eup %7864  ;;  %5571 = vmatpush.bf16.msrb.mxu0 %v7522_v34  ;;  %v5168_v8 = vmul.f32 0.7978846, %v5141_v21 }
0x11b9   : > { %v4759_v6 = vsub.f32 1.5, %v4758_v62  ;;  %v5220_v37 = vadd.f32 1.0, %v7865_v57  ;;  %v5140_v63 = vadd.f32 %v5113_v18, %v10259_v58 }
0x11ba   : > { %7868 = vtanh.f32 %v5169_v26  ;;  %v7867_v59 = vpop.eup %7866 }
0x11bb   : > { %v4760_v54 = vmul.f32 %v7863_v27, %v4759_v6  ;;  %v4766_v49 = vmul.f32 %v7867_v59, %v10242_v33  ;;  %v5247_v39 = vmul.f32 0.5, %v5220_v37  ;;  %vm4772_vm10 = vweird.f32 %v7867_v59 }
0x11bc   : > { %vm4773_vm0 = vmor %vm4771_vm11, %vm4772_vm10 }
0x11bd   : > { %v4767_v32 = vmul.f32 %v7867_v59, %v4766_v49  ;;  %v4764_v9 = vsel %vm4763_vm9, %v7863_v27, %v4760_v54  ;;  %v5274_v17 = vmul.f32 %v5247_v39, %v10164_v22  ;;  %v5144_v27 = vadd.f32 %v5117_v55, %v10248_v40 }
0x11be   : > { %v4782_v0 = vmul.f32 %v4764_v9, %v10112_v10  ;;  %v5143_v10 = vadd.f32 %v5116_v29, %v10245_v2  ;;  %v5167_v22 = vmul.f32 0.7978846, %v5140_v63 }
0x11bf   : > { %v4768_v45 = vmul.f32 0.5, %v4767_v32  ;;  %v5171_v13 = vmul.f32 0.7978846, %v5144_v27 }
0x11c0   : > { %v7869_v46 = vpop.eup %7868  ;;  %v4787_v12 = vpack.c.bf16 %v4782_v0, %v4781_v38  ;;  %v5170_v11 = vmul.f32 0.7978846, %v5143_v10 }
0x11c1   : > { %v5223_v56 = vadd.f32 1.0, %v7869_v46  ;;  %v4769_v61 = vsub.f32 1.5, %v4768_v45 }
0x11c2   : > { %4982 = vmatmul.bf16.gmra.mxu3 %v4787_v12  ;;  %5015 = vmatmul.bf16.gmra.mxu0 %v4787_v12  ;;  %7870 = vtanh.f32 %v5170_v11 }
0x11c3   : > { %v5250_v5 = vmul.f32 0.5, %v5223_v56  ;;  %5048 = vmatmul.bf16.gmra.mxu1 %v4787_v12  ;;  %v4770_v36 = vmul.f32 %v7867_v59, %v4769_v61  ;;  %7872 = vtanh.f32 %v5171_v13 }
0x11c4   : > { %7874 = vtanh.f32 %v5167_v22 }
0x11c5   : > { %v5277_v15 = vmul.f32 %v5250_v5, %v10223_v42  ;;  %v4774_v4 = vsel %vm4773_vm0, %v7867_v59, %v4770_v36  ;;  %7876 = vtanh.f32 %v5168_v8 }
0x11c6   : > { %v4783_v42 = vmul.f32 %v4774_v4, %v10118_v35 }
0x11c7   : > { %v5301_v30 = vpack.c.bf16 %v5277_v15, %v5274_v17 }
0x11c8   : > { %v7871_v26 = vpop.eup %7870  ;;  %v4788_v20 = vpack.c.bf16 %v4783_v42, %v4783_v42 }
0x11c9   : > { %5522 = vmatmul.bf16.vlgmr.msrb.gmra.mxu2 %v5301_v30  ;;  %v7873_v62 = vpop.eup %7872  ;;  %v5224_v33 = vadd.f32 1.0, %v7871_v26 }
0x11ca   : > { %v7875_v23 = vpop.eup %7874  ;;  %v5225_v57 = vadd.f32 1.0, %v7873_v62 }
0x11cb   : > { %v7877_v19 = vpop.eup %7876  ;;  %v5221_v14 = vadd.f32 1.0, %v7875_v23  ;;  %v5251_v6 = vmul.f32 0.5, %v5224_v33 }
0x11cc   : > { %v5222_v7 = vadd.f32 1.0, %v7877_v19  ;;  %v5252_v59 = vmul.f32 0.5, %v5225_v57 }
0x11cd   : > { %v5248_v60 = vmul.f32 0.5, %v5221_v14  ;;  %v5278_v47 = vmul.f32 %v5251_v6, %v10245_v2 }
0x11ce   : > { %v5249_v44 = vmul.f32 0.5, %v5222_v7  ;;  %v5279_v35 = vmul.f32 %v5252_v59, %v10248_v40 }
0x11cf   : > { %v5275_v37 = vmul.f32 %v5248_v60, %v10259_v58 }
0x11d0   : > { %v5276_v54 = vmul.f32 %v5249_v44, %v10265_v25 }
0x11d1   : > { %v5302_v49 = vpack.c.bf16 %v5278_v47, %v5275_v37 }
0x11d2   : > { %4987 = vmatmul.bf16.gmra.mxu3 %v4788_v20  ;;  %5020 = vmatmul.bf16.gmra.mxu0 %v4788_v20  ;;  %v5303_v31 = vpack.c.bf16 %v5279_v35, %v5276_v54 }
0x11d3   : > { %5053 = vmatmul.bf16.gmra.mxu1 %v4788_v20 }
0x11e2   : > { %5547 = vmatmul.bf16.vlgmr.msra.gmra.mxu3 %v5302_v49  ;;  %5572 = vmatmul.bf16.vlgmr.msrb.gmra.mxu0 %v5303_v31 }
0x121f   : > { %v5006_v51 = vpop.f32.mrf.mxu0 }
0x1220   : > { %v10325_v16 = vadd.f32 %v5006_v51, %v10236_v28  ;;  %v5039_v52 = vpop.f32.mrf.mxu1 }
0x1221   : > { %v10328_v3 = vadd.f32 %v5039_v52, %v10239_v1 }
0x1222   : > { %v5065_v2 = vmul.f32 %v10325_v16, %v10325_v16 }
0x1223   : > { %v5066_v40 = vmul.f32 %v10328_v3, %v10328_v3 }
0x1224   : > { %v5092_v58 = vmul.f32 %v5065_v2, %v10325_v16 }
0x1225   : > { %v5093_v25 = vmul.f32 %v5066_v40, %v10328_v3  ;;  %v4973_v32 = vpop.f32.mrf.mxu3 }
0x1226   : > { %v5119_v9 = vmul.f32 0.044715, %v5092_v58  ;;  %v10337_v46 = vadd.f32 %v4973_v32, %v10155_v53 }
0x1227   : > { %v5120_v29 = vmul.f32 0.044715, %v5093_v25  ;;  %v5008_v38 = vpop.f32.mrf.mxu0 }
0x1228   : > { %v5146_v0 = vadd.f32 %v5119_v9, %v10325_v16  ;;  %v5064_v39 = vmul.f32 %v10337_v46, %v10337_v46  ;;  %v10343_v55 = vadd.f32 %v5008_v38, %v10236_v28  ;;  %v5041_v56 = vpop.f32.mrf.mxu1 }
0x1229   : > { %v5147_v45 = vadd.f32 %v5120_v29, %v10328_v3  ;;  %v10347_v50 = vadd.f32 %v5041_v56, %v10239_v1 }
0x122a   : > { %v5173_v18 = vmul.f32 0.7978846, %v5146_v0  ;;  %v5091_v12 = vmul.f32 %v5064_v39, %v10337_v46  ;;  %v5068_v34 = vmul.f32 %v10343_v55, %v10343_v55 }
0x122b   : > { %v5174_v41 = vmul.f32 0.7978846, %v5147_v45  ;;  %v5069_v5 = vmul.f32 %v10347_v50, %v10347_v50 }
0x122c   : > { %7878 = vtanh.f32 %v5173_v18  ;;  %v5118_v61 = vmul.f32 0.044715, %v5091_v12  ;;  %v5095_v10 = vmul.f32 %v5068_v34, %v10343_v55 }
0x122d   : > { %7880 = vtanh.f32 %v5174_v41  ;;  %v5096_v17 = vmul.f32 %v5069_v5, %v10347_v50  ;;  %v4975_v27 = vpop.f32.mrf.mxu3 }
0x122e   : > { %v5145_v15 = vadd.f32 %v5118_v61, %v10337_v46  ;;  %v5122_v63 = vmul.f32 0.044715, %v5095_v10  ;;  %v10358_v21 = vadd.f32 %v4975_v27, %v10155_v53 }
0x122f   : > { %v5123_v30 = vmul.f32 0.044715, %v5096_v17  ;;  %v5011_v22 = vpop.f32.mrf.mxu0 }
0x1230   : > { %v5172_v36 = vmul.f32 0.7978846, %v5145_v15  ;;  %v5149_v11 = vadd.f32 %v5122_v63, %v10343_v55  ;;  %v5067_v13 = vmul.f32 %v10358_v21, %v10358_v21  ;;  %v10365_v4 = vadd.f32 %v5011_v22, %v10236_v28  ;;  %v5044_v42 = vpop.f32.mrf.mxu1 }
0x1231   : > { %v5150_v8 = vadd.f32 %v5123_v30, %v10347_v50  ;;  %v10369_v23 = vadd.f32 %v5044_v42, %v10239_v1 }
0x1232   : > { %v7879_v26 = vpop.eup %7878  ;;  %v5176_v20 = vmul.f32 0.7978846, %v5149_v11  ;;  %v5094_v62 = vmul.f32 %v5067_v13, %v10358_v21  ;;  %7882 = vtanh.f32 %v5172_v36  ;;  %v5071_v57 = vmul.f32 %v10365_v4, %v10365_v4 }
0x1233   : > { %v7881_v19 = vpop.eup %7880  ;;  %v5177_v33 = vmul.f32 0.7978846, %v5150_v8  ;;  %v5072_v7 = vmul.f32 %v10369_v23, %v10369_v23  ;;  %v5227_v59 = vadd.f32 1.0, %v7879_v26 }
0x1234   : > { %7884 = vtanh.f32 %v5176_v20  ;;  %v5121_v14 = vmul.f32 0.044715, %v5094_v62  ;;  %v5098_v6 = vmul.f32 %v5071_v57, %v10365_v4  ;;  %v5228_v35 = vadd.f32 1.0, %v7881_v19 }
0x1235   : > { %7886 = vtanh.f32 %v5177_v33  ;;  %v5099_v44 = vmul.f32 %v5072_v7, %v10369_v23  ;;  %v4978_v47 = vpop.f32.mrf.mxu3  ;;  %v5254_v32 = vmul.f32 0.5, %v5227_v59 }
0x1236   : > { %v5148_v60 = vadd.f32 %v5121_v14, %v10358_v21  ;;  %v5125_v37 = vmul.f32 0.044715, %v5098_v6  ;;  %v10379_v54 = vadd.f32 %v4978_v47, %v10155_v53  ;;  %v5255_v0 = vmul.f32 0.5, %v5228_v35 }
0x1237   : > { %v5126_v31 = vmul.f32 0.044715, %v5099_v44  ;;  %v5013_v51 = vpop.f32.mrf.mxu0  ;;  %v5281_v30 = vmul.f32 %v5254_v32, %v10325_v16 }
0x1238   : > { %v5175_v49 = vmul.f32 0.7978846, %v5148_v60  ;;  %v7883_v52 = vpop.eup %7882  ;;  %v5152_v2 = vadd.f32 %v5125_v37, %v10365_v4  ;;  %v5070_v40 = vmul.f32 %v10379_v54, %v10379_v54  ;;  %v10385_v58 = vadd.f32 %v5013_v51, %v10236_v28  ;;  %v5046_v25 = vpop.f32.mrf.mxu1 }
0x1239   : > { %v5153_v29 = vadd.f32 %v5126_v31, %v10369_v23  ;;  %v10389_v38 = vadd.f32 %v5046_v25, %v10239_v1  ;;  %v5226_v61 = vadd.f32 1.0, %v7883_v52  ;;  %v5282_v11 = vmul.f32 %v5255_v0, %v10328_v3 }
0x123a   : > { %v7885_v9 = vpop.eup %7884  ;;  %7888 = vtanh.f32 %v5175_v49  ;;  %v5179_v56 = vmul.f32 0.7978846, %v5152_v2  ;;  %v5097_v45 = vmul.f32 %v5070_v40, %v10379_v54  ;;  %v5074_v18 = vmul.f32 %v10385_v58, %v10385_v58 }
0x123b   : > { %v7887_v39 = vpop.eup %7886  ;;  %v5230_v12 = vadd.f32 1.0, %v7885_v9  ;;  %v5180_v34 = vmul.f32 0.7978846, %v5153_v29  ;;  %v5075_v41 = vmul.f32 %v10389_v38, %v10389_v38  ;;  %v5253_v19 = vmul.f32 0.5, %v5226_v61 }
0x123c   : > { %v5231_v5 = vadd.f32 1.0, %v7887_v39  ;;  %7890 = vtanh.f32 %v5179_v56  ;;  %v5124_v10 = vmul.f32 0.044715, %v5097_v45  ;;  %v5101_v17 = vmul.f32 %v5074_v18, %v10385_v58 }
0x123d   : > { %v5257_v27 = vmul.f32 0.5, %v5230_v12  ;;  %v5102_v15 = vmul.f32 %v5075_v41, %v10389_v38  ;;  %v4980_v63 = vpop.f32.mrf.mxu3  ;;  %7892 = vtanh.f32 %v5180_v34  ;;  %v5280_v2 = vmul.f32 %v5253_v19, %v10337_v46 }
0x123e   : > { %v5258_v36 = vmul.f32 0.5, %v5231_v5  ;;  %v5151_v13 = vadd.f32 %v5124_v10, %v10379_v54  ;;  %v5128_v22 = vmul.f32 0.044715, %v5101_v17  ;;  %v10402_v8 = vadd.f32 %v4980_v63, %v10155_v53 }
0x123f   : > { %v5284_v42 = vmul.f32 %v5257_v27, %v10343_v55  ;;  %v5129_v20 = vmul.f32 0.044715, %v5102_v15  ;;  %v5016_v57 = vpop.f32.mrf.mxu0 }
0x1240   : > { %v7889_v26 = vpop.eup %7888  ;;  %v5285_v62 = vmul.f32 %v5258_v36, %v10347_v50  ;;  %v5178_v33 = vmul.f32 0.7978846, %v5151_v13  ;;  %v5155_v16 = vadd.f32 %v5128_v22, %v10385_v58  ;;  %v5073_v3 = vmul.f32 %v10402_v8, %v10402_v8  ;;  %v5049_v55 = vpop.f32.mrf.mxu1 }
0x1241   : > { %v5305_v14 = vpack.c.bf16 %v5284_v42, %v5281_v30  ;;  %v5156_v7 = vadd.f32 %v5129_v20, %v10389_v38  ;;  %v10411_v6 = vadd.f32 %v5016_v57, %v10236_v28  ;;  %v5229_v60 = vadd.f32 1.0, %v7889_v26 }
0x1242   : > { %v5306_v59 = vpack.c.bf16 %v5285_v62, %v5282_v11  ;;  %v7891_v44 = vpop.eup %7890  ;;  %v5182_v47 = vmul.f32 0.7978846, %v5155_v16  ;;  %v5100_v50 = vmul.f32 %v5073_v3, %v10402_v8  ;;  %v10415_v35 = vadd.f32 %v5049_v55, %v10239_v1 }
0x1243   : > { %5551 = vmatmul.bf16.gmra.mxu3 %v5305_v14  ;;  %7894 = vtanh.f32 %v5178_v33  ;;  %v5183_v37 = vmul.f32 0.7978846, %v5156_v7  ;;  %v5077_v49 = vmul.f32 %v10411_v6, %v10411_v6  ;;  %v5256_v31 = vmul.f32 0.5, %v5229_v60  ;;  %v7893_v40 = vpop.eup %7892 }
0x1244   : > { %5576 = vmatmul.bf16.gmra.mxu0 %v5306_v59  ;;  %7896 = vtanh.f32 %v5182_v47  ;;  %v5127_v51 = vmul.f32 0.044715, %v5100_v50  ;;  %v5078_v52 = vmul.f32 %v10415_v35, %v10415_v35  ;;  %v5233_v9 = vadd.f32 1.0, %v7891_v44 }
0x1245   : > { %7898 = vtanh.f32 %v5183_v37  ;;  %v5104_v25 = vmul.f32 %v5077_v49, %v10411_v6  ;;  %v5283_v32 = vmul.f32 %v5256_v31, %v10358_v21  ;;  %v4983_v39 = vpop.f32.mrf.mxu3  ;;  %v5234_v41 = vadd.f32 1.0, %v7893_v40 }
0x1246   : > { %v5154_v29 = vadd.f32 %v5127_v51, %v10402_v8  ;;  %v5105_v0 = vmul.f32 %v5078_v52, %v10415_v35  ;;  %v10427_v45 = vadd.f32 %v4983_v39, %v10155_v53  ;;  %v5260_v27 = vmul.f32 0.5, %v5233_v9 }
0x1247   : > { %v5131_v56 = vmul.f32 0.044715, %v5104_v25  ;;  %v5304_v18 = vpack.c.bf16 %v5283_v32, %v5280_v2  ;;  %v5018_v46 = vpop.f32.mrf.mxu0  ;;  %v5261_v33 = vmul.f32 0.5, %v5234_v41 }
0x1248   : > { %v5181_v12 = vmul.f32 0.7978846, %v5154_v29  ;;  %v5132_v34 = vmul.f32 0.044715, %v5105_v0  ;;  %v5076_v21 = vmul.f32 %v10427_v45, %v10427_v45  ;;  %v10433_v10 = vadd.f32 %v5018_v46, %v10236_v28  ;;  %v5051_v17 = vpop.f32.mrf.mxu1 }
0x1249   : > { %v7895_v5 = vpop.eup %7894  ;;  %v5158_v61 = vadd.f32 %v5131_v56, %v10411_v6  ;;  %5526 = vmatmul.bf16.gmra.mxu2 %v5304_v18  ;;  %v10437_v30 = vadd.f32 %v5051_v17, %v10239_v1  ;;  %v5287_v14 = vmul.f32 %v5260_v27, %v10365_v4  ;;  %v5288_v4 = vmul.f32 %v5261_v33, %v10369_v23 }
0x124a   : > { %v7897_v15 = vpop.eup %7896  ;;  %7900 = vtanh.f32 %v5181_v12  ;;  %v5159_v63 = vadd.f32 %v5132_v34, %v10415_v35  ;;  %v5103_v13 = vmul.f32 %v5076_v21, %v10427_v45  ;;  %v5080_v22 = vmul.f32 %v10433_v10, %v10433_v10 }
0x124b   : > { %v7899_v36 = vpop.eup %7898  ;;  %v5185_v11 = vmul.f32 0.7978846, %v5158_v61  ;;  %v5236_v26 = vadd.f32 1.0, %v7897_v15  ;;  %v5081_v62 = vmul.f32 %v10437_v30, %v10437_v30  ;;  %v5232_v60 = vadd.f32 1.0, %v7895_v5 }
0x124c   : > { %v10442_v42 = vpop.f32.mrf.mxu2  ;;  %v5186_v20 = vmul.f32 0.7978846, %v5159_v63  ;;  %v5237_v19 = vadd.f32 1.0, %v7899_v36  ;;  %v5130_v16 = vmul.f32 0.044715, %v5103_v13  ;;  %v5107_v3 = vmul.f32 %v5080_v22, %v10433_v10 }
0x124d   : > { %v5263_v57 = vmul.f32 0.5, %v5236_v26  ;;  %7902 = vtanh.f32 %v5185_v11  ;;  %v5108_v7 = vmul.f32 %v5081_v62, %v10437_v30  ;;  %v4985_v55 = vpop.f32.mrf.mxu3  ;;  %v5259_v12 = vmul.f32 0.5, %v5232_v60 }
0x124e   : > { %v5264_v59 = vmul.f32 0.5, %v5237_v19  ;;  %v5157_v44 = vadd.f32 %v5130_v16, %v10427_v45  ;;  %v5134_v47 = vmul.f32 0.044715, %v5107_v3  ;;  %v10451_v50 = vadd.f32 %v4985_v55, %v10155_v53 }
0x124f   : > { %v5290_v37 = vmul.f32 %v5263_v57, %v10385_v58  ;;  %7904 = vtanh.f32 %v5186_v20  ;;  %v5135_v31 = vmul.f32 0.044715, %v5108_v7  ;;  %v5021_v51 = vpop.f32.mrf.mxu0  ;;  %v5286_v22 = vmul.f32 %v5259_v12, %v10379_v54 }
0x1250   : > { %v7901_v49 = vpop.eup %7900  ;;  %v5291_v52 = vmul.f32 %v5264_v59, %v10389_v38  ;;  %v5184_v2 = vmul.f32 0.7978846, %v5157_v44  ;;  %v5161_v40 = vadd.f32 %v5134_v47, %v10433_v10  ;;  %v5079_v25 = vmul.f32 %v10451_v50, %v10451_v50  ;;  %v5054_v9 = vpop.f32.mrf.mxu1 }
0x1251   : > { %v10460_v32 = vadd.f32 %v5021_v51, %v10236_v28  ;;  %v5162_v58 = vadd.f32 %v5135_v31, %v10437_v30  ;;  %v10464_v29 = vadd.f32 %v5054_v9, %v10239_v1  ;;  %v5308_v0 = vpack.c.bf16 %v5290_v37, %v5287_v14 }
0x1252   : > { %v5309_v39 = vpack.c.bf16 %v5291_v52, %v5288_v4  ;;  %v5188_v23 = vmul.f32 0.7978846, %v5161_v40  ;;  %v5106_v38 = vmul.f32 %v5079_v25, %v10451_v50  ;;  %7906 = vtanh.f32 %v5184_v2 }
0x1253   : > { %v5083_v56 = vmul.f32 %v10460_v32, %v10460_v32  ;;  %v7903_v34 = vpop.eup %7902  ;;  %v5189_v28 = vmul.f32 0.7978846, %v5162_v58  ;;  %v5084_v46 = vmul.f32 %v10464_v29, %v10464_v29  ;;  %5554 = vmatmul.bf16.gmra.mxu3 %v5308_v0  ;;  %v5235_v1 = vadd.f32 1.0, %v7901_v49  ;;  %v7595_v0 = vld [vmem:[%s10718_s10 + $0x1] ss:$0 sm:$0xff] }
0x1254   : > { %v5525_v18 = vpop.f32.mrf.mxu2  ;;  %5579 = vmatmul.bf16.gmra.mxu0 %v5309_v39  ;;  %7908 = vtanh.f32 %v5188_v23  ;;  %v5133_v41 = vmul.f32 0.044715, %v5106_v38  ;;  %v5239_v20 = vadd.f32 1.0, %v7903_v34 }
0x1255   : > { %v5110_v5 = vmul.f32 %v5083_v56, %v10460_v32  ;;  %v7905_v61 = vpop.eup %7904  ;;  %7910 = vtanh.f32 %v5189_v28  ;;  %v5111_v21 = vmul.f32 %v5084_v46, %v10464_v29  ;;  %v4988_v17 = vpop.f32.mrf.mxu3  ;;  %v5262_v27 = vmul.f32 0.5, %v5235_v1 }
0x1256   : > { %v5160_v15 = vadd.f32 %v5133_v41, %v10451_v50  ;;  %v10475_v36 = vadd.f32 %v4988_v17, %v10155_v53  ;;  %v5240_v3 = vadd.f32 1.0, %v7905_v61  ;;  %v5266_v44 = vmul.f32 0.5, %v5239_v20 }
0x1257   : > { %v5137_v63 = vmul.f32 0.044715, %v5110_v5  ;;  %v5138_v11 = vmul.f32 0.044715, %v5111_v21  ;;  %v5023_v13 = vpop.f32.mrf.mxu0  ;;  %v5289_v26 = vmul.f32 %v5262_v27, %v10402_v8 }
0x1258   : > { %v5187_v62 = vmul.f32 0.7978846, %v5160_v15  ;;  %v5082_v33 = vmul.f32 %v10475_v36, %v10475_v36  ;;  %v5056_v16 = vpop.f32.mrf.mxu1  ;;  %v7907_v57 = vpop.eup %7906  ;;  %v5267_v49 = vmul.f32 0.5, %v5240_v3  ;;  %v5293_v25 = vmul.f32 %v5266_v44, %v10411_v6 }
0x1259   : > { %v5164_v19 = vadd.f32 %v5137_v63, %v10460_v32  ;;  %v5165_v14 = vadd.f32 %v5138_v11, %v10464_v29  ;;  %v5307_v53 = vpack.c.bf16 %v5289_v26, %v5286_v22  ;;  %v5238_v4 = vadd.f32 1.0, %v7907_v57 }
0x125a   : > { %v7909_v7 = vpop.eup %7908  ;;  %7912 = vtanh.f32 %v5187_v62  ;;  %v5109_v54 = vmul.f32 %v5082_v33, %v10475_v36  ;;  %v5294_v23 = vmul.f32 %v5267_v49, %v10415_v35 }
0x125b   : > { %v5191_v55 = vmul.f32 0.7978846, %v5164_v19  ;;  %v7911_v59 = vpop.eup %7910  ;;  %v5192_v8 = vmul.f32 0.7978846, %v5165_v14  ;;  %5529 = vmatmul.bf16.gmra.mxu2 %v5307_v53  ;;  %v5242_v60 = vadd.f32 1.0, %v7909_v7  ;;  %v5265_v12 = vmul.f32 0.5, %v5238_v4 }
0x125c   : > { %v5136_v47 = vmul.f32 0.044715, %v5109_v54  ;;  %v5243_v37 = vadd.f32 1.0, %v7911_v59  ;;  %v7278_v4 = vld [vmem:[%s10719_s11 + $0xc0] sm:$0xf] }
0x125d   : > { %7914 = vtanh.f32 %v5191_v55  ;;  %v4990_v31 = vpop.f32.mrf.mxu3  ;;  %v5269_v51 = vmul.f32 0.5, %v5242_v60  ;;  %v5292_v41 = vmul.f32 %v5265_v12, %v10427_v45  ;;  %v7280_v12 = vld [vmem:[%s10719_s11 + $0xd0] sm:$0xf0] }
0x125e   : > { %7916 = vtanh.f32 %v5192_v8  ;;  %v5163_v52 = vadd.f32 %v5136_v47, %v10475_v36  ;;  %v5270_v2 = vmul.f32 0.5, %v5243_v37  ;;  %v7294_v31 = vld [vmem:[%s10719_s11 + $0xe0] sm:$0xf] }
0x125f   : > { %v5573_v40 = vpop.f32.mrf.mxu0  ;;  %v5296_v9 = vmul.f32 %v5269_v51, %v10433_v10  ;;  %v5524_v10 = vadd.f32 %v7595_v0, %v10442_v42  ;;  %v7560_v51 = vld [vmem:[%s10719_s11 + $0xec] sm:$0xf0]  ;;  %v7561_v0 = vld [vmem:[%s10719_s11 + $0xf4] sm:$0xf0] }
0x1260   : > { %v7913_v58 = vpop.eup %7912  ;;  %v5190_v39 = vmul.f32 0.7978846, %v5163_v52  ;;  %v5297_v38 = vmul.f32 %v5270_v2, %v10437_v30  ;;  %v7295_v52 = vor.u32 %v7560_v51, %v7294_v31  ;;  %v7558_v2 = vld [vmem:[%s10719_s11 + $0xe4] sm:$0xf]  ;;  %v7545_v31 = vld [vmem:[%s10719_s11 + $0x74] sm:$0xf0] }
0x1261   : > { %v5311_v56 = vpack.c.bf16 %v5296_v9, %v5293_v25  ;;  %v5241_v18 = vadd.f32 1.0, %v7913_v58  ;;  %v7296_v9 = vld [vmem:[%s10719_s11 + $0xf0] sm:$0xf0]  ;;  %v7302_v58 = vld [vmem:[%s10719_s11 + $0xe8] sm:$0xf] }
0x1262   : > { %v5312_v28 = vpack.c.bf16 %v5297_v38, %v5294_v23  ;;  %7918 = vtanh.f32 %v5190_v39  ;;  %5814 = vmatpush.bf16.msrb.mxu1 %v7295_v52  ;;  %v7262_v39 = vld [vmem:[%s10719_s11 + $0xa0] sm:$0xf]  ;;  %v7552_v23 = vld [vmem:[%s10719_s11 + $0xac] sm:$0xf0]  ;;  %v7299_v38 = vor.u32 %v7558_v2, %v7296_v9  ;;  %v7559_v51 = vld [vmem:[%s10719_s11 + $0xec] sm:$0xf] }
0x1263   : > { %v7915_v34 = vpop.eup %7914  ;;  %5557 = vmatmul.bf16.gmra.mxu3 %v5311_v56  ;;  %v5268_v6 = vmul.f32 0.5, %v5241_v18  ;;  %v7303_v56 = vor.u32 %v7561_v0, %v7302_v58  ;;  %v7554_v18 = vld [vmem:[%s10719_s11 + $0xc4] sm:$0xf]  ;;  %v7541_v58 = vld [vmem:[%s10719_s11 + $0x54] sm:$0xf0] }
0x1264   : > { %v7917_v46 = vpop.eup %7916  ;;  %5582 = vmatmul.bf16.gmra.mxu0 %v5312_v28  ;;  %v5245_v35 = vadd.f32 1.0, %v7915_v34  ;;  %v7286_v34 = vld [vmem:[%s10719_s11 + $0xc8] sm:$0xf]  ;;  %v7557_v28 = vld [vmem:[%s10719_s11 + $0xd4] sm:$0xf0]  ;;  %5827 = vmatpush.bf16.msra.mxu2 %v7299_v38 }
0x1265   : > { %v5548_v1 = vpop.f32.mrf.mxu3  ;;  %v5295_v5 = vmul.f32 %v5268_v6, %v10451_v50  ;;  %v5246_v30 = vadd.f32 1.0, %v7917_v46  ;;  %5840 = vmatpush.bf16.msrb.mxu3 %v7303_v56  ;;  %v7283_v46 = vor.u32 %v7554_v18, %v7280_v12  ;;  %v7287_v6 = vor.u32 %v7557_v28, %v7286_v34  ;;  %v7538_v2 = vld [vmem:[%s10719_s11 + $0x44] sm:$0xf]  ;;  %v7555_v0 = vld [vmem:[%s10719_s11 + $0xcc] sm:$0xf] }
0x1266   : > { %v5549_v61 = vadd.f32 %v5548_v1, %v5524_v10  ;;  %v5272_v15 = vmul.f32 0.5, %v5245_v35  ;;  %v7263_v10 = vor.u32 %v7552_v23, %v7262_v39  ;;  %v7548_v35 = vld [vmem:[%s10719_s11 + $0x8c] sm:$0xf0]  ;;  %v7288_v39 = vld [vmem:[%s10719_s11 + $0xd8] sm:$0xf0] }
0x1267   : > { %v5575_v21 = vpop.f32.mrf.mxu0  ;;  %v5310_v17 = vpack.c.bf16 %v5295_v5, %v5292_v41  ;;  %v5273_v13 = vmul.f32 0.5, %v5246_v30  ;;  %v7246_v5 = vld [vmem:[%s10719_s11 + $0x80] sm:$0xf]  ;;  %v7291_v38 = vor.u32 %v7555_v0, %v7288_v39  ;;  %v7534_v56 = vld [vmem:[%s10719_s11 + $0x24] sm:$0xf] }
0x1268   : > { %v5574_v27 = vadd.f32 %v5573_v40, %v5549_v61  ;;  %v7919_v63 = vpop.eup %7918  ;;  %v5299_v22 = vmul.f32 %v5272_v15, %v10460_v32  ;;  %5828 = vmatpush.bf16.msra.mxu2 %v7283_v46  ;;  %v7247_v30 = vor.u32 %v7548_v35, %v7246_v5  ;;  %v7230_v21 = vld [vmem:[%s10719_s11 + $0x60] sm:$0xf]  ;;  %v7200_v18 = vld [vmem:[%s10719_s11 + $0x30] sm:$0xf0]  ;;  %v7206_v12 = vld [vmem:[%s10719_s11 + $0x28] sm:$0xf] }
0x1269   : > { %v5244_v26 = vadd.f32 1.0, %v7919_v63  ;;  %v5300_v45 = vmul.f32 %v5273_v13, %v10464_v29  ;;  %5841 = vmatpush.bf16.msrb.mxu3 %v7287_v6  ;;  %v7203_v34 = vor.u32 %v7534_v56, %v7200_v18  ;;  %v7537_v28 = vld [vmem:[%s10719_s11 + $0x34] sm:$0xf0]  ;;  %v7551_v46 = vld [vmem:[%s10719_s11 + $0xac] sm:$0xf] }
0x126a   : > { %v5589_v11 = vadd.f32 %v5574_v27, %v9872_v24  ;;  %v5314_v50 = vpack.c.bf16 %v5299_v22, %v5299_v22  ;;  %v7272_v6 = vld [vmem:[%s10719_s11 + $0xb8] sm:$0xf0]  ;;  %v7184_v5 = vld [vmem:[%s10719_s11 + $0x10] sm:$0xf0]  ;;  %v7190_v35 = vld [vmem:[%s10719_s11 + $0x8] sm:$0xf] }
0x126b   : > { %5532 = vmatmul.bf16.gmra.mxu2 %v5310_v17  ;;  %v5271_v20 = vmul.f32 0.5, %v5244_v26  ;;  %v5315_v62 = vpack.c.bf16 %v5300_v45, %v5300_v45  ;;  %v7544_v17 = vld [vmem:[%s10719_s11 + $0x6c] sm:$0xf0]  ;;  %v7214_v26 = vld [vmem:[%s10719_s11 + $0x40] sm:$0xf] }
0x126c   : > { %5590 = vadd.xlane.f32.xlu0 %v5589_v11  ;;  %v7231_v27 = vor.u32 %v7544_v17, %v7230_v21  ;;  %v7540_v45 = vld [vmem:[%s10719_s11 + $0x4c] sm:$0xf0]  ;;  %v7547_v21 = vld [vmem:[%s10719_s11 + $0x8c] sm:$0xf]  ;;  %v7256_v17 = vld [vmem:[%s10719_s11 + $0x98] sm:$0xf0] }
0x126d   : > { %v5550_v42 = vpop.f32.mrf.mxu3  ;;  %v5298_v19 = vmul.f32 %v5271_v20, %v10475_v36  ;;  %v7550_v20 = vld [vmem:[%s10719_s11 + $0xa4] sm:$0xf] }
0x126f   : > { %v5313_v33 = vpack.c.bf16 %v5298_v19, %v5298_v19  ;;  %v7270_v19 = vld [vmem:[%s10719_s11 + $0xa8] sm:$0xf] }
0x1273   : > { %5560 = vmatmul.bf16.gmra.mxu3 %v5314_v50  ;;  %v7215_v50 = vor.u32 %v7540_v45, %v7214_v26 }
0x1274   : > { %5585 = vmatmul.bf16.gmra.mxu0 %v5315_v62  ;;  %v7264_v62 = vld [vmem:[%s10719_s11 + $0xb0] sm:$0xf0] }
0x127b   : > { %5535 = vmatmul.bf16.gmra.mxu2 %v5313_v33  ;;  %v7267_v33 = vor.u32 %v7550_v20, %v7264_v62  ;;  %v7535_v20 = vld [vmem:[%s10719_s11 + $0x2c] sm:$0xf]  ;;  %v7208_v62 = vld [vmem:[%s10719_s11 + $0x38] sm:$0xf0] }
0x127d   : > { %5829 = vmatpush.bf16.msra.mxu2 %v7267_v33  ;;  %v7211_v33 = vor.u32 %v7535_v20, %v7208_v62 }
0x12c1   : > { %v5577_v16 = vpop.f32.mrf.mxu0 }
0x12c2   : > { %v7553_v16 = vld [vmem:[%s10719_s11 + $0xb4] sm:$0xf0] }
0x12c6   : > { %v5552_v24 = vpop.f32.mrf.mxu3 }
0x12c7   : > { %v7271_v24 = vor.u32 %v7553_v16, %v7270_v19  ;;  %v7531_v16 = vld [vmem:[%s10719_s11 + $0xc] sm:$0xf] }
0x12c9   : > { %v5578_v3 = vpop.f32.mrf.mxu0  ;;  %5842 = vmatpush.bf16.msrb.mxu3 %v7271_v24  ;;  %v7192_v24 = vld [vmem:[%s10719_s11 + $0x18] sm:$0xf0] }
0x12ca   : > { %v7198_v3 = vld [vmem:[%s10719_s11 + $0x20] sm:$0xf] }
0x12cc   : > { %v5527_v57 = vpop.f32.mrf.mxu2 }
0x12cd   : > { %v7536_v57 = vld [vmem:[%s10719_s11 + $0x2c] sm:$0xf0] }
0x12ce   : > { %v5553_v14 = vpop.f32.mrf.mxu3 }
0x12cf   : > { %v7199_v14 = vor.u32 %v7536_v57, %v7198_v3  ;;  %v7195_v3 = vor.u32 %v7531_v16, %v7192_v24 }
0x12d1   : > { %v5580_v53 = vpop.f32.mrf.mxu0 }
0x12d2   : > { %v7546_v53 = vld [vmem:[%s10719_s11 + $0x84] sm:$0xf] }
0x12d4   : > { %v5528_v7 = vpop.f32.mrf.mxu2 }
0x12d5   : > { %v7248_v7 = vld [vmem:[%s10719_s11 + $0x90] sm:$0xf0] }
0x12d6   : > { %v5555_v32 = vpop.f32.mrf.mxu3 }
0x12d7   : > { %v7254_v32 = vld [vmem:[%s10719_s11 + $0x88] sm:$0xf] }
0x12d9   : > { %v5581_v55 = vpop.f32.mrf.mxu0 }
0x12da   : > { %v7251_v55 = vor.u32 %v7546_v53, %v7248_v7 }
0x12dc   : > { %5830 = vmatpush.bf16.msra.mxu2 %v7251_v55 }
0x12de   : > { %v5530_v54 = vpop.f32.mrf.mxu2  ;;  %v5556_v29 = vpop.f32.mrf.mxu3 }
0x12df   : > { %v5591_v59 = vpop.xlane.xlu0 %5590  ;;  %v7549_v54 = vld [vmem:[%s10719_s11 + $0x94] sm:$0xf0] }
0x12e0   : > { %v5592_v8 = vmul.f32 0.010416667, %v5591_v59  ;;  %v7255_v29 = vor.u32 %v7549_v54, %v7254_v32  ;;  %v7182_v59 = vld [vmem:[%s10719_s11] sm:$0xf] }
0x12e1   : > { %v5583_v60 = vpop.f32.mrf.mxu0 }
0x12e2   : > { %v5593_v44 = vsub.f32 %v5589_v11, %v5592_v8  ;;  %v7532_v8 = vld [vmem:[%s10719_s11 + $0xc] sm:$0xf0]  ;;  %5843 = vmatpush.bf16.msrb.mxu3 %v7255_v29 }
0x12e3   : > { %v7183_v60 = vor.u32 %v7532_v8, %v7182_v59 }
0x12e4   : > { %v10500_v47 = vmul.f32 %v8097_v48, %v5593_v44  ;;  %v7556_v48 = vld [vmem:[%s10719_s11 + $0xcc] sm:$0xf0]  ;;  %v7542_v44 = vld [vmem:[%s10719_s11 + $0x64] sm:$0xf] }
0x12e5   : > { %v7279_v25 = vor.u32 %v7556_v48, %v7278_v4  ;;  %v7304_v4 = vld [vmem:[%s10719_s11 + $0xf8] sm:$0xf0] }
0x12e6   : > { %v5531_v36 = vpop.f32.mrf.mxu2  ;;  %v5558_v37 = vpop.f32.mrf.mxu3  ;;  %v5595_v49 = vmul.f32 %v10500_v47, %v10500_v47  ;;  %v7307_v48 = vor.u32 %v7559_v51, %v7304_v4 }
0x12e7   : > { %5815 = vmatpush.bf16.msrb.mxu1 %v7279_v25  ;;  %v7232_v36 = vld [vmem:[%s10719_s11 + $0x70] sm:$0xf0]  ;;  %v7238_v37 = vld [vmem:[%s10719_s11 + $0x68] sm:$0xf] }
0x12e8   : > { %5596 = vadd.xlane.f32.xlu1 %v5595_v49  ;;  %v7235_v49 = vor.u32 %v7542_v44, %v7232_v36  ;;  %v7239_v52 = vor.u32 %v7545_v31, %v7238_v37  ;;  %v7222_v25 = vld [vmem:[%s10719_s11 + $0x48] sm:$0xf]  ;;  %v5644_v36 = vld [vmem:[%s10720_s12] sm:$0xf] }
0x12e9   : > { %v5584_v40 = vpop.f32.mrf.mxu0  ;;  %v7223_v23 = vor.u32 %v7541_v58, %v7222_v25  ;;  %v5648_v31 = vperm.slane %v5644_v36, 2  ;;  %v5649_v4 = vperm.slane %v5644_v36, 3 }
0x12ea   : > { %5831 = vmatpush.bf16.msra.mxu2 %v7235_v49  ;;  %5844 = vmatpush.bf16.msrb.mxu3 %v7239_v52  ;;  %v7216_v40 = vld [vmem:[%s10719_s11 + $0x50] sm:$0xf0]  ;;  %v5647_v49 = vperm.slane %v5644_v36, 1 }
0x12eb   : > { %5816 = vmatpush.bf16.msrb.mxu1 %v7263_v10  ;;  %v7219_v9 = vor.u32 %v7538_v2, %v7216_v40  ;;  %v7207_v10 = vor.u32 %v7537_v28, %v7206_v12 }
0x12ee   : > { %v5533_v1 = vpop.f32.mrf.mxu2  ;;  %v5559_v41 = vpop.f32.mrf.mxu3  ;;  %5832 = vmatpush.bf16.msra.mxu2 %v7219_v9  ;;  %5845 = vmatpush.bf16.msrb.mxu3 %v7223_v23 }
0x12ef   : > { %5817 = vmatpush.bf16.msrb.mxu1 %v7247_v30  ;;  %v7275_v1 = vor.u32 %v7551_v46, %v7272_v6  ;;  %v7530_v41 = vld [vmem:[%s10719_s11 + $0x4] sm:$0xf]  ;;  %v7533_v30 = vld [vmem:[%s10719_s11 + $0x14] sm:$0xf0] }
0x12f1   : > { %v5586_v61 = vpop.f32.mrf.mxu0 }
0x12f2   : > { %5833 = vmatpush.bf16.msra.mxu2 %v7203_v34  ;;  %5846 = vmatpush.bf16.msrb.mxu3 %v7207_v10  ;;  %v7187_v61 = vor.u32 %v7530_v41, %v7184_v5 }
0x12f3   : > { %5818 = vmatpush.bf16.msrb.mxu1 %v7231_v27  ;;  %v7191_v27 = vor.u32 %v7533_v30, %v7190_v35 }
0x12f6   : > { %v5534_v15 = vpop.f32.mrf.mxu2  ;;  %v5561_v63 = vpop.f32.mrf.mxu3  ;;  %5834 = vmatpush.bf16.msra.mxu2 %v7187_v61  ;;  %5847 = vmatpush.bf16.msrb.mxu3 %v7191_v27 }
0x12f7   : > { %5819 = vmatpush.bf16.msrb.mxu1 %v7215_v50  ;;  %v7259_v15 = vor.u32 %v7547_v21, %v7256_v17  ;;  %v7543_v63 = vld [vmem:[%s10719_s11 + $0x6c] sm:$0xf] }
0x12f9   : > { %v5587_v11 = vpop.f32.mrf.mxu0 }
0x12fa   : > { %v7240_v11 = vld [vmem:[%s10719_s11 + $0x78] sm:$0xf0] }
0x12fb   : > { %5820 = vmatpush.bf16.msrb.mxu1 %v7199_v14 }
0x12fe   : > { %v5536_v13 = vpop.f32.mrf.mxu2  ;;  %v5562_v42 = vpop.f32.mrf.mxu3 }
0x12ff   : > { %5821 = vmatpush.bf16.msrb.mxu1 %v7183_v60  ;;  %v7243_v13 = vor.u32 %v7543_v63, %v7240_v11  ;;  %v7539_v42 = vld [vmem:[%s10719_s11 + $0x4c] sm:$0xf] }
0x1303   : > { %5853 = vmatpush.bf16.msra.mxu1 %v7307_v48 }
0x1306   : > { %v5537_v22 = vpop.f32.mrf.mxu2 }
0x1307   : > { %5854 = vmatpush.bf16.msra.mxu1 %v7291_v38  ;;  %v7224_v22 = vld [vmem:[%s10719_s11 + $0x58] sm:$0xf0] }
0x1308   : > { %v7227_v50 = vor.u32 %v7539_v42, %v7224_v22 }
0x130b   : > { %5855 = vmatpush.bf16.msra.mxu1 %v7275_v1 }
0x130f   : > { %5856 = vmatpush.bf16.msra.mxu1 %v7259_v15 }
0x1313   : > { %5857 = vmatpush.bf16.msra.mxu1 %v7243_v13 }
0x1317   : > { %5858 = vmatpush.bf16.msra.mxu1 %v7227_v50 }
0x131b   : > { %5859 = vmatpush.bf16.msra.mxu1 %v7211_v33 }
0x131f   : > { %5860 = vmatpush.bf16.msra.mxu1 %v7195_v3 }
0x135b   : > { %v5597_v26 = vpop.xlane.xlu1 %5596 }
0x135c   : > { %v5598_v45 = vmul.f32 0.010416667, %v5597_v26 }
0x135e   : > { %v5599_v19 = vadd.f32 1e-06, %v5598_v45 }
0x1360   : > { %7920 = vrsqrt.f32 %v5599_v19  ;;  %vm5606_vm2 = vweird.f32 %v5599_v19 }
0x1366   : > { %v7921_v57 = vpop.eup %7920 }
0x1367   : > { %v5601_v14 = vmul.f32 %v7921_v57, %v5599_v19  ;;  %vm5607_vm1 = vweird.f32 %v7921_v57 }
0x1368   : > { %vm5608_vm3 = vmor %vm5606_vm2, %vm5607_vm1 }
0x1369   : > { %v5602_v53 = vmul.f32 %v7921_v57, %v5601_v14 }
0x136b   : > { %v5603_v7 = vmul.f32 0.5, %v5602_v53 }
0x136d   : > { %v5604_v32 = vsub.f32 1.5, %v5603_v7 }
0x136f   : > { %v5605_v55 = vmul.f32 %v7921_v57, %v5604_v32 }
0x1371   : > { %v5609_v54 = vsel %vm5608_vm3, %v7921_v57, %v5605_v55 }
0x1372   : > { %v5610_v29 = vmul.f32 %v5609_v54, %v10500_v47  ;;  %v5646_v47 = vperm.slane %v5644_v36, 0 }
0x1374   : > { %v5611_v59 = vpack.c.bf16 %v5610_v29, %v5610_v29 }
0x1376   : > { %5822 = vmatmul.bf16.vlgmr.msrb.gmra.mxu1 %v5611_v59  ;;  %5835 = vmatmul.bf16.vlgmr.msra.gmra.mxu2 %v5611_v59 }
0x1377   : > { %5848 = vmatmul.bf16.vlgmr.msrb.gmra.mxu3 %v5611_v59 }
0x1386   : > { %5861 = vmatmul.bf16.vlgmr.msra.gmra.mxu1 %v5611_v59 }
0x13f3   : > { %v5823_v8 = vpop.f32.mrf.mxu1 }
0x13f4   : > { %v5824_v58 = vadd.f32 %v5823_v8, %v5646_v47 }
0x13f9   : > { %v5836_v60 = vpop.f32.mrf.mxu2 }
0x13fa   : > { %v5849_v44 = vpop.f32.mrf.mxu3  ;;  %v5837_v51 = vadd.f32 %v5836_v60, %v5647_v49 }
0x13fb   : > { %v5825_v37 = vpop.f32.mrf.mxu1  ;;  %v5850_v48 = vadd.f32 %v5849_v44, %v5648_v31 }
0x13fc   : > { %v5870_v25 = vrot.slane %v5837_v51, 7 }
0x13fd   : > { %v5871_v0 = vrot.slane %v5850_v48, 6 }
0x13fe   : > { %v5874_v23 = vsel %vm5873_vm4, %v5824_v58, %v5870_v25 }
0x1401   : > { %v5838_v52 = vpop.f32.mrf.mxu2 }
0x1402   : > { %v5851_v2 = vpop.f32.mrf.mxu3 }
0x1403   : > { %v5862_v40 = vpop.f32.mrf.mxu1 }
0x1404   : > { %v5863_v9 = vadd.f32 %v5862_v40, %v5649_v4 }
0x1406   : > { %v5872_v39 = vrot.slane %v5863_v9, 5 }
0x1408   : > { %v5876_v38 = vsel %vm5875_vm5, %v5871_v0, %v5872_v39 }
0x1409   : > { %v5878_v56 = vsel %vm5877_vm12, %v5874_v23, %v5876_v38 }
0x140a   : > { %5884 = vst.msk [vmem:[%s438_s24] sm:$0xf] %vm5882_vm13, %v5878_v56 }
0x140b   : > { %v5864_v18 = vpop.f32.mrf.mxu1 }
0x140c PF: > { %s23_s25 = sadd.s32 1, %s7928_s25  }
0x140d   : > { %p20_p4 = scmp.ge.s32.totalorder %s23_s25, 4  }
0x140f   :  { %22 = sbr.rel (!%p20_p4) target bundleno = 1 (0x1), region = 132 }

</bundles_post_ra>
